<compile_context>
chip_gen: v7x
topology: tpu7x:2x2x1
jax: 0.10.0
libtpu: 0.0.40
codegen_flags: <defaults>
</compile_context>

<pallas_src>
import functools

import jax
import jax.numpy as jnp
from jax import lax
from jax.experimental import pallas as pl
from jax.experimental.pallas import tpu as pltpu


VMEM_LIMIT_BYTES = 32 * 1024 * 1024


def _round_up(x, m):
    return ((x + m - 1) // m) * m


def _batch_tile(batch, tb_max):
    """Pick a batch tile (tb, padded_batch); tb_max must be a multiple of 8."""
    if batch <= tb_max:
        return batch, batch
    return tb_max, _round_up(batch, tb_max)


def _compiler_params():
    return pltpu.CompilerParams(
        dimension_semantics=("parallel",),
        vmem_limit_bytes=VMEM_LIMIT_BYTES,
    )


# ----------------------------------------------------------------------------
# Generic matmul + bias + activation kernel (M-tiled, bf16 MXU, f32 accumulate)
# ----------------------------------------------------------------------------
def _matmul_bias_act_kernel(x_ref, w_ref, b_ref, o_ref, *, activation):
    acc = jnp.dot(x_ref[...].astype(jnp.bfloat16), w_ref[...],
                  preferred_element_type=jnp.float32)
    acc = acc + b_ref[...]                      # b_ref is [1, N]
    if activation == "relu":
        acc = jnp.maximum(acc, 0.0)
    o_ref[...] = acc.astype(o_ref.dtype)


def matmul_bias_act(x, w_bf16, b2, activation="none", tm_max=512):
    """out = act(x @ w + b); grid over row tiles of x ("parallel")."""
    M, K = x.shape
    K2, N = w_bf16.shape
    assert K == K2
    # Keep the x tile comfortably inside VMEM (it is double-buffered).
    tm_cap = max(8, ((4 * 1024 * 1024) // (K * 4)) // 8 * 8)
    tm = min(tm_max, tm_cap, _round_up(M, 8))
    Mp = _round_up(M, tm)
    if Mp != M:
        x = jnp.pad(x, ((0, Mp - M), (0, 0)))
    out = pl.pallas_call(
        functools.partial(_matmul_bias_act_kernel, activation=activation),
        out_shape=jax.ShapeDtypeStruct((Mp, N), jnp.float32),
        grid=(Mp // tm,),
        in_specs=[
            pl.BlockSpec((tm, K), lambda i: (i, 0)),
            pl.BlockSpec((K, N), lambda i: (0, 0)),   # weights resident
            pl.BlockSpec((1, N), lambda i: (0, 0)),
        ],
        out_specs=pl.BlockSpec((tm, N), lambda i: (i, 0)),
        compiler_params=_compiler_params(),
    )(x.astype(jnp.float32), w_bf16, b2)
    return out[:M] if Mp != M else out


# ----------------------------------------------------------------------------
# Convolution = im2col (JAX glue) + Pallas matmul
# ----------------------------------------------------------------------------
def _im2col(x, kh, kw, sh, sw):
    B, C, H, W = x.shape
    Ho = (H - kh) // sh + 1
    Wo = (W - kw) // sw + 1
    cols = []
    for i in range(kh):
        for j in range(kw):
            cols.append(x[:, :, i:i + sh * (Ho - 1) + 1:sh, j:j + sw * (Wo - 1) + 1:sw])
    p = jnp.stack(cols, axis=2)                         # [B, C, kh*kw, Ho, Wo]
    p = p.reshape(B, C, kh, kw, Ho, Wo)
    p = jnp.transpose(p, (0, 4, 5, 1, 2, 3))            # [B, Ho, Wo, C, kh, kw]
    return p.reshape(B * Ho * Wo, C * kh * kw), Ho, Wo


def conv2d_nchw(x, wmat_bf16, bias2, kh, kw, stride, activation="none"):
    """PyTorch-semantics Conv2d (padding=0) with optional fused ReLU."""
    # TODO(synk): patches are still materialized in HBM (kh*kw amplification);
    # an in-kernel window-DMA patch extraction is left for future work.
    sh, sw = stride
    B = x.shape[0]
    cout = wmat_bf16.shape[1]
    patches, Ho, Wo = _im2col(x, kh, kw, sh, sw)
    out = matmul_bias_act(patches, wmat_bf16, bias2, activation)
    return out.reshape(B, Ho, Wo, cout).transpose(0, 3, 1, 2)    # NCHW


# ----------------------------------------------------------------------------
# DenseCapsule: squash + affine transform + dynamic routing in one kernel
# ----------------------------------------------------------------------------
def _squash(x, axis=-1):
    # torch: norm = ||x||; scale = norm^2 / (1 + norm^2) / (norm + 1e-8)
    sq = jnp.sum(x * x, axis=axis, keepdims=True)
    norm = jnp.sqrt(sq)
    scale = sq * pl.reciprocal((1.0 + sq) * (norm + 1e-8), approx=True)
    return scale * x


def _digitcaps_kernel(u_ref, w_ref, v_ref, len_ref, xhat_ref, *,
                      routings, n_classes, out_dim):
    J, O = n_classes, out_dim
    TB, I, _ = u_ref.shape

    # 1) PrimaryCapsule squash + capsule affine transform on the MXU:
    #      x_hat[b, i, j*O + o] = sum_d squash(u)[b, i, d] * w[i, d, j*O + o]
    #    Each input capsule is one 2-D bf16 matmul with f32 accumulation; the
    #    5-D broadcast intermediate of the naive formulation is never built.
    # TODO(synk): realistic in_num_caps needs an extra grid axis over I with
    # x_hat staged per tile instead of this full unroll.
    for i in range(I):
        x_i = _squash(u_ref[:, i, :], axis=-1)                   # [TB, D] f32
        xhat_ref[:, i, :] = jnp.dot(x_i.astype(jnp.bfloat16), w_ref[i],
                                    preferred_element_type=jnp.float32)

    # Per-class views of x_hat (static lane slices); routing math stays in f32.
    xh = [xhat_ref[:, :, j * O:(j + 1) * O] for j in range(J)]   # each [TB, I, O]

    # Routing prior; torch keeps b as [B, out_caps, in_caps] -> per-class [TB,1,I].
    b_coef = [jnp.zeros((TB, 1, I), jnp.float32) for _ in range(J)]
    v = [None] * J
    for r in range(routings):
        # c = softmax(b) over the out_num_caps axis (torch F.softmax(b, dim=1)).
        m = b_coef[0]
        for j in range(1, J):
            m = jnp.maximum(m, b_coef[j])
        e = [jnp.exp(b_coef[j] - m) for j in range(J)]
        denom = e[0]
        for j in range(1, J):
            denom = denom + e[j]
        inv = pl.reciprocal(denom, approx=True)
        for j in range(J):
            c_j = e[j] * inv                                     # [TB, 1, I]
            # s_j[b, o] = sum_i c_j[b, i] * x_hat_j[b, i, o]   (batched MXU dot)
            s_j = lax.dot_general(c_j, xh[j], (((2,), (1,)), ((0,), (0,))),
                                  preferred_element_type=jnp.float32)
            v[j] = _squash(s_j, axis=-1)                         # [TB, 1, O]
            if r < routings - 1:
                # b_j[b, i] += sum_o v_j[b, o] * x_hat_j[b, i, o]
                # (forward-identical to torch's use of x_hat.detach() here)
                b_coef[j] = b_coef[j] + lax.dot_general(
                    v[j], xh[j], (((2,), (2,)), ((0,), (0,))),
                    preferred_element_type=jnp.float32)          # [TB, 1, I]

    # Lane-dense outputs: routed capsules packed as [TB, J*O], lengths [TB, J].
    for j in range(J):
        vj = v[j][:, 0, :]                                       # [TB, O]
        v_ref[:, j * O:(j + 1) * O] = vj
        len_ref[:, j:j + 1] = jnp.sqrt(jnp.sum(vj * vj, axis=-1, keepdims=True))


def digitcaps_routing(u, w_route_bf16, routings, n_classes, out_dim):
    B, I, D = u.shape
    I2, D2, N = w_route_bf16.shape
    assert I == I2 and D == D2 and N == n_classes * out_dim
    tb, Bp = _batch_tile(B, 8)
    if Bp != B:
        u = jnp.pad(u, ((0, Bp - B), (0, 0), (0, 0)))
    v_flat, length = pl.pallas_call(
        functools.partial(_digitcaps_kernel, routings=routings,
                          n_classes=n_classes, out_dim=out_dim),
        out_shape=(jax.ShapeDtypeStruct((Bp, N), jnp.float32),
                   jax.ShapeDtypeStruct((Bp, n_classes), jnp.float32)),
        grid=(Bp // tb,),
        in_specs=[
            pl.BlockSpec((tb, I, D), lambda b: (b, 0, 0)),
            pl.BlockSpec((I, D, N), lambda b: (0, 0, 0)),        # weights resident
        ],
        out_specs=(pl.BlockSpec((tb, N), lambda b: (b, 0)),
                   pl.BlockSpec((tb, n_classes), lambda b: (b, 0))),
        scratch_shapes=[pltpu.VMEM((tb, I, N), jnp.float32)],    # x_hat staging
        compiler_params=_compiler_params(),
    )(u.astype(jnp.float32), w_route_bf16)
    if Bp != B:
        v_flat, length = v_flat[:B], length[:B]
    return v_flat, length


# ----------------------------------------------------------------------------
# Fused decoder MLP + regression head (all weights VMEM-resident)
# ----------------------------------------------------------------------------
def _decoder_kernel(x_ref, w1_ref, b1_ref, w2_ref, b2_ref, w3_ref, b3_ref,
                    wr_ref, br_ref, recon_ref, width_ref):
    h = jnp.dot(x_ref[...].astype(jnp.bfloat16), w1_ref[...],
                preferred_element_type=jnp.float32) + b1_ref[...]
    h = jnp.maximum(h, 0.0)
    h = jnp.dot(h.astype(jnp.bfloat16), w2_ref[...],
                preferred_element_type=jnp.float32) + b2_ref[...]
    h = jnp.maximum(h, 0.0)
    r = jnp.dot(h.astype(jnp.bfloat16), w3_ref[...],
                preferred_element_type=jnp.float32) + b3_ref[...]
    recon_ref[...] = r
    width_ref[...] = jnp.dot(r.astype(jnp.bfloat16), wr_ref[...],
                             preferred_element_type=jnp.float32) + br_ref[...]


def decoder_forward(masked, prep):
    B, F = masked.shape
    tb, Bp = _batch_tile(B, 128)
    if Bp != B:
        masked = jnp.pad(masked, ((0, Bp - B), (0, 0)))
    w1, b1 = prep["dec1_w"], prep["dec1_b"]
    w2, b2 = prep["dec2_w"], prep["dec2_b"]
    w3, b3 = prep["dec3_w"], prep["dec3_b"]
    wr, br = prep["reg_w"], prep["reg_b"]
    n_rec = w3.shape[1]

    def resident(shape):
        return pl.BlockSpec(shape, lambda i: (0, 0))

    recon, width = pl.pallas_call(
        _decoder_kernel,
        out_shape=(jax.ShapeDtypeStruct((Bp, n_rec), jnp.float32),
                   jax.ShapeDtypeStruct((Bp, 1), jnp.float32)),
        grid=(Bp // tb,),
        in_specs=[
            pl.BlockSpec((tb, F), lambda i: (i, 0)),
            resident(w1.shape), resident(b1.shape),
            resident(w2.shape), resident(b2.shape),
            resident(w3.shape), resident(b3.shape),
            resident(wr.shape), resident(br.shape),
        ],
        out_specs=(pl.BlockSpec((tb, n_rec), lambda i: (i, 0)),
                   pl.BlockSpec((tb, 1), lambda i: (i, 0))),
        compiler_params=_compiler_params(),
    )(masked.astype(jnp.float32), w1, b1, w2, b2, w3, b3, wr, br)
    if Bp != B:
        recon, width = recon[:B], width[:B]
    return recon, width


# ----------------------------------------------------------------------------
# CapsuleNet parameters + forward
# ----------------------------------------------------------------------------
def init_params(key, in_channels, conv_channels, classes, in_num_caps, H, W):
    ks = jax.random.split(key, 9)

    def normal(k, shape, scale):
        return scale * jax.random.normal(k, shape, jnp.float32)

    return {
        "conv1_w": normal(ks[0], (conv_channels, in_channels, 9, 9), 0.05),
        "conv1_b": normal(ks[1], (conv_channels,), 0.05),
        "prim_w": normal(ks[2], (conv_channels, conv_channels, 9, 9), 0.02),
        "prim_b": normal(ks[3], (conv_channels,), 0.02),
        # DenseCapsule (affine='param'): 0.01 * randn(out_num, in_num, out_dim, in_dim)
        "digit_w": 0.01 * jax.random.normal(ks[4], (classes, in_num_caps, 16, 8), jnp.float32),
        "dec1_w": normal(ks[5], (16 * classes, 512), 0.05),
        "dec1_b": jnp.zeros((512,), jnp.float32),
        "dec2_w": normal(ks[6], (512, 1024), 0.05),
        "dec2_b": jnp.zeros((1024,), jnp.float32),
        "dec3_w": normal(ks[7], (1024, 3 * H * W), 0.05),
        "dec3_b": jnp.zeros((3 * H * W,), jnp.float32),
        "reg_w": normal(ks[8], (3 * H * W, 1), 0.05),
        "reg_b": jnp.zeros((1,), jnp.float32),
    }


def prepare_params(params):
    """One-time weight re-layout (done at init, not per forward)."""
    def conv_mat(w):
        cout = w.shape[0]
        return w.reshape(cout, -1).T.astype(jnp.bfloat16)        # [Cin*kh*kw, Cout]

    def bias2(b):
        return b.reshape(1, -1).astype(jnp.float32)

    digit_w = params["digit_w"]                                   # [J, I, O, D]
    J, I, O, D = digit_w.shape
    w_route = (jnp.transpose(digit_w, (1, 3, 0, 2))
               .reshape(I, D, J * O).astype(jnp.bfloat16))        # [I, D, J*O]

    return {
        "conv1_wmat": conv_mat(params["conv1_w"]), "conv1_b": bias2(params["conv1_b"]),
        "prim_wmat": conv_mat(params["prim_w"]), "prim_b": bias2(params["prim_b"]),
        "w_route": w_route,
        "dec1_w": params["dec1_w"].astype(jnp.bfloat16), "dec1_b": bias2(params["dec1_b"]),
        "dec2_w": params["dec2_w"].astype(jnp.bfloat16), "dec2_b": bias2(params["dec2_b"]),
        "dec3_w": params["dec3_w"].astype(jnp.bfloat16), "dec3_b": bias2(params["dec3_b"]),
        "reg_w": params["reg_w"].astype(jnp.bfloat16), "reg_b": bias2(params["reg_b"]),
    }


def capsule_net_forward(prep, x, classes, routings, out_dim_caps=16):
    B = x.shape[0]
    # conv1 + ReLU (fused in the matmul kernel)
    h = conv2d_nchw(x, prep["conv1_wmat"], prep["conv1_b"], 9, 9, (1, 1), "relu")
    # PrimaryCapsule conv (9x9, stride 2); the squash is fused into the routing kernel
    h = conv2d_nchw(h, prep["prim_wmat"], prep["prim_b"], 9, 9, (2, 2), "none")
    u = h.reshape(B, -1, 8)                                       # [B, in_num_caps, 8]

    # DenseCapsule: squash + affine transform + dynamic routing in one kernel
    v_flat, length = digitcaps_routing(u, prep["w_route"], routings,
                                       classes, out_dim_caps)
    v = v_flat.reshape(B, classes, out_dim_caps)

    # y = one-hot(argmax length)  (mirrors the scatter_ in torch)
    idx = jnp.argmax(length, axis=1)
    y = jax.nn.one_hot(idx, classes, dtype=jnp.float32)
    masked = (v * y[:, :, None]).reshape(B, classes * out_dim_caps)

    # Fused decoder MLP + regression head (single Pallas kernel)
    recon, width = decoder_forward(masked, prep)
    return length, recon, width


if __name__ == "__main__":
    key = jax.random.PRNGKey(0)

    # Small shapes consistent with the module (channels downsized from 8*32=256).
    B = 2
    in_channels, H, W = 1, 20, 20
    conv_channels = 32
    classes = 4
    routings = 3

    H1, W1 = H - 9 + 1, W - 9 + 1                  # after conv1 (9x9, stride 1)
    H2, W2 = (H1 - 9) // 2 + 1, (W1 - 9) // 2 + 1  # after primary caps (9x9, stride 2)
    in_num_caps = conv_channels * H2 * W2 // 8

    kp, kx = jax.random.split(key)
    params = init_params(kp, in_channels, conv_channels, classes, in_num_caps, H, W)
    prep = prepare_params(params)
    x = jax.random.normal(kx, (B, in_channels, H, W), jnp.float32)

    fwd = jax.jit(functools.partial(capsule_net_forward,
                                    classes=classes, routings=routings))
    length, recon, width = fwd(prep, x)
    jax.block_until_ready((length, recon, width))

    assert length.shape == (B, classes)
    assert recon.shape == (B, 3 * H * W)
    assert width.shape == (B, 1)
    assert bool(jnp.all(jnp.isfinite(length)))
    assert bool(jnp.all(jnp.isfinite(recon)))
    assert bool(jnp.all(jnp.isfinite(width)))
    print("KERNEL_OK")
</pallas_src>

<mosaic_0001>
module attributes {stable_mosaic.version = 11 : i64} {
  func.func @_matmul_bias_act_kernel(%arg0: i32, %arg1: memref<288x81xf32, #tpu.memory_space<vmem>>, %arg2: memref<81x32xbf16, #tpu.memory_space<vmem>>, %arg3: memref<1x32xf32, #tpu.memory_space<vmem>>, %arg4: memref<288x32xf32, #tpu.memory_space<vmem>>) attributes {dimension_semantics = [#tpu.dimension_semantics<parallel>], iteration_bounds = array<i64: 1>, scalar_prefetch = 0 : i64, scratch_operands = 0 : i64, tpu.core_type = #tpu.core_type<tc>, window_params = [{transform_indices = @transform_0, window_bounds = array<i64: 288, 81>}, {pipeline_mode = #tpu.pipeline_mode<synchronous>, transform_indices = @transform_1, window_bounds = array<i64: 81, 32>}, {pipeline_mode = #tpu.pipeline_mode<synchronous>, transform_indices = @transform_2, window_bounds = array<i64: 1, 32>}, {transform_indices = @transform_3, window_bounds = array<i64: 288, 32>}]} {
    %c0 = arith.constant 0 : index
    %c0_0 = arith.constant 0 : index
    %0 = vector.load %arg1[%c0, %c0_0] : memref<288x81xf32, #tpu.memory_space<vmem>>, vector<288x81xf32>
    %1 = arith.truncf %0 : vector<288x81xf32> to vector<288x81xbf16>
    %c0_1 = arith.constant 0 : index
    %c0_2 = arith.constant 0 : index
    %2 = vector.load %arg2[%c0_1, %c0_2] : memref<81x32xbf16, #tpu.memory_space<vmem>>, vector<81x32xbf16>
    %cst = arith.constant dense<0.000000e+00> : vector<288x32xf32>
    %3 = tpu.matmul %1, %2, %cst {dimension_numbers = #tpu.dot_dimension_numbers<[1], [0], [0], [1], [0, 0, 1, 1], [], []>} : vector<288x81xbf16>, vector<81x32xbf16>, vector<288x32xf32> -> vector<288x32xf32>
    %c0_3 = arith.constant 0 : index
    %c0_4 = arith.constant 0 : index
    %4 = vector.load %arg3[%c0_3, %c0_4] : memref<1x32xf32, #tpu.memory_space<vmem>>, vector<1x32xf32>
    %5 = vector.broadcast %4 : vector<1x32xf32> to vector<288x32xf32>
    %6 = arith.addf %3, %5 : vector<288x32xf32>
    %cst_5 = arith.constant 0.000000e+00 : f32
    %7 = vector.broadcast %cst_5 : f32 to vector<288x32xf32>
    %8 = arith.maximumf %6, %7 : vector<288x32xf32>
    %c0_6 = arith.constant 0 : index
    %c0_7 = arith.constant 0 : index
    %9 = vector.load %arg4[%c0_6, %c0_7] : memref<288x32xf32, #tpu.memory_space<vmem>>, vector<288x32xf32>
    tpu.vector_store %arg4[%c0_6, %c0_7], %8 {strides = array<i32>} : memref<288x32xf32, #tpu.memory_space<vmem>>, vector<288x32xf32>,
    return
  }
  func.func @transform_0(%arg0: i32) -> (i32, i32) {
    %c0_i32 = arith.constant 0 : i32
    %c0_i32_0 = arith.constant 0 : i32
    return %arg0, %c0_i32 : i32, i32
  }
  func.func @transform_1(%arg0: i32) -> (i32, i32) {
    %c0_i32 = arith.constant 0 : i32
    %c0_i32_0 = arith.constant 0 : i32
    %c0_i32_1 = arith.constant 0 : i32
    return %c0_i32, %c0_i32_0 : i32, i32
  }
  func.func @transform_2(%arg0: i32) -> (i32, i32) {
    %c0_i32 = arith.constant 0 : i32
    %c0_i32_0 = arith.constant 0 : i32
    %c0_i32_1 = arith.constant 0 : i32
    return %c0_i32, %c0_i32_0 : i32, i32
  }
  func.func @transform_3(%arg0: i32) -> (i32, i32) {
    %c0_i32 = arith.constant 0 : i32
    %c0_i32_0 = arith.constant 0 : i32
    return %arg0, %c0_i32 : i32, i32
  }
}

module attributes {stable_mosaic.version = 11 : i64} {
  func.func @_matmul_bias_act_kernel(%arg0: i32, %arg1: memref<8x2592xf32, #tpu.memory_space<vmem>>, %arg2: memref<2592x32xbf16, #tpu.memory_space<vmem>>, %arg3: memref<1x32xf32, #tpu.memory_space<vmem>>, %arg4: memref<8x32xf32, #tpu.memory_space<vmem>>) attributes {dimension_semantics = [#tpu.dimension_semantics<parallel>], iteration_bounds = array<i64: 1>, scalar_prefetch = 0 : i64, scratch_operands = 0 : i64, tpu.core_type = #tpu.core_type<tc>, window_params = [{transform_indices = @transform_0, window_bounds = array<i64: 8, 2592>}, {pipeline_mode = #tpu.pipeline_mode<synchronous>, transform_indices = @transform_1, window_bounds = array<i64: 2592, 32>}, {pipeline_mode = #tpu.pipeline_mode<synchronous>, transform_indices = @transform_2, window_bounds = array<i64: 1, 32>}, {transform_indices = @transform_3, window_bounds = array<i64: 8, 32>}]} {
    %c0 = arith.constant 0 : index
    %c0_0 = arith.constant 0 : index
    %0 = vector.load %arg1[%c0, %c0_0] : memref<8x2592xf32, #tpu.memory_space<vmem>>, vector<8x2592xf32>
    %1 = arith.truncf %0 : vector<8x2592xf32> to vector<8x2592xbf16>
    %c0_1 = arith.constant 0 : index
    %c0_2 = arith.constant 0 : index
    %2 = vector.load %arg2[%c0_1, %c0_2] : memref<2592x32xbf16, #tpu.memory_space<vmem>>, vector<2592x32xbf16>
    %cst = arith.constant dense<0.000000e+00> : vector<8x32xf32>
    %3 = tpu.matmul %1, %2, %cst {dimension_numbers = #tpu.dot_dimension_numbers<[1], [0], [0], [1], [0, 0, 1, 1], [], []>} : vector<8x2592xbf16>, vector<2592x32xbf16>, vector<8x32xf32> -> vector<8x32xf32>
    %c0_3 = arith.constant 0 : index
    %c0_4 = arith.constant 0 : index
    %4 = vector.load %arg3[%c0_3, %c0_4] : memref<1x32xf32, #tpu.memory_space<vmem>>, vector<1x32xf32>
    %5 = vector.broadcast %4 : vector<1x32xf32> to vector<8x32xf32>
    %6 = arith.addf %3, %5 : vector<8x32xf32>
    %c0_5 = arith.constant 0 : index
    %c0_6 = arith.constant 0 : index
    %7 = vector.load %arg4[%c0_5, %c0_6] : memref<8x32xf32, #tpu.memory_space<vmem>>, vector<8x32xf32>
    tpu.vector_store %arg4[%c0_5, %c0_6], %6 {strides = array<i32>} : memref<8x32xf32, #tpu.memory_space<vmem>>, vector<8x32xf32>,
    return
  }
  func.func @transform_0(%arg0: i32) -> (i32, i32) {
    %c0_i32 = arith.constant 0 : i32
    %c0_i32_0 = arith.constant 0 : i32
    return %arg0, %c0_i32 : i32, i32
  }
  func.func @transform_1(%arg0: i32) -> (i32, i32) {
    %c0_i32 = arith.constant 0 : i32
    %c0_i32_0 = arith.constant 0 : i32
    %c0_i32_1 = arith.constant 0 : i32
    return %c0_i32, %c0_i32_0 : i32, i32
  }
  func.func @transform_2(%arg0: i32) -> (i32, i32) {
    %c0_i32 = arith.constant 0 : i32
    %c0_i32_0 = arith.constant 0 : i32
    %c0_i32_1 = arith.constant 0 : i32
    return %c0_i32, %c0_i32_0 : i32, i32
  }
  func.func @transform_3(%arg0: i32) -> (i32, i32) {
    %c0_i32 = arith.constant 0 : i32
    %c0_i32_0 = arith.constant 0 : i32
    return %arg0, %c0_i32 : i32, i32
  }
}

module attributes {stable_mosaic.version = 11 : i64} {
  func.func @_digitcaps_kernel(%arg0: i32, %arg1: memref<2x16x8xf32, #tpu.memory_space<vmem>>, %arg2: memref<16x8x64xbf16, #tpu.memory_space<vmem>>, %arg3: memref<2x64xf32, #tpu.memory_space<vmem>>, %arg4: memref<2x4xf32, #tpu.memory_space<vmem>>, %arg5: memref<2x16x64xf32, #tpu.memory_space<vmem>>) attributes {dimension_semantics = [#tpu.dimension_semantics<parallel>], iteration_bounds = array<i64: 1>, scalar_prefetch = 0 : i64, scratch_operands = 1 : i64, tpu.core_type = #tpu.core_type<tc>, window_params = [{transform_indices = @transform_0, window_bounds = array<i64: 2, 16, 8>}, {pipeline_mode = #tpu.pipeline_mode<synchronous>, transform_indices = @transform_1, window_bounds = array<i64: 16, 8, 64>}, {transform_indices = @transform_2, window_bounds = array<i64: 2, 64>}, {transform_indices = @transform_3, window_bounds = array<i64: 2, 4>}]} {
    %c0 = arith.constant 0 : index
    %c0_0 = arith.constant 0 : index
    %c0_1 = arith.constant 0 : index
    %0 = vector.load %arg1[%c0, %c0_0, %c0_1] : memref<2x16x8xf32, #tpu.memory_space<vmem>>, vector<2x1x8xf32>
    %1 = vector.shape_cast %0 : vector<2x1x8xf32> to vector<2x8xf32>
    %2 = arith.mulf %1, %1 : vector<2x8xf32>
    %cst = arith.constant dense<0.000000e+00> : vector<2xf32>
    %3 = vector.multi_reduction <add>, %2, %cst [1] : vector<2x8xf32> to vector<2xf32>
    %4 = vector.shape_cast %3 : vector<2xf32> to vector<2x1xf32>
    %5 = math.sqrt %4 : vector<2x1xf32>
    %cst_2 = arith.constant 1.000000e+00 : f32
    %6 = vector.broadcast %cst_2 : f32 to vector<2x1xf32>
    %7 = arith.addf %6, %4 : vector<2x1xf32>
    %cst_3 = arith.constant 9.99999993E-9 : f32
    %8 = vector.broadcast %cst_3 : f32 to vector<2x1xf32>
    %9 = arith.addf %5, %8 : vector<2x1xf32>
    %10 = arith.mulf %7, %9 : vector<2x1xf32>
    %11 = tpu.reciprocal %10 {approx = true} : vector<2x1xf32> -> vector<2x1xf32>
    %12 = arith.mulf %4, %11 : vector<2x1xf32>
    %13 = vector.broadcast %12 : vector<2x1xf32> to vector<2x8xf32>
    %14 = arith.mulf %13, %1 : vector<2x8xf32>
    %15 = arith.truncf %14 : vector<2x8xf32> to vector<2x8xbf16>
    %c0_4 = arith.constant 0 : index
    %c0_5 = arith.constant 0 : index
    %c0_6 = arith.constant 0 : index
    %16 = vector.load %arg2[%c0_4, %c0_5, %c0_6] : memref<16x8x64xbf16, #tpu.memory_space<vmem>>, vector<1x8x64xbf16>
    %17 = vector.shape_cast %16 : vector<1x8x64xbf16> to vector<8x64xbf16>
    %cst_7 = arith.constant dense<0.000000e+00> : vector<2x64xf32>
    %18 = tpu.matmul %15, %17, %cst_7 {dimension_numbers = #tpu.dot_dimension_numbers<[1], [0], [0], [1], [0, 0, 1, 1], [], []>} : vector<2x8xbf16>, vector<8x64xbf16>, vector<2x64xf32> -> vector<2x64xf32>
    %c0_8 = arith.constant 0 : index
    %c0_9 = arith.constant 0 : index
    %c0_10 = arith.constant 0 : index
    %19 = vector.load %arg5[%c0_8, %c0_9, %c0_10] : memref<2x16x64xf32, #tpu.memory_space<vmem>>, vector<2x1x64xf32>
    %20 = vector.shape_cast %19 : vector<2x1x64xf32> to vector<2x64xf32>
    %21 = vector.shape_cast %18 : vector<2x64xf32> to vector<2x1x64xf32>
    tpu.vector_store %arg5[%c0_8, %c0_9, %c0_10], %21 {strides = array<i32>} : memref<2x16x64xf32, #tpu.memory_space<vmem>>, vector<2x1x64xf32>,
    %c0_11 = arith.constant 0 : index
    %c1 = arith.constant 1 : index
    %c0_12 = arith.constant 0 : index
    %22 = vector.load %arg1[%c0_11, %c1, %c0_12] : memref<2x16x8xf32, #tpu.memory_space<vmem>>, vector<2x1x8xf32>
    %23 = vector.shape_cast %22 : vector<2x1x8xf32> to vector<2x8xf32>
    %24 = arith.mulf %23, %23 : vector<2x8xf32>
    %cst_13 = arith.constant dense<0.000000e+00> : vector<2xf32>
    %25 = vector.multi_reduction <add>, %24, %cst_13 [1] : vector<2x8xf32> to vector<2xf32>
    %26 = vector.shape_cast %25 : vector<2xf32> to vector<2x1xf32>
    %27 = math.sqrt %26 : vector<2x1xf32>
    %cst_14 = arith.constant 1.000000e+00 : f32
    %28 = vector.broadcast %cst_14 : f32 to vector<2x1xf32>
    %29 = arith.addf %28, %26 : vector<2x1xf32>
    %cst_15 = arith.constant 9.99999993E-9 : f32
    %30 = vector.broadcast %cst_15 : f32 to vector<2x1xf32>
    %31 = arith.addf %27, %30 : vector<2x1xf32>
    %32 = arith.mulf %29, %31 : vector<2x1xf32>
    %33 = tpu.reciprocal %32 {approx = true} : vector<2x1xf32> -> vector<2x1xf32>
    %34 = arith.mulf %26, %33 : vector<2x1xf32>
    %35 = vector.broadcast %34 : vector<2x1xf32> to vector<2x8xf32>
    %36 = arith.mulf %35, %23 : vector<2x8xf32>
    %37 = arith.truncf %36 : vector<2x8xf32> to vector<2x8xbf16>
    %c1_16 = arith.constant 1 : index
    %c0_17 = arith.constant 0 : index
    %c0_18 = arith.constant 0 : index
    %38 = vector.load %arg2[%c1_16, %c0_17, %c0_18] : memref<16x8x64xbf16, #tpu.memory_space<vmem>>, vector<1x8x64xbf16>
    %39 = vector.shape_cast %38 : vector<1x8x64xbf16> to vector<8x64xbf16>
    %cst_19 = arith.constant dense<0.000000e+00> : vector<2x64xf32>
    %40 = tpu.matmul %37, %39, %cst_19 {dimension_numbers = #tpu.dot_dimension_numbers<[1], [0], [0], [1], [0, 0, 1, 1], [], []>} : vector<2x8xbf16>, vector<8x64xbf16>, vector<2x64xf32> -> vector<2x64xf32>
    %c0_20 = arith.constant 0 : index
    %c1_21 = arith.constant 1 : index
    %c0_22 = arith.constant 0 : index
    %41 = vector.load %arg5[%c0_20, %c1_21, %c0_22] : memref<2x16x64xf32, #tpu.memory_space<vmem>>, vector<2x1x64xf32>
    %42 = vector.shape_cast %41 : vector<2x1x64xf32> to vector<2x64xf32>
    %43 = vector.shape_cast %40 : vector<2x64xf32> to vector<2x1x64xf32>
    tpu.vector_store %arg5[%c0_20, %c1_21, %c0_22], %43 {strides = array<i32>} : memref<2x16x64xf32, #tpu.memory_space<vmem>>, vector<2x1x64xf32>,
    %c0_23 = arith.constant 0 : index
    %c2 = arith.constant 2 : index
    %c0_24 = arith.constant 0 : index
    %44 = vector.load %arg1[%c0_23, %c2, %c0_24] : memref<2x16x8xf32, #tpu.memory_space<vmem>>, vector<2x1x8xf32>
    %45 = vector.shape_cast %44 : vector<2x1x8xf32> to vector<2x8xf32>
    %46 = arith.mulf %45, %45 : vector<2x8xf32>
    %cst_25 = arith.constant dense<0.000000e+00> : vector<2xf32>
    %47 = vector.multi_reduction <add>, %46, %cst_25 [1] : vector<2x8xf32> to vector<2xf32>
    %48 = vector.shape_cast %47 : vector<2xf32> to vector<2x1xf32>
    %49 = math.sqrt %48 : vector<2x1xf32>
    %cst_26 = arith.constant 1.000000e+00 : f32
    %50 = vector.broadcast %cst_26 : f32 to vector<2x1xf32>
    %51 = arith.addf %50, %48 : vector<2x1xf32>
    %cst_27 = arith.constant 9.99999993E-9 : f32
    %52 = vector.broadcast %cst_27 : f32 to vector<2x1xf32>
    %53 = arith.addf %49, %52 : vector<2x1xf32>
    %54 = arith.mulf %51, %53 : vector<2x1xf32>
    %55 = tpu.reciprocal %54 {approx = true} : vector<2x1xf32> -> vector<2x1xf32>
    %56 = arith.mulf %48, %55 : vector<2x1xf32>
    %57 = vector.broadcast %56 : vector<2x1xf32> to vector<2x8xf32>
    %58 = arith.mulf %57, %45 : vector<2x8xf32>
    %59 = arith.truncf %58 : vector<2x8xf32> to vector<2x8xbf16>
    %c2_28 = arith.constant 2 : index
    %c0_29 = arith.constant 0 : index
    %c0_30 = arith.constant 0 : index
    %60 = vector.load %arg2[%c2_28, %c0_29, %c0_30] : memref<16x8x64xbf16, #tpu.memory_space<vmem>>, vector<1x8x64xbf16>
    %61 = vector.shape_cast %60 : vector<1x8x64xbf16> to vector<8x64xbf16>
    %cst_31 = arith.constant dense<0.000000e+00> : vector<2x64xf32>
    %62 = tpu.matmul %59, %61, %cst_31 {dimension_numbers = #tpu.dot_dimension_numbers<[1], [0], [0], [1], [0, 0, 1, 1], [], []>} : vector<2x8xbf16>, vector<8x64xbf16>, vector<2x64xf32> -> vector<2x64xf32>
    %c0_32 = arith.constant 0 : index
    %c2_33 = arith.constant 2 : index
    %c0_34 = arith.constant 0 : index
    %63 = vector.load %arg5[%c0_32, %c2_33, %c0_34] : memref<2x16x64xf32, #tpu.memory_space<vmem>>, vector<2x1x64xf32>
    %64 = vector.shape_cast %63 : vector<2x1x64xf32> to vector<2x64xf32>
    %65 = vector.shape_cast %62 : vector<2x64xf32> to vector<2x1x64xf32>
    tpu.vector_store %arg5[%c0_32, %c2_33, %c0_34], %65 {strides = array<i32>} : memref<2x16x64xf32, #tpu.memory_space<vmem>>, vector<2x1x64xf32>,
    %c0_35 = arith.constant 0 : index
    %c3 = arith.constant 3 : index
    %c0_36 = arith.constant 0 : index
    %66 = vector.load %arg1[%c0_35, %c3, %c0_36] : memref<2x16x8xf32, #tpu.memory_space<vmem>>, vector<2x1x8xf32>
    %67 = vector.shape_cast %66 : vector<2x1x8xf32> to vector<2x8xf32>
    %68 = arith.mulf %67, %67 : vector<2x8xf32>
    %cst_37 = arith.constant dense<0.000000e+00> : vector<2xf32>
    %69 = vector.multi_reduction <add>, %68, %cst_37 [1] : vector<2x8xf32> to vector<2xf32>
    %70 = vector.shape_cast %69 : vector<2xf32> to vector<2x1xf32>
    %71 = math.sqrt %70 : vector<2x1xf32>
    %cst_38 = arith.constant 1.000000e+00 : f32
    %72 = vector.broadcast %cst_38 : f32 to vector<2x1xf32>
    %73 = arith.addf %72, %70 : vector<2x1xf32>
    %cst_39 = arith.constant 9.99999993E-9 : f32
    %74 = vector.broadcast %cst_39 : f32 to vector<2x1xf32>
    %75 = arith.addf %71, %74 : vector<2x1xf32>
    %76 = arith.mulf %73, %75 : vector<2x1xf32>
    %77 = tpu.reciprocal %76 {approx = true} : vector<2x1xf32> -> vector<2x1xf32>
    %78 = arith.mulf %70, %77 : vector<2x1xf32>
    %79 = vector.broadcast %78 : vector<2x1xf32> to vector<2x8xf32>
    %80 = arith.mulf %79, %67 : vector<2x8xf32>
    %81 = arith.truncf %80 : vector<2x8xf32> to vector<2x8xbf16>
    %c3_40 = arith.constant 3 : index
    %c0_41 = arith.constant 0 : index
    %c0_42 = arith.constant 0 : index
    %82 = vector.load %arg2[%c3_40, %c0_41, %c0_42] : memref<16x8x64xbf16, #tpu.memory_space<vmem>>, vector<1x8x64xbf16>
    %83 = vector.shape_cast %82 : vector<1x8x64xbf16> to vector<8x64xbf16>
    %cst_43 = arith.constant dense<0.000000e+00> : vector<2x64xf32>
    %84 = tpu.matmul %81, %83, %cst_43 {dimension_numbers = #tpu.dot_dimension_numbers<[1], [0], [0], [1], [0, 0, 1, 1], [], []>} : vector<2x8xbf16>, vector<8x64xbf16>, vector<2x64xf32> -> vector<2x64xf32>
    %c0_44 = arith.constant 0 : index
    %c3_45 = arith.constant 3 : index
    %c0_46 = arith.constant 0 : index
    %85 = vector.load %arg5[%c0_44, %c3_45, %c0_46] : memref<2x16x64xf32, #tpu.memory_space<vmem>>, vector<2x1x64xf32>
    %86 = vector.shape_cast %85 : vector<2x1x64xf32> to vector<2x64xf32>
    %87 = vector.shape_cast %84 : vector<2x64xf32> to vector<2x1x64xf32>
    tpu.vector_store %arg5[%c0_44, %c3_45, %c0_46], %87 {strides = array<i32>} : memref<2x16x64xf32, #tpu.memory_space<vmem>>, vector<2x1x64xf32>,
    %c0_47 = arith.constant 0 : index
    %c4 = arith.constant 4 : index
    %c0_48 = arith.constant 0 : index
    %88 = vector.load %arg1[%c0_47, %c4, %c0_48] : memref<2x16x8xf32, #tpu.memory_space<vmem>>, vector<2x1x8xf32>
    %89 = vector.shape_cast %88 : vector<2x1x8xf32> to vector<2x8xf32>
    %90 = arith.mulf %89, %89 : vector<2x8xf32>
    %cst_49 = arith.constant dense<0.000000e+00> : vector<2xf32>
    %91 = vector.multi_reduction <add>, %90, %cst_49 [1] : vector<2x8xf32> to vector<2xf32>
    %92 = vector.shape_cast %91 : vector<2xf32> to vector<2x1xf32>
    %93 = math.sqrt %92 : vector<2x1xf32>
    %cst_50 = arith.constant 1.000000e+00 : f32
    %94 = vector.broadcast %cst_50 : f32 to vector<2x1xf32>
    %95 = arith.addf %94, %92 : vector<2x1xf32>
    %cst_51 = arith.constant 9.99999993E-9 : f32
    %96 = vector.broadcast %cst_51 : f32 to vector<2x1xf32>
    %97 = arith.addf %93, %96 : vector<2x1xf32>
    %98 = arith.mulf %95, %97 : vector<2x1xf32>
    %99 = tpu.reciprocal %98 {approx = true} : vector<2x1xf32> -> vector<2x1xf32>
    %100 = arith.mulf %92, %99 : vector<2x1xf32>
    %101 = vector.broadcast %100 : vector<2x1xf32> to vector<2x8xf32>
    %102 = arith.mulf %101, %89 : vector<2x8xf32>
    %103 = arith.truncf %102 : vector<2x8xf32> to vector<2x8xbf16>
    %c4_52 = arith.constant 4 : index
    %c0_53 = arith.constant 0 : index
    %c0_54 = arith.constant 0 : index
    %104 = vector.load %arg2[%c4_52, %c0_53, %c0_54] : memref<16x8x64xbf16, #tpu.memory_space<vmem>>, vector<1x8x64xbf16>
    %105 = vector.shape_cast %104 : vector<1x8x64xbf16> to vector<8x64xbf16>
    %cst_55 = arith.constant dense<0.000000e+00> : vector<2x64xf32>
    %106 = tpu.matmul %103, %105, %cst_55 {dimension_numbers = #tpu.dot_dimension_numbers<[1], [0], [0], [1], [0, 0, 1, 1], [], []>} : vector<2x8xbf16>, vector<8x64xbf16>, vector<2x64xf32> -> vector<2x64xf32>
    %c0_56 = arith.constant 0 : index
    %c4_57 = arith.constant 4 : index
    %c0_58 = arith.constant 0 : index
    %107 = vector.load %arg5[%c0_56, %c4_57, %c0_58] : memref<2x16x64xf32, #tpu.memory_space<vmem>>, vector<2x1x64xf32>
    %108 = vector.shape_cast %107 : vector<2x1x64xf32> to vector<2x64xf32>
    %109 = vector.shape_cast %106 : vector<2x64xf32> to vector<2x1x64xf32>
    tpu.vector_store %arg5[%c0_56, %c4_57, %c0_58], %109 {strides = array<i32>} : memref<2x16x64xf32, #tpu.memory_space<vmem>>, vector<2x1x64xf32>,
    %c0_59 = arith.constant 0 : index
    %c5 = arith.constant 5 : index
    %c0_60 = arith.constant 0 : index
    %110 = vector.load %arg1[%c0_59, %c5, %c0_60] : memref<2x16x8xf32, #tpu.memory_space<vmem>>, vector<2x1x8xf32>
    %111 = vector.shape_cast %110 : vector<2x1x8xf32> to vector<2x8xf32>
    %112 = arith.mulf %111, %111 : vector<2x8xf32>
    %cst_61 = arith.constant dense<0.000000e+00> : vector<2xf32>
    %113 = vector.multi_reduction <add>, %112, %cst_61 [1] : vector<2x8xf32> to vector<2xf32>
    %114 = vector.shape_cast %113 : vector<2xf32> to vector<2x1xf32>
    %115 = math.sqrt %114 : vector<2x1xf32>
    %cst_62 = arith.constant 1.000000e+00 : f32
    %116 = vector.broadcast %cst_62 : f32 to vector<2x1xf32>
    %117 = arith.addf %116, %114 : vector<2x1xf32>
    %cst_63 = arith.constant 9.99999993E-9 : f32
    %118 = vector.broadcast %cst_63 : f32 to vector<2x1xf32>
    %119 = arith.addf %115, %118 : vector<2x1xf32>
    %120 = arith.mulf %117, %119 : vector<2x1xf32>
    %121 = tpu.reciprocal %120 {approx = true} : vector<2x1xf32> -> vector<2x1xf32>
    %122 = arith.mulf %114, %121 : vector<2x1xf32>
    %123 = vector.broadcast %122 : vector<2x1xf32> to vector<2x8xf32>
    %124 = arith.mulf %123, %111 : vector<2x8xf32>
    %125 = arith.truncf %124 : vector<2x8xf32> to vector<2x8xbf16>
    %c5_64 = arith.constant 5 : index
    %c0_65 = arith.constant 0 : index
    %c0_66 = arith.constant 0 : index
    %126 = vector.load %arg2[%c5_64, %c0_65, %c0_66] : memref<16x8x64xbf16, #tpu.memory_space<vmem>>, vector<1x8x64xbf16>
    %127 = vector.shape_cast %126 : vector<1x8x64xbf16> to vector<8x64xbf16>
    %cst_67 = arith.constant dense<0.000000e+00> : vector<2x64xf32>
    %128 = tpu.matmul %125, %127, %cst_67 {dimension_numbers = #tpu.dot_dimension_numbers<[1], [0], [0], [1], [0, 0, 1, 1], [], []>} : vector<2x8xbf16>, vector<8x64xbf16>, vector<2x64xf32> -> vector<2x64xf32>
    %c0_68 = arith.constant 0 : index
    %c5_69 = arith.constant 5 : index
    %c0_70 = arith.constant 0 : index
    %129 = vector.load %arg5[%c0_68, %c5_69, %c0_70] : memref<2x16x64xf32, #tpu.memory_space<vmem>>, vector<2x1x64xf32>
    %130 = vector.shape_cast %129 : vector<2x1x64xf32> to vector<2x64xf32>
    %131 = vector.shape_cast %128 : vector<2x64xf32> to vector<2x1x64xf32>
    tpu.vector_store %arg5[%c0_68, %c5_69, %c0_70], %131 {strides = array<i32>} : memref<2x16x64xf32, #tpu.memory_space<vmem>>, vector<2x1x64xf32>,
    %c0_71 = arith.constant 0 : index
    %c6 = arith.constant 6 : index
    %c0_72 = arith.constant 0 : index
    %132 = vector.load %arg1[%c0_71, %c6, %c0_72] : memref<2x16x8xf32, #tpu.memory_space<vmem>>, vector<2x1x8xf32>
    %133 = vector.shape_cast %132 : vector<2x1x8xf32> to vector<2x8xf32>
    %134 = arith.mulf %133, %133 : vector<2x8xf32>
    %cst_73 = arith.constant dense<0.000000e+00> : vector<2xf32>
    %135 = vector.multi_reduction <add>, %134, %cst_73 [1] : vector<2x8xf32> to vector<2xf32>
    %136 = vector.shape_cast %135 : vector<2xf32> to vector<2x1xf32>
    %137 = math.sqrt %136 : vector<2x1xf32>
    %cst_74 = arith.constant 1.000000e+00 : f32
    %138 = vector.broadcast %cst_74 : f32 to vector<2x1xf32>
    %139 = arith.addf %138, %136 : vector<2x1xf32>
    %cst_75 = arith.constant 9.99999993E-9 : f32
    %140 = vector.broadcast %cst_75 : f32 to vector<2x1xf32>
    %141 = arith.addf %137, %140 : vector<2x1xf32>
    %142 = arith.mulf %139, %141 : vector<2x1xf32>
    %143 = tpu.reciprocal %142 {approx = true} : vector<2x1xf32> -> vector<2x1xf32>
    %144 = arith.mulf %136, %143 : vector<2x1xf32>
    %145 = vector.broadcast %144 : vector<2x1xf32> to vector<2x8xf32>
    %146 = arith.mulf %145, %133 : vector<2x8xf32>
    %147 = arith.truncf %146 : vector<2x8xf32> to vector<2x8xbf16>
    %c6_76 = arith.constant 6 : index
    %c0_77 = arith.constant 0 : index
    %c0_78 = arith.constant 0 : index
    %148 = vector.load %arg2[%c6_76, %c0_77, %c0_78] : memref<16x8x64xbf16, #tpu.memory_space<vmem>>, vector<1x8x64xbf16>
    %149 = vector.shape_cast %148 : vector<1x8x64xbf16> to vector<8x64xbf16>
    %cst_79 = arith.constant dense<0.000000e+00> : vector<2x64xf32>
    %150 = tpu.matmul %147, %149, %cst_79 {dimension_numbers = #tpu.dot_dimension_numbers<[1], [0], [0], [1], [0, 0, 1, 1], [], []>} : vector<2x8xbf16>, vector<8x64xbf16>, vector<2x64xf32> -> vector<2x64xf32>
    %c0_80 = arith.constant 0 : index
    %c6_81 = arith.constant 6 : index
    %c0_82 = arith.constant 0 : index
    %151 = vector.load %arg5[%c0_80, %c6_81, %c0_82] : memref<2x16x64xf32, #tpu.memory_space<vmem>>, vector<2x1x64xf32>
    %152 = vector.shape_cast %151 : vector<2x1x64xf32> to vector<2x64xf32>
    %153 = vector.shape_cast %150 : vector<2x64xf32> to vector<2x1x64xf32>
    tpu.vector_store %arg5[%c0_80, %c6_81, %c0_82], %153 {strides = array<i32>} : memref<2x16x64xf32, #tpu.memory_space<vmem>>, vector<2x1x64xf32>,
    %c0_83 = arith.constant 0 : index
    %c7 = arith.constant 7 : index
    %c0_84 = arith.constant 0 : index
    %154 = vector.load %arg1[%c0_83, %c7, %c0_84] : memref<2x16x8xf32, #tpu.memory_space<vmem>>, vector<2x1x8xf32>
    %155 = vector.shape_cast %154 : vector<2x1x8xf32> to vector<2x8xf32>
    %156 = arith.mulf %155, %155 : vector<2x8xf32>
    %cst_85 = arith.constant dense<0.000000e+00> : vector<2xf32>
    %157 = vector.multi_reduction <add>, %156, %cst_85 [1] : vector<2x8xf32> to vector<2xf32>
    %158 = vector.shape_cast %157 : vector<2xf32> to vector<2x1xf32>
    %159 = math.sqrt %158 : vector<2x1xf32>
    %cst_86 = arith.constant 1.000000e+00 : f32
    %160 = vector.broadcast %cst_86 : f32 to vector<2x1xf32>
    %161 = arith.addf %160, %158 : vector<2x1xf32>
    %cst_87 = arith.constant 9.99999993E-9 : f32
    %162 = vector.broadcast %cst_87 : f32 to vector<2x1xf32>
    %163 = arith.addf %159, %162 : vector<2x1xf32>
    %164 = arith.mulf %161, %163 : vector<2x1xf32>
    %165 = tpu.reciprocal %164 {approx = true} : vector<2x1xf32> -> vector<2x1xf32>
    %166 = arith.mulf %158, %165 : vector<2x1xf32>
    %167 = vector.broadcast %166 : vector<2x1xf32> to vector<2x8xf32>
    %168 = arith.mulf %167, %155 : vector<2x8xf32>
    %169 = arith.truncf %168 : vector<2x8xf32> to vector<2x8xbf16>
    %c7_88 = arith.constant 7 : index
    %c0_89 = arith.constant 0 : index
    %c0_90 = arith.constant 0 : index
    %170 = vector.load %arg2[%c7_88, %c0_89, %c0_90] : memref<16x8x64xbf16, #tpu.memory_space<vmem>>, vector<1x8x64xbf16>
    %171 = vector.shape_cast %170 : vector<1x8x64xbf16> to vector<8x64xbf16>
    %cst_91 = arith.constant dense<0.000000e+00> : vector<2x64xf32>
    %172 = tpu.matmul %169, %171, %cst_91 {dimension_numbers = #tpu.dot_dimension_numbers<[1], [0], [0], [1], [0, 0, 1, 1], [], []>} : vector<2x8xbf16>, vector<8x64xbf16>, vector<2x64xf32> -> vector<2x64xf32>
    %c0_92 = arith.constant 0 : index
    %c7_93 = arith.constant 7 : index
    %c0_94 = arith.constant 0 : index
    %173 = vector.load %arg5[%c0_92, %c7_93, %c0_94] : memref<2x16x64xf32, #tpu.memory_space<vmem>>, vector<2x1x64xf32>
    %174 = vector.shape_cast %173 : vector<2x1x64xf32> to vector<2x64xf32>
    %175 = vector.shape_cast %172 : vector<2x64xf32> to vector<2x1x64xf32>
    tpu.vector_store %arg5[%c0_92, %c7_93, %c0_94], %175 {strides = array<i32>} : memref<2x16x64xf32, #tpu.memory_space<vmem>>, vector<2x1x64xf32>,
    %c0_95 = arith.constant 0 : index
    %c8 = arith.constant 8 : index
    %c0_96 = arith.constant 0 : index
    %176 = vector.load %arg1[%c0_95, %c8, %c0_96] : memref<2x16x8xf32, #tpu.memory_space<vmem>>, vector<2x1x8xf32>
    %177 = vector.shape_cast %176 : vector<2x1x8xf32> to vector<2x8xf32>
    %178 = arith.mulf %177, %177 : vector<2x8xf32>
    %cst_97 = arith.constant dense<0.000000e+00> : vector<2xf32>
    %179 = vector.multi_reduction <add>, %178, %cst_97 [1] : vector<2x8xf32> to vector<2xf32>
    %180 = vector.shape_cast %179 : vector<2xf32> to vector<2x1xf32>
    %181 = math.sqrt %180 : vector<2x1xf32>
    %cst_98 = arith.constant 1.000000e+00 : f32
    %182 = vector.broadcast %cst_98 : f32 to vector<2x1xf32>
    %183 = arith.addf %182, %180 : vector<2x1xf32>
    %cst_99 = arith.constant 9.99999993E-9 : f32
    %184 = vector.broadcast %cst_99 : f32 to vector<2x1xf32>
    %185 = arith.addf %181, %184 : vector<2x1xf32>
    %186 = arith.mulf %183, %185 : vector<2x1xf32>
    %187 = tpu.reciprocal %186 {approx = true} : vector<2x1xf32> -> vector<2x1xf32>
    %188 = arith.mulf %180, %187 : vector<2x1xf32>
    %189 = vector.broadcast %188 : vector<2x1xf32> to vector<2x8xf32>
    %190 = arith.mulf %189, %177 : vector<2x8xf32>
    %191 = arith.truncf %190 : vector<2x8xf32> to vector<2x8xbf16>
    %c8_100 = arith.constant 8 : index
    %c0_101 = arith.constant 0 : index
    %c0_102 = arith.constant 0 : index
    %192 = vector.load %arg2[%c8_100, %c0_101, %c0_102] : memref<16x8x64xbf16, #tpu.memory_space<vmem>>, vector<1x8x64xbf16>
    %193 = vector.shape_cast %192 : vector<1x8x64xbf16> to vector<8x64xbf16>
    %cst_103 = arith.constant dense<0.000000e+00> : vector<2x64xf32>
    %194 = tpu.matmul %191, %193, %cst_103 {dimension_numbers = #tpu.dot_dimension_numbers<[1], [0], [0], [1], [0, 0, 1, 1], [], []>} : vector<2x8xbf16>, vector<8x64xbf16>, vector<2x64xf32> -> vector<2x64xf32>
    %c0_104 = arith.constant 0 : index
    %c8_105 = arith.constant 8 : index
    %c0_106 = arith.constant 0 : index
    %195 = vector.load %arg5[%c0_104, %c8_105, %c0_106] : memref<2x16x64xf32, #tpu.memory_space<vmem>>, vector<2x1x64xf32>
    %196 = vector.shape_cast %195 : vector<2x1x64xf32> to vector<2x64xf32>
    %197 = vector.shape_cast %194 : vector<2x64xf32> to vector<2x1x64xf32>
    tpu.vector_store %arg5[%c0_104, %c8_105, %c0_106], %197 {strides = array<i32>} : memref<2x16x64xf32, #tpu.memory_space<vmem>>, vector<2x1x64xf32>,
    %c0_107 = arith.constant 0 : index
    %c9 = arith.constant 9 : index
    %c0_108 = arith.constant 0 : index
    %198 = vector.load %arg1[%c0_107, %c9, %c0_108] : memref<2x16x8xf32, #tpu.memory_space<vmem>>, vector<2x1x8xf32>
    %199 = vector.shape_cast %198 : vector<2x1x8xf32> to vector<2x8xf32>
    %200 = arith.mulf %199, %199 : vector<2x8xf32>
    %cst_109 = arith.constant dense<0.000000e+00> : vector<2xf32>
    %201 = vector.multi_reduction <add>, %200, %cst_109 [1] : vector<2x8xf32> to vector<2xf32>
    %202 = vector.shape_cast %201 : vector<2xf32> to vector<2x1xf32>
    %203 = math.sqrt %202 : vector<2x1xf32>
    %cst_110 = arith.constant 1.000000e+00 : f32
    %204 = vector.broadcast %cst_110 : f32 to vector<2x1xf32>
    %205 = arith.addf %204, %202 : vector<2x1xf32>
    %cst_111 = arith.constant 9.99999993E-9 : f32
    %206 = vector.broadcast %cst_111 : f32 to vector<2x1xf32>
    %207 = arith.addf %203, %206 : vector<2x1xf32>
    %208 = arith.mulf %205, %207 : vector<2x1xf32>
    %209 = tpu.reciprocal %208 {approx = true} : vector<2x1xf32> -> vector<2x1xf32>
    %210 = arith.mulf %202, %209 : vector<2x1xf32>
    %211 = vector.broadcast %210 : vector<2x1xf32> to vector<2x8xf32>
    %212 = arith.mulf %211, %199 : vector<2x8xf32>
    %213 = arith.truncf %212 : vector<2x8xf32> to vector<2x8xbf16>
    %c9_112 = arith.constant 9 : index
    %c0_113 = arith.constant 0 : index
    %c0_114 = arith.constant 0 : index
    %214 = vector.load %arg2[%c9_112, %c0_113, %c0_114] : memref<16x8x64xbf16, #tpu.memory_space<vmem>>, vector<1x8x64xbf16>
    %215 = vector.shape_cast %214 : vector<1x8x64xbf16> to vector<8x64xbf16>
    %cst_115 = arith.constant dense<0.000000e+00> : vector<2x64xf32>
    %216 = tpu.matmul %213, %215, %cst_115 {dimension_numbers = #tpu.dot_dimension_numbers<[1], [0], [0], [1], [0, 0, 1, 1], [], []>} : vector<2x8xbf16>, vector<8x64xbf16>, vector<2x64xf32> -> vector<2x64xf32>
    %c0_116 = arith.constant 0 : index
    %c9_117 = arith.constant 9 : index
    %c0_118 = arith.constant 0 : index
    %217 = vector.load %arg5[%c0_116, %c9_117, %c0_118] : memref<2x16x64xf32, #tpu.memory_space<vmem>>, vector<2x1x64xf32>
    %218 = vector.shape_cast %217 : vector<2x1x64xf32> to vector<2x64xf32>
    %219 = vector.shape_cast %216 : vector<2x64xf32> to vector<2x1x64xf32>
    tpu.vector_store %arg5[%c0_116, %c9_117, %c0_118], %219 {strides = array<i32>} : memref<2x16x64xf32, #tpu.memory_space<vmem>>, vector<2x1x64xf32>,
    %c0_119 = arith.constant 0 : index
    %c10 = arith.constant 10 : index
    %c0_120 = arith.constant 0 : index
    %220 = vector.load %arg1[%c0_119, %c10, %c0_120] : memref<2x16x8xf32, #tpu.memory_space<vmem>>, vector<2x1x8xf32>
    %221 = vector.shape_cast %220 : vector<2x1x8xf32> to vector<2x8xf32>
    %222 = arith.mulf %221, %221 : vector<2x8xf32>
    %cst_121 = arith.constant dense<0.000000e+00> : vector<2xf32>
    %223 = vector.multi_reduction <add>, %222, %cst_121 [1] : vector<2x8xf32> to vector<2xf32>
    %224 = vector.shape_cast %223 : vector<2xf32> to vector<2x1xf32>
    %225 = math.sqrt %224 : vector<2x1xf32>
    %cst_122 = arith.constant 1.000000e+00 : f32
    %226 = vector.broadcast %cst_122 : f32 to vector<2x1xf32>
    %227 = arith.addf %226, %224 : vector<2x1xf32>
    %cst_123 = arith.constant 9.99999993E-9 : f32
    %228 = vector.broadcast %cst_123 : f32 to vector<2x1xf32>
    %229 = arith.addf %225, %228 : vector<2x1xf32>
    %230 = arith.mulf %227, %229 : vector<2x1xf32>
    %231 = tpu.reciprocal %230 {approx = true} : vector<2x1xf32> -> vector<2x1xf32>
    %232 = arith.mulf %224, %231 : vector<2x1xf32>
    %233 = vector.broadcast %232 : vector<2x1xf32> to vector<2x8xf32>
    %234 = arith.mulf %233, %221 : vector<2x8xf32>
    %235 = arith.truncf %234 : vector<2x8xf32> to vector<2x8xbf16>
    %c10_124 = arith.constant 10 : index
    %c0_125 = arith.constant 0 : index
    %c0_126 = arith.constant 0 : index
    %236 = vector.load %arg2[%c10_124, %c0_125, %c0_126] : memref<16x8x64xbf16, #tpu.memory_space<vmem>>, vector<1x8x64xbf16>
    %237 = vector.shape_cast %236 : vector<1x8x64xbf16> to vector<8x64xbf16>
    %cst_127 = arith.constant dense<0.000000e+00> : vector<2x64xf32>
    %238 = tpu.matmul %235, %237, %cst_127 {dimension_numbers = #tpu.dot_dimension_numbers<[1], [0], [0], [1], [0, 0, 1, 1], [], []>} : vector<2x8xbf16>, vector<8x64xbf16>, vector<2x64xf32> -> vector<2x64xf32>
    %c0_128 = arith.constant 0 : index
    %c10_129 = arith.constant 10 : index
    %c0_130 = arith.constant 0 : index
    %239 = vector.load %arg5[%c0_128, %c10_129, %c0_130] : memref<2x16x64xf32, #tpu.memory_space<vmem>>, vector<2x1x64xf32>
    %240 = vector.shape_cast %239 : vector<2x1x64xf32> to vector<2x64xf32>
    %241 = vector.shape_cast %238 : vector<2x64xf32> to vector<2x1x64xf32>
    tpu.vector_store %arg5[%c0_128, %c10_129, %c0_130], %241 {strides = array<i32>} : memref<2x16x64xf32, #tpu.memory_space<vmem>>, vector<2x1x64xf32>,
    %c0_131 = arith.constant 0 : index
    %c11 = arith.constant 11 : index
    %c0_132 = arith.constant 0 : index
    %242 = vector.load %arg1[%c0_131, %c11, %c0_132] : memref<2x16x8xf32, #tpu.memory_space<vmem>>, vector<2x1x8xf32>
    %243 = vector.shape_cast %242 : vector<2x1x8xf32> to vector<2x8xf32>
    %244 = arith.mulf %243, %243 : vector<2x8xf32>
    %cst_133 = arith.constant dense<0.000000e+00> : vector<2xf32>
    %245 = vector.multi_reduction <add>, %244, %cst_133 [1] : vector<2x8xf32> to vector<2xf32>
    %246 = vector.shape_cast %245 : vector<2xf32> to vector<2x1xf32>
    %247 = math.sqrt %246 : vector<2x1xf32>
    %cst_134 = arith.constant 1.000000e+00 : f32
    %248 = vector.broadcast %cst_134 : f32 to vector<2x1xf32>
    %249 = arith.addf %248, %246 : vector<2x1xf32>
    %cst_135 = arith.constant 9.99999993E-9 : f32
    %250 = vector.broadcast %cst_135 : f32 to vector<2x1xf32>
    %251 = arith.addf %247, %250 : vector<2x1xf32>
    %252 = arith.mulf %249, %251 : vector<2x1xf32>
    %253 = tpu.reciprocal %252 {approx = true} : vector<2x1xf32> -> vector<2x1xf32>
    %254 = arith.mulf %246, %253 : vector<2x1xf32>
    %255 = vector.broadcast %254 : vector<2x1xf32> to vector<2x8xf32>
    %256 = arith.mulf %255, %243 : vector<2x8xf32>
    %257 = arith.truncf %256 : vector<2x8xf32> to vector<2x8xbf16>
    %c11_136 = arith.constant 11 : index
    %c0_137 = arith.constant 0 : index
    %c0_138 = arith.constant 0 : index
    %258 = vector.load %arg2[%c11_136, %c0_137, %c0_138] : memref<16x8x64xbf16, #tpu.memory_space<vmem>>, vector<1x8x64xbf16>
    %259 = vector.shape_cast %258 : vector<1x8x64xbf16> to vector<8x64xbf16>
    %cst_139 = arith.constant dense<0.000000e+00> : vector<2x64xf32>
    %260 = tpu.matmul %257, %259, %cst_139 {dimension_numbers = #tpu.dot_dimension_numbers<[1], [0], [0], [1], [0, 0, 1, 1], [], []>} : vector<2x8xbf16>, vector<8x64xbf16>, vector<2x64xf32> -> vector<2x64xf32>
    %c0_140 = arith.constant 0 : index
    %c11_141 = arith.constant 11 : index
    %c0_142 = arith.constant 0 : index
    %261 = vector.load %arg5[%c0_140, %c11_141, %c0_142] : memref<2x16x64xf32, #tpu.memory_space<vmem>>, vector<2x1x64xf32>
    %262 = vector.shape_cast %261 : vector<2x1x64xf32> to vector<2x64xf32>
    %263 = vector.shape_cast %260 : vector<2x64xf32> to vector<2x1x64xf32>
    tpu.vector_store %arg5[%c0_140, %c11_141, %c0_142], %263 {strides = array<i32>} : memref<2x16x64xf32, #tpu.memory_space<vmem>>, vector<2x1x64xf32>,
    %c0_143 = arith.constant 0 : index
    %c12 = arith.constant 12 : index
    %c0_144 = arith.constant 0 : index
    %264 = vector.load %arg1[%c0_143, %c12, %c0_144] : memref<2x16x8xf32, #tpu.memory_space<vmem>>, vector<2x1x8xf32>
    %265 = vector.shape_cast %264 : vector<2x1x8xf32> to vector<2x8xf32>
    %266 = arith.mulf %265, %265 : vector<2x8xf32>
    %cst_145 = arith.constant dense<0.000000e+00> : vector<2xf32>
    %267 = vector.multi_reduction <add>, %266, %cst_145 [1] : vector<2x8xf32> to vector<2xf32>
    %268 = vector.shape_cast %267 : vector<2xf32> to vector<2x1xf32>
    %269 = math.sqrt %268 : vector<2x1xf32>
    %cst_146 = arith.constant 1.000000e+00 : f32
    %270 = vector.broadcast %cst_146 : f32 to vector<2x1xf32>
    %271 = arith.addf %270, %268 : vector<2x1xf32>
    %cst_147 = arith.constant 9.99999993E-9 : f32
    %272 = vector.broadcast %cst_147 : f32 to vector<2x1xf32>
    %273 = arith.addf %269, %272 : vector<2x1xf32>
    %274 = arith.mulf %271, %273 : vector<2x1xf32>
    %275 = tpu.reciprocal %274 {approx = true} : vector<2x1xf32> -> vector<2x1xf32>
    %276 = arith.mulf %268, %275 : vector<2x1xf32>
    %277 = vector.broadcast %276 : vector<2x1xf32> to vector<2x8xf32>
    %278 = arith.mulf %277, %265 : vector<2x8xf32>
    %279 = arith.truncf %278 : vector<2x8xf32> to vector<2x8xbf16>
    %c12_148 = arith.constant 12 : index
    %c0_149 = arith.constant 0 : index
    %c0_150 = arith.constant 0 : index
    %280 = vector.load %arg2[%c12_148, %c0_149, %c0_150] : memref<16x8x64xbf16, #tpu.memory_space<vmem>>, vector<1x8x64xbf16>
    %281 = vector.shape_cast %280 : vector<1x8x64xbf16> to vector<8x64xbf16>
    %cst_151 = arith.constant dense<0.000000e+00> : vector<2x64xf32>
    %282 = tpu.matmul %279, %281, %cst_151 {dimension_numbers = #tpu.dot_dimension_numbers<[1], [0], [0], [1], [0, 0, 1, 1], [], []>} : vector<2x8xbf16>, vector<8x64xbf16>, vector<2x64xf32> -> vector<2x64xf32>
    %c0_152 = arith.constant 0 : index
    %c12_153 = arith.constant 12 : index
    %c0_154 = arith.constant 0 : index
    %283 = vector.load %arg5[%c0_152, %c12_153, %c0_154] : memref<2x16x64xf32, #tpu.memory_space<vmem>>, vector<2x1x64xf32>
    %284 = vector.shape_cast %283 : vector<2x1x64xf32> to vector<2x64xf32>
    %285 = vector.shape_cast %282 : vector<2x64xf32> to vector<2x1x64xf32>
    tpu.vector_store %arg5[%c0_152, %c12_153, %c0_154], %285 {strides = array<i32>} : memref<2x16x64xf32, #tpu.memory_space<vmem>>, vector<2x1x64xf32>,
    %c0_155 = arith.constant 0 : index
    %c13 = arith.constant 13 : index
    %c0_156 = arith.constant 0 : index
    %286 = vector.load %arg1[%c0_155, %c13, %c0_156] : memref<2x16x8xf32, #tpu.memory_space<vmem>>, vector<2x1x8xf32>
    %287 = vector.shape_cast %286 : vector<2x1x8xf32> to vector<2x8xf32>
    %288 = arith.mulf %287, %287 : vector<2x8xf32>
    %cst_157 = arith.constant dense<0.000000e+00> : vector<2xf32>
    %289 = vector.multi_reduction <add>, %288, %cst_157 [1] : vector<2x8xf32> to vector<2xf32>
    %290 = vector.shape_cast %289 : vector<2xf32> to vector<2x1xf32>
    %291 = math.sqrt %290 : vector<2x1xf32>
    %cst_158 = arith.constant 1.000000e+00 : f32
    %292 = vector.broadcast %cst_158 : f32 to vector<2x1xf32>
    %293 = arith.addf %292, %290 : vector<2x1xf32>
    %cst_159 = arith.constant 9.99999993E-9 : f32
    %294 = vector.broadcast %cst_159 : f32 to vector<2x1xf32>
    %295 = arith.addf %291, %294 : vector<2x1xf32>
    %296 = arith.mulf %293, %295 : vector<2x1xf32>
    %297 = tpu.reciprocal %296 {approx = true} : vector<2x1xf32> -> vector<2x1xf32>
    %298 = arith.mulf %290, %297 : vector<2x1xf32>
    %299 = vector.broadcast %298 : vector<2x1xf32> to vector<2x8xf32>
    %300 = arith.mulf %299, %287 : vector<2x8xf32>
    %301 = arith.truncf %300 : vector<2x8xf32> to vector<2x8xbf16>
    %c13_160 = arith.constant 13 : index
    %c0_161 = arith.constant 0 : index
    %c0_162 = arith.constant 0 : index
    %302 = vector.load %arg2[%c13_160, %c0_161, %c0_162] : memref<16x8x64xbf16, #tpu.memory_space<vmem>>, vector<1x8x64xbf16>
    %303 = vector.shape_cast %302 : vector<1x8x64xbf16> to vector<8x64xbf16>
    %cst_163 = arith.constant dense<0.000000e+00> : vector<2x64xf32>
    %304 = tpu.matmul %301, %303, %cst_163 {dimension_numbers = #tpu.dot_dimension_numbers<[1], [0], [0], [1], [0, 0, 1, 1], [], []>} : vector<2x8xbf16>, vector<8x64xbf16>, vector<2x64xf32> -> vector<2x64xf32>
    %c0_164 = arith.constant 0 : index
    %c13_165 = arith.constant 13 : index
    %c0_166 = arith.constant 0 : index
    %305 = vector.load %arg5[%c0_164, %c13_165, %c0_166] : memref<2x16x64xf32, #tpu.memory_space<vmem>>, vector<2x1x64xf32>
    %306 = vector.shape_cast %305 : vector<2x1x64xf32> to vector<2x64xf32>
    %307 = vector.shape_cast %304 : vector<2x64xf32> to vector<2x1x64xf32>
    tpu.vector_store %arg5[%c0_164, %c13_165, %c0_166], %307 {strides = array<i32>} : memref<2x16x64xf32, #tpu.memory_space<vmem>>, vector<2x1x64xf32>,
    %c0_167 = arith.constant 0 : index
    %c14 = arith.constant 14 : index
    %c0_168 = arith.constant 0 : index
    %308 = vector.load %arg1[%c0_167, %c14, %c0_168] : memref<2x16x8xf32, #tpu.memory_space<vmem>>, vector<2x1x8xf32>
    %309 = vector.shape_cast %308 : vector<2x1x8xf32> to vector<2x8xf32>
    %310 = arith.mulf %309, %309 : vector<2x8xf32>
    %cst_169 = arith.constant dense<0.000000e+00> : vector<2xf32>
    %311 = vector.multi_reduction <add>, %310, %cst_169 [1] : vector<2x8xf32> to vector<2xf32>
    %312 = vector.shape_cast %311 : vector<2xf32> to vector<2x1xf32>
    %313 = math.sqrt %312 : vector<2x1xf32>
    %cst_170 = arith.constant 1.000000e+00 : f32
    %314 = vector.broadcast %cst_170 : f32 to vector<2x1xf32>
    %315 = arith.addf %314, %312 : vector<2x1xf32>
    %cst_171 = arith.constant 9.99999993E-9 : f32
    %316 = vector.broadcast %cst_171 : f32 to vector<2x1xf32>
    %317 = arith.addf %313, %316 : vector<2x1xf32>
    %318 = arith.mulf %315, %317 : vector<2x1xf32>
    %319 = tpu.reciprocal %318 {approx = true} : vector<2x1xf32> -> vector<2x1xf32>
    %320 = arith.mulf %312, %319 : vector<2x1xf32>
    %321 = vector.broadcast %320 : vector<2x1xf32> to vector<2x8xf32>
    %322 = arith.mulf %321, %309 : vector<2x8xf32>
    %323 = arith.truncf %322 : vector<2x8xf32> to vector<2x8xbf16>
    %c14_172 = arith.constant 14 : index
    %c0_173 = arith.constant 0 : index
    %c0_174 = arith.constant 0 : index
    %324 = vector.load %arg2[%c14_172, %c0_173, %c0_174] : memref<16x8x64xbf16, #tpu.memory_space<vmem>>, vector<1x8x64xbf16>
    %325 = vector.shape_cast %324 : vector<1x8x64xbf16> to vector<8x64xbf16>
    %cst_175 = arith.constant dense<0.000000e+00> : vector<2x64xf32>
    %326 = tpu.matmul %323, %325, %cst_175 {dimension_numbers = #tpu.dot_dimension_numbers<[1], [0], [0], [1], [0, 0, 1, 1], [], []>} : vector<2x8xbf16>, vector<8x64xbf16>, vector<2x64xf32> -> vector<2x64xf32>
    %c0_176 = arith.constant 0 : index
    %c14_177 = arith.constant 14 : index
    %c0_178 = arith.constant 0 : index
    %327 = vector.load %arg5[%c0_176, %c14_177, %c0_178] : memref<2x16x64xf32, #tpu.memory_space<vmem>>, vector<2x1x64xf32>
    %328 = vector.shape_cast %327 : vector<2x1x64xf32> to vector<2x64xf32>
    %329 = vector.shape_cast %326 : vector<2x64xf32> to vector<2x1x64xf32>
    tpu.vector_store %arg5[%c0_176, %c14_177, %c0_178], %329 {strides = array<i32>} : memref<2x16x64xf32, #tpu.memory_space<vmem>>, vector<2x1x64xf32>,
    %c0_179 = arith.constant 0 : index
    %c15 = arith.constant 15 : index
    %c0_180 = arith.constant 0 : index
    %330 = vector.load %arg1[%c0_179, %c15, %c0_180] : memref<2x16x8xf32, #tpu.memory_space<vmem>>, vector<2x1x8xf32>
    %331 = vector.shape_cast %330 : vector<2x1x8xf32> to vector<2x8xf32>
    %332 = arith.mulf %331, %331 : vector<2x8xf32>
    %cst_181 = arith.constant dense<0.000000e+00> : vector<2xf32>
    %333 = vector.multi_reduction <add>, %332, %cst_181 [1] : vector<2x8xf32> to vector<2xf32>
    %334 = vector.shape_cast %333 : vector<2xf32> to vector<2x1xf32>
    %335 = math.sqrt %334 : vector<2x1xf32>
    %cst_182 = arith.constant 1.000000e+00 : f32
    %336 = vector.broadcast %cst_182 : f32 to vector<2x1xf32>
    %337 = arith.addf %336, %334 : vector<2x1xf32>
    %cst_183 = arith.constant 9.99999993E-9 : f32
    %338 = vector.broadcast %cst_183 : f32 to vector<2x1xf32>
    %339 = arith.addf %335, %338 : vector<2x1xf32>
    %340 = arith.mulf %337, %339 : vector<2x1xf32>
    %341 = tpu.reciprocal %340 {approx = true} : vector<2x1xf32> -> vector<2x1xf32>
    %342 = arith.mulf %334, %341 : vector<2x1xf32>
    %343 = vector.broadcast %342 : vector<2x1xf32> to vector<2x8xf32>
    %344 = arith.mulf %343, %331 : vector<2x8xf32>
    %345 = arith.truncf %344 : vector<2x8xf32> to vector<2x8xbf16>
    %c15_184 = arith.constant 15 : index
    %c0_185 = arith.constant 0 : index
    %c0_186 = arith.constant 0 : index
    %346 = vector.load %arg2[%c15_184, %c0_185, %c0_186] : memref<16x8x64xbf16, #tpu.memory_space<vmem>>, vector<1x8x64xbf16>
    %347 = vector.shape_cast %346 : vector<1x8x64xbf16> to vector<8x64xbf16>
    %cst_187 = arith.constant dense<0.000000e+00> : vector<2x64xf32>
    %348 = tpu.matmul %345, %347, %cst_187 {dimension_numbers = #tpu.dot_dimension_numbers<[1], [0], [0], [1], [0, 0, 1, 1], [], []>} : vector<2x8xbf16>, vector<8x64xbf16>, vector<2x64xf32> -> vector<2x64xf32>
    %c0_188 = arith.constant 0 : index
    %c15_189 = arith.constant 15 : index
    %c0_190 = arith.constant 0 : index
    %349 = vector.load %arg5[%c0_188, %c15_189, %c0_190] : memref<2x16x64xf32, #tpu.memory_space<vmem>>, vector<2x1x64xf32>
    %350 = vector.shape_cast %349 : vector<2x1x64xf32> to vector<2x64xf32>
    %351 = vector.shape_cast %348 : vector<2x64xf32> to vector<2x1x64xf32>
    tpu.vector_store %arg5[%c0_188, %c15_189, %c0_190], %351 {strides = array<i32>} : memref<2x16x64xf32, #tpu.memory_space<vmem>>, vector<2x1x64xf32>,
    %c0_191 = arith.constant 0 : index
    %c0_192 = arith.constant 0 : index
    %c0_193 = arith.constant 0 : index
    %352 = vector.load %arg5[%c0_191, %c0_192, %c0_193] : memref<2x16x64xf32, #tpu.memory_space<vmem>>, vector<2x16x16xf32>
    %c0_194 = arith.constant 0 : index
    %c0_195 = arith.constant 0 : index
    %c16 = arith.constant 16 : index
    %353 = vector.load %arg5[%c0_194, %c0_195, %c16] : memref<2x16x64xf32, #tpu.memory_space<vmem>>, vector<2x16x16xf32>
    %c0_196 = arith.constant 0 : index
    %c0_197 = arith.constant 0 : index
    %c32 = arith.constant 32 : index
    %354 = vector.load %arg5[%c0_196, %c0_197, %c32] : memref<2x16x64xf32, #tpu.memory_space<vmem>>, vector<2x16x16xf32>
    %c0_198 = arith.constant 0 : index
    %c0_199 = arith.constant 0 : index
    %c48 = arith.constant 48 : index
    %355 = vector.load %arg5[%c0_198, %c0_199, %c48] : memref<2x16x64xf32, #tpu.memory_space<vmem>>, vector<2x16x16xf32>
    %cst_200 = arith.constant 0.000000e+00 : f32
    %356 = vector.broadcast %cst_200 : f32 to vector<2x1x16xf32>
    %cst_201 = arith.constant 0.000000e+00 : f32
    %357 = vector.broadcast %cst_201 : f32 to vector<2x1x16xf32>
    %cst_202 = arith.constant 0.000000e+00 : f32
    %358 = vector.broadcast %cst_202 : f32 to vector<2x1x16xf32>
    %cst_203 = arith.constant 0.000000e+00 : f32
    %359 = vector.broadcast %cst_203 : f32 to vector<2x1x16xf32>
    %360 = arith.maximumf %356, %357 : vector<2x1x16xf32>
    %361 = arith.maximumf %360, %358 : vector<2x1x16xf32>
    %362 = arith.maximumf %361, %359 : vector<2x1x16xf32>
    %363 = arith.subf %356, %362 : vector<2x1x16xf32>
    %364 = math.exp %363 : vector<2x1x16xf32>
    %365 = arith.subf %357, %362 : vector<2x1x16xf32>
    %366 = math.exp %365 : vector<2x1x16xf32>
    %367 = arith.subf %358, %362 : vector<2x1x16xf32>
    %368 = math.exp %367 : vector<2x1x16xf32>
    %369 = arith.subf %359, %362 : vector<2x1x16xf32>
    %370 = math.exp %369 : vector<2x1x16xf32>
    %371 = arith.addf %364, %366 : vector<2x1x16xf32>
    %372 = arith.addf %371, %368 : vector<2x1x16xf32>
    %373 = arith.addf %372, %370 : vector<2x1x16xf32>
    %374 = tpu.reciprocal %373 {approx = true} : vector<2x1x16xf32> -> vector<2x1x16xf32>
    %375 = arith.mulf %364, %374 : vector<2x1x16xf32>
    %cst_204 = arith.constant dense<0.000000e+00> : vector<2x1x16xf32>
    %376 = tpu.matmul %375, %352, %cst_204 {dimension_numbers = #tpu.dot_dimension_numbers<[2], [1], [1], [2], [0, 0, 0, 1, 1, 2], [0], [0]>} : vector<2x1x16xf32>, vector<2x16x16xf32>, vector<2x1x16xf32> -> vector<2x1x16xf32>
    %377 = arith.mulf %376, %376 : vector<2x1x16xf32>
    %cst_205 = arith.constant dense<0.000000e+00> : vector<2x1xf32>
    %378 = vector.multi_reduction <add>, %377, %cst_205 [2] : vector<2x1x16xf32> to vector<2x1xf32>
    %379 = vector.shape_cast %378 : vector<2x1xf32> to vector<2x1x1xf32>
    %380 = math.sqrt %379 : vector<2x1x1xf32>
    %cst_206 = arith.constant 1.000000e+00 : f32
    %381 = vector.broadcast %cst_206 : f32 to vector<2x1x1xf32>
    %382 = arith.addf %381, %379 : vector<2x1x1xf32>
    %cst_207 = arith.constant 9.99999993E-9 : f32
    %383 = vector.broadcast %cst_207 : f32 to vector<2x1x1xf32>
    %384 = arith.addf %380, %383 : vector<2x1x1xf32>
    %385 = arith.mulf %382, %384 : vector<2x1x1xf32>
    %386 = tpu.reciprocal %385 {approx = true} : vector<2x1x1xf32> -> vector<2x1x1xf32>
    %387 = arith.mulf %379, %386 : vector<2x1x1xf32>
    %388 = vector.broadcast %387 : vector<2x1x1xf32> to vector<2x1x16xf32>
    %389 = arith.mulf %388, %376 : vector<2x1x16xf32>
    %cst_208 = arith.constant dense<0.000000e+00> : vector<2x1x16xf32>
    %390 = tpu.matmul %389, %352, %cst_208 {dimension_numbers = #tpu.dot_dimension_numbers<[2], [2], [1], [1], [0, 0, 0, 1, 1, 1], [0], [0]>} : vector<2x1x16xf32>, vector<2x16x16xf32>, vector<2x1x16xf32> -> vector<2x1x16xf32>
    %391 = arith.addf %356, %390 : vector<2x1x16xf32>
    %392 = arith.mulf %366, %374 : vector<2x1x16xf32>
    %cst_209 = arith.constant dense<0.000000e+00> : vector<2x1x16xf32>
    %393 = tpu.matmul %392, %353, %cst_209 {dimension_numbers = #tpu.dot_dimension_numbers<[2], [1], [1], [2], [0, 0, 0, 1, 1, 2], [0], [0]>} : vector<2x1x16xf32>, vector<2x16x16xf32>, vector<2x1x16xf32> -> vector<2x1x16xf32>
    %394 = arith.mulf %393, %393 : vector<2x1x16xf32>
    %cst_210 = arith.constant dense<0.000000e+00> : vector<2x1xf32>
    %395 = vector.multi_reduction <add>, %394, %cst_210 [2] : vector<2x1x16xf32> to vector<2x1xf32>
    %396 = vector.shape_cast %395 : vector<2x1xf32> to vector<2x1x1xf32>
    %397 = math.sqrt %396 : vector<2x1x1xf32>
    %cst_211 = arith.constant 1.000000e+00 : f32
    %398 = vector.broadcast %cst_211 : f32 to vector<2x1x1xf32>
    %399 = arith.addf %398, %396 : vector<2x1x1xf32>
    %cst_212 = arith.constant 9.99999993E-9 : f32
    %400 = vector.broadcast %cst_212 : f32 to vector<2x1x1xf32>
    %401 = arith.addf %397, %400 : vector<2x1x1xf32>
    %402 = arith.mulf %399, %401 : vector<2x1x1xf32>
    %403 = tpu.reciprocal %402 {approx = true} : vector<2x1x1xf32> -> vector<2x1x1xf32>
    %404 = arith.mulf %396, %403 : vector<2x1x1xf32>
    %405 = vector.broadcast %404 : vector<2x1x1xf32> to vector<2x1x16xf32>
    %406 = arith.mulf %405, %393 : vector<2x1x16xf32>
    %cst_213 = arith.constant dense<0.000000e+00> : vector<2x1x16xf32>
    %407 = tpu.matmul %406, %353, %cst_213 {dimension_numbers = #tpu.dot_dimension_numbers<[2], [2], [1], [1], [0, 0, 0, 1, 1, 1], [0], [0]>} : vector<2x1x16xf32>, vector<2x16x16xf32>, vector<2x1x16xf32> -> vector<2x1x16xf32>
    %408 = arith.addf %357, %407 : vector<2x1x16xf32>
    %409 = arith.mulf %368, %374 : vector<2x1x16xf32>
    %cst_214 = arith.constant dense<0.000000e+00> : vector<2x1x16xf32>
    %410 = tpu.matmul %409, %354, %cst_214 {dimension_numbers = #tpu.dot_dimension_numbers<[2], [1], [1], [2], [0, 0, 0, 1, 1, 2], [0], [0]>} : vector<2x1x16xf32>, vector<2x16x16xf32>, vector<2x1x16xf32> -> vector<2x1x16xf32>
    %411 = arith.mulf %410, %410 : vector<2x1x16xf32>
    %cst_215 = arith.constant dense<0.000000e+00> : vector<2x1xf32>
    %412 = vector.multi_reduction <add>, %411, %cst_215 [2] : vector<2x1x16xf32> to vector<2x1xf32>
    %413 = vector.shape_cast %412 : vector<2x1xf32> to vector<2x1x1xf32>
    %414 = math.sqrt %413 : vector<2x1x1xf32>
    %cst_216 = arith.constant 1.000000e+00 : f32
    %415 = vector.broadcast %cst_216 : f32 to vector<2x1x1xf32>
    %416 = arith.addf %415, %413 : vector<2x1x1xf32>
    %cst_217 = arith.constant 9.99999993E-9 : f32
    %417 = vector.broadcast %cst_217 : f32 to vector<2x1x1xf32>
    %418 = arith.addf %414, %417 : vector<2x1x1xf32>
    %419 = arith.mulf %416, %418 : vector<2x1x1xf32>
    %420 = tpu.reciprocal %419 {approx = true} : vector<2x1x1xf32> -> vector<2x1x1xf32>
    %421 = arith.mulf %413, %420 : vector<2x1x1xf32>
    %422 = vector.broadcast %421 : vector<2x1x1xf32> to vector<2x1x16xf32>
    %423 = arith.mulf %422, %410 : vector<2x1x16xf32>
    %cst_218 = arith.constant dense<0.000000e+00> : vector<2x1x16xf32>
    %424 = tpu.matmul %423, %354, %cst_218 {dimension_numbers = #tpu.dot_dimension_numbers<[2], [2], [1], [1], [0, 0, 0, 1, 1, 1], [0], [0]>} : vector<2x1x16xf32>, vector<2x16x16xf32>, vector<2x1x16xf32> -> vector<2x1x16xf32>
    %425 = arith.addf %358, %424 : vector<2x1x16xf32>
    %426 = arith.mulf %370, %374 : vector<2x1x16xf32>
    %cst_219 = arith.constant dense<0.000000e+00> : vector<2x1x16xf32>
    %427 = tpu.matmul %426, %355, %cst_219 {dimension_numbers = #tpu.dot_dimension_numbers<[2], [1], [1], [2], [0, 0, 0, 1, 1, 2], [0], [0]>} : vector<2x1x16xf32>, vector<2x16x16xf32>, vector<2x1x16xf32> -> vector<2x1x16xf32>
    %428 = arith.mulf %427, %427 : vector<2x1x16xf32>
    %cst_220 = arith.constant dense<0.000000e+00> : vector<2x1xf32>
    %429 = vector.multi_reduction <add>, %428, %cst_220 [2] : vector<2x1x16xf32> to vector<2x1xf32>
    %430 = vector.shape_cast %429 : vector<2x1xf32> to vector<2x1x1xf32>
    %431 = math.sqrt %430 : vector<2x1x1xf32>
    %cst_221 = arith.constant 1.000000e+00 : f32
    %432 = vector.broadcast %cst_221 : f32 to vector<2x1x1xf32>
    %433 = arith.addf %432, %430 : vector<2x1x1xf32>
    %cst_222 = arith.constant 9.99999993E-9 : f32
    %434 = vector.broadcast %cst_222 : f32 to vector<2x1x1xf32>
    %435 = arith.addf %431, %434 : vector<2x1x1xf32>
    %436 = arith.mulf %433, %435 : vector<2x1x1xf32>
    %437 = tpu.reciprocal %436 {approx = true} : vector<2x1x1xf32> -> vector<2x1x1xf32>
    %438 = arith.mulf %430, %437 : vector<2x1x1xf32>
    %439 = vector.broadcast %438 : vector<2x1x1xf32> to vector<2x1x16xf32>
    %440 = arith.mulf %439, %427 : vector<2x1x16xf32>
    %cst_223 = arith.constant dense<0.000000e+00> : vector<2x1x16xf32>
    %441 = tpu.matmul %440, %355, %cst_223 {dimension_numbers = #tpu.dot_dimension_numbers<[2], [2], [1], [1], [0, 0, 0, 1, 1, 1], [0], [0]>} : vector<2x1x16xf32>, vector<2x16x16xf32>, vector<2x1x16xf32> -> vector<2x1x16xf32>
    %442 = arith.addf %359, %441 : vector<2x1x16xf32>
    %443 = arith.maximumf %391, %408 : vector<2x1x16xf32>
    %444 = arith.maximumf %443, %425 : vector<2x1x16xf32>
    %445 = arith.maximumf %444, %442 : vector<2x1x16xf32>
    %446 = arith.subf %391, %445 : vector<2x1x16xf32>
    %447 = math.exp %446 : vector<2x1x16xf32>
    %448 = arith.subf %408, %445 : vector<2x1x16xf32>
    %449 = math.exp %448 : vector<2x1x16xf32>
    %450 = arith.subf %425, %445 : vector<2x1x16xf32>
    %451 = math.exp %450 : vector<2x1x16xf32>
    %452 = arith.subf %442, %445 : vector<2x1x16xf32>
    %453 = math.exp %452 : vector<2x1x16xf32>
    %454 = arith.addf %447, %449 : vector<2x1x16xf32>
    %455 = arith.addf %454, %451 : vector<2x1x16xf32>
    %456 = arith.addf %455, %453 : vector<2x1x16xf32>
    %457 = tpu.reciprocal %456 {approx = true} : vector<2x1x16xf32> -> vector<2x1x16xf32>
    %458 = arith.mulf %447, %457 : vector<2x1x16xf32>
    %cst_224 = arith.constant dense<0.000000e+00> : vector<2x1x16xf32>
    %459 = tpu.matmul %458, %352, %cst_224 {dimension_numbers = #tpu.dot_dimension_numbers<[2], [1], [1], [2], [0, 0, 0, 1, 1, 2], [0], [0]>} : vector<2x1x16xf32>, vector<2x16x16xf32>, vector<2x1x16xf32> -> vector<2x1x16xf32>
    %460 = arith.mulf %459, %459 : vector<2x1x16xf32>
    %cst_225 = arith.constant dense<0.000000e+00> : vector<2x1xf32>
    %461 = vector.multi_reduction <add>, %460, %cst_225 [2] : vector<2x1x16xf32> to vector<2x1xf32>
    %462 = vector.shape_cast %461 : vector<2x1xf32> to vector<2x1x1xf32>
    %463 = math.sqrt %462 : vector<2x1x1xf32>
    %cst_226 = arith.constant 1.000000e+00 : f32
    %464 = vector.broadcast %cst_226 : f32 to vector<2x1x1xf32>
    %465 = arith.addf %464, %462 : vector<2x1x1xf32>
    %cst_227 = arith.constant 9.99999993E-9 : f32
    %466 = vector.broadcast %cst_227 : f32 to vector<2x1x1xf32>
    %467 = arith.addf %463, %466 : vector<2x1x1xf32>
    %468 = arith.mulf %465, %467 : vector<2x1x1xf32>
    %469 = tpu.reciprocal %468 {approx = true} : vector<2x1x1xf32> -> vector<2x1x1xf32>
    %470 = arith.mulf %462, %469 : vector<2x1x1xf32>
    %471 = vector.broadcast %470 : vector<2x1x1xf32> to vector<2x1x16xf32>
    %472 = arith.mulf %471, %459 : vector<2x1x16xf32>
    %cst_228 = arith.constant dense<0.000000e+00> : vector<2x1x16xf32>
    %473 = tpu.matmul %472, %352, %cst_228 {dimension_numbers = #tpu.dot_dimension_numbers<[2], [2], [1], [1], [0, 0, 0, 1, 1, 1], [0], [0]>} : vector<2x1x16xf32>, vector<2x16x16xf32>, vector<2x1x16xf32> -> vector<2x1x16xf32>
    %474 = arith.addf %391, %473 : vector<2x1x16xf32>
    %475 = arith.mulf %449, %457 : vector<2x1x16xf32>
    %cst_229 = arith.constant dense<0.000000e+00> : vector<2x1x16xf32>
    %476 = tpu.matmul %475, %353, %cst_229 {dimension_numbers = #tpu.dot_dimension_numbers<[2], [1], [1], [2], [0, 0, 0, 1, 1, 2], [0], [0]>} : vector<2x1x16xf32>, vector<2x16x16xf32>, vector<2x1x16xf32> -> vector<2x1x16xf32>
    %477 = arith.mulf %476, %476 : vector<2x1x16xf32>
    %cst_230 = arith.constant dense<0.000000e+00> : vector<2x1xf32>
    %478 = vector.multi_reduction <add>, %477, %cst_230 [2] : vector<2x1x16xf32> to vector<2x1xf32>
    %479 = vector.shape_cast %478 : vector<2x1xf32> to vector<2x1x1xf32>
    %480 = math.sqrt %479 : vector<2x1x1xf32>
    %cst_231 = arith.constant 1.000000e+00 : f32
    %481 = vector.broadcast %cst_231 : f32 to vector<2x1x1xf32>
    %482 = arith.addf %481, %479 : vector<2x1x1xf32>
    %cst_232 = arith.constant 9.99999993E-9 : f32
    %483 = vector.broadcast %cst_232 : f32 to vector<2x1x1xf32>
    %484 = arith.addf %480, %483 : vector<2x1x1xf32>
    %485 = arith.mulf %482, %484 : vector<2x1x1xf32>
    %486 = tpu.reciprocal %485 {approx = true} : vector<2x1x1xf32> -> vector<2x1x1xf32>
    %487 = arith.mulf %479, %486 : vector<2x1x1xf32>
    %488 = vector.broadcast %487 : vector<2x1x1xf32> to vector<2x1x16xf32>
    %489 = arith.mulf %488, %476 : vector<2x1x16xf32>
    %cst_233 = arith.constant dense<0.000000e+00> : vector<2x1x16xf32>
    %490 = tpu.matmul %489, %353, %cst_233 {dimension_numbers = #tpu.dot_dimension_numbers<[2], [2], [1], [1], [0, 0, 0, 1, 1, 1], [0], [0]>} : vector<2x1x16xf32>, vector<2x16x16xf32>, vector<2x1x16xf32> -> vector<2x1x16xf32>
    %491 = arith.addf %408, %490 : vector<2x1x16xf32>
    %492 = arith.mulf %451, %457 : vector<2x1x16xf32>
    %cst_234 = arith.constant dense<0.000000e+00> : vector<2x1x16xf32>
    %493 = tpu.matmul %492, %354, %cst_234 {dimension_numbers = #tpu.dot_dimension_numbers<[2], [1], [1], [2], [0, 0, 0, 1, 1, 2], [0], [0]>} : vector<2x1x16xf32>, vector<2x16x16xf32>, vector<2x1x16xf32> -> vector<2x1x16xf32>
    %494 = arith.mulf %493, %493 : vector<2x1x16xf32>
    %cst_235 = arith.constant dense<0.000000e+00> : vector<2x1xf32>
    %495 = vector.multi_reduction <add>, %494, %cst_235 [2] : vector<2x1x16xf32> to vector<2x1xf32>
    %496 = vector.shape_cast %495 : vector<2x1xf32> to vector<2x1x1xf32>
    %497 = math.sqrt %496 : vector<2x1x1xf32>
    %cst_236 = arith.constant 1.000000e+00 : f32
    %498 = vector.broadcast %cst_236 : f32 to vector<2x1x1xf32>
    %499 = arith.addf %498, %496 : vector<2x1x1xf32>
    %cst_237 = arith.constant 9.99999993E-9 : f32
    %500 = vector.broadcast %cst_237 : f32 to vector<2x1x1xf32>
    %501 = arith.addf %497, %500 : vector<2x1x1xf32>
    %502 = arith.mulf %499, %501 : vector<2x1x1xf32>
    %503 = tpu.reciprocal %502 {approx = true} : vector<2x1x1xf32> -> vector<2x1x1xf32>
    %504 = arith.mulf %496, %503 : vector<2x1x1xf32>
    %505 = vector.broadcast %504 : vector<2x1x1xf32> to vector<2x1x16xf32>
    %506 = arith.mulf %505, %493 : vector<2x1x16xf32>
    %cst_238 = arith.constant dense<0.000000e+00> : vector<2x1x16xf32>
    %507 = tpu.matmul %506, %354, %cst_238 {dimension_numbers = #tpu.dot_dimension_numbers<[2], [2], [1], [1], [0, 0, 0, 1, 1, 1], [0], [0]>} : vector<2x1x16xf32>, vector<2x16x16xf32>, vector<2x1x16xf32> -> vector<2x1x16xf32>
    %508 = arith.addf %425, %507 : vector<2x1x16xf32>
    %509 = arith.mulf %453, %457 : vector<2x1x16xf32>
    %cst_239 = arith.constant dense<0.000000e+00> : vector<2x1x16xf32>
    %510 = tpu.matmul %509, %355, %cst_239 {dimension_numbers = #tpu.dot_dimension_numbers<[2], [1], [1], [2], [0, 0, 0, 1, 1, 2], [0], [0]>} : vector<2x1x16xf32>, vector<2x16x16xf32>, vector<2x1x16xf32> -> vector<2x1x16xf32>
    %511 = arith.mulf %510, %510 : vector<2x1x16xf32>
    %cst_240 = arith.constant dense<0.000000e+00> : vector<2x1xf32>
    %512 = vector.multi_reduction <add>, %511, %cst_240 [2] : vector<2x1x16xf32> to vector<2x1xf32>
    %513 = vector.shape_cast %512 : vector<2x1xf32> to vector<2x1x1xf32>
    %514 = math.sqrt %513 : vector<2x1x1xf32>
    %cst_241 = arith.constant 1.000000e+00 : f32
    %515 = vector.broadcast %cst_241 : f32 to vector<2x1x1xf32>
    %516 = arith.addf %515, %513 : vector<2x1x1xf32>
    %cst_242 = arith.constant 9.99999993E-9 : f32
    %517 = vector.broadcast %cst_242 : f32 to vector<2x1x1xf32>
    %518 = arith.addf %514, %517 : vector<2x1x1xf32>
    %519 = arith.mulf %516, %518 : vector<2x1x1xf32>
    %520 = tpu.reciprocal %519 {approx = true} : vector<2x1x1xf32> -> vector<2x1x1xf32>
    %521 = arith.mulf %513, %520 : vector<2x1x1xf32>
    %522 = vector.broadcast %521 : vector<2x1x1xf32> to vector<2x1x16xf32>
    %523 = arith.mulf %522, %510 : vector<2x1x16xf32>
    %cst_243 = arith.constant dense<0.000000e+00> : vector<2x1x16xf32>
    %524 = tpu.matmul %523, %355, %cst_243 {dimension_numbers = #tpu.dot_dimension_numbers<[2], [2], [1], [1], [0, 0, 0, 1, 1, 1], [0], [0]>} : vector<2x1x16xf32>, vector<2x16x16xf32>, vector<2x1x16xf32> -> vector<2x1x16xf32>
    %525 = arith.addf %442, %524 : vector<2x1x16xf32>
    %526 = arith.maximumf %474, %491 : vector<2x1x16xf32>
    %527 = arith.maximumf %526, %508 : vector<2x1x16xf32>
    %528 = arith.maximumf %527, %525 : vector<2x1x16xf32>
    %529 = arith.subf %474, %528 : vector<2x1x16xf32>
    %530 = math.exp %529 : vector<2x1x16xf32>
    %531 = arith.subf %491, %528 : vector<2x1x16xf32>
    %532 = math.exp %531 : vector<2x1x16xf32>
    %533 = arith.subf %508, %528 : vector<2x1x16xf32>
    %534 = math.exp %533 : vector<2x1x16xf32>
    %535 = arith.subf %525, %528 : vector<2x1x16xf32>
    %536 = math.exp %535 : vector<2x1x16xf32>
    %537 = arith.addf %530, %532 : vector<2x1x16xf32>
    %538 = arith.addf %537, %534 : vector<2x1x16xf32>
    %539 = arith.addf %538, %536 : vector<2x1x16xf32>
    %540 = tpu.reciprocal %539 {approx = true} : vector<2x1x16xf32> -> vector<2x1x16xf32>
    %541 = arith.mulf %530, %540 : vector<2x1x16xf32>
    %cst_244 = arith.constant dense<0.000000e+00> : vector<2x1x16xf32>
    %542 = tpu.matmul %541, %352, %cst_244 {dimension_numbers = #tpu.dot_dimension_numbers<[2], [1], [1], [2], [0, 0, 0, 1, 1, 2], [0], [0]>} : vector<2x1x16xf32>, vector<2x16x16xf32>, vector<2x1x16xf32> -> vector<2x1x16xf32>
    %543 = arith.mulf %542, %542 : vector<2x1x16xf32>
    %cst_245 = arith.constant dense<0.000000e+00> : vector<2x1xf32>
    %544 = vector.multi_reduction <add>, %543, %cst_245 [2] : vector<2x1x16xf32> to vector<2x1xf32>
    %545 = vector.shape_cast %544 : vector<2x1xf32> to vector<2x1x1xf32>
    %546 = math.sqrt %545 : vector<2x1x1xf32>
    %cst_246 = arith.constant 1.000000e+00 : f32
    %547 = vector.broadcast %cst_246 : f32 to vector<2x1x1xf32>
    %548 = arith.addf %547, %545 : vector<2x1x1xf32>
    %cst_247 = arith.constant 9.99999993E-9 : f32
    %549 = vector.broadcast %cst_247 : f32 to vector<2x1x1xf32>
    %550 = arith.addf %546, %549 : vector<2x1x1xf32>
    %551 = arith.mulf %548, %550 : vector<2x1x1xf32>
    %552 = tpu.reciprocal %551 {approx = true} : vector<2x1x1xf32> -> vector<2x1x1xf32>
    %553 = arith.mulf %545, %552 : vector<2x1x1xf32>
    %554 = vector.broadcast %553 : vector<2x1x1xf32> to vector<2x1x16xf32>
    %555 = arith.mulf %554, %542 : vector<2x1x16xf32>
    %556 = arith.mulf %532, %540 : vector<2x1x16xf32>
    %cst_248 = arith.constant dense<0.000000e+00> : vector<2x1x16xf32>
    %557 = tpu.matmul %556, %353, %cst_248 {dimension_numbers = #tpu.dot_dimension_numbers<[2], [1], [1], [2], [0, 0, 0, 1, 1, 2], [0], [0]>} : vector<2x1x16xf32>, vector<2x16x16xf32>, vector<2x1x16xf32> -> vector<2x1x16xf32>
    %558 = arith.mulf %557, %557 : vector<2x1x16xf32>
    %cst_249 = arith.constant dense<0.000000e+00> : vector<2x1xf32>
    %559 = vector.multi_reduction <add>, %558, %cst_249 [2] : vector<2x1x16xf32> to vector<2x1xf32>
    %560 = vector.shape_cast %559 : vector<2x1xf32> to vector<2x1x1xf32>
    %561 = math.sqrt %560 : vector<2x1x1xf32>
    %cst_250 = arith.constant 1.000000e+00 : f32
    %562 = vector.broadcast %cst_250 : f32 to vector<2x1x1xf32>
    %563 = arith.addf %562, %560 : vector<2x1x1xf32>
    %cst_251 = arith.constant 9.99999993E-9 : f32
    %564 = vector.broadcast %cst_251 : f32 to vector<2x1x1xf32>
    %565 = arith.addf %561, %564 : vector<2x1x1xf32>
    %566 = arith.mulf %563, %565 : vector<2x1x1xf32>
    %567 = tpu.reciprocal %566 {approx = true} : vector<2x1x1xf32> -> vector<2x1x1xf32>
    %568 = arith.mulf %560, %567 : vector<2x1x1xf32>
    %569 = vector.broadcast %568 : vector<2x1x1xf32> to vector<2x1x16xf32>
    %570 = arith.mulf %569, %557 : vector<2x1x16xf32>
    %571 = arith.mulf %534, %540 : vector<2x1x16xf32>
    %cst_252 = arith.constant dense<0.000000e+00> : vector<2x1x16xf32>
    %572 = tpu.matmul %571, %354, %cst_252 {dimension_numbers = #tpu.dot_dimension_numbers<[2], [1], [1], [2], [0, 0, 0, 1, 1, 2], [0], [0]>} : vector<2x1x16xf32>, vector<2x16x16xf32>, vector<2x1x16xf32> -> vector<2x1x16xf32>
    %573 = arith.mulf %572, %572 : vector<2x1x16xf32>
    %cst_253 = arith.constant dense<0.000000e+00> : vector<2x1xf32>
    %574 = vector.multi_reduction <add>, %573, %cst_253 [2] : vector<2x1x16xf32> to vector<2x1xf32>
    %575 = vector.shape_cast %574 : vector<2x1xf32> to vector<2x1x1xf32>
    %576 = math.sqrt %575 : vector<2x1x1xf32>
    %cst_254 = arith.constant 1.000000e+00 : f32
    %577 = vector.broadcast %cst_254 : f32 to vector<2x1x1xf32>
    %578 = arith.addf %577, %575 : vector<2x1x1xf32>
    %cst_255 = arith.constant 9.99999993E-9 : f32
    %579 = vector.broadcast %cst_255 : f32 to vector<2x1x1xf32>
    %580 = arith.addf %576, %579 : vector<2x1x1xf32>
    %581 = arith.mulf %578, %580 : vector<2x1x1xf32>
    %582 = tpu.reciprocal %581 {approx = true} : vector<2x1x1xf32> -> vector<2x1x1xf32>
    %583 = arith.mulf %575, %582 : vector<2x1x1xf32>
    %584 = vector.broadcast %583 : vector<2x1x1xf32> to vector<2x1x16xf32>
    %585 = arith.mulf %584, %572 : vector<2x1x16xf32>
    %586 = arith.mulf %536, %540 : vector<2x1x16xf32>
    %cst_256 = arith.constant dense<0.000000e+00> : vector<2x1x16xf32>
    %587 = tpu.matmul %586, %355, %cst_256 {dimension_numbers = #tpu.dot_dimension_numbers<[2], [1], [1], [2], [0, 0, 0, 1, 1, 2], [0], [0]>} : vector<2x1x16xf32>, vector<2x16x16xf32>, vector<2x1x16xf32> -> vector<2x1x16xf32>
    %588 = arith.mulf %587, %587 : vector<2x1x16xf32>
    %cst_257 = arith.constant dense<0.000000e+00> : vector<2x1xf32>
    %589 = vector.multi_reduction <add>, %588, %cst_257 [2] : vector<2x1x16xf32> to vector<2x1xf32>
    %590 = vector.shape_cast %589 : vector<2x1xf32> to vector<2x1x1xf32>
    %591 = math.sqrt %590 : vector<2x1x1xf32>
    %cst_258 = arith.constant 1.000000e+00 : f32
    %592 = vector.broadcast %cst_258 : f32 to vector<2x1x1xf32>
    %593 = arith.addf %592, %590 : vector<2x1x1xf32>
    %cst_259 = arith.constant 9.99999993E-9 : f32
    %594 = vector.broadcast %cst_259 : f32 to vector<2x1x1xf32>
    %595 = arith.addf %591, %594 : vector<2x1x1xf32>
    %596 = arith.mulf %593, %595 : vector<2x1x1xf32>
    %597 = tpu.reciprocal %596 {approx = true} : vector<2x1x1xf32> -> vector<2x1x1xf32>
    %598 = arith.mulf %590, %597 : vector<2x1x1xf32>
    %599 = vector.broadcast %598 : vector<2x1x1xf32> to vector<2x1x16xf32>
    %600 = arith.mulf %599, %587 : vector<2x1x16xf32>
    %601 = vector.shape_cast %555 : vector<2x1x16xf32> to vector<2x16xf32>
    %c0_260 = arith.constant 0 : index
    %c0_261 = arith.constant 0 : index
    %602 = vector.load %arg3[%c0_260, %c0_261] : memref<2x64xf32, #tpu.memory_space<vmem>>, vector<2x16xf32>
    tpu.vector_store %arg3[%c0_260, %c0_261], %601 {strides = array<i32>} : memref<2x64xf32, #tpu.memory_space<vmem>>, vector<2x16xf32>,
    %603 = arith.mulf %601, %601 : vector<2x16xf32>
    %cst_262 = arith.constant dense<0.000000e+00> : vector<2xf32>
    %604 = vector.multi_reduction <add>, %603, %cst_262 [1] : vector<2x16xf32> to vector<2xf32>
    %605 = vector.shape_cast %604 : vector<2xf32> to vector<2x1xf32>
    %606 = math.sqrt %605 : vector<2x1xf32>
    %c0_263 = arith.constant 0 : index
    %c0_264 = arith.constant 0 : index
    %607 = vector.load %arg4[%c0_263, %c0_264] : memref<2x4xf32, #tpu.memory_space<vmem>>, vector<2x1xf32>
    tpu.vector_store %arg4[%c0_263, %c0_264], %606 {strides = array<i32>} : memref<2x4xf32, #tpu.memory_space<vmem>>, vector<2x1xf32>,
    %608 = vector.shape_cast %570 : vector<2x1x16xf32> to vector<2x16xf32>
    %c0_265 = arith.constant 0 : index
    %c16_266 = arith.constant 16 : index
    %609 = vector.load %arg3[%c0_265, %c16_266] : memref<2x64xf32, #tpu.memory_space<vmem>>, vector<2x16xf32>
    tpu.vector_store %arg3[%c0_265, %c16_266], %608 {strides = array<i32>} : memref<2x64xf32, #tpu.memory_space<vmem>>, vector<2x16xf32>,
    %610 = arith.mulf %608, %608 : vector<2x16xf32>
    %cst_267 = arith.constant dense<0.000000e+00> : vector<2xf32>
    %611 = vector.multi_reduction <add>, %610, %cst_267 [1] : vector<2x16xf32> to vector<2xf32>
    %612 = vector.shape_cast %611 : vector<2xf32> to vector<2x1xf32>
    %613 = math.sqrt %612 : vector<2x1xf32>
    %c0_268 = arith.constant 0 : index
    %c1_269 = arith.constant 1 : index
    %614 = vector.load %arg4[%c0_268, %c1_269] : memref<2x4xf32, #tpu.memory_space<vmem>>, vector<2x1xf32>
    tpu.vector_store %arg4[%c0_268, %c1_269], %613 {strides = array<i32>} : memref<2x4xf32, #tpu.memory_space<vmem>>, vector<2x1xf32>,
    %615 = vector.shape_cast %585 : vector<2x1x16xf32> to vector<2x16xf32>
    %c0_270 = arith.constant 0 : index
    %c32_271 = arith.constant 32 : index
    %616 = vector.load %arg3[%c0_270, %c32_271] : memref<2x64xf32, #tpu.memory_space<vmem>>, vector<2x16xf32>
    tpu.vector_store %arg3[%c0_270, %c32_271], %615 {strides = array<i32>} : memref<2x64xf32, #tpu.memory_space<vmem>>, vector<2x16xf32>,
    %617 = arith.mulf %615, %615 : vector<2x16xf32>
    %cst_272 = arith.constant dense<0.000000e+00> : vector<2xf32>
    %618 = vector.multi_reduction <add>, %617, %cst_272 [1] : vector<2x16xf32> to vector<2xf32>
    %619 = vector.shape_cast %618 : vector<2xf32> to vector<2x1xf32>
    %620 = math.sqrt %619 : vector<2x1xf32>
    %c0_273 = arith.constant 0 : index
    %c2_274 = arith.constant 2 : index
    %621 = vector.load %arg4[%c0_273, %c2_274] : memref<2x4xf32, #tpu.memory_space<vmem>>, vector<2x1xf32>
    tpu.vector_store %arg4[%c0_273, %c2_274], %620 {strides = array<i32>} : memref<2x4xf32, #tpu.memory_space<vmem>>, vector<2x1xf32>,
    %622 = vector.shape_cast %600 : vector<2x1x16xf32> to vector<2x16xf32>
    %c0_275 = arith.constant 0 : index
    %c48_276 = arith.constant 48 : index
    %623 = vector.load %arg3[%c0_275, %c48_276] : memref<2x64xf32, #tpu.memory_space<vmem>>, vector<2x16xf32>
    tpu.vector_store %arg3[%c0_275, %c48_276], %622 {strides = array<i32>} : memref<2x64xf32, #tpu.memory_space<vmem>>, vector<2x16xf32>,
    %624 = arith.mulf %622, %622 : vector<2x16xf32>
    %cst_277 = arith.constant dense<0.000000e+00> : vector<2xf32>
    %625 = vector.multi_reduction <add>, %624, %cst_277 [1] : vector<2x16xf32> to vector<2xf32>
    %626 = vector.shape_cast %625 : vector<2xf32> to vector<2x1xf32>
    %627 = math.sqrt %626 : vector<2x1xf32>
    %c0_278 = arith.constant 0 : index
    %c3_279 = arith.constant 3 : index
    %628 = vector.load %arg4[%c0_278, %c3_279] : memref<2x4xf32, #tpu.memory_space<vmem>>, vector<2x1xf32>
    tpu.vector_store %arg4[%c0_278, %c3_279], %627 {strides = array<i32>} : memref<2x4xf32, #tpu.memory_space<vmem>>, vector<2x1xf32>,
    return
  }
  func.func @transform_0(%arg0: i32) -> (i32, i32, i32) {
    %c0_i32 = arith.constant 0 : i32
    %c0_i32_0 = arith.constant 0 : i32
    %c0_i32_1 = arith.constant 0 : i32
    return %arg0, %c0_i32, %c0_i32_0 : i32, i32, i32
  }
  func.func @transform_1(%arg0: i32) -> (i32, i32, i32) {
    %c0_i32 = arith.constant 0 : i32
    %c0_i32_0 = arith.constant 0 : i32
    %c0_i32_1 = arith.constant 0 : i32
    %c0_i32_2 = arith.constant 0 : i32
    return %c0_i32, %c0_i32_0, %c0_i32_1 : i32, i32, i32
  }
  func.func @transform_2(%arg0: i32) -> (i32, i32) {
    %c0_i32 = arith.constant 0 : i32
    %c0_i32_0 = arith.constant 0 : i32
    return %arg0, %c0_i32 : i32, i32
  }
  func.func @transform_3(%arg0: i32) -> (i32, i32) {
    %c0_i32 = arith.constant 0 : i32
    %c0_i32_0 = arith.constant 0 : i32
    return %arg0, %c0_i32 : i32, i32
  }
}

module attributes {stable_mosaic.version = 11 : i64} {
  func.func @_decoder_kernel(%arg0: i32, %arg1: memref<2x64xf32, #tpu.memory_space<vmem>>, %arg2: memref<64x512xbf16, #tpu.memory_space<vmem>>, %arg3: memref<1x512xf32, #tpu.memory_space<vmem>>, %arg4: memref<512x1024xbf16, #tpu.memory_space<vmem>>, %arg5: memref<1x1024xf32, #tpu.memory_space<vmem>>, %arg6: memref<1024x1200xbf16, #tpu.memory_space<vmem>>, %arg7: memref<1x1200xf32, #tpu.memory_space<vmem>>, %arg8: memref<1200x1xbf16, #tpu.memory_space<vmem>>, %arg9: memref<1x1xf32, #tpu.memory_space<vmem>>, %arg10: memref<2x1200xf32, #tpu.memory_space<vmem>>, %arg11: memref<2x1xf32, #tpu.memory_space<vmem>>) attributes {dimension_semantics = [#tpu.dimension_semantics<parallel>], iteration_bounds = array<i64: 1>, scalar_prefetch = 0 : i64, scratch_operands = 0 : i64, tpu.core_type = #tpu.core_type<tc>, window_params = [{transform_indices = @transform_0, window_bounds = array<i64: 2, 64>}, {pipeline_mode = #tpu.pipeline_mode<synchronous>, transform_indices = @transform_1, window_bounds = array<i64: 64, 512>}, {pipeline_mode = #tpu.pipeline_mode<synchronous>, transform_indices = @transform_2, window_bounds = array<i64: 1, 512>}, {pipeline_mode = #tpu.pipeline_mode<synchronous>, transform_indices = @transform_3, window_bounds = array<i64: 512, 1024>}, {pipeline_mode = #tpu.pipeline_mode<synchronous>, transform_indices = @transform_4, window_bounds = array<i64: 1, 1024>}, {pipeline_mode = #tpu.pipeline_mode<synchronous>, transform_indices = @transform_5, window_bounds = array<i64: 1024, 1200>}, {pipeline_mode = #tpu.pipeline_mode<synchronous>, transform_indices = @transform_6, window_bounds = array<i64: 1, 1200>}, {pipeline_mode = #tpu.pipeline_mode<synchronous>, transform_indices = @transform_7, window_bounds = array<i64: 1200, 1>}, {pipeline_mode = #tpu.pipeline_mode<synchronous>, transform_indices = @transform_8, window_bounds = array<i64: 1, 1>}, {transform_indices = @transform_9, window_bounds = array<i64: 2, 1200>}, {transform_indices = @transform_10, window_bounds = array<i64: 2, 1>}]} {
    %c0 = arith.constant 0 : index
    %c0_0 = arith.constant 0 : index
    %0 = vector.load %arg1[%c0, %c0_0] : memref<2x64xf32, #tpu.memory_space<vmem>>, vector<2x64xf32>
    %1 = arith.truncf %0 : vector<2x64xf32> to vector<2x64xbf16>
    %c0_1 = arith.constant 0 : index
    %c0_2 = arith.constant 0 : index
    %2 = vector.load %arg2[%c0_1, %c0_2] : memref<64x512xbf16, #tpu.memory_space<vmem>>, vector<64x512xbf16>
    %cst = arith.constant dense<0.000000e+00> : vector<2x512xf32>
    %3 = tpu.matmul %1, %2, %cst {dimension_numbers = #tpu.dot_dimension_numbers<[1], [0], [0], [1], [0, 0, 1, 1], [], []>} : vector<2x64xbf16>, vector<64x512xbf16>, vector<2x512xf32> -> vector<2x512xf32>
    %c0_3 = arith.constant 0 : index
    %c0_4 = arith.constant 0 : index
    %4 = vector.load %arg3[%c0_3, %c0_4] : memref<1x512xf32, #tpu.memory_space<vmem>>, vector<1x512xf32>
    %5 = vector.broadcast %4 : vector<1x512xf32> to vector<2x512xf32>
    %6 = arith.addf %3, %5 : vector<2x512xf32>
    %cst_5 = arith.constant 0.000000e+00 : f32
    %7 = vector.broadcast %cst_5 : f32 to vector<2x512xf32>
    %8 = arith.maximumf %6, %7 : vector<2x512xf32>
    %9 = arith.truncf %8 : vector<2x512xf32> to vector<2x512xbf16>
    %c0_6 = arith.constant 0 : index
    %c0_7 = arith.constant 0 : index
    %10 = vector.load %arg4[%c0_6, %c0_7] : memref<512x1024xbf16, #tpu.memory_space<vmem>>, vector<512x1024xbf16>
    %cst_8 = arith.constant dense<0.000000e+00> : vector<2x1024xf32>
    %11 = tpu.matmul %9, %10, %cst_8 {dimension_numbers = #tpu.dot_dimension_numbers<[1], [0], [0], [1], [0, 0, 1, 1], [], []>} : vector<2x512xbf16>, vector<512x1024xbf16>, vector<2x1024xf32> -> vector<2x1024xf32>
    %c0_9 = arith.constant 0 : index
    %c0_10 = arith.constant 0 : index
    %12 = vector.load %arg5[%c0_9, %c0_10] : memref<1x1024xf32, #tpu.memory_space<vmem>>, vector<1x1024xf32>
    %13 = vector.broadcast %12 : vector<1x1024xf32> to vector<2x1024xf32>
    %14 = arith.addf %11, %13 : vector<2x1024xf32>
    %cst_11 = arith.constant 0.000000e+00 : f32
    %15 = vector.broadcast %cst_11 : f32 to vector<2x1024xf32>
    %16 = arith.maximumf %14, %15 : vector<2x1024xf32>
    %17 = arith.truncf %16 : vector<2x1024xf32> to vector<2x1024xbf16>
    %c0_12 = arith.constant 0 : index
    %c0_13 = arith.constant 0 : index
    %18 = vector.load %arg6[%c0_12, %c0_13] : memref<1024x1200xbf16, #tpu.memory_space<vmem>>, vector<1024x1200xbf16>
    %cst_14 = arith.constant dense<0.000000e+00> : vector<2x1200xf32>
    %19 = tpu.matmul %17, %18, %cst_14 {dimension_numbers = #tpu.dot_dimension_numbers<[1], [0], [0], [1], [0, 0, 1, 1], [], []>} : vector<2x1024xbf16>, vector<1024x1200xbf16>, vector<2x1200xf32> -> vector<2x1200xf32>
    %c0_15 = arith.constant 0 : index
    %c0_16 = arith.constant 0 : index
    %20 = vector.load %arg7[%c0_15, %c0_16] : memref<1x1200xf32, #tpu.memory_space<vmem>>, vector<1x1200xf32>
    %21 = vector.broadcast %20 : vector<1x1200xf32> to vector<2x1200xf32>
    %22 = arith.addf %19, %21 : vector<2x1200xf32>
    %c0_17 = arith.constant 0 : index
    %c0_18 = arith.constant 0 : index
    %23 = vector.load %arg10[%c0_17, %c0_18] : memref<2x1200xf32, #tpu.memory_space<vmem>>, vector<2x1200xf32>
    tpu.vector_store %arg10[%c0_17, %c0_18], %22 {strides = array<i32>} : memref<2x1200xf32, #tpu.memory_space<vmem>>, vector<2x1200xf32>,
    %24 = arith.truncf %22 : vector<2x1200xf32> to vector<2x1200xbf16>
    %c0_19 = arith.constant 0 : index
    %c0_20 = arith.constant 0 : index
    %25 = vector.load %arg8[%c0_19, %c0_20] : memref<1200x1xbf16, #tpu.memory_space<vmem>>, vector<1200x1xbf16>
    %cst_21 = arith.constant dense<0.000000e+00> : vector<2x1xf32>
    %26 = tpu.matmul %24, %25, %cst_21 {dimension_numbers = #tpu.dot_dimension_numbers<[1], [0], [0], [1], [0, 0, 1, 1], [], []>} : vector<2x1200xbf16>, vector<1200x1xbf16>, vector<2x1xf32> -> vector<2x1xf32>
    %c0_22 = arith.constant 0 : index
    %c0_23 = arith.constant 0 : index
    %27 = vector.load %arg9[%c0_22, %c0_23] : memref<1x1xf32, #tpu.memory_space<vmem>>, vector<1x1xf32>
    %28 = vector.broadcast %27 : vector<1x1xf32> to vector<2x1xf32>
    %29 = arith.addf %26, %28 : vector<2x1xf32>
    %c0_24 = arith.constant 0 : index
    %c0_25 = arith.constant 0 : index
    %30 = vector.load %arg11[%c0_24, %c0_25] : memref<2x1xf32, #tpu.memory_space<vmem>>, vector<2x1xf32>
    tpu.vector_store %arg11[%c0_24, %c0_25], %29 {strides = array<i32>} : memref<2x1xf32, #tpu.memory_space<vmem>>, vector<2x1xf32>,
    return
  }
  func.func @transform_0(%arg0: i32) -> (i32, i32) {
    %c0_i32 = arith.constant 0 : i32
    %c0_i32_0 = arith.constant 0 : i32
    return %arg0, %c0_i32 : i32, i32
  }
  func.func @transform_1(%arg0: i32) -> (i32, i32) {
    %c0_i32 = arith.constant 0 : i32
    %c0_i32_0 = arith.constant 0 : i32
    %c0_i32_1 = arith.constant 0 : i32
    return %c0_i32, %c0_i32_0 : i32, i32
  }
  func.func @transform_2(%arg0: i32) -> (i32, i32) {
    %c0_i32 = arith.constant 0 : i32
    %c0_i32_0 = arith.constant 0 : i32
    %c0_i32_1 = arith.constant 0 : i32
    return %c0_i32, %c0_i32_0 : i32, i32
  }
  func.func @transform_3(%arg0: i32) -> (i32, i32) {
    %c0_i32 = arith.constant 0 : i32
    %c0_i32_0 = arith.constant 0 : i32
    %c0_i32_1 = arith.constant 0 : i32
    return %c0_i32, %c0_i32_0 : i32, i32
  }
  func.func @transform_4(%arg0: i32) -> (i32, i32) {
    %c0_i32 = arith.constant 0 : i32
    %c0_i32_0 = arith.constant 0 : i32
    %c0_i32_1 = arith.constant 0 : i32
    return %c0_i32, %c0_i32_0 : i32, i32
  }
  func.func @transform_5(%arg0: i32) -> (i32, i32) {
    %c0_i32 = arith.constant 0 : i32
    %c0_i32_0 = arith.constant 0 : i32
    %c0_i32_1 = arith.constant 0 : i32
    return %c0_i32, %c0_i32_0 : i32, i32
  }
  func.func @transform_6(%arg0: i32) -> (i32, i32) {
    %c0_i32 = arith.constant 0 : i32
    %c0_i32_0 = arith.constant 0 : i32
    %c0_i32_1 = arith.constant 0 : i32
    return %c0_i32, %c0_i32_0 : i32, i32
  }
  func.func @transform_7(%arg0: i32) -> (i32, i32) {
    %c0_i32 = arith.constant 0 : i32
    %c0_i32_0 = arith.constant 0 : i32
    %c0_i32_1 = arith.constant 0 : i32
    return %c0_i32, %c0_i32_0 : i32, i32
  }
  func.func @transform_8(%arg0: i32) -> (i32, i32) {
    %c0_i32 = arith.constant 0 : i32
    %c0_i32_0 = arith.constant 0 : i32
    %c0_i32_1 = arith.constant 0 : i32
    return %c0_i32, %c0_i32_0 : i32, i32
  }
  func.func @transform_9(%arg0: i32) -> (i32, i32) {
    %c0_i32 = arith.constant 0 : i32
    %c0_i32_0 = arith.constant 0 : i32
    return %arg0, %c0_i32 : i32, i32
  }
  func.func @transform_10(%arg0: i32) -> (i32, i32) {
    %c0_i32 = arith.constant 0 : i32
    %c0_i32_0 = arith.constant 0 : i32
    return %arg0, %c0_i32 : i32, i32
  }
}

</mosaic_0001>

<bundles_post_ra>
// kernel: capsule_net_forward.4
= control target key start
LH: loop header
LB: loop body
LE: loop exit
PB: predicated region body
PF: predicated region fallthrough
CT: control target
= control target key end

     0   :  { %vm120_vm0 = vcmask 662528   ;;  %vm175_vm1 = vcmask 1040384   ;;  %v551_v12 = vmov 0   ;;  %vm394_vm2 = vcmask 261120   ;;  %s901_s1 = inlined_call_operand.vmem [shape: bf16[81,32], index: 1, kind: input, shape index: {}]   ;;  %s902_s0 = inlined_call_operand.vmem [shape: f32[288,81], index: 0, kind: input, shape index: {}]   ;;  %s903_s2 = inlined_call_operand.vmem [shape: f32[1,32], index: 2, kind: input, shape index: {}]   ;;  %s904_s3 = inlined_call_operand.vmem [shape: f32[288,32], index: 3, kind: output, shape index: {}]  }
   0x1   :  { %v545_v0 = vld [vmem:[%s901_s1] sm:$0xff]   ;;  %v546_v1 = vld [vmem:[%s901_s1 + $0x8] sm:$0xff]   ;;  %v547_v2 = vld [vmem:[%s901_s1 + $0x10] sm:$0xff]   ;;  %v177_v13 = vsel %vm175_vm1, 65535, %v551_v12 }
   0x2   :  { %484 = vmatprep.subr.bf16.mxu0 %v545_v0  ;;  %532 = vmatprep.subr.bf16.mxu1 %v545_v0  ;;  %v15_v3 = vld [vmem:[%s902_s0] sm:$0xff]  ;;  %v16_v4 = vld [vmem:[%s902_s0 + $0x8] sm:$0xff]  ;;  %v548_v8 = vld [vmem:[%s901_s1 + $0x18] sm:$0xff]  }
   0x3   :  { %485 = vmatpush3.bf16.msra.mxu0 %v545_v0  ;;  %538 = vmatpush3.bf16.msra.mxu1 %v545_v0  ;;  %v51_v5 = vpack.c.bf16 %v16_v4, %v15_v3  ;;  %v35_v6 = vld [vmem:[%s902_s0 + $0xa0] sm:$0xff]  ;;  %v36_v7 = vld [vmem:[%s902_s0 + $0xa8] sm:$0xff]  ;;  %v17_v15 = vld [vmem:[%s902_s0 + $0x10] sm:$0xff] }
   0x4   :  { %486 = vmatprep.subr.bf16.mxu0 %v546_v1  ;;  %533 = vmatprep.subr.bf16.mxu1 %v546_v1  ;;  %v61_v9 = vpack.c.bf16 %v36_v7, %v35_v6  ;;  %v549_v10 = vld [vmem:[%s901_s1 + $0x20] sm:$0xff]   ;;  %v550_v11 = vld [vmem:[%s901_s1 + $0x28] ss:$0 sps:$4 sm:$0x11]   ;;  %v18_v16 = vld [vmem:[%s902_s0 + $0x18] sm:$0xff] }
   0x5   :  { %496 = vmatprep.mubr.msk.bf16.mxu0 %vm120_vm0, %v51_v5  ;;  %v179_v14 = vand.u32 %v550_v11, %v177_v13  ;;  %v37_v17 = vld [vmem:[%s902_s0 + $0xb0] sm:$0xff]  ;;  %v38_v18 = vld [vmem:[%s902_s0 + $0xb8] sm:$0xff]  ;;  %v19_v19 = vld [vmem:[%s902_s0 + $0x20] sm:$0xff]  ;;  %v52_v23 = vpack.c.bf16 %v18_v16, %v17_v15 }
   0x6   :  { %516 = vmatprep.mubr.msk.bf16.mxu1 %vm120_vm0, %v61_v9  ;;  %v20_v20 = vld [vmem:[%s902_s0 + $0x28] sm:$0xff]  ;;  %v39_v21 = vld [vmem:[%s902_s0 + $0xc0] sm:$0xff]  ;;  %v62_v24 = vpack.c.bf16 %v38_v18, %v37_v17  ;;  %v21_v27 = vld [vmem:[%s902_s0 + $0x30] sm:$0xff] }
   0x7   :  { %487 = vmatpush3.bf16.msra.mxu0 %v546_v1  ;;  %539 = vmatpush3.bf16.msra.mxu1 %v546_v1  ;;  %v40_v22 = vld [vmem:[%s902_s0 + $0xc8] sm:$0xff]  ;;  %v53_v25 = vpack.c.bf16 %v20_v20, %v19_v19  ;;  %v22_v28 = vld [vmem:[%s902_s0 + $0x38] sm:$0xff]  ;;  %v41_v29 = vld [vmem:[%s902_s0 + $0xd0] sm:$0xff] }
   0x8   :  { %488 = vmatprep.subr.bf16.mxu0 %v547_v2  ;;  %534 = vmatprep.subr.bf16.mxu1 %v547_v2  ;;  %v63_v26 = vpack.c.bf16 %v40_v22, %v39_v21  ;;  %v42_v30 = vld [vmem:[%s902_s0 + $0xd8] sm:$0xff]  ;;  %v23_v31 = vld [vmem:[%s902_s0 + $0x40] sm:$0xff]  ;;  %v24_v32 = vld [vmem:[%s902_s0 + $0x48] sm:$0xff]  ;;  %v54_v35 = vpack.c.bf16 %v22_v28, %v21_v27 }
   0x9   :  { %v43_v33 = vld [vmem:[%s902_s0 + $0xe0] sm:$0xff]  ;;  %v44_v34 = vld [vmem:[%s902_s0 + $0xe8] sm:$0xff]  ;;  %v64_v36 = vpack.c.bf16 %v42_v30, %v41_v29  ;;  %v55_v37 = vpack.c.bf16 %v24_v32, %v23_v31  ;;  %v25_v39 = vld [vmem:[%s902_s0 + $0x50] sm:$0xff] }
   0xa   :  { %v65_v38 = vpack.c.bf16 %v44_v34, %v43_v33  ;;  %v26_v40 = vld [vmem:[%s902_s0 + $0x58] sm:$0xff]  ;;  %v45_v41 = vld [vmem:[%s902_s0 + $0xf0] sm:$0xff]  ;;  %v27_v43 = vld [vmem:[%s902_s0 + $0x60] sm:$0xff] }
   0xb   :  { %489 = vmatpush3.bf16.msra.mxu0 %v547_v2  ;;  %540 = vmatpush3.bf16.msra.mxu1 %v547_v2  ;;  %v46_v42 = vld [vmem:[%s902_s0 + $0xf8] sm:$0xff]  ;;  %v28_v44 = vld [vmem:[%s902_s0 + $0x68] sm:$0xff]  ;;  %v47_v45 = vld [vmem:[%s902_s0 + $0x100] sm:$0xff]  ;;  %v56_v47 = vpack.c.bf16 %v26_v40, %v25_v39 }
   0xc   :  { %490 = vmatprep.subr.bf16.mxu0 %v548_v8  ;;  %535 = vmatprep.subr.bf16.mxu1 %v548_v8  ;;  %v48_v46 = vld [vmem:[%s902_s0 + $0x108] sm:$0xff]  ;;  %v66_v48 = vpack.c.bf16 %v46_v42, %v45_v41  ;;  %v57_v49 = vpack.c.bf16 %v28_v44, %v27_v43  ;;  %v29_v51 = vld [vmem:[%s902_s0 + $0x70] sm:$0xff]  ;;  %v30_v52 = vld [vmem:[%s902_s0 + $0x78] sm:$0xff] }
   0xd   :  { %v67_v50 = vpack.c.bf16 %v48_v46, %v47_v45  ;;  %v49_v53 = vld [vmem:[%s902_s0 + $0x110] sm:$0xff]  ;;  %v50_v54 = vld [vmem:[%s902_s0 + $0x118] sm:$0xff]  ;;  %v31_v55 = vld [vmem:[%s902_s0 + $0x80] sm:$0xff]  ;;  %v58_v57 = vpack.c.bf16 %v30_v52, %v29_v51 }
   0xe   :  { %v32_v56 = vld [vmem:[%s902_s0 + $0x88] sm:$0xff]  ;;  %v68_v58 = vpack.c.bf16 %v50_v54, %v49_v53  ;;  %v33_v60 = vld [vmem:[%s902_s0 + $0x90] sm:$0xff]  ;;  %v34_v61 = vld [vmem:[%s902_s0 + $0x98] sm:$0xff] }
   0xf   :  { %491 = vmatpush3.bf16.msra.mxu0 %v548_v8  ;;  %541 = vmatpush3.bf16.msra.mxu1 %v548_v8  ;;  %v59_v59 = vpack.c.bf16 %v32_v56, %v31_v55  ;;  %v60_v62 = vpack.c.bf16 %v34_v61, %v33_v60  ;;  %v719_v63 = vld [vmem:[%s903_s2] ss:$0 sm:$0xff] }
  0x10   :  { %492 = vmatprep.subr.bf16.mxu0 %v549_v10  ;;  %536 = vmatprep.subr.bf16.mxu1 %v549_v10 }
  0x13   :  { %493 = vmatpush3.bf16.msra.mxu0 %v549_v10  ;;  %542 = vmatpush3.bf16.msra.mxu1 %v549_v10 }
  0x14   :  { %494 = vmatprep.subr.bf16.mxu0 %v179_v14  ;;  %537 = vmatprep.subr.bf16.mxu1 %v179_v14 }
  0x17   :  { %495 = vmatpush3.bf16.msra.mxu0 %v179_v14  ;;  %543 = vmatpush3.bf16.msra.mxu1 %v179_v14 }
  0x1a   :  { %497 = vmatmul.mubr.msk.bf16.vlgmr.msra.gmra.mrb[0].mxu0 %vm120_vm0, %v52_v23  ;;  %517 = vmatmul.mubr.msk.bf16.vlgmr.msra.gmra.mrb[0].mxu1 %vm120_vm0, %v62_v24 }
  0x1b   :  { %500 = vmatprep.mubr.msk.bf16.mxu0 %vm120_vm0, %v53_v25  ;;  %520 = vmatprep.mubr.msk.bf16.mxu1 %vm120_vm0, %v63_v26 }
  0x22   :  { %501 = vmatmul.mubr.msk.bf16.gmra.mrb[4].mxu0 %vm120_vm0, %v54_v35  ;;  %521 = vmatmul.mubr.msk.bf16.gmra.mrb[4].mxu1 %vm120_vm0, %v64_v36 }
  0x23   :  { %504 = vmatprep.mubr.msk.bf16.mxu0 %vm120_vm0, %v55_v37  ;;  %524 = vmatprep.mubr.msk.bf16.mxu1 %vm120_vm0, %v65_v38 }
  0x2a   :  { %505 = vmatmul.mubr.msk.bf16.gmra.mrb[8].mxu0 %vm120_vm0, %v56_v47  ;;  %525 = vmatmul.mubr.msk.bf16.gmra.mrb[8].mxu1 %vm120_vm0, %v66_v48 }
  0x2b   :  { %508 = vmatprep.mubr.msk.bf16.mxu0 %vm120_vm0, %v57_v49  ;;  %528 = vmatprep.mubr.msk.bf16.mxu1 %vm120_vm0, %v67_v50 }
  0x32   :  { %509 = vmatmul.mubr.msk.bf16.gmra.mrb[12].mxu0 %vm120_vm0, %v58_v57  ;;  %529 = vmatmul.mubr.msk.bf16.gmra.mrb[12].mxu1 %vm120_vm0, %v68_v58 }
  0x33   :  { %512 = vmatprep.mubr.msk.bf16.mxu0 %vm120_vm0, %v59_v59 }
  0x3a   :  { %513 = vmatmul.mubr.msk.bf16.gmra.mrb[16].mxu0 %vm120_vm0, %v60_v62 }
  0xed   :  { %v498_v0 = vpop.f32.mrb[0].mxu0  ;;  %v518_v1 = vpop.f32.mrb[0].mxu1 }
  0xee   :  { %v224_v2 = vadd.f32 %v498_v0, %v719_v63  ;;  %v215_v3 = vpop.f32.mrb[1].mxu0  ;;  %v304_v4 = vadd.f32 %v518_v1, %v719_v63  ;;  %v295_v5 = vpop.f32.mrb[1].mxu1 }
  0xef   :  { %v216_v6 = vadd.f32 %v719_v63, %v215_v3  ;;  %v499_v7 = vpop.f32.mrb[2].mxu0  ;;  %v296_v8 = vadd.f32 %v719_v63, %v295_v5  ;;  %v519_v9 = vpop.f32.mrb[2].mxu1 }
  0xf0   :  { %v360_v10 = vmax.f32 %v224_v2, 0.0  ;;  %v227_v11 = vadd.f32 %v499_v7, %v719_v63  ;;  %v218_v12 = vpop.f32.mrb[3].mxu0  ;;  %v380_v13 = vmax.f32 %v304_v4, 0.0  ;;  %v307_v14 = vadd.f32 %v519_v9, %v719_v63  ;;  %v298_v15 = vpop.f32.mrb[3].mxu1 }
  0xf1   :  { %v358_v16 = vmax.f32 %v216_v6, 0.0  ;;  %v219_v17 = vadd.f32 %v719_v63, %v218_v12  ;;  %v378_v18 = vmax.f32 %v296_v8, 0.0  ;;  %v299_v19 = vadd.f32 %v719_v63, %v298_v15 }
  0xf2   :  { %397 = vst.msk [vmem:[%s904_s3 + $0x10] sm:$0xff] %vm394_vm2, %v360_v10  ;;  %v361_v20 = vmax.f32 %v227_v11, 0.0  ;;  %417 = vst.msk [vmem:[%s904_s3 + $0xb0] sm:$0xff] %vm394_vm2, %v380_v13  ;;  %v381_v21 = vmax.f32 %v307_v14, 0.0 }
  0xf3   :  { %395 = vst.msk [vmem:[%s904_s3] sm:$0xff] %vm394_vm2, %v358_v16  ;;  %v359_v22 = vmax.f32 %v219_v17, 0.0  ;;  %415 = vst.msk [vmem:[%s904_s3 + $0xa0] sm:$0xff] %vm394_vm2, %v378_v18  ;;  %v379_v23 = vmax.f32 %v299_v19, 0.0 }
  0xf4   :  { %398 = vst.msk [vmem:[%s904_s3 + $0x18] sm:$0xff] %vm394_vm2, %v361_v20  ;;  %418 = vst.msk [vmem:[%s904_s3 + $0xb8] sm:$0xff] %vm394_vm2, %v381_v21 }
  0xf5   :  { %396 = vst.msk [vmem:[%s904_s3 + $0x8] sm:$0xff] %vm394_vm2, %v359_v22  ;;  %v502_v24 = vpop.f32.mrb[4].mxu0  ;;  %416 = vst.msk [vmem:[%s904_s3 + $0xa8] sm:$0xff] %vm394_vm2, %v379_v23  ;;  %v522_v25 = vpop.f32.mrb[4].mxu1 }
  0xf6   :  { %v240_v26 = vadd.f32 %v502_v24, %v719_v63  ;;  %v231_v27 = vpop.f32.mrb[5].mxu0  ;;  %v320_v28 = vadd.f32 %v522_v25, %v719_v63  ;;  %v311_v29 = vpop.f32.mrb[5].mxu1 }
  0xf7   :  { %v232_v30 = vadd.f32 %v719_v63, %v231_v27  ;;  %v503_v31 = vpop.f32.mrb[6].mxu0  ;;  %v312_v32 = vadd.f32 %v719_v63, %v311_v29  ;;  %v523_v33 = vpop.f32.mrb[6].mxu1 }
  0xf8   :  { %v364_v34 = vmax.f32 %v240_v26, 0.0  ;;  %v243_v35 = vadd.f32 %v503_v31, %v719_v63  ;;  %v234_v36 = vpop.f32.mrb[7].mxu0  ;;  %v384_v37 = vmax.f32 %v320_v28, 0.0  ;;  %v323_v38 = vadd.f32 %v523_v33, %v719_v63  ;;  %v314_v39 = vpop.f32.mrb[7].mxu1 }
  0xf9   :  { %v362_v40 = vmax.f32 %v232_v30, 0.0  ;;  %v235_v41 = vadd.f32 %v719_v63, %v234_v36  ;;  %v382_v42 = vmax.f32 %v312_v32, 0.0  ;;  %v315_v43 = vadd.f32 %v719_v63, %v314_v39 }
  0xfa   :  { %401 = vst.msk [vmem:[%s904_s3 + $0x30] sm:$0xff] %vm394_vm2, %v364_v34  ;;  %v365_v44 = vmax.f32 %v243_v35, 0.0  ;;  %421 = vst.msk [vmem:[%s904_s3 + $0xd0] sm:$0xff] %vm394_vm2, %v384_v37  ;;  %v385_v45 = vmax.f32 %v323_v38, 0.0 }
  0xfb   :  { %399 = vst.msk [vmem:[%s904_s3 + $0x20] sm:$0xff] %vm394_vm2, %v362_v40  ;;  %v363_v46 = vmax.f32 %v235_v41, 0.0  ;;  %419 = vst.msk [vmem:[%s904_s3 + $0xc0] sm:$0xff] %vm394_vm2, %v382_v42  ;;  %v383_v47 = vmax.f32 %v315_v43, 0.0 }
  0xfc   :  { %402 = vst.msk [vmem:[%s904_s3 + $0x38] sm:$0xff] %vm394_vm2, %v365_v44  ;;  %422 = vst.msk [vmem:[%s904_s3 + $0xd8] sm:$0xff] %vm394_vm2, %v385_v45 }
  0xfd   :  { %400 = vst.msk [vmem:[%s904_s3 + $0x28] sm:$0xff] %vm394_vm2, %v363_v46  ;;  %v506_v48 = vpop.f32.mrb[8].mxu0  ;;  %420 = vst.msk [vmem:[%s904_s3 + $0xc8] sm:$0xff] %vm394_vm2, %v383_v47  ;;  %v526_v49 = vpop.f32.mrb[8].mxu1 }
  0xfe   :  { %v256_v50 = vadd.f32 %v506_v48, %v719_v63  ;;  %v247_v51 = vpop.f32.mrb[9].mxu0  ;;  %v336_v52 = vadd.f32 %v526_v49, %v719_v63  ;;  %v327_v53 = vpop.f32.mrb[9].mxu1 }
  0xff   :  { %v248_v54 = vadd.f32 %v719_v63, %v247_v51  ;;  %v507_v55 = vpop.f32.mrb[10].mxu0  ;;  %v328_v56 = vadd.f32 %v719_v63, %v327_v53  ;;  %v527_v57 = vpop.f32.mrb[10].mxu1 }
 0x100   :  { %v368_v58 = vmax.f32 %v256_v50, 0.0  ;;  %v259_v59 = vadd.f32 %v507_v55, %v719_v63  ;;  %v250_v60 = vpop.f32.mrb[11].mxu0  ;;  %v388_v61 = vmax.f32 %v336_v52, 0.0  ;;  %v339_v62 = vadd.f32 %v527_v57, %v719_v63  ;;  %v330_v0 = vpop.f32.mrb[11].mxu1 }
 0x101   :  { %v366_v1 = vmax.f32 %v248_v54, 0.0  ;;  %v251_v2 = vadd.f32 %v719_v63, %v250_v60  ;;  %v386_v3 = vmax.f32 %v328_v56, 0.0  ;;  %v331_v4 = vadd.f32 %v719_v63, %v330_v0 }
 0x102   :  { %405 = vst.msk [vmem:[%s904_s3 + $0x50] sm:$0xff] %vm394_vm2, %v368_v58  ;;  %v369_v5 = vmax.f32 %v259_v59, 0.0  ;;  %425 = vst.msk [vmem:[%s904_s3 + $0xf0] sm:$0xff] %vm394_vm2, %v388_v61  ;;  %v389_v6 = vmax.f32 %v339_v62, 0.0 }
 0x103   :  { %403 = vst.msk [vmem:[%s904_s3 + $0x40] sm:$0xff] %vm394_vm2, %v366_v1  ;;  %v367_v7 = vmax.f32 %v251_v2, 0.0  ;;  %423 = vst.msk [vmem:[%s904_s3 + $0xe0] sm:$0xff] %vm394_vm2, %v386_v3  ;;  %v387_v8 = vmax.f32 %v331_v4, 0.0 }
 0x104   :  { %406 = vst.msk [vmem:[%s904_s3 + $0x58] sm:$0xff] %vm394_vm2, %v369_v5  ;;  %426 = vst.msk [vmem:[%s904_s3 + $0xf8] sm:$0xff] %vm394_vm2, %v389_v6 }
 0x105   :  { %404 = vst.msk [vmem:[%s904_s3 + $0x48] sm:$0xff] %vm394_vm2, %v367_v7  ;;  %v510_v9 = vpop.f32.mrb[12].mxu0  ;;  %424 = vst.msk [vmem:[%s904_s3 + $0xe8] sm:$0xff] %vm394_vm2, %v387_v8  ;;  %v530_v10 = vpop.f32.mrb[12].mxu1 }
 0x106   :  { %v272_v11 = vadd.f32 %v510_v9, %v719_v63  ;;  %v263_v12 = vpop.f32.mrb[13].mxu0  ;;  %v352_v13 = vadd.f32 %v530_v10, %v719_v63  ;;  %v343_v14 = vpop.f32.mrb[13].mxu1 }
 0x107   :  { %v264_v15 = vadd.f32 %v719_v63, %v263_v12  ;;  %v511_v16 = vpop.f32.mrb[14].mxu0  ;;  %v344_v17 = vadd.f32 %v719_v63, %v343_v14  ;;  %v531_v18 = vpop.f32.mrb[14].mxu1 }
 0x108   :  { %v372_v19 = vmax.f32 %v272_v11, 0.0  ;;  %v275_v20 = vadd.f32 %v511_v16, %v719_v63  ;;  %v266_v21 = vpop.f32.mrb[15].mxu0  ;;  %v392_v22 = vmax.f32 %v352_v13, 0.0  ;;  %v355_v23 = vadd.f32 %v531_v18, %v719_v63  ;;  %v346_v24 = vpop.f32.mrb[15].mxu1 }
 0x109   :  { %v370_v25 = vmax.f32 %v264_v15, 0.0  ;;  %v267_v26 = vadd.f32 %v719_v63, %v266_v21  ;;  %v390_v27 = vmax.f32 %v344_v17, 0.0  ;;  %v347_v28 = vadd.f32 %v719_v63, %v346_v24 }
 0x10a   :  { %409 = vst.msk [vmem:[%s904_s3 + $0x70] sm:$0xff] %vm394_vm2, %v372_v19  ;;  %v373_v29 = vmax.f32 %v275_v20, 0.0  ;;  %429 = vst.msk [vmem:[%s904_s3 + $0x110] sm:$0xff] %vm394_vm2, %v392_v22  ;;  %v393_v30 = vmax.f32 %v355_v23, 0.0 }
 0x10b   :  { %407 = vst.msk [vmem:[%s904_s3 + $0x60] sm:$0xff] %vm394_vm2, %v370_v25  ;;  %v371_v31 = vmax.f32 %v267_v26, 0.0  ;;  %427 = vst.msk [vmem:[%s904_s3 + $0x100] sm:$0xff] %vm394_vm2, %v390_v27  ;;  %v391_v32 = vmax.f32 %v347_v28, 0.0 }
 0x10c   :  { %410 = vst.msk [vmem:[%s904_s3 + $0x78] sm:$0xff] %vm394_vm2, %v373_v29  ;;  %430 = vst.msk [vmem:[%s904_s3 + $0x118] sm:$0xff] %vm394_vm2, %v393_v30 }
 0x10d   :  { %408 = vst.msk [vmem:[%s904_s3 + $0x68] sm:$0xff] %vm394_vm2, %v371_v31  ;;  %v514_v33 = vpop.f32.mrb[16].mxu0  ;;  %428 = vst.msk [vmem:[%s904_s3 + $0x108] sm:$0xff] %vm394_vm2, %v391_v32 }
 0x10e   :  { %v288_v34 = vadd.f32 %v514_v33, %v719_v63  ;;  %v279_v35 = vpop.f32.mrb[17].mxu0 }
 0x10f   :  { %v280_v36 = vadd.f32 %v719_v63, %v279_v35  ;;  %v515_v37 = vpop.f32.mrb[18].mxu0 }
 0x110   :  { %v376_v38 = vmax.f32 %v288_v34, 0.0  ;;  %v291_v39 = vadd.f32 %v515_v37, %v719_v63  ;;  %v282_v40 = vpop.f32.mrb[19].mxu0 }
 0x111   :  { %v374_v41 = vmax.f32 %v280_v36, 0.0  ;;  %v283_v42 = vadd.f32 %v719_v63, %v282_v40 }
 0x112   :  { %413 = vst.msk [vmem:[%s904_s3 + $0x90] sm:$0xff] %vm394_vm2, %v376_v38  ;;  %v377_v43 = vmax.f32 %v291_v39, 0.0 }
 0x113   :  { %411 = vst.msk [vmem:[%s904_s3 + $0x80] sm:$0xff] %vm394_vm2, %v374_v41  ;;  %v375_v44 = vmax.f32 %v283_v42, 0.0 }
 0x114   :  { %414 = vst.msk [vmem:[%s904_s3 + $0x98] sm:$0xff] %vm394_vm2, %v377_v43 }
 0x115   :  { %412 = vst.msk [vmem:[%s904_s3 + $0x88] sm:$0xff] %vm394_vm2, %v375_v44 }

// kernel: capsule_net_forward.5
= control target key start
LH: loop header
LB: loop body
LE: loop exit
PB: predicated region body
PF: predicated region fallthrough
CT: control target
= control target key end

     0   :  { %vm2369_vm0 = vmmov 0   ;;  %vm1360_vm1 = vcmask 261120   ;;  %s2947_s1 = inlined_call_operand.vmem [shape: bf16[2592,32], index: 1, kind: input, shape index: {}]   ;;  %s2948_s0 = inlined_call_operand.vmem [shape: f32[8,2592], index: 0, kind: input, shape index: {}]   ;;  %s2949_s2 = inlined_call_operand.vmem [shape: f32[1,32], index: 2, kind: input, shape index: {}]   ;;  %s2950_s3 = inlined_call_operand.vmem [shape: f32[8,32], index: 3, kind: output, shape index: {}]  }
   0x1   :  { %v2206_v0 = vld [vmem:[%s2947_s1 + $0x40] sm:$0xff]   ;;  %v2210_v4 = vld [vmem:[%s2947_s1 + $0x48] sm:$0xff]   ;;  %v2214_v8 = vld [vmem:[%s2947_s1 + $0x50] sm:$0xff]  }
   0x2   :  { %v2207_v1 = vld [vmem:[%s2947_s1] sm:$0xff]   ;;  %1973 = vmatprep.subr.bf16.mxu0 %v2206_v0  ;;  %v2211_v5 = vld [vmem:[%s2947_s1 + $0x8] sm:$0xff]   ;;  %v2215_v9 = vld [vmem:[%s2947_s1 + $0x10] sm:$0xff]  }
   0x3   :  { %v2208_v2 = vld [vmem:[%s2947_s1 + $0xc0] sm:$0xff]   ;;  %1974 = vmatpush3.bf16.msra.mxu0 %v2207_v1  ;;  %v2212_v6 = vld [vmem:[%s2947_s1 + $0xc8] sm:$0xff]   ;;  %v2216_v10 = vld [vmem:[%s2947_s1 + $0xd0] sm:$0xff]  }
   0x4   :  { %v2209_v3 = vld [vmem:[%s2947_s1 + $0x80] sm:$0xff]   ;;  %1995 = vmatprep.subr.bf16.mxu1 %v2208_v2  ;;  %1975 = vmatprep.subr.bf16.mxu0 %v2210_v4  ;;  %v2213_v7 = vld [vmem:[%s2947_s1 + $0x88] sm:$0xff]   ;;  %v2217_v11 = vld [vmem:[%s2947_s1 + $0x90] sm:$0xff]  }
   0x5   :  { %1996 = vmatpush3.bf16.msra.mxu1 %v2209_v3  ;;  %v2218_v12 = vld [vmem:[%s2947_s1 + $0x58] sm:$0xff]   ;;  %v2222_v16 = vld [vmem:[%s2947_s1 + $0x60] sm:$0xff]   ;;  %v2226_v20 = vld [vmem:[%s2947_s1 + $0x68] sm:$0xff]  }
   0x6   :  { %1997 = vmatprep.subr.bf16.mxu1 %v2212_v6  ;;  %v2219_v13 = vld [vmem:[%s2947_s1 + $0x18] sm:$0xff]   ;;  %v2223_v17 = vld [vmem:[%s2947_s1 + $0x20] sm:$0xff]   ;;  %v2227_v21 = vld [vmem:[%s2947_s1 + $0x28] sm:$0xff]  }
   0x7   :  { %1976 = vmatpush3.bf16.msra.mxu0 %v2211_v5  ;;  %v2220_v14 = vld [vmem:[%s2947_s1 + $0xd8] sm:$0xff]   ;;  %v2224_v18 = vld [vmem:[%s2947_s1 + $0xe0] sm:$0xff]   ;;  %v2228_v22 = vld [vmem:[%s2947_s1 + $0xe8] sm:$0xff]  }
   0x8   :  { %1977 = vmatprep.subr.bf16.mxu0 %v2214_v8  ;;  %v2221_v15 = vld [vmem:[%s2947_s1 + $0x98] sm:$0xff]   ;;  %v2225_v19 = vld [vmem:[%s2947_s1 + $0xa0] sm:$0xff]   ;;  %v2229_v23 = vld [vmem:[%s2947_s1 + $0xa8] sm:$0xff]  }
   0x9   :  { %1998 = vmatpush3.bf16.msra.mxu1 %v2213_v7  ;;  %v2230_v24 = vld [vmem:[%s2947_s1 + $0x70] sm:$0xff]   ;;  %v2234_v28 = vld [vmem:[%s2947_s1 + $0x78] sm:$0xff]   ;;  %v16_v32 = vld [vmem:[%s2948_s0 + $0x8] sm:$0xff] }
   0xa   :  { %1999 = vmatprep.subr.bf16.mxu1 %v2216_v10  ;;  %v2231_v25 = vld [vmem:[%s2947_s1 + $0x30] sm:$0xff]   ;;  %v2235_v29 = vld [vmem:[%s2947_s1 + $0x38] sm:$0xff]   ;;  %v15_v33 = vld [vmem:[%s2948_s0] sm:$0xff]  ;;  %v37_v34 = vpack.c.bf16 %v16_v32, %v16_v32 }
   0xb   :  { %1978 = vmatpush3.bf16.msra.mxu0 %v2215_v9  ;;  %v2232_v26 = vld [vmem:[%s2947_s1 + $0xf0] sm:$0xff]   ;;  %v2236_v30 = vld [vmem:[%s2947_s1 + $0xf8] sm:$0xff]   ;;  %v36_v35 = vpack.c.bf16 %v15_v33, %v15_v33  ;;  %v2238_v36 = vld [vmem:[%s2947_s1 + $0x140] sm:$0xff]  }
   0xc   :  { %1979 = vmatprep.subr.bf16.mxu0 %v2218_v12  ;;  %v2233_v27 = vld [vmem:[%s2947_s1 + $0xb0] sm:$0xff]   ;;  %v2237_v31 = vld [vmem:[%s2947_s1 + $0xb8] sm:$0xff]   ;;  %v2239_v39 = vld [vmem:[%s2947_s1 + $0x100] sm:$0xff]   ;;  %1396 = vmatprep.mubr.bf16.mxu0 %v37_v34 }
   0xd   :  { %2000 = vmatpush3.bf16.msra.mxu1 %v2217_v11  ;;  %v18_v37 = vld [vmem:[%s2948_s0 + $0x18] sm:$0xff]  ;;  %v2240_v40 = vld [vmem:[%s2947_s1 + $0x1c0] sm:$0xff]   ;;  %v17_v41 = vld [vmem:[%s2948_s0 + $0x10] sm:$0xff] }
   0xe   :  { %2001 = vmatprep.subr.bf16.mxu1 %v2220_v14  ;;  %v39_v38 = vpack.c.bf16 %v18_v37, %v18_v37  ;;  %v38_v42 = vpack.c.bf16 %v17_v41, %v17_v41  ;;  %v2241_v43 = vld [vmem:[%s2947_s1 + $0x180] sm:$0xff]   ;;  %v2242_v44 = vld [vmem:[%s2947_s1 + $0x148] sm:$0xff]   ;;  %v2246_v48 = vld [vmem:[%s2947_s1 + $0x150] sm:$0xff]  }
   0xf   :  { %1980 = vmatpush3.bf16.msra.mxu0 %v2219_v13  ;;  %v2243_v45 = vld [vmem:[%s2947_s1 + $0x108] sm:$0xff]   ;;  %v2247_v49 = vld [vmem:[%s2947_s1 + $0x110] sm:$0xff]   ;;  %v2250_v52 = vld [vmem:[%s2947_s1 + $0x158] sm:$0xff]  }
  0x10   :  { %1981 = vmatprep.subr.bf16.mxu0 %v2222_v16  ;;  %1436 = vmatprep.mubr.bf16.mxu1 %v39_v38  ;;  %v2244_v46 = vld [vmem:[%s2947_s1 + $0x1c8] sm:$0xff]   ;;  %v2248_v50 = vld [vmem:[%s2947_s1 + $0x1d0] sm:$0xff]   ;;  %v2251_v53 = vld [vmem:[%s2947_s1 + $0x118] sm:$0xff]  }
  0x11   :  { %2002 = vmatpush3.bf16.msra.mxu1 %v2221_v15  ;;  %v2245_v47 = vld [vmem:[%s2947_s1 + $0x188] sm:$0xff]   ;;  %v2249_v51 = vld [vmem:[%s2947_s1 + $0x190] sm:$0xff]   ;;  %v2252_v54 = vld [vmem:[%s2947_s1 + $0x1d8] sm:$0xff]  }
  0x12   :  { %2003 = vmatprep.subr.bf16.mxu1 %v2224_v18  ;;  %v2253_v55 = vld [vmem:[%s2947_s1 + $0x198] sm:$0xff]   ;;  %v2254_v56 = vld [vmem:[%s2947_s1 + $0x160] sm:$0xff]   ;;  %v2258_v60 = vld [vmem:[%s2947_s1 + $0x168] sm:$0xff]  }
  0x13   :  { %1982 = vmatpush3.bf16.msra.mxu0 %v2223_v17  ;;  %v2255_v57 = vld [vmem:[%s2947_s1 + $0x120] sm:$0xff]   ;;  %v2259_v61 = vld [vmem:[%s2947_s1 + $0x128] sm:$0xff]   ;;  %v2262_v0 = vld [vmem:[%s2947_s1 + $0x170] sm:$0xff]  }
  0x14   :  { %1983 = vmatprep.subr.bf16.mxu0 %v2226_v20  ;;  %v2256_v58 = vld [vmem:[%s2947_s1 + $0x1e0] sm:$0xff]   ;;  %v2260_v62 = vld [vmem:[%s2947_s1 + $0x1e8] sm:$0xff]   ;;  %v2263_v1 = vld [vmem:[%s2947_s1 + $0x130] sm:$0xff]  }
  0x15   :  { %2004 = vmatpush3.bf16.msra.mxu1 %v2225_v19  ;;  %v2257_v59 = vld [vmem:[%s2947_s1 + $0x1a0] sm:$0xff]   ;;  %v2261_v63 = vld [vmem:[%s2947_s1 + $0x1a8] sm:$0xff]   ;;  %v2264_v2 = vld [vmem:[%s2947_s1 + $0x1f0] sm:$0xff]  }
  0x16   :  { %2005 = vmatprep.subr.bf16.mxu1 %v2228_v22  ;;  %v2265_v3 = vld [vmem:[%s2947_s1 + $0x1b0] sm:$0xff]   ;;  %v2266_v4 = vld [vmem:[%s2947_s1 + $0x178] sm:$0xff]   ;;  %v20_v8 = vld [vmem:[%s2948_s0 + $0x28] sm:$0xff] }
  0x17   :  { %1984 = vmatpush3.bf16.msra.mxu0 %v2227_v21  ;;  %v2267_v5 = vld [vmem:[%s2947_s1 + $0x138] sm:$0xff]   ;;  %v19_v9 = vld [vmem:[%s2948_s0 + $0x20] sm:$0xff]  ;;  %v41_v10 = vpack.c.bf16 %v20_v8, %v20_v8  ;;  %v21_v17 = vld [vmem:[%s2948_s0 + $0x30] sm:$0xff] }
  0x18   :  { %1985 = vmatprep.subr.bf16.mxu0 %v2230_v24  ;;  %v2268_v6 = vld [vmem:[%s2947_s1 + $0x1f8] sm:$0xff]   ;;  %v40_v11 = vpack.c.bf16 %v19_v9, %v19_v9  ;;  %v2270_v12 = vld [vmem:[%s2947_s1 + $0x240] sm:$0xff]   ;;  %v42_v18 = vpack.c.bf16 %v21_v17, %v21_v17  ;;  %v2274_v20 = vld [vmem:[%s2947_s1 + $0x248] sm:$0xff]  }
  0x19   :  { %2006 = vmatpush3.bf16.msra.mxu1 %v2229_v23  ;;  %v2269_v7 = vld [vmem:[%s2947_s1 + $0x1b8] sm:$0xff]   ;;  %v2271_v15 = vld [vmem:[%s2947_s1 + $0x200] sm:$0xff]   ;;  %v2275_v21 = vld [vmem:[%s2947_s1 + $0x208] sm:$0xff]  }
  0x1a   :  { %2007 = vmatprep.subr.bf16.mxu1 %v2232_v26  ;;  %v22_v13 = vld [vmem:[%s2948_s0 + $0x38] sm:$0xff]  ;;  %v2272_v16 = vld [vmem:[%s2947_s1 + $0x2c0] sm:$0xff]   ;;  %v2276_v22 = vld [vmem:[%s2947_s1 + $0x2c8] sm:$0xff]  }
  0x1b   :  { %1986 = vmatpush3.bf16.msra.mxu0 %v2231_v25  ;;  %v43_v14 = vpack.c.bf16 %v22_v13, %v22_v13  ;;  %v2273_v19 = vld [vmem:[%s2947_s1 + $0x280] sm:$0xff]   ;;  %v2277_v23 = vld [vmem:[%s2947_s1 + $0x288] sm:$0xff]   ;;  %v2278_v24 = vld [vmem:[%s2947_s1 + $0x250] sm:$0xff]  }
  0x1c   :  { %1987 = vmatprep.subr.bf16.mxu0 %v2234_v28  ;;  %v2279_v25 = vld [vmem:[%s2947_s1 + $0x210] sm:$0xff]   ;;  %v2282_v28 = vld [vmem:[%s2947_s1 + $0x258] sm:$0xff]   ;;  %v2286_v32 = vld [vmem:[%s2947_s1 + $0x260] sm:$0xff]  }
  0x1d   :  { %2008 = vmatpush3.bf16.msra.mxu1 %v2233_v27  ;;  %v2280_v26 = vld [vmem:[%s2947_s1 + $0x2d0] sm:$0xff]   ;;  %v2287_v33 = vld [vmem:[%s2947_s1 + $0x220] sm:$0xff]   ;;  %v2291_v37 = vld [vmem:[%s2947_s1 + $0x228] sm:$0xff]  }
  0x1e   :  { %2009 = vmatprep.subr.bf16.mxu1 %v2236_v30  ;;  %v2281_v27 = vld [vmem:[%s2947_s1 + $0x290] sm:$0xff]   ;;  %v2284_v30 = vld [vmem:[%s2947_s1 + $0x2d8] sm:$0xff]   ;;  %v2288_v34 = vld [vmem:[%s2947_s1 + $0x2e0] sm:$0xff]  }
  0x1f   :  { %1988 = vmatpush3.bf16.msra.mxu0 %v2235_v29  ;;  %v2283_v29 = vld [vmem:[%s2947_s1 + $0x218] sm:$0xff]   ;;  %v2292_v38 = vld [vmem:[%s2947_s1 + $0x2e8] sm:$0xff]   ;;  %v2295_v41 = vld [vmem:[%s2947_s1 + $0x230] sm:$0xff]  }
  0x20   :  { %2017 = vmatprep.subr.bf16.mxu0 %v2238_v36  ;;  %v2290_v36 = vld [vmem:[%s2947_s1 + $0x268] sm:$0xff]   ;;  %v2318_v8 = vld [vmem:[%s2947_s1 + $0x360] sm:$0xff]   ;;  %v2327_v17 = vld [vmem:[%s2947_s1 + $0x330] sm:$0xff]  }
  0x21   :  { %2010 = vmatpush3.bf16.msra.mxu1 %v2237_v31  ;;  %v2285_v31 = vld [vmem:[%s2947_s1 + $0x298] sm:$0xff]   ;;  %v2319_v9 = vld [vmem:[%s2947_s1 + $0x320] sm:$0xff]   ;;  %v2323_v13 = vld [vmem:[%s2947_s1 + $0x328] sm:$0xff]  }
  0x22   :  { %1397 = vmatmul.mubr.bf16.vlgmr.msra.gmra.mrb[0].mxu0 %v36_v35  ;;  %2039 = vmatprep.subr.bf16.mxu1 %v2240_v40  ;;  %v2289_v35 = vld [vmem:[%s2947_s1 + $0x2a0] sm:$0xff]   ;;  %v2294_v40 = vld [vmem:[%s2947_s1 + $0x270] sm:$0xff]  }
  0x23   :  { %2018 = vmatpush3.bf16.msra.mxu0 %v2239_v39  ;;  %1476 = vmatprep.mubr.bf16.mxu0 %v41_v10  ;;  %v2293_v39 = vld [vmem:[%s2947_s1 + $0x2a8] sm:$0xff]   ;;  %v2320_v10 = vld [vmem:[%s2947_s1 + $0x3e0] sm:$0xff]  }
  0x24   :  { %1437 = vmatmul.mubr.bf16.vlgmr.msra.gmra.mrb[0].mxu1 %v38_v42  ;;  %2019 = vmatprep.subr.bf16.mxu0 %v2242_v44  ;;  %v2296_v42 = vld [vmem:[%s2947_s1 + $0x2f0] sm:$0xff]   ;;  %v2298_v44 = vld [vmem:[%s2947_s1 + $0x278] sm:$0xff]  }
  0x25   :  { %2040 = vmatpush3.bf16.msra.mxu1 %v2241_v43  ;;  %1516 = vmatprep.mubr.bf16.mxu1 %v43_v14  ;;  %v2297_v43 = vld [vmem:[%s2947_s1 + $0x2b0] sm:$0xff]   ;;  %v2324_v14 = vld [vmem:[%s2947_s1 + $0x3e8] sm:$0xff]  }
  0x26   :  { %2041 = vmatprep.subr.bf16.mxu1 %v2244_v46  ;;  %v2300_v46 = vld [vmem:[%s2947_s1 + $0x2f8] sm:$0xff]  }
  0x27   :  { %2020 = vmatpush3.bf16.msra.mxu0 %v2243_v45  ;;  %v2299_v45 = vld [vmem:[%s2947_s1 + $0x238] sm:$0xff]  }
  0x28   :  { %2021 = vmatprep.subr.bf16.mxu0 %v2246_v48  ;;  %v24_v48 = vld [vmem:[%s2948_s0 + $0x48] sm:$0xff] }
  0x29   :  { %2042 = vmatpush3.bf16.msra.mxu1 %v2245_v47  ;;  %v2301_v47 = vld [vmem:[%s2947_s1 + $0x2b8] sm:$0xff]  }
  0x2a   :  { %2043 = vmatprep.subr.bf16.mxu1 %v2248_v50  ;;  %v23_v50 = vld [vmem:[%s2948_s0 + $0x40] sm:$0xff] }
  0x2b   :  { %2022 = vmatpush3.bf16.msra.mxu0 %v2247_v49  ;;  %v45_v49 = vpack.c.bf16 %v24_v48, %v24_v48  ;;  %v2350_v48 = vld [vmem:[%s2947_s1 + $0x460] sm:$0xff]  }
  0x2c   :  { %2023 = vmatprep.subr.bf16.mxu0 %v2250_v52  ;;  %v2302_v52 = vld [vmem:[%s2947_s1 + $0x340] sm:$0xff]  }
  0x2d   :  { %2044 = vmatpush3.bf16.msra.mxu1 %v2249_v51  ;;  %v44_v51 = vpack.c.bf16 %v23_v50, %v23_v50  ;;  %v2352_v50 = vld [vmem:[%s2947_s1 + $0x4e0] sm:$0xff]  }
  0x2e   :  { %2045 = vmatprep.subr.bf16.mxu1 %v2252_v54 }
  0x2f   :  { %2024 = vmatpush3.bf16.msra.mxu0 %v2251_v53  ;;  %v26_v53 = vld [vmem:[%s2948_s0 + $0x58] sm:$0xff] }
  0x30   :  { %2025 = vmatprep.subr.bf16.mxu0 %v2254_v56  ;;  %v47_v54 = vpack.c.bf16 %v26_v53, %v26_v53  ;;  %v2304_v56 = vld [vmem:[%s2947_s1 + $0x3c0] sm:$0xff]   ;;  %v2355_v53 = vld [vmem:[%s2947_s1 + $0x428] sm:$0xff]  }
  0x31   :  { %2046 = vmatpush3.bf16.msra.mxu1 %v2253_v55  ;;  %v2303_v55 = vld [vmem:[%s2947_s1 + $0x300] sm:$0xff]  }
  0x32   :  { %2047 = vmatprep.subr.bf16.mxu1 %v2256_v58 }
  0x33   :  { %2026 = vmatpush3.bf16.msra.mxu0 %v2255_v57  ;;  %v25_v57 = vld [vmem:[%s2948_s0 + $0x50] sm:$0xff] }
  0x34   :  { %2027 = vmatprep.subr.bf16.mxu0 %v2258_v60  ;;  %v46_v58 = vpack.c.bf16 %v25_v57, %v25_v57  ;;  %v2306_v60 = vld [vmem:[%s2947_s1 + $0x348] sm:$0xff]   ;;  %v2359_v57 = vld [vmem:[%s2947_s1 + $0x430] sm:$0xff]  }
  0x35   :  { %2048 = vmatpush3.bf16.msra.mxu1 %v2257_v59  ;;  %v2305_v59 = vld [vmem:[%s2947_s1 + $0x380] sm:$0xff]  }
  0x36   :  { %2049 = vmatprep.subr.bf16.mxu1 %v2260_v62  ;;  %v2308_v62 = vld [vmem:[%s2947_s1 + $0x3c8] sm:$0xff]  }
  0x37   :  { %2028 = vmatpush3.bf16.msra.mxu0 %v2259_v61  ;;  %v2307_v61 = vld [vmem:[%s2947_s1 + $0x308] sm:$0xff]  }
  0x38   :  { %2029 = vmatprep.subr.bf16.mxu0 %v2262_v0  ;;  %v2310_v0 = vld [vmem:[%s2947_s1 + $0x350] sm:$0xff]  }
  0x39   :  { %2050 = vmatpush3.bf16.msra.mxu1 %v2261_v63  ;;  %v2309_v63 = vld [vmem:[%s2947_s1 + $0x388] sm:$0xff]  }
  0x3a   :  { %2051 = vmatprep.subr.bf16.mxu1 %v2264_v2  ;;  %v2312_v2 = vld [vmem:[%s2947_s1 + $0x3d0] sm:$0xff]  }
  0x3b   :  { %2030 = vmatpush3.bf16.msra.mxu0 %v2263_v1  ;;  %v2311_v1 = vld [vmem:[%s2947_s1 + $0x310] sm:$0xff]  }
  0x3c   :  { %2031 = vmatprep.subr.bf16.mxu0 %v2266_v4  ;;  %v2314_v4 = vld [vmem:[%s2947_s1 + $0x358] sm:$0xff]  }
  0x3d   :  { %2052 = vmatpush3.bf16.msra.mxu1 %v2265_v3  ;;  %v2313_v3 = vld [vmem:[%s2947_s1 + $0x390] sm:$0xff]  }
  0x3e   :  { %2053 = vmatprep.subr.bf16.mxu1 %v2268_v6  ;;  %v2316_v6 = vld [vmem:[%s2947_s1 + $0x3d8] sm:$0xff]  }
  0x3f   :  { %2032 = vmatpush3.bf16.msra.mxu0 %v2267_v5  ;;  %v2315_v5 = vld [vmem:[%s2947_s1 + $0x318] sm:$0xff]  }
  0x40   :  { %2061 = vmatprep.subr.bf16.mxu0 %v2270_v12  ;;  %v2322_v12 = vld [vmem:[%s2947_s1 + $0x368] sm:$0xff]  }
  0x41   :  { %2054 = vmatpush3.bf16.msra.mxu1 %v2269_v7  ;;  %v2317_v7 = vld [vmem:[%s2947_s1 + $0x398] sm:$0xff]  }
  0x42   :  { %1477 = vmatmul.mubr.bf16.vlgmr.msra.gmra.mrb[4].mxu0 %v40_v11  ;;  %2083 = vmatprep.subr.bf16.mxu1 %v2272_v16  ;;  %v2321_v11 = vld [vmem:[%s2947_s1 + $0x3a0] sm:$0xff]   ;;  %v2326_v16 = vld [vmem:[%s2947_s1 + $0x370] sm:$0xff]  }
  0x43   :  { %2062 = vmatpush3.bf16.msra.mxu0 %v2271_v15  ;;  %1556 = vmatprep.mubr.bf16.mxu0 %v45_v49  ;;  %v2325_v15 = vld [vmem:[%s2947_s1 + $0x3a8] sm:$0xff]   ;;  %v2351_v49 = vld [vmem:[%s2947_s1 + $0x420] sm:$0xff]  }
  0x44   :  { %1517 = vmatmul.mubr.bf16.vlgmr.msra.gmra.mrb[4].mxu1 %v42_v18  ;;  %2063 = vmatprep.subr.bf16.mxu0 %v2274_v20  ;;  %v2328_v18 = vld [vmem:[%s2947_s1 + $0x3f0] sm:$0xff]   ;;  %v2330_v20 = vld [vmem:[%s2947_s1 + $0x378] sm:$0xff]  }
  0x45   :  { %2084 = vmatpush3.bf16.msra.mxu1 %v2273_v19  ;;  %1596 = vmatprep.mubr.bf16.mxu1 %v47_v54  ;;  %v2329_v19 = vld [vmem:[%s2947_s1 + $0x3b0] sm:$0xff]   ;;  %v2356_v54 = vld [vmem:[%s2947_s1 + $0x4e8] sm:$0xff]  }
  0x46   :  { %2085 = vmatprep.subr.bf16.mxu1 %v2276_v22  ;;  %v2332_v22 = vld [vmem:[%s2947_s1 + $0x3f8] sm:$0xff]  }
  0x47   :  { %2064 = vmatpush3.bf16.msra.mxu0 %v2275_v21  ;;  %v2331_v21 = vld [vmem:[%s2947_s1 + $0x338] sm:$0xff]  }
  0x48   :  { %2065 = vmatprep.subr.bf16.mxu0 %v2278_v24  ;;  %v28_v24 = vld [vmem:[%s2948_s0 + $0x68] sm:$0xff] }
  0x49   :  { %2086 = vmatpush3.bf16.msra.mxu1 %v2277_v23  ;;  %v2333_v23 = vld [vmem:[%s2947_s1 + $0x3b8] sm:$0xff]  }
  0x4a   :  { %2087 = vmatprep.subr.bf16.mxu1 %v2280_v26  ;;  %v49_v26 = vpack.c.bf16 %v28_v24, %v28_v24 }
  0x4b   :  { %2066 = vmatpush3.bf16.msra.mxu0 %v2279_v25  ;;  %v27_v25 = vld [vmem:[%s2948_s0 + $0x60] sm:$0xff] }
  0x4c   :  { %2067 = vmatprep.subr.bf16.mxu0 %v2282_v28  ;;  %v2334_v28 = vld [vmem:[%s2947_s1 + $0x440] sm:$0xff]  }
  0x4d   :  { %2088 = vmatpush3.bf16.msra.mxu1 %v2281_v27  ;;  %v48_v27 = vpack.c.bf16 %v27_v25, %v27_v25 }
  0x4e   :  { %2089 = vmatprep.subr.bf16.mxu1 %v2284_v30 }
  0x4f   :  { %2068 = vmatpush3.bf16.msra.mxu0 %v2283_v29  ;;  %v30_v29 = vld [vmem:[%s2948_s0 + $0x78] sm:$0xff] }
  0x50   :  { %2069 = vmatprep.subr.bf16.mxu0 %v2286_v32  ;;  %v51_v30 = vpack.c.bf16 %v30_v29, %v30_v29  ;;  %v2336_v32 = vld [vmem:[%s2947_s1 + $0x4c0] sm:$0xff]  }
  0x51   :  { %2090 = vmatpush3.bf16.msra.mxu1 %v2285_v31  ;;  %v2335_v31 = vld [vmem:[%s2947_s1 + $0x400] sm:$0xff]  }
  0x52   :  { %2091 = vmatprep.subr.bf16.mxu1 %v2288_v34 }
  0x53   :  { %2070 = vmatpush3.bf16.msra.mxu0 %v2287_v33  ;;  %v29_v33 = vld [vmem:[%s2948_s0 + $0x70] sm:$0xff] }
  0x54   :  { %2071 = vmatprep.subr.bf16.mxu0 %v2290_v36  ;;  %v50_v34 = vpack.c.bf16 %v29_v33, %v29_v33  ;;  %v2338_v36 = vld [vmem:[%s2947_s1 + $0x448] sm:$0xff]  }
  0x55   :  { %2092 = vmatpush3.bf16.msra.mxu1 %v2289_v35  ;;  %v2337_v35 = vld [vmem:[%s2947_s1 + $0x480] sm:$0xff]  }
  0x56   :  { %2093 = vmatprep.subr.bf16.mxu1 %v2292_v38  ;;  %v2340_v38 = vld [vmem:[%s2947_s1 + $0x4c8] sm:$0xff]  }
  0x57   :  { %2072 = vmatpush3.bf16.msra.mxu0 %v2291_v37  ;;  %v2339_v37 = vld [vmem:[%s2947_s1 + $0x408] sm:$0xff]  }
  0x58   :  { %2073 = vmatprep.subr.bf16.mxu0 %v2294_v40  ;;  %v2342_v40 = vld [vmem:[%s2947_s1 + $0x450] sm:$0xff]  }
  0x59   :  { %2094 = vmatpush3.bf16.msra.mxu1 %v2293_v39  ;;  %v2341_v39 = vld [vmem:[%s2947_s1 + $0x488] sm:$0xff]  }
  0x5a   :  { %2095 = vmatprep.subr.bf16.mxu1 %v2296_v42  ;;  %v2344_v42 = vld [vmem:[%s2947_s1 + $0x4d0] sm:$0xff]  }
  0x5b   :  { %2074 = vmatpush3.bf16.msra.mxu0 %v2295_v41  ;;  %v2343_v41 = vld [vmem:[%s2947_s1 + $0x410] sm:$0xff]  }
  0x5c   :  { %2075 = vmatprep.subr.bf16.mxu0 %v2298_v44  ;;  %v2346_v44 = vld [vmem:[%s2947_s1 + $0x458] sm:$0xff]  }
  0x5d   :  { %2096 = vmatpush3.bf16.msra.mxu1 %v2297_v43  ;;  %v2345_v43 = vld [vmem:[%s2947_s1 + $0x490] sm:$0xff]  }
  0x5e   :  { %2097 = vmatprep.subr.bf16.mxu1 %v2300_v46  ;;  %v2348_v46 = vld [vmem:[%s2947_s1 + $0x4d8] sm:$0xff]  }
  0x5f   :  { %2076 = vmatpush3.bf16.msra.mxu0 %v2299_v45  ;;  %v2347_v45 = vld [vmem:[%s2947_s1 + $0x418] sm:$0xff]  }
  0x60   :  { %2105 = vmatprep.subr.bf16.mxu0 %v2302_v52  ;;  %v2354_v52 = vld [vmem:[%s2947_s1 + $0x468] sm:$0xff]  }
  0x61   :  { %2098 = vmatpush3.bf16.msra.mxu1 %v2301_v47  ;;  %v2349_v47 = vld [vmem:[%s2947_s1 + $0x498] sm:$0xff]  }
  0x62   :  { %1557 = vmatmul.mubr.bf16.vlgmr.msra.gmra.mrb[8].mxu0 %v44_v51  ;;  %2127 = vmatprep.subr.bf16.mxu1 %v2304_v56  ;;  %v2353_v51 = vld [vmem:[%s2947_s1 + $0x4a0] sm:$0xff]   ;;  %v2358_v56 = vld [vmem:[%s2947_s1 + $0x470] sm:$0xff]  }
  0x63   :  { %2106 = vmatpush3.bf16.msra.mxu0 %v2303_v55  ;;  %1636 = vmatprep.mubr.bf16.mxu0 %v49_v26  ;;  %v2357_v55 = vld [vmem:[%s2947_s1 + $0x4a8] sm:$0xff]  }
  0x64   :  { %1597 = vmatmul.mubr.bf16.vlgmr.msra.gmra.mrb[8].mxu1 %v46_v58  ;;  %2107 = vmatprep.subr.bf16.mxu0 %v2306_v60  ;;  %v2360_v58 = vld [vmem:[%s2947_s1 + $0x4f0] sm:$0xff]   ;;  %v2362_v60 = vld [vmem:[%s2947_s1 + $0x478] sm:$0xff]  }
  0x65   :  { %2128 = vmatpush3.bf16.msra.mxu1 %v2305_v59  ;;  %1676 = vmatprep.mubr.bf16.mxu1 %v51_v30  ;;  %v2361_v59 = vld [vmem:[%s2947_s1 + $0x4b0] sm:$0xff]  }
  0x66   :  { %2129 = vmatprep.subr.bf16.mxu1 %v2308_v62  ;;  %v2364_v62 = vld [vmem:[%s2947_s1 + $0x4f8] sm:$0xff]  }
  0x67   :  { %2108 = vmatpush3.bf16.msra.mxu0 %v2307_v61  ;;  %v2363_v61 = vld [vmem:[%s2947_s1 + $0x438] sm:$0xff]  }
  0x68   :  { %2109 = vmatprep.subr.bf16.mxu0 %v2310_v0  ;;  %v32_v0 = vld [vmem:[%s2948_s0 + $0x88] sm:$0xff] }
  0x69   :  { %2130 = vmatpush3.bf16.msra.mxu1 %v2309_v63  ;;  %v2365_v63 = vld [vmem:[%s2947_s1 + $0x4b8] sm:$0xff]  }
  0x6a   :  { %2131 = vmatprep.subr.bf16.mxu1 %v2312_v2  ;;  %v53_v2 = vpack.c.bf16 %v32_v0, %v32_v0 }
  0x6b   :  { %2110 = vmatpush3.bf16.msra.mxu0 %v2311_v1  ;;  %v31_v1 = vld [vmem:[%s2948_s0 + $0x80] sm:$0xff] }
  0x6c   :  { %2111 = vmatprep.subr.bf16.mxu0 %v2314_v4  ;;  %v34_v4 = vld [vmem:[%s2948_s0 + $0x98] sm:$0xff] }
  0x6d   :  { %2132 = vmatpush3.bf16.msra.mxu1 %v2313_v3  ;;  %v52_v3 = vpack.c.bf16 %v31_v1, %v31_v1 }
  0x6e   :  { %2133 = vmatprep.subr.bf16.mxu1 %v2316_v6  ;;  %v33_v6 = vld [vmem:[%s2948_s0 + $0x90] sm:$0xff] }
  0x6f   :  { %2112 = vmatpush3.bf16.msra.mxu0 %v2315_v5  ;;  %v2368_v5 = vmov 0.0  }
  0x70   :  { %2113 = vmatprep.subr.bf16.mxu0 %v2318_v8  ;;  %v54_v8 = vpack.c.bf16 %v33_v6, %v33_v6 }
  0x71   :  { %2134 = vmatpush3.bf16.msra.mxu1 %v2317_v7  ;;  %v55_v7 = vpack.c.bf16 %v34_v4, %v34_v4 }
  0x72   :  { %2135 = vmatprep.subr.bf16.mxu1 %v2320_v10  ;;  %v2367_v10 = vld [vmem:[%s2947_s1 + $0x508] sm:$0xff]  }
  0x73   :  { %2114 = vmatpush3.bf16.msra.mxu0 %v2319_v9  ;;  %v2366_v9 = vld [vmem:[%s2947_s1 + $0x500] sm:$0xff]  }
  0x74   :  { %2115 = vmatprep.subr.bf16.mxu0 %v2322_v12 }
  0x75   :  { %2136 = vmatpush3.bf16.msra.mxu1 %v2321_v11  ;;  %v35_v11 = vld [vmem:[%s2948_s0 + $0xa0] sm:$0xff] }
  0x76   :  { %2137 = vmatprep.subr.bf16.mxu1 %v2324_v14  ;;  %v56_v12 = vpack.c.bf16 %v35_v11, %v35_v11  ;;  %v1809_v14 = vld [vmem:[%s2949_s2] ss:$0 sm:$0xff] }
  0x77   :  { %2116 = vmatpush3.bf16.msra.mxu0 %v2323_v13 }
  0x78   :  { %2117 = vmatprep.subr.bf16.mxu0 %v2326_v16 }
  0x79   :  { %2138 = vmatpush3.bf16.msra.mxu1 %v2325_v15 }
  0x7a   :  { %2139 = vmatprep.subr.bf16.mxu1 %v2328_v18 }
  0x7b   :  { %2118 = vmatpush3.bf16.msra.mxu0 %v2327_v17 }
  0x7c   :  { %2119 = vmatprep.subr.bf16.mxu0 %v2330_v20 }
  0x7d   :  { %2140 = vmatpush3.bf16.msra.mxu1 %v2329_v19 }
  0x7e   :  { %2141 = vmatprep.subr.bf16.mxu1 %v2332_v22 }
  0x7f   :  { %2120 = vmatpush3.bf16.msra.mxu0 %v2331_v21 }
  0x80   :  { %2149 = vmatprep.subr.bf16.mxu0 %v2334_v28 }
  0x81   :  { %2142 = vmatpush3.bf16.msra.mxu1 %v2333_v23 }
  0x82   :  { %1637 = vmatmul.mubr.bf16.vlgmr.msra.gmra.mrb[12].mxu0 %v48_v27  ;;  %2171 = vmatprep.subr.bf16.mxu1 %v2336_v32 }
  0x83   :  { %2150 = vmatpush3.bf16.msra.mxu0 %v2335_v31  ;;  %1716 = vmatprep.mubr.bf16.mxu0 %v53_v2 }
  0x84   :  { %1677 = vmatmul.mubr.bf16.vlgmr.msra.gmra.mrb[12].mxu1 %v50_v34  ;;  %2151 = vmatprep.subr.bf16.mxu0 %v2338_v36 }
  0x85   :  { %2172 = vmatpush3.bf16.msra.mxu1 %v2337_v35  ;;  %1756 = vmatprep.mubr.bf16.mxu1 %v55_v7 }
  0x86   :  { %2173 = vmatprep.subr.bf16.mxu1 %v2340_v38 }
  0x87   :  { %2152 = vmatpush3.bf16.msra.mxu0 %v2339_v37 }
  0x88   :  { %2153 = vmatprep.subr.bf16.mxu0 %v2342_v40 }
  0x89   :  { %2174 = vmatpush3.bf16.msra.mxu1 %v2341_v39 }
  0x8a   :  { %2175 = vmatprep.subr.bf16.mxu1 %v2344_v42 }
  0x8b   :  { %2154 = vmatpush3.bf16.msra.mxu0 %v2343_v41 }
  0x8c   :  { %2155 = vmatprep.subr.bf16.mxu0 %v2346_v44 }
  0x8d   :  { %2176 = vmatpush3.bf16.msra.mxu1 %v2345_v43 }
  0x8e   :  { %2177 = vmatprep.subr.bf16.mxu1 %v2348_v46 }
  0x8f   :  { %2156 = vmatpush3.bf16.msra.mxu0 %v2347_v45 }
  0x90   :  { %2157 = vmatprep.subr.bf16.mxu0 %v2350_v48 }
  0x91   :  { %2178 = vmatpush3.bf16.msra.mxu1 %v2349_v47 }
  0x92   :  { %2179 = vmatprep.subr.bf16.mxu1 %v2352_v50 }
  0x93   :  { %2158 = vmatpush3.bf16.msra.mxu0 %v2351_v49 }
  0x94   :  { %2159 = vmatprep.subr.bf16.mxu0 %v2354_v52 }
  0x95   :  { %2180 = vmatpush3.bf16.msra.mxu1 %v2353_v51 }
  0x96   :  { %2181 = vmatprep.subr.bf16.mxu1 %v2356_v54 }
  0x97   :  { %2160 = vmatpush3.bf16.msra.mxu0 %v2355_v53 }
  0x98   :  { %2161 = vmatprep.subr.bf16.mxu0 %v2358_v56 }
  0x99   :  { %2182 = vmatpush3.bf16.msra.mxu1 %v2357_v55 }
  0x9a   :  { %2183 = vmatprep.subr.bf16.mxu1 %v2360_v58 }
  0x9b   :  { %2162 = vmatpush3.bf16.msra.mxu0 %v2359_v57 }
  0x9c   :  { %2163 = vmatprep.subr.bf16.mxu0 %v2362_v60 }
  0x9d   :  { %2184 = vmatpush3.bf16.msra.mxu1 %v2361_v59 }
  0x9e   :  { %2185 = vmatprep.subr.bf16.mxu1 %v2364_v62 }
  0x9f   :  { %2164 = vmatpush3.bf16.msra.mxu0 %v2363_v61 }
  0xa0   :  { %2196 = vmatprep.subr.bf16.mxu0 %v2368_v5 }
  0xa1   :  { %2186 = vmatpush3.bf16.msra.mxu1 %v2365_v63 }
  0xa2   :  { %1717 = vmatmul.mubr.bf16.vlgmr.msra.gmra.mrb[16].mxu0 %v52_v3 }
  0xa3   :  { %2197 = vmatpush3.bf16.msra.mxu0 %v2366_v9  ;;  %2200 = vmatprep.mubr.msk.bf16.mxu0 %vm2369_vm0, %v2368_v5 }
  0xa4   :  { %1757 = vmatmul.mubr.bf16.vlgmr.msra.gmra.mrb[16].mxu1 %v54_v8  ;;  %2198 = vmatprep.subr.bf16.mxu0 %v2368_v5 }
  0xa7   :  { %2199 = vmatpush3.bf16.msra.mxu0 %v2367_v10 }
  0xaa   :  { %2201 = vmatmul.mubr.msk.bf16.vlgmr.msra.gmra.mrb[20].mxu0 %vm1360_vm1, %v56_v12 }
  0xf5   :  { %v1989_v13 = vpop.f32.mrb[0].mxu0 }
  0xf6   :  { %v1990_v15 = vpop.f32.mrb[1].mxu0 }
  0xf7   :  { %v1991_v16 = vadd.f32 %v1990_v15, %v1989_v13  ;;  %v1992_v17 = vpop.f32.mrb[2].mxu0  ;;  %v2011_v18 = vpop.f32.mrb[0].mxu1 }
  0xf8   :  { %v1993_v19 = vpop.f32.mrb[3].mxu0  ;;  %v2012_v21 = vpop.f32.mrb[1].mxu1 }
  0xf9   :  { %v1399_v20 = vadd.f32 %v1991_v16, %v1809_v14  ;;  %v2013_v22 = vadd.f32 %v2012_v21, %v2011_v18  ;;  %v2014_v23 = vpop.f32.mrb[2].mxu1 }
  0xfa   :  { %v2015_v24 = vpop.f32.mrb[3].mxu1 }
  0xfb   :  { %v1439_v25 = vadd.f32 %v2013_v22, %v1399_v20 }
 0x115   :  { %v2033_v26 = vpop.f32.mrb[4].mxu0 }
 0x116   :  { %v2034_v27 = vpop.f32.mrb[5].mxu0 }
 0x117   :  { %v2035_v28 = vadd.f32 %v2034_v27, %v2033_v26  ;;  %v2036_v29 = vpop.f32.mrb[6].mxu0  ;;  %v2055_v30 = vpop.f32.mrb[4].mxu1 }
 0x118   :  { %v2037_v31 = vpop.f32.mrb[7].mxu0  ;;  %v2056_v33 = vpop.f32.mrb[5].mxu1 }
 0x119   :  { %v1479_v32 = vadd.f32 %v2035_v28, %v1439_v25  ;;  %v2057_v34 = vadd.f32 %v2056_v33, %v2055_v30  ;;  %v2058_v35 = vpop.f32.mrb[6].mxu1 }
 0x11a   :  { %v2059_v36 = vpop.f32.mrb[7].mxu1 }
 0x11b   :  { %v1519_v37 = vadd.f32 %v2057_v34, %v1479_v32 }
 0x135   :  { %v2077_v38 = vpop.f32.mrb[8].mxu0 }
 0x136   :  { %v2078_v39 = vpop.f32.mrb[9].mxu0 }
 0x137   :  { %v2079_v40 = vadd.f32 %v2078_v39, %v2077_v38  ;;  %v2080_v41 = vpop.f32.mrb[10].mxu0  ;;  %v2099_v42 = vpop.f32.mrb[8].mxu1 }
 0x138   :  { %v2081_v43 = vpop.f32.mrb[11].mxu0  ;;  %v2100_v45 = vpop.f32.mrb[9].mxu1 }
 0x139   :  { %v1559_v44 = vadd.f32 %v2079_v40, %v1519_v37  ;;  %v2101_v46 = vadd.f32 %v2100_v45, %v2099_v42  ;;  %v2102_v47 = vpop.f32.mrb[10].mxu1 }
 0x13a   :  { %v2103_v48 = vpop.f32.mrb[11].mxu1 }
 0x13b   :  { %v1599_v49 = vadd.f32 %v2101_v46, %v1559_v44 }
 0x155   :  { %v2121_v50 = vpop.f32.mrb[12].mxu0 }
 0x156   :  { %v2122_v51 = vpop.f32.mrb[13].mxu0 }
 0x157   :  { %v2123_v52 = vadd.f32 %v2122_v51, %v2121_v50  ;;  %v2124_v53 = vpop.f32.mrb[14].mxu0  ;;  %v2143_v54 = vpop.f32.mrb[12].mxu1 }
 0x158   :  { %v2125_v55 = vpop.f32.mrb[15].mxu0  ;;  %v2144_v57 = vpop.f32.mrb[13].mxu1 }
 0x159   :  { %v1639_v56 = vadd.f32 %v2123_v52, %v1599_v49  ;;  %v2145_v58 = vadd.f32 %v2144_v57, %v2143_v54  ;;  %v2146_v59 = vpop.f32.mrb[14].mxu1 }
 0x15a   :  { %v2147_v60 = vpop.f32.mrb[15].mxu1 }
 0x15b   :  { %v1679_v61 = vadd.f32 %v2145_v58, %v1639_v56 }
 0x175   :  { %v2165_v62 = vpop.f32.mrb[16].mxu0 }
 0x176   :  { %v2166_v63 = vpop.f32.mrb[17].mxu0 }
 0x177   :  { %v2167_v0 = vadd.f32 %v2166_v63, %v2165_v62  ;;  %v2187_v1 = vpop.f32.mrb[16].mxu1  ;;  %v2168_v2 = vpop.f32.mrb[18].mxu0 }
 0x178   :  { %v2188_v3 = vpop.f32.mrb[17].mxu1  ;;  %v2169_v4 = vpop.f32.mrb[19].mxu0 }
 0x179   :  { %v1719_v5 = vadd.f32 %v2167_v0, %v1679_v61  ;;  %v2189_v6 = vadd.f32 %v2188_v3, %v2187_v1  ;;  %v2190_v7 = vpop.f32.mrb[18].mxu1 }
 0x17a   :  { %v2191_v8 = vpop.f32.mrb[19].mxu1 }
 0x17b   :  { %v1759_v9 = vadd.f32 %v2189_v6, %v1719_v5 }
 0x17d   :  { %v1798_v10 = vpop.f32.mrb[20].mxu0 }
 0x17e   :  { %v1799_v11 = vadd.f32 %v1798_v10, %v1759_v9  ;;  %v2202_v12 = vpop.f32.mrb[21].mxu0 }
 0x17f   :  { %v1801_v13 = vpop.f32.mrb[22].mxu0 }
 0x180   :  { %1804 = vst.msk [vmem:[%s2950_s3] sm:$0xff] %vm1360_vm1, %v1799_v11  ;;  %v2203_v14 = vpop.f32.mrb[23].mxu0 }

// kernel: mul.0
= control target key start
LH: loop header
LB: loop body
LE: loop exit
PB: predicated region body
PF: predicated region fallthrough
CT: control target
= control target key end

     0   :  { %s34_s0 = inlined_call_operand.vmem [shape: f32[2,64], index: 0, kind: input, shape index: {}]   ;;  %s35_s1 = inlined_call_operand.vmem [shape: f32[2,64], index: 1, kind: input, shape index: {}]   ;;  %s36_s2 = inlined_call_operand.vmem [shape: f32[2,64], index: 2, kind: output, shape index: {}]  }
   0x1   :  { %v3_v0 = vld [vmem:[%s34_s0] sm:$0x3] }
   0x2   :  { %v4_v1 = vld [vmem:[%s35_s1] sm:$0x3] }
   0x3   :  { %v7_v2 = vmul.f32 %v4_v1, %v3_v0 }
   0x5   :  { %9 = vst [vmem:[%s36_s2] sm:$0x3] %v7_v2 }

// kernel: capsule_net_forward.6
= control target key start
LH: loop header
LB: loop body
LE: loop exit
PB: predicated region body
PF: predicated region fallthrough
CT: control target
= control target key end

     0   :  { %vm21_vm0 = vcmask 1041409   ;;  %vm24_vm1 = vcmask 58368   ;;  %vm52_vm2 = vcmask 1043456   ;;  %vm6335_vm3 = vmmov 0   ;;  %s6340_s25 = smov 96   ;;  %s6341_s26 = smov 80   ;;  %s7500_s0 = inlined_call_operand.vmem [shape: f32[2,16,8], index: 0, kind: input, shape index: {}]   ;;  %s7501_s1 = inlined_call_operand.vmem [shape: bf16[16,8,64], index: 1, kind: input, shape index: {}]   ;;  %s7502_s2 = inlined_call_operand.vmem [shape: f32[2,64], index: 2, kind: output, shape index: {0}]   ;;  %s7503_s3 = inlined_call_operand.vmem [shape: f32[2,4], index: 3, kind: output, shape index: {1}]  }
   0x1   :  { %v230_v0 = vld [vmem:[%s7500_s0 + $0x2] sm:$0x1]  ;;  %v231_v1 = vld [vmem:[%s7500_s0 + $0x12] sm:$0x1]  ;;  %v14_v2 = vld [vmem:[%s7500_s0] sm:$0x1] }
   0x2   :  { %v232_v3 = vmul.f32 %v230_v0, %v230_v0  ;;  %v233_v4 = vmul.f32 %v231_v1, %v231_v1  ;;  %v256_v5 = vrot.slane %v231_v1, 7  ;;  %v15_v6 = vld [vmem:[%s7500_s0 + $0x10] sm:$0x1]  ;;  %v336_v7 = vld [vmem:[%s7500_s0 + $0x3] sm:$0x1]  ;;  %v16_v8 = vmul.f32 %v14_v2, %v14_v2  ;;  %s6342_s29 = smov 32  }
   0x3   :  { %v17_v9 = vmul.f32 %v15_v6, %v15_v6  ;;  %v42_v10 = vrot.slane %v15_v6, 7  ;;  %v337_v11 = vld [vmem:[%s7500_s0 + $0x13] sm:$0x1]  ;;  %v338_v12 = vmul.f32 %v336_v7, %v336_v7  ;;  %v6386_v13 = vld [vmem:[%s7500_s0 + $0x1] sm:$0x1]  ;;  %s6343_s30 = smov 16  }
   0x4   :  { %v236_v14 = vrot.slane %v233_v4, 7  ;;  %v6389_v15 = vsel %vm21_vm0, %v256_v5, %v230_v0  ;;  %v339_v16 = vmul.f32 %v337_v11, %v337_v11  ;;  %v362_v17 = vrot.slane %v337_v11, 7  ;;  %v6394_v18 = vld [vmem:[%s7500_s0 + $0x11] sm:$0x1]  ;;  %v548_v19 = vld [vmem:[%s7500_s0 + $0x5] sm:$0x1] }
   0x5   :  { %v20_v20 = vrot.slane %v17_v9, 7  ;;  %v6400_v21 = vsel %vm21_vm0, %v42_v10, %v14_v2  ;;  %v126_v22 = vmul.f32 %v6386_v13, %v6386_v13  ;;  %v127_v23 = vmul.f32 %v6394_v18, %v6394_v18  ;;  %v549_v24 = vld [vmem:[%s7500_s0 + $0x15] sm:$0x1]  ;;  %v442_v28 = vld [vmem:[%s7500_s0 + $0x4] sm:$0x1]  ;;  %s6344_s4 = smov 48  }
   0x6   :  { %v237_v25 = vsel %vm21_vm0, %v236_v14, %v232_v3  ;;  %v342_v26 = vrot.slane %v339_v16, 7  ;;  %v6411_v27 = vsel %vm21_vm0, %v362_v17, %v336_v7  ;;  %v443_v29 = vld [vmem:[%s7500_s0 + $0x14] sm:$0x1]  ;;  %v550_v33 = vmul.f32 %v548_v19, %v548_v19  ;;  %v760_v38 = vld [vmem:[%s7500_s0 + $0x7] sm:$0x1] }
   0x7   :  { %v239_v30 = vsel %vm24_vm1, %v237_v25, 0.0  ;;  %v22_v31 = vsel %vm21_vm0, %v20_v20, %v16_v8  ;;  %v130_v32 = vrot.slane %v127_v23, 7  ;;  %v551_v36 = vmul.f32 %v549_v24, %v549_v24  ;;  %v761_v39 = vld [vmem:[%s7500_s0 + $0x17] sm:$0x1]  ;;  %v654_v44 = vld [vmem:[%s7500_s0 + $0x6] sm:$0x1] }
   0x8   :  { %240 = vadd.xlane.f32.xlu1 %v239_v30  ;;  %v25_v34 = vsel %vm24_vm1, %v22_v31, 0.0  ;;  %v343_v35 = vsel %vm21_vm0, %v342_v26, %v338_v12  ;;  %v574_v37 = vrot.slane %v549_v24, 7  ;;  %v444_v42 = vmul.f32 %v442_v28, %v442_v28  ;;  %v655_v45 = vld [vmem:[%s7500_s0 + $0x16] sm:$0x1]  ;;  %v972_v54 = vld [vmem:[%s7500_s0 + $0x9] sm:$0x1] }
   0x9   :  { %26 = vadd.xlane.f32.xlu0 %v25_v34  ;;  %v345_v40 = vsel %vm24_vm1, %v343_v35, 0.0  ;;  %v131_v41 = vsel %vm21_vm0, %v130_v32, %v126_v22  ;;  %v445_v43 = vmul.f32 %v443_v29, %v443_v29  ;;  %v554_v47 = vrot.slane %v551_v36, 7  ;;  %v973_v59 = vld [vmem:[%s7500_s0 + $0x19] sm:$0x1]  ;;  %v866_v60 = vld [vmem:[%s7500_s0 + $0x8] sm:$0x1] }
   0xa   :  { %v133_v46 = vsel %vm24_vm1, %v131_v41, 0.0  ;;  %v6439_v48 = vsel %vm21_vm0, %v574_v37, %v548_v19  ;;  %v468_v49 = vrot.slane %v443_v29, 7  ;;  %v762_v51 = vmul.f32 %v760_v38, %v760_v38  ;;  %v867_v1 = vld [vmem:[%s7500_s0 + $0x18] sm:$0x1]  ;;  %v1184_v10 = vld [vmem:[%s7500_s0 + $0xb] sm:$0x1] }
   0xb   :  { %v448_v50 = vrot.slane %v445_v43, 7  ;;  %v763_v52 = vmul.f32 %v761_v39, %v761_v39  ;;  %v786_v53 = vrot.slane %v761_v39, 7  ;;  %v555_v55 = vsel %vm21_vm0, %v554_v47, %v550_v33  ;;  %v1185_v11 = vld [vmem:[%s7500_s0 + $0x1b] sm:$0x1]  ;;  %v1078_v19 = vld [vmem:[%s7500_s0 + $0xa] sm:$0x1] }
   0xc   :  { %346 = vadd.xlane.f32.xlu1 %v345_v40  ;;  %v6446_v56 = vsel %vm21_vm0, %v468_v49, %v442_v28  ;;  %v656_v57 = vmul.f32 %v654_v44, %v654_v44  ;;  %v657_v58 = vmul.f32 %v655_v45, %v655_v45  ;;  %v557_v61 = vsel %vm24_vm1, %v555_v55, 0.0  ;;  %v1079_v20 = vld [vmem:[%s7500_s0 + $0x1a] sm:$0x1]  ;;  %v1396_v35 = vld [vmem:[%s7500_s0 + $0xd] sm:$0x1] }
   0xd   :  { %134 = vadd.xlane.f32.xlu0 %v133_v46  ;;  %v449_v62 = vsel %vm21_vm0, %v448_v50, %v444_v42  ;;  %v766_v63 = vrot.slane %v763_v52, 7  ;;  %v6457_v0 = vsel %vm21_vm0, %v786_v53, %v760_v38  ;;  %v680_v4 = vrot.slane %v655_v45, 7  ;;  %v1397_v36 = vld [vmem:[%s7500_s0 + $0x1d] sm:$0x1]  ;;  %v1290_v40 = vld [vmem:[%s7500_s0 + $0xc] sm:$0x1] }
   0xe   :  { %v451_v2 = vsel %vm24_vm1, %v449_v62, 0.0  ;;  %v660_v3 = vrot.slane %v657_v58, 7  ;;  %v974_v5 = vmul.f32 %v972_v54, %v972_v54  ;;  %v975_v7 = vmul.f32 %v973_v59, %v973_v59  ;;  %v1291_v41 = vld [vmem:[%s7500_s0 + $0x1c] sm:$0x1]  ;;  %v1503_v58 = vld [vmem:[%s7500_s0 + $0x1e] sm:$0x1] }
   0xf   :  { %v767_v6 = vsel %vm21_vm0, %v766_v63, %v762_v51  ;;  %v998_v8 = vrot.slane %v973_v59, 7  ;;  %v868_v9 = vmul.f32 %v866_v60, %v866_v60  ;;  %v6473_v16 = vsel %vm21_vm0, %v680_v4, %v654_v44  ;;  %v1609_v51 = vld [vmem:[%s7500_s0 + $0x1f] sm:$0x1]  ;;  %v1502_v63 = vld [vmem:[%s7500_s0 + $0xe] sm:$0x1] }
  0x10   :  { %558 = vadd.xlane.f32.xlu1 %v557_v61  ;;  %v769_v12 = vsel %vm24_vm1, %v767_v6, 0.0  ;;  %v661_v14 = vsel %vm21_vm0, %v660_v3, %v656_v57  ;;  %v869_v17 = vmul.f32 %v867_v1, %v867_v1  ;;  %v978_v23 = vrot.slane %v975_v7, 7  ;;  %v1608_v57 = vld [vmem:[%s7500_s0 + $0xf] sm:$0x1] }
  0x11   :  { %452 = vadd.xlane.f32.xlu0 %v451_v2  ;;  %v663_v22 = vsel %vm24_vm1, %v661_v14, 0.0  ;;  %v6483_v24 = vsel %vm21_vm0, %v998_v8, %v972_v54  ;;  %v892_v25 = vrot.slane %v867_v1, 7  ;;  %v1186_v28 = vmul.f32 %v1184_v10, %v1184_v10 }
  0x12   :  { %v872_v26 = vrot.slane %v869_v17, 7  ;;  %v1187_v29 = vmul.f32 %v1185_v11, %v1185_v11  ;;  %v1210_v30 = vrot.slane %v1185_v11, 7  ;;  %v979_v31 = vsel %vm21_vm0, %v978_v23, %v974_v5 }
  0x13   :  { %v6487_v32 = vsel %vm21_vm0, %v892_v25, %v866_v60  ;;  %v1080_v33 = vmul.f32 %v1078_v19, %v1078_v19  ;;  %v1081_v34 = vmul.f32 %v1079_v20, %v1079_v20  ;;  %v981_v42 = vsel %vm24_vm1, %v979_v31, 0.0 }
  0x14   :  { %770 = vadd.xlane.f32.xlu1 %v769_v12  ;;  %v873_v37 = vsel %vm21_vm0, %v872_v26, %v868_v9  ;;  %v1190_v38 = vrot.slane %v1187_v29, 7  ;;  %v6497_v39 = vsel %vm21_vm0, %v1210_v30, %v1184_v10  ;;  %v1104_v45 = vrot.slane %v1079_v20, 7  ;;  %v47_v29 = vld [vmem:[%s7501_s1] sm:$0xf] }
  0x15   :  { %664 = vadd.xlane.f32.xlu0 %v663_v22  ;;  %v875_v43 = vsel %vm24_vm1, %v873_v37, 0.0  ;;  %v1084_v44 = vrot.slane %v1081_v34, 7  ;;  %v1398_v47 = vmul.f32 %v1396_v35, %v1396_v35  ;;  %v1399_v49 = vmul.f32 %v1397_v36, %v1397_v36 }
  0x16   :  { %v1191_v46 = vsel %vm21_vm0, %v1190_v38, %v1186_v28  ;;  %v1422_v50 = vrot.slane %v1397_v36, 7  ;;  %v6513_v53 = vsel %vm21_vm0, %v1104_v45, %v1078_v19  ;;  %v1292_v54 = vmul.f32 %v1290_v40, %v1290_v40 }
  0x17   :  { %v1085_v52 = vsel %vm21_vm0, %v1084_v44, %v1080_v33  ;;  %v1293_v55 = vmul.f32 %v1291_v41, %v1291_v41  ;;  %v1193_v59 = vsel %vm24_vm1, %v1191_v46, 0.0  ;;  %v1402_v60 = vrot.slane %v1399_v49, 7  ;;  %v5319_v33 = vld [vmem:[%s7501_s1 + $0x4] sm:$0xf] }
  0x18   :  { %982 = vadd.xlane.f32.xlu1 %v981_v42  ;;  %v6523_v61 = vsel %vm21_vm0, %v1422_v50, %v1396_v35  ;;  %v1316_v62 = vrot.slane %v1291_v41, 7  ;;  %v1087_v1 = vsel %vm24_vm1, %v1085_v52, 0.0  ;;  %v1611_v3 = vmul.f32 %v1609_v51, %v1609_v51 }
  0x19   :  { %876 = vadd.xlane.f32.xlu0 %v875_v43  ;;  %v1296_v2 = vrot.slane %v1293_v55, 7  ;;  %v1634_v4 = vrot.slane %v1609_v51, 7  ;;  %v1403_v5 = vsel %vm21_vm0, %v1402_v60, %v1398_v47  ;;  %v1610_v7 = vmul.f32 %v1608_v57, %v1608_v57 }
  0x1a   :  { %v6531_v6 = vsel %vm21_vm0, %v1316_v62, %v1290_v40  ;;  %v1505_v8 = vmul.f32 %v1503_v58, %v1503_v58  ;;  %v1614_v10 = vrot.slane %v1611_v3, 7  ;;  %v1504_v12 = vmul.f32 %v1502_v63, %v1502_v63 }
  0x1b   :  { %v1297_v9 = vsel %vm21_vm0, %v1296_v2, %v1292_v54  ;;  %v6535_v11 = vsel %vm21_vm0, %v1634_v4, %v1608_v57  ;;  %v1528_v17 = vrot.slane %v1503_v58, 7  ;;  %v1405_v19 = vsel %vm24_vm1, %v1403_v5, 0.0 }
  0x1c   :  { %1194 = vadd.xlane.f32.xlu1 %v1193_v59  ;;  %v1508_v14 = vrot.slane %v1505_v8, 7  ;;  %v1299_v20 = vsel %vm24_vm1, %v1297_v9, 0.0  ;;  %v1615_v22 = vsel %vm21_vm0, %v1614_v10, %v1610_v7  ;;  %v6334_v30 = vmov 0.0  }
  0x1d   :  { %1088 = vadd.xlane.f32.xlu0 %v1087_v1  ;;  %v6541_v23 = vsel %vm21_vm0, %v1528_v17, %v1502_v63  ;;  %v1617_v26 = vsel %vm24_vm1, %v1615_v22, 0.0  ;;  %5573 = vmatprep.subr.bf16.mxu0 %v6334_v30  ;;  %v54_v31 = vsel %vm52_vm2, %v47_v29, 0  ;;  %v161_v34 = vsel %vm52_vm2, %v5319_v33, 0 }
  0x1e   :  { %v1509_v25 = vsel %vm21_vm0, %v1508_v14, %v1504_v12  ;;  %5579 = vmatprep.subr.bf16.mxu1 %v6334_v30  ;;  %5574 = vmatpush3.bf16.msra.mxu0 %v54_v31 }
  0x1f   :  { %v1511_v28 = vsel %vm24_vm1, %v1509_v25, 0.0  ;;  %5585 = vmatprep.subr.bf16.mxu0 %v6334_v30  ;;  %5575 = vmatprep.mubr.msk.bf16.mxu0 %vm6335_vm3, %v6334_v30 }
  0x20   :  { %1406 = vadd.xlane.f32.xlu1 %v1405_v19  ;;  %5581 = vmatprep.mubr.msk.bf16.mxu1 %vm6335_vm3, %v6334_v30 }
  0x21   :  { %1300 = vadd.xlane.f32.xlu0 %v1299_v20  ;;  %5580 = vmatpush3.bf16.msra.mxu1 %v161_v34 }
  0x22   :  { %5591 = vmatprep.subr.bf16.mxu1 %v6334_v30 }
  0x24   :  { %1618 = vadd.xlane.f32.xlu1 %v1617_v26 }
  0x25   :  { %1512 = vadd.xlane.f32.xlu0 %v1511_v28 }
  0x95   :  { %v6562_v35 = vpop.xlane.xlu1 %240 }
  0x96   :  { %v6564_v36 = vpop.xlane.xlu0 %26  ;;  %6126 = vrsqrt.f32 %v6562_v35  ;;  %vm244_vm4 = vcmp.eq.f32.partialorder %v6562_v35, inf  ;;  %v247_v55 = vand.u32 2147483648, %v6562_v35  ;;  %vm246_vm5 = vcmp.eq.f32.partialorder %v6562_v35, 0.0 }
  0x97   :  { %6128 = vrsqrt.f32 %v6564_v36  ;;  %vm30_vm6 = vcmp.eq.f32.partialorder %v6564_v36, inf  ;;  %v33_v1 = vand.u32 2147483648, %v6564_v36  ;;  %vm32_vm9 = vcmp.eq.f32.partialorder %v6564_v36, 0.0 }
  0x98   :  { %v249_v10 = vadd.f32 1.0, %v6562_v35  ;;  %v35_v12 = vadd.f32 1.0, %v6564_v36 }
  0x99   :  { %v6567_v37 = vpop.xlane.xlu1 %346 }
  0x9a   :  { %v6569_v38 = vpop.xlane.xlu0 %134  ;;  %6130 = vrsqrt.f32 %v6567_v37  ;;  %vm350_vm7 = vcmp.eq.f32.partialorder %v6567_v37, inf  ;;  %v353_v2 = vand.u32 2147483648, %v6567_v37  ;;  %vm352_vm10 = vcmp.eq.f32.partialorder %v6567_v37, 0.0 }
  0x9b   :  { %6132 = vrsqrt.f32 %v6569_v38  ;;  %vm138_vm8 = vcmp.eq.f32.partialorder %v6569_v38, inf  ;;  %v141_v3 = vand.u32 2147483648, %v6569_v38  ;;  %vm140_vm11 = vcmp.eq.f32.partialorder %v6569_v38, 0.0 }
  0x9c   :  { %v355_v19 = vadd.f32 1.0, %v6567_v37 }
  0x9d   :  { %v6574_v40 = vpop.xlane.xlu1 %558 }
  0x9e   :  { %v6576_v41 = vpop.xlane.xlu0 %452  ;;  %6134 = vrsqrt.f32 %v6574_v40  ;;  %vm562_vm12 = vcmp.eq.f32.partialorder %v6574_v40, inf  ;;  %vm564_vm13 = vcmp.eq.f32.partialorder %v6574_v40, 0.0  ;;  %v565_v20 = vand.u32 2147483648, %v6574_v40 }
  0x9f   :  { %6136 = vrsqrt.f32 %v6576_v41  ;;  %vm456_vm14 = vcmp.eq.f32.partialorder %v6576_v41, inf  ;;  %v459_v33 = vand.u32 2147483648, %v6576_v41  ;;  %vm458_vm15 = vcmp.eq.f32.partialorder %v6576_v41, 0.0 }
  0xa0   :  { %v6127_v42 = vpop.eup %6126 }
  0xa1   :  { %v6129_v43 = vpop.eup %6128  ;;  %v243_v45 = vmul.f32 %v6127_v42, %v6562_v35  ;;  %v6582_v47 = vpop.xlane.xlu1 %770  ;;  %v143_v42 = vadd.f32 1.0, %v6569_v38 }
  0xa2   :  { %v29_v50 = vmul.f32 %v6129_v43, %v6564_v36  ;;  %v6588_v54 = vpop.xlane.xlu0 %664  ;;  %6138 = vrsqrt.f32 %v6582_v47  ;;  %vm774_vm1 = vcmp.eq.f32.partialorder %v6582_v47, inf }
  0xa3   :  { %v245_v49 = vsel %vm244_vm4, %v6562_v35, %v243_v45  ;;  %6140 = vrsqrt.f32 %v6588_v54  ;;  %vm668_vm4 = vcmp.eq.f32.partialorder %v6588_v54, inf }
  0xa4   :  { %v6131_v44 = vpop.eup %6130  ;;  %v248_v57 = vsel %vm246_vm5, %v247_v55, %v245_v49  ;;  %v31_v59 = vsel %vm30_vm6, %v6564_v36, %v29_v50  ;;  %vm776_vm5 = vcmp.eq.f32.partialorder %v6582_v47, 0.0  ;;  %vm670_vm6 = vcmp.eq.f32.partialorder %v6588_v54, 0.0 }
  0xa5   :  { %v6133_v46 = vpop.eup %6132  ;;  %v349_v51 = vmul.f32 %v6131_v44, %v6567_v37  ;;  %v250_v4 = vadd.f32 1e-08, %v248_v57  ;;  %v34_v5 = vsel %vm32_vm9, %v33_v1, %v31_v59  ;;  %v6617_v22 = vpop.xlane.xlu1 %982  ;;  %v777_v1 = vand.u32 2147483648, %v6582_v47 }
  0xa6   :  { %v137_v52 = vmul.f32 %v6133_v46, %v6569_v38  ;;  %v6611_v17 = vpop.xlane.xlu0 %876  ;;  %v36_v25 = vadd.f32 1e-08, %v34_v5  ;;  %vm986_vm9 = vcmp.eq.f32.partialorder %v6617_v22, inf }
  0xa7   :  { %v351_v60 = vsel %vm350_vm7, %v6567_v37, %v349_v51  ;;  %v251_v29 = vmul.f32 %v250_v4, %v249_v10  ;;  %6142 = vrsqrt.f32 %v6611_v17  ;;  %vm48_vm7 = vcmask 64512  }
  0xa8   :  { %v6135_v58 = vpop.eup %6134  ;;  %v139_v62 = vsel %vm138_vm8, %v6569_v38, %v137_v52  ;;  %v354_v7 = vsel %vm352_vm10, %v353_v2, %v351_v60  ;;  %6144 = vrsqrt.f32 %v6617_v22  ;;  %v37_v49 = vmul.f32 %v36_v25, %v35_v12 }
  0xa9   :  { %v6137_v63 = vpop.eup %6136  ;;  %v142_v8 = vsel %vm140_vm11, %v141_v3, %v139_v62  ;;  %v561_v9 = vmul.f32 %v6135_v58, %v6574_v40  ;;  %v356_v26 = vadd.f32 1e-08, %v354_v7  ;;  %6146 = vrcp.f32 %v251_v29  ;;  %v6635_v60 = vpop.xlane.xlu1 %1194 }
  0xaa   :  { %v455_v14 = vmul.f32 %v6137_v63, %v6576_v41  ;;  %v144_v28 = vadd.f32 1e-08, %v142_v8  ;;  %v6631_v57 = vpop.xlane.xlu0 %1088  ;;  %6148 = vrcp.f32 %v37_v49  ;;  %v150_v58 = vrot.slane %v6394_v18, 7  ;;  %v5323_v49 = vld [vmem:[%s7501_s1 + $0xc] sm:$0xf] }
  0xab   :  { %v563_v31 = vsel %vm562_vm12, %v6574_v40, %v561_v9  ;;  %v357_v45 = vmul.f32 %v356_v26, %v355_v19  ;;  %v567_v62 = vadd.f32 1.0, %v6574_v40  ;;  %v671_v3 = vand.u32 2147483648, %v6588_v54 }
  0xac   :  { %v6139_v34 = vpop.eup %6138  ;;  %v457_v43 = vsel %vm456_vm14, %v6576_v41, %v455_v14  ;;  %v566_v46 = vsel %vm564_vm13, %v565_v20, %v563_v31  ;;  %v145_v50 = vmul.f32 %v144_v28, %v143_v42  ;;  %v461_v18 = vadd.f32 1.0, %v6576_v41 }
  0xad   :  { %v6141_v44 = vpop.eup %6140  ;;  %v460_v51 = vsel %vm458_vm15, %v459_v33, %v457_v43  ;;  %v773_v52 = vmul.f32 %v6139_v34, %v6582_v47  ;;  %v568_v59 = vadd.f32 1e-08, %v566_v46  ;;  %v779_v14 = vadd.f32 1.0, %v6582_v47  ;;  %v6655_v31 = vpop.xlane.xlu1 %1406  ;;  %v5321_v46 = vld [vmem:[%s7501_s1 + $0x8] sm:$0xf] }
  0xae   :  { %v667_v55 = vmul.f32 %v6141_v44, %v6588_v54  ;;  %6150 = vrcp.f32 %v145_v50  ;;  %v462_v63 = vadd.f32 1e-08, %v460_v51  ;;  %v6649_v20 = vpop.xlane.xlu0 %1300  ;;  %v151_v25 = vsel %vm21_vm0, %v150_v58, %v6386_v13 }
  0xaf   :  { %6152 = vrcp.f32 %v357_v45  ;;  %v775_v2 = vsel %vm774_vm1, %v6582_v47, %v773_v52  ;;  %v569_v7 = vmul.f32 %v568_v59, %v567_v62  ;;  %vm880_vm8 = vcmp.eq.f32.partialorder %v6611_v17, inf }
  0xb0   :  { %6154 = vrsqrt.f32 %v6631_v57  ;;  %v669_v4 = vsel %vm668_vm4, %v6588_v54, %v667_v55  ;;  %v463_v9 = vmul.f32 %v462_v63, %v461_v18  ;;  %v778_v10 = vsel %vm776_vm5, %v777_v1, %v775_v2 }
  0xb1   :  { %6156 = vrsqrt.f32 %v6635_v60  ;;  %v6143_v5 = vpop.eup %6142  ;;  %v672_v12 = vsel %vm670_vm6, %v671_v3, %v669_v4  ;;  %v780_v28 = vadd.f32 1e-08, %v778_v10  ;;  %v673_v34 = vadd.f32 1.0, %v6588_v54 }
  0xb2   :  { %v6145_v8 = vpop.eup %6144  ;;  %v879_v19 = vmul.f32 %v6143_v5, %v6611_v17  ;;  %6158 = vrcp.f32 %v569_v7  ;;  %v674_v42 = vadd.f32 1e-08, %v672_v12  ;;  %v989_v44 = vand.u32 2147483648, %v6617_v22 }
  0xb3   :  { %v6147_v26 = vpop.eup %6146  ;;  %v985_v29 = vmul.f32 %v6145_v8, %v6617_v22  ;;  %6160 = vrcp.f32 %v463_v9  ;;  %v883_v13 = vand.u32 2147483648, %v6611_v17  ;;  %vm882_vm10 = vcmp.eq.f32.partialorder %v6611_v17, 0.0  ;;  %v6681_v9 = vpop.xlane.xlu0 %1512 }
  0xb4   :  { %v6149_v33 = vpop.eup %6148  ;;  %6162 = vrsqrt.f32 %v6649_v20  ;;  %v881_v51 = vsel %vm880_vm8, %v6611_v17, %v879_v19  ;;  %v781_v58 = vmul.f32 %v780_v28, %v779_v14  ;;  %vm988_vm11 = vcmp.eq.f32.partialorder %v6617_v22, 0.0  ;;  %v6687_v19 = vpop.xlane.xlu1 %1618 }
  0xb5   :  { %v39_v45 = vmul.f32 %v6149_v33, %v6564_v36  ;;  %6164 = vrsqrt.f32 %v6655_v31  ;;  %v987_v36 = vsel %vm986_vm9, %v6617_v22, %v985_v29  ;;  %v675_v63 = vmul.f32 %v674_v42, %v673_v34  ;;  %v5327_v34 = vld [vmem:[%s7501_s1 + $0x14] sm:$0xf] }
  0xb6   :  { %v267_v2 = vsel %vm52_vm2, %v5321_v46, 0  ;;  %v373_v3 = vsel %vm52_vm2, %v5323_v49, 0  ;;  %v991_v18 = vadd.f32 1.0, %v6617_v22  ;;  %v884_v4 = vsel %vm882_vm10, %v883_v13, %v881_v51 }
  0xb7   :  { %v45_v59 = vmul.f32 %v6400_v21, %v39_v45  ;;  %v990_v7 = vsel %vm988_vm11, %v989_v44, %v987_v36  ;;  %6166 = vrcp.f32 %v781_v58  ;;  %v885_v12 = vadd.f32 1.0, %v6611_v17 }
  0xb8   :  { %v6151_v43 = vpop.eup %6150  ;;  %vm1092_vm12 = vcmp.eq.f32.partialorder %v6631_v57, inf  ;;  %6168 = vrcp.f32 %v675_v63  ;;  %vm1198_vm13 = vcmp.eq.f32.partialorder %v6635_v60, inf  ;;  %v992_v28 = vadd.f32 1e-08, %v990_v7 }
  0xb9   :  { %v6153_v50 = vpop.eup %6152  ;;  %v147_v52 = vmul.f32 %v6151_v43, %v6569_v38  ;;  %v46_v5 = vpack.c.bf16 %v45_v59, %v45_v59  ;;  %v253_v38 = vmul.f32 %v6147_v26, %v6562_v35  ;;  %v886_v35 = vadd.f32 1e-08, %v884_v4 }
  0xba   :  { %v6155_v55 = vpop.eup %6154  ;;  %v359_v21 = vmul.f32 %v6153_v50, %v6567_v37  ;;  %v5325_v37 = vld [vmem:[%s7501_s1 + $0x10] sm:$0xf]  ;;  %v1095_v29 = vand.u32 2147483648, %v6631_v57  ;;  %6170 = vrsqrt.f32 %v6681_v9  ;;  %vm1094_vm14 = vcmp.eq.f32.partialorder %v6631_v57, 0.0 }
  0xbb   :  { %v6157_v62 = vpop.eup %6156  ;;  %v153_v1 = vmul.f32 %v151_v25, %v147_v52  ;;  %v1091_v8 = vmul.f32 %v6155_v55, %v6631_v57  ;;  %5576 = vmatmul.mubr.msk.bf16.vlgmr.msra.gmra.mrb[0].mxu0 %vm48_vm7, %v46_v5  ;;  %v1201_v25 = vand.u32 2147483648, %v6635_v60  ;;  %v259_v33 = vmul.f32 %v6389_v15, %v253_v38  ;;  %v5331_v38 = vld [vmem:[%s7501_s1 + $0x1c] sm:$0xf] }
  0xbc   :  { %v1197_v14 = vmul.f32 %v6157_v62, %v6635_v60  ;;  %5586 = vmatpush3.bf16.msra.mxu0 %v267_v2  ;;  %v6159_v26 = vpop.eup %6158  ;;  %5587 = vmatprep.mubr.msk.bf16.mxu0 %vm6335_vm3, %v6334_v30  ;;  %6172 = vrsqrt.f32 %v6687_v19  ;;  %v365_v44 = vmul.f32 %v6411_v27, %v359_v21  ;;  %vm1200_vm15 = vcmp.eq.f32.partialorder %v6635_v60, 0.0 }
  0xbd   :  { %v154_v10 = vpack.c.bf16 %v153_v1, %v153_v1  ;;  %v6161_v42 = vpop.eup %6160  ;;  %v1093_v43 = vsel %vm1092_vm12, %v6631_v57, %v1091_v8  ;;  %5597 = vmatprep.subr.bf16.mxu0 %v6334_v30  ;;  %v887_v46 = vmul.f32 %v886_v35, %v885_v12  ;;  %v479_v49 = vsel %vm52_vm2, %v5325_v37, 0 }
  0xbe   :  { %v6163_v15 = vpop.eup %6162  ;;  %v1199_v13 = vsel %vm1198_vm13, %v6635_v60, %v1197_v14  ;;  %v585_v50 = vsel %vm52_vm2, %v5327_v34, 0  ;;  %v993_v51 = vmul.f32 %v992_v28, %v991_v18  ;;  %v1096_v52 = vsel %vm1094_vm14, %v1095_v29, %v1093_v43 }
  0xbf   :  { %5582 = vmatmul.mubr.msk.bf16.vlgmr.msra.gmra.mrb[0].mxu1 %vm48_vm7, %v154_v10  ;;  %v6165_v45 = vpop.eup %6164  ;;  %v260_v27 = vpack.c.bf16 %v259_v33, %v259_v33  ;;  %v465_v55 = vmul.f32 %v6161_v42, %v6576_v41  ;;  %v1202_v58 = vsel %vm1200_vm15, %v1201_v25, %v1199_v13  ;;  %v1303_v36 = vmul.f32 %v6163_v15, %v6649_v20 }
  0xc0   :  { %5592 = vmatpush3.bf16.msra.mxu1 %v373_v3  ;;  %5593 = vmatprep.mubr.msk.bf16.mxu1 %vm6335_vm3, %v6334_v30  ;;  %v366_v59 = vpack.c.bf16 %v365_v44, %v365_v44  ;;  %v571_v62 = vmul.f32 %v6159_v26, %v6574_v40  ;;  %v1203_v63 = vadd.f32 1.0, %v6635_v60  ;;  %v1409_v1 = vmul.f32 %v6165_v45, %v6655_v31  ;;  %v5329_v40 = vld [vmem:[%s7501_s1 + $0x18] sm:$0xf] }
  0xc1   :  { %5603 = vmatprep.subr.bf16.mxu1 %v6334_v30  ;;  %vm1304_vm1 = vcmp.eq.f32.partialorder %v6649_v20, inf  ;;  %6174 = vrcp.f32 %v887_v46  ;;  %v1097_v2 = vadd.f32 1.0, %v6631_v57  ;;  %v1098_v3 = vadd.f32 1e-08, %v1096_v52  ;;  %v6167_v41 = vpop.eup %6166 }
  0xc2   :  { %vm1410_vm4 = vcmp.eq.f32.partialorder %v6655_v31, inf  ;;  %6176 = vrcp.f32 %v993_v51  ;;  %v1204_v18 = vadd.f32 1e-08, %v1202_v58  ;;  %v1307_v4 = vand.u32 2147483648, %v6649_v20  ;;  %v6169_v7 = vpop.eup %6168  ;;  %v5335_v58 = vld [vmem:[%s7501_s1 + $0x24] sm:$0xf] }
  0xc3   :  { %5588 = vmatmul.mubr.msk.bf16.vlgmr.msra.gmra.mrb[4].mxu0 %vm48_vm7, %v260_v27  ;;  %v471_v5 = vmul.f32 %v6446_v56, %v465_v55  ;;  %v1413_v8 = vand.u32 2147483648, %v6655_v31  ;;  %v1305_v10 = vsel %vm1304_vm1, %v6649_v20, %v1303_v36  ;;  %vm1306_vm5 = vcmp.eq.f32.partialorder %v6649_v20, 0.0 }
  0xc4   :  { %5598 = vmatpush3.bf16.msra.mxu0 %v479_v49  ;;  %5599 = vmatprep.mubr.msk.bf16.mxu0 %vm6335_vm3, %v6334_v30  ;;  %v577_v21 = vmul.f32 %v6439_v48, %v571_v62  ;;  %v6171_v56 = vpop.eup %6170  ;;  %v1411_v12 = vsel %vm1410_vm4, %v6655_v31, %v1409_v1  ;;  %vm1412_vm6 = vcmp.eq.f32.partialorder %v6655_v31, 0.0  ;;  %v1099_v35 = vmul.f32 %v1098_v3, %v1097_v2  ;;  %v5333_v49 = vld [vmem:[%s7501_s1 + $0x20] sm:$0xf] }
  0xc5   :  { %5609 = vmatprep.subr.bf16.mxu0 %v6334_v30  ;;  %v691_v25 = vsel %vm52_vm2, %v5329_v40, 0  ;;  %v797_v37 = vsel %vm52_vm2, %v5331_v38, 0  ;;  %v1205_v26 = vmul.f32 %v1204_v18, %v1203_v63  ;;  %v1308_v28 = vsel %vm1306_vm5, %v1307_v4, %v1305_v10 }
  0xc6   :  { %v6173_v14 = vpop.eup %6172  ;;  %v472_v48 = vpack.c.bf16 %v471_v5, %v471_v5  ;;  %v677_v29 = vmul.f32 %v6169_v7, %v6588_v54  ;;  %v1414_v33 = vsel %vm1412_vm6, %v1413_v8, %v1411_v12  ;;  %v1515_v34 = vmul.f32 %v6171_v56, %v6681_v9  ;;  %v5337_v8 = vld [vmem:[%s7501_s1 + $0x28] sm:$0xf] }
  0xc7   :  { %5594 = vmatmul.mubr.msk.bf16.vlgmr.msra.gmra.mrb[4].mxu1 %vm48_vm7, %v366_v59  ;;  %v578_v42 = vpack.c.bf16 %v577_v21, %v577_v21  ;;  %v783_v43 = vmul.f32 %v6167_v41, %v6582_v47  ;;  %v1415_v44 = vadd.f32 1.0, %v6655_v31  ;;  %v1621_v15 = vmul.f32 %v6173_v14, %v6687_v19 }
  0xc8   :  { %5604 = vmatpush3.bf16.msra.mxu1 %v585_v50  ;;  %5605 = vmatprep.mubr.msk.bf16.mxu1 %vm6335_vm3, %v6334_v30  ;;  %vm1516_vm8 = vcmp.eq.f32.partialorder %v6681_v9, inf  ;;  %6178 = vrcp.f32 %v1099_v35  ;;  %v1309_v13 = vadd.f32 1.0, %v6649_v20  ;;  %v1310_v45 = vadd.f32 1e-08, %v1308_v28 }
  0xc9   :  { %5615 = vmatprep.subr.bf16.mxu1 %v6334_v30  ;;  %vm1622_vm9 = vcmp.eq.f32.partialorder %v6687_v19, inf  ;;  %6180 = vrcp.f32 %v1205_v26  ;;  %v1416_v54 = vadd.f32 1e-08, %v1414_v33  ;;  %v1519_v47 = vand.u32 2147483648, %v6681_v9 }
  0xca   :  { %v683_v46 = vmul.f32 %v6473_v16, %v677_v29  ;;  %v1625_v51 = vand.u32 2147483648, %v6687_v19  ;;  %v1517_v52 = vsel %vm1516_vm8, %v6681_v9, %v1515_v34  ;;  %vm1518_vm10 = vcmp.eq.f32.partialorder %v6681_v9, 0.0 }
  0xcb   :  { %5600 = vmatmul.mubr.msk.bf16.vlgmr.msra.gmra.mrb[8].mxu0 %vm48_vm7, %v472_v48  ;;  %v6175_v50 = vpop.eup %6174  ;;  %v789_v27 = vmul.f32 %v6457_v0, %v783_v43  ;;  %v1623_v55 = vsel %vm1622_vm9, %v6687_v19, %v1621_v15  ;;  %vm1624_vm11 = vcmp.eq.f32.partialorder %v6687_v19, 0.0  ;;  %v1311_v36 = vmul.f32 %v1310_v45, %v1309_v13 }
  0xcc   :  { %5610 = vmatpush3.bf16.msra.mxu0 %v691_v25  ;;  %5611 = vmatprep.mubr.msk.bf16.mxu0 %vm6335_vm3, %v6334_v30  ;;  %v6177_v16 = vpop.eup %6176  ;;  %v903_v59 = vsel %vm52_vm2, %v5333_v49, 0  ;;  %v1417_v62 = vmul.f32 %v1416_v54, %v1415_v44  ;;  %v1520_v0 = vsel %vm1518_vm10, %v1519_v47, %v1517_v52  ;;  %v684_v63 = vpack.c.bf16 %v683_v46, %v683_v46 }
  0xcd   :  { %5621 = vmatprep.subr.bf16.mxu0 %v6334_v30  ;;  %v889_v1 = vmul.f32 %v6175_v50, %v6611_v17  ;;  %v1626_v2 = vsel %vm1624_vm11, %v1625_v51, %v1623_v55  ;;  %v790_v3 = vpack.c.bf16 %v789_v27, %v789_v27  ;;  %v1009_v40 = vsel %vm52_vm2, %v5335_v58, 0 }
  0xce   :  { %v995_v41 = vmul.f32 %v6177_v16, %v6617_v22  ;;  %6182 = vrcp.f32 %v1311_v36  ;;  %v1521_v18 = vadd.f32 1.0, %v6681_v9  ;;  %v1522_v4 = vadd.f32 1e-08, %v1520_v0 }
  0xcf   :  { %5606 = vmatmul.mubr.msk.bf16.vlgmr.msra.gmra.mrb[8].mxu1 %vm48_vm7, %v578_v42  ;;  %6184 = vrcp.f32 %v1417_v62  ;;  %v1627_v5 = vadd.f32 1.0, %v6687_v19  ;;  %v1628_v38 = vadd.f32 1e-08, %v1626_v2  ;;  %v895_v17 = vmul.f32 %v6487_v32, %v889_v1  ;;  %v5339_v32 = vld [vmem:[%s7501_s1 + $0x2c] sm:$0xf] }
  0xd0   :  { %5616 = vmatpush3.bf16.msra.mxu1 %v797_v37  ;;  %5617 = vmatprep.mubr.msk.bf16.mxu1 %vm6335_vm3, %v6334_v30  ;;  %v1001_v7 = vmul.f32 %v6483_v24, %v995_v41  ;;  %v1523_v21 = vmul.f32 %v1522_v4, %v1521_v18  ;;  %v1115_v14 = vsel %vm52_vm2, %v5337_v8, 0  ;;  %v1221_v25 = vsel %vm52_vm2, %v5339_v32, 0 }
  0xd1   :  { %5627 = vmatprep.subr.bf16.mxu1 %v6334_v30  ;;  %v1629_v56 = vmul.f32 %v1628_v38, %v1627_v5  ;;  %v896_v12 = vpack.c.bf16 %v895_v17, %v895_v17  ;;  %vm1865_vm13 = vcmask 122880  }
  0xd2   :  { %v6179_v22 = vpop.eup %6178  ;;  %v1002_v35 = vpack.c.bf16 %v1001_v7, %v1001_v7  ;;  %6186 = vrcp.f32 %v1523_v21 }
  0xd3   :  { %5612 = vmatmul.mubr.msk.bf16.vlgmr.msra.gmra.mrb[12].mxu0 %vm48_vm7, %v684_v63  ;;  %v6181_v10 = vpop.eup %6180  ;;  %v1101_v24 = vmul.f32 %v6179_v22, %v6631_v57  ;;  %6188 = vrcp.f32 %v1629_v56 }
  0xd4   :  { %5622 = vmatpush3.bf16.msra.mxu0 %v903_v59  ;;  %5623 = vmatprep.mubr.msk.bf16.mxu0 %vm6335_vm3, %v6334_v30  ;;  %v1207_v37 = vmul.f32 %v6181_v10, %v6635_v60  ;;  %v5341_v60 = vld [vmem:[%s7501_s1 + $0x30] sm:$0xf] }
  0xd5   :  { %5633 = vmatprep.subr.bf16.mxu0 %v6334_v30  ;;  %v1107_v26 = vmul.f32 %v6513_v53, %v1101_v24  ;;  %v5343_v53 = vld [vmem:[%s7501_s1 + $0x34] sm:$0xf]  ;;  %v1327_v33 = vsel %vm52_vm2, %v5341_v60, 0 }
  0xd6   :  { %v1213_v57 = vmul.f32 %v6497_v39, %v1207_v37  ;;  %v1433_v39 = vsel %vm52_vm2, %v5343_v53, 0 }
  0xd7   :  { %5618 = vmatmul.mubr.msk.bf16.vlgmr.msra.gmra.mrb[12].mxu1 %vm48_vm7, %v790_v3  ;;  %v1108_v29 = vpack.c.bf16 %v1107_v26, %v1107_v26 }
  0xd8   :  { %5628 = vmatpush3.bf16.msra.mxu1 %v1009_v40  ;;  %5629 = vmatprep.mubr.msk.bf16.mxu1 %vm6335_vm3, %v6334_v30  ;;  %v6183_v28 = vpop.eup %6182  ;;  %v1214_v42 = vpack.c.bf16 %v1213_v57, %v1213_v57 }
  0xd9   :  { %5639 = vmatprep.subr.bf16.mxu1 %v6334_v30  ;;  %v6185_v48 = vpop.eup %6184  ;;  %v1313_v34 = vmul.f32 %v6183_v28, %v6649_v20 }
  0xda   :  { %v1419_v43 = vmul.f32 %v6185_v48, %v6655_v31  ;;  %v5345_v31 = vld [vmem:[%s7501_s1 + $0x38] sm:$0xf] }
  0xdb   :  { %5624 = vmatmul.mubr.msk.bf16.vlgmr.msra.gmra.mrb[16].mxu0 %vm48_vm7, %v896_v12  ;;  %v1319_v44 = vmul.f32 %v6531_v6, %v1313_v34  ;;  %v5347_v6 = vld [vmem:[%s7501_s1 + $0x3c] sm:$0xf]  ;;  %v1539_v54 = vsel %vm52_vm2, %v5345_v31, 0  ;;  %s6339_s1 = smov 112  }
  0xdc   :  { %5634 = vmatpush3.bf16.msra.mxu0 %v1115_v14  ;;  %5635 = vmatprep.mubr.msk.bf16.mxu0 %vm6335_vm3, %v6334_v30  ;;  %v6187_v15 = vpop.eup %6186  ;;  %v1425_v20 = vmul.f32 %v6523_v61, %v1419_v43  ;;  %v1645_v61 = vsel %vm52_vm2, %v5347_v6, 0  ;;  %vm121_vm2 = vcmask 516096  }
  0xdd   :  { %5645 = vmatprep.subr.bf16.mxu0 %v6334_v30  ;;  %v6189_v13 = vpop.eup %6188  ;;  %v1320_v45 = vpack.c.bf16 %v1319_v44, %v1319_v44  ;;  %v1525_v47 = vmul.f32 %v6187_v15, %v6681_v9 }
  0xde   :  { %v1426_v46 = vpack.c.bf16 %v1425_v20, %v1425_v20  ;;  %v1631_v49 = vmul.f32 %v6189_v13, %v6687_v19  ;;  %v6336_v19 = vmov 0.0|0.0  }
  0xdf   :  { %5630 = vmatmul.mubr.msk.bf16.vlgmr.msra.gmra.mrb[16].mxu1 %vm48_vm7, %v1002_v35  ;;  %v1531_v50 = vmul.f32 %v6541_v23, %v1525_v47  ;;  %v6337_v23 = vmov 1966171168  }
  0xe0   :  { %5640 = vmatpush3.bf16.msra.mxu1 %v1221_v25  ;;  %5641 = vmatprep.mubr.msk.bf16.mxu1 %vm6335_vm3, %v6334_v30  ;;  %v1637_v9 = vmul.f32 %v6535_v11, %v1631_v49  ;;  %v98_v27 = vunpack.c.l.s4 %v6337_v23  ;;  %v100_v11 = vlaneseq }
  0xe1   :  { %5651 = vmatprep.subr.bf16.mxu1 %v6334_v30  ;;  %v1532_v51 = vpack.c.bf16 %v1531_v50, %v1531_v50 }
  0xe2   :  { %v1638_v52 = vpack.c.bf16 %v1637_v9, %v1637_v9  ;;  %v99_v16 = vunpack.c.0.s8 %v98_v27  ;;  %v101_v55 = vshrl.u32 %v100_v11, 7 }
  0xe3   :  { %5636 = vmatmul.mubr.msk.bf16.vlgmr.msra.gmra.mrb[20].mxu0 %vm48_vm7, %v1108_v29 }
  0xe4   :  { %5646 = vmatpush3.bf16.msra.mxu0 %v1327_v33  ;;  %5647 = vmatprep.mubr.msk.bf16.mxu0 %vm6335_vm3, %v6334_v30  ;;  %v6872_v58 = vsub.s32 %v99_v16, %v101_v55 }
  0xe5   :  { %5657 = vmatprep.subr.bf16.mxu0 %v6334_v30 }
  0xe7   :  { %5642 = vmatmul.mubr.msk.bf16.vlgmr.msra.gmra.mrb[20].mxu1 %vm48_vm7, %v1214_v42 }
  0xe8   :  { %5652 = vmatpush3.bf16.msra.mxu1 %v1433_v39  ;;  %5653 = vmatprep.mubr.msk.bf16.mxu1 %vm6335_vm3, %v6334_v30 }
  0xe9   :  { %5663 = vmatprep.subr.bf16.mxu1 %v6334_v30 }
  0xeb   :  { %5648 = vmatmul.mubr.msk.bf16.vlgmr.msra.gmra.mrb[24].mxu0 %vm48_vm7, %v1320_v45 }
  0xec   :  { %5658 = vmatpush3.bf16.msra.mxu0 %v1539_v54  ;;  %5659 = vmatprep.mubr.msk.bf16.mxu0 %vm6335_vm3, %v6334_v30 }
  0xed   :  { %5949 = vmatprep.subr.bf16.mxu0 %v6336_v19 }
  0xef   :  { %5654 = vmatmul.mubr.msk.bf16.vlgmr.msra.gmra.mrb[24].mxu1 %vm48_vm7, %v1426_v46 }
  0xf0   :  { %5664 = vmatpush3.bf16.msra.mxu1 %v1645_v61  ;;  %5665 = vmatprep.mubr.msk.bf16.mxu1 %vm6335_vm3, %v6334_v30 }
  0xf1   :  { %5952 = vmatprep.subr.bf16.mxu1 %v6336_v19 }
  0xf3   :  { %5660 = vmatmul.mubr.msk.bf16.vlgmr.msra.gmra.mrb[28].mxu0 %vm48_vm7, %v1532_v51 }
  0xf4   :  { %5673 = vmatprep.mubr.msk.f32.mxu0 %vm6335_vm3, %v6334_v30 }
  0xf7   :  { %5666 = vmatmul.mubr.msk.bf16.vlgmr.msra.gmra.mrb[28].mxu1 %vm48_vm7, %v1638_v52  ;;  %vm1719_vm7 = vcmask 130048  }
  0xf8   :  { %5680 = vmatprep.mubr.msk.f32.mxu1 %vm6335_vm3, %v6334_v30  ;;  %vm6974_vm12 = vmpackc.low %vm1719_vm7, %vm1719_vm7 }
 0x18e   :  { %v90_v36 = vpop.f32.mrb[0].mxu0 }
 0x18f   :  { %v103_v59 = vrot.slane %v90_v36, %v6872_v58  ;;  %v5577_v62 = vpop.f32.mrb[1].mxu0 }
 0x190   :  { %v93_v63 = vpop.f32.mrb[2].mxu0 }
 0x191   :  { %v104_v3 = vcombine.high %v103_v59, %v103_v59  ;;  %v111_v40 = vrot.slane %v103_v59, %v6872_v58  ;;  %v5578_v41 = vpop.f32.mrb[3].mxu0 }
 0x192   :  { %v197_v0 = vpop.f32.mrb[0].mxu1 }
 0x193   :  { %v210_v1 = vrot.slane %v197_v0, %v6872_v58  ;;  %v5583_v2 = vpop.f32.mrb[1].mxu1  ;;  %v118_v17 = vrot.slane %v104_v3, %v6872_v58  ;;  %122 = vst.msk [vmem:[#allocation2] sm:$0x1] %vm121_vm2, %v111_v40 }
 0x194   :  { %v200_v18 = vpop.f32.mrb[2].mxu1 }
 0x195   :  { %v211_v4 = vcombine.high %v210_v1, %v210_v1  ;;  %v218_v5 = vrot.slane %v210_v1, %v6872_v58  ;;  %v5584_v38 = vpop.f32.mrb[3].mxu1  ;;  %123 = vst.msk [vmem:[#allocation2 + $0x10] sm:$0x1] %vm121_vm2, %v118_v17 }
 0x196   :  { %v303_v7 = vpop.f32.mrb[4].mxu0 }
 0x197   :  { %v225_v22 = vrot.slane %v211_v4, %v6872_v58  ;;  %228 = vst.msk [vmem:[#allocation2 + $0x1] sm:$0x1] %vm121_vm2, %v218_v5  ;;  %v316_v8 = vrot.slane %v303_v7, %v6872_v58  ;;  %v5589_v10 = vpop.f32.mrb[5].mxu0 }
 0x198   :  { %v306_v21 = vpop.f32.mrb[6].mxu0 }
 0x199   :  { %229 = vst.msk [vmem:[#allocation2 + $0x11] sm:$0x1] %vm121_vm2, %v225_v22  ;;  %v317_v14 = vcombine.high %v316_v8, %v316_v8  ;;  %v324_v24 = vrot.slane %v316_v8, %v6872_v58  ;;  %v5590_v35 = vpop.f32.mrb[7].mxu0 }
 0x19a   :  { %v409_v32 = vpop.f32.mrb[4].mxu1 }
 0x19b   :  { %v422_v56 = vrot.slane %v409_v32, %v6872_v58  ;;  %v5595_v12 = vpop.f32.mrb[5].mxu1  ;;  %v331_v57 = vrot.slane %v317_v14, %v6872_v58  ;;  %334 = vst.msk [vmem:[#allocation2 + $0x2] sm:$0x1] %vm121_vm2, %v324_v24 }
 0x19c   :  { %v412_v25 = vpop.f32.mrb[6].mxu1 }
 0x19d   :  { %v423_v37 = vcombine.high %v422_v56, %v422_v56  ;;  %v430_v26 = vrot.slane %v422_v56, %v6872_v58  ;;  %v5596_v28 = vpop.f32.mrb[7].mxu1  ;;  %335 = vst.msk [vmem:[#allocation2 + $0x12] sm:$0x1] %vm121_vm2, %v331_v57 }
 0x19e   :  { %v515_v48 = vpop.f32.mrb[8].mxu0 }
 0x19f   :  { %v437_v60 = vrot.slane %v423_v37, %v6872_v58  ;;  %440 = vst.msk [vmem:[#allocation2 + $0x3] sm:$0x1] %vm121_vm2, %v430_v26  ;;  %v528_v53 = vrot.slane %v515_v48, %v6872_v58  ;;  %v5601_v29 = vpop.f32.mrb[9].mxu0 }
 0x1a0   :  { %v518_v34 = vpop.f32.mrb[10].mxu0 }
 0x1a1   :  { %441 = vst.msk [vmem:[#allocation2 + $0x13] sm:$0x1] %vm121_vm2, %v437_v60  ;;  %v529_v43 = vcombine.high %v528_v53, %v528_v53  ;;  %v536_v44 = vrot.slane %v528_v53, %v6872_v58  ;;  %v5602_v15 = vpop.f32.mrb[11].mxu0 }
 0x1a2   :  { %v621_v33 = vpop.f32.mrb[8].mxu1 }
 0x1a3   :  { %v634_v42 = vrot.slane %v621_v33, %v6872_v58  ;;  %v5607_v39 = vpop.f32.mrb[9].mxu1  ;;  %v543_v45 = vrot.slane %v529_v43, %v6872_v58  ;;  %546 = vst.msk [vmem:[#allocation2 + $0x4] sm:$0x1] %vm121_vm2, %v536_v44 }
 0x1a4   :  { %v624_v20 = vpop.f32.mrb[10].mxu1 }
 0x1a5   :  { %v635_v31 = vcombine.high %v634_v42, %v634_v42  ;;  %v642_v13 = vrot.slane %v634_v42, %v6872_v58  ;;  %v5608_v6 = vpop.f32.mrb[11].mxu1  ;;  %547 = vst.msk [vmem:[#allocation2 + $0x14] sm:$0x1] %vm121_vm2, %v543_v45 }
 0x1a6   :  { %v727_v47 = vpop.f32.mrb[12].mxu0 }
 0x1a7   :  { %v649_v54 = vrot.slane %v635_v31, %v6872_v58  ;;  %652 = vst.msk [vmem:[#allocation2 + $0x5] sm:$0x1] %vm121_vm2, %v642_v13  ;;  %v740_v46 = vrot.slane %v727_v47, %v6872_v58  ;;  %v5613_v61 = vpop.f32.mrb[13].mxu0 }
 0x1a8   :  { %v730_v50 = vpop.f32.mrb[14].mxu0 }
 0x1a9   :  { %653 = vst.msk [vmem:[#allocation2 + $0x15] sm:$0x1] %vm121_vm2, %v649_v54  ;;  %v741_v52 = vcombine.high %v740_v46, %v740_v46  ;;  %v748_v23 = vrot.slane %v740_v46, %v6872_v58  ;;  %v5614_v27 = vpop.f32.mrb[15].mxu0 }
 0x1aa   :  { %v833_v49 = vpop.f32.mrb[12].mxu1 }
 0x1ab   :  { %v846_v9 = vrot.slane %v833_v49, %v6872_v58  ;;  %v5619_v51 = vpop.f32.mrb[13].mxu1  ;;  %v755_v59 = vrot.slane %v741_v52, %v6872_v58  ;;  %758 = vst.msk [vmem:[#allocation2 + $0x6] sm:$0x1] %vm121_vm2, %v748_v23 }
 0x1ac   :  { %v836_v11 = vpop.f32.mrb[14].mxu1 }
 0x1ad   :  { %v847_v16 = vcombine.high %v846_v9, %v846_v9  ;;  %v854_v55 = vrot.slane %v846_v9, %v6872_v58  ;;  %v5620_v36 = vpop.f32.mrb[15].mxu1  ;;  %759 = vst.msk [vmem:[#allocation2 + $0x16] sm:$0x1] %vm121_vm2, %v755_v59 }
 0x1ae   :  { %v939_v0 = vpop.f32.mrb[16].mxu0 }
 0x1af   :  { %v861_v62 = vrot.slane %v847_v16, %v6872_v58  ;;  %864 = vst.msk [vmem:[#allocation2 + $0x7] sm:$0x1] %vm121_vm2, %v854_v55  ;;  %v952_v63 = vrot.slane %v939_v0, %v6872_v58  ;;  %v5625_v1 = vpop.f32.mrb[17].mxu0 }
 0x1b0   :  { %v942_v3 = vpop.f32.mrb[18].mxu0 }
 0x1b1   :  { %865 = vst.msk [vmem:[#allocation2 + $0x17] sm:$0x1] %vm121_vm2, %v861_v62  ;;  %v953_v18 = vcombine.high %v952_v63, %v952_v63  ;;  %v960_v4 = vrot.slane %v952_v63, %v6872_v58  ;;  %v5626_v5 = vpop.f32.mrb[19].mxu0 }
 0x1b2   :  { %v1045_v2 = vpop.f32.mrb[16].mxu1 }
 0x1b3   :  { %v1058_v40 = vrot.slane %v1045_v2, %v6872_v58  ;;  %v5631_v41 = vpop.f32.mrb[17].mxu1  ;;  %v967_v8 = vrot.slane %v953_v18, %v6872_v58  ;;  %970 = vst.msk [vmem:[#allocation2 + $0x8] sm:$0x1] %vm121_vm2, %v960_v4 }
 0x1b4   :  { %v1048_v38 = vpop.f32.mrb[18].mxu1 }
 0x1b5   :  { %v1059_v17 = vcombine.high %v1058_v40, %v1058_v40  ;;  %v1066_v22 = vrot.slane %v1058_v40, %v6872_v58  ;;  %v5632_v7 = vpop.f32.mrb[19].mxu1  ;;  %971 = vst.msk [vmem:[#allocation2 + $0x18] sm:$0x1] %vm121_vm2, %v967_v8  ;;  %v6338_v38 = vmov 0.25  }
 0x1b6   :  { %v1151_v32 = vpop.f32.mrb[20].mxu0  ;;  %v1714_v2 = vld [vmem:[#allocation2] sm:$0xff] }
 0x1b7   :  { %v1073_v10 = vrot.slane %v1059_v17, %v6872_v58  ;;  %1076 = vst.msk [vmem:[#allocation2 + $0x9] sm:$0x1] %vm121_vm2, %v1066_v22  ;;  %v1164_v21 = vrot.slane %v1151_v32, %v6872_v58  ;;  %v5637_v56 = vpop.f32.mrb[21].mxu0 }
 0x1b8   :  { %v1154_v14 = vpop.f32.mrb[22].mxu0  ;;  %v1716_v18 = vld [vmem:[#allocation2 + $0x10] sm:$0xff] }
 0x1b9   :  { %1077 = vst.msk [vmem:[#allocation2 + $0x19] sm:$0x1] %vm121_vm2, %v1073_v10  ;;  %v1165_v25 = vcombine.high %v1164_v21, %v1164_v21  ;;  %v1172_v37 = vrot.slane %v1164_v21, %v6872_v58  ;;  %v5638_v26 = vpop.f32.mrb[23].mxu0 }
 0x1ba   :  { %v1257_v12 = vpop.f32.mrb[20].mxu1 }
 0x1bb   :  { %v1270_v24 = vrot.slane %v1257_v12, %v6872_v58  ;;  %v5643_v35 = vpop.f32.mrb[21].mxu1  ;;  %v1179_v53 = vrot.slane %v1165_v25, %v6872_v58  ;;  %1182 = vst.msk [vmem:[#allocation2 + $0xa] sm:$0x1] %vm121_vm2, %v1172_v37 }
 0x1bc   :  { %v1260_v28 = vpop.f32.mrb[22].mxu1 }
 0x1bd   :  { %v1271_v57 = vcombine.high %v1270_v24, %v1270_v24  ;;  %v1278_v60 = vrot.slane %v1270_v24, %v6872_v58  ;;  %v5644_v48 = vpop.f32.mrb[23].mxu1  ;;  %1183 = vst.msk [vmem:[#allocation2 + $0x1a] sm:$0x1] %vm121_vm2, %v1179_v53 }
 0x1be   :  { %v1363_v33 = vpop.f32.mrb[24].mxu0 }
 0x1bf   :  { %v1285_v29 = vrot.slane %v1271_v57, %v6872_v58  ;;  %1288 = vst.msk [vmem:[#allocation2 + $0xb] sm:$0x1] %vm121_vm2, %v1278_v60  ;;  %v1376_v34 = vrot.slane %v1363_v33, %v6872_v58  ;;  %v5649_v42 = vpop.f32.mrb[25].mxu0 }
 0x1c0   :  { %v1366_v43 = vpop.f32.mrb[26].mxu0 }
 0x1c1   :  { %1289 = vst.msk [vmem:[#allocation2 + $0x1b] sm:$0x1] %vm121_vm2, %v1285_v29  ;;  %v1377_v20 = vcombine.high %v1376_v34, %v1376_v34  ;;  %v1384_v31 = vrot.slane %v1376_v34, %v6872_v58  ;;  %v5650_v13 = vpop.f32.mrb[27].mxu0 }
 0x1c2   :  { %v1469_v39 = vpop.f32.mrb[24].mxu1 }
 0x1c3   :  { %v1482_v44 = vrot.slane %v1469_v39, %v6872_v58  ;;  %v5655_v15 = vpop.f32.mrb[25].mxu1  ;;  %v1391_v46 = vrot.slane %v1377_v20, %v6872_v58  ;;  %1394 = vst.msk [vmem:[#allocation2 + $0xc] sm:$0x1] %vm121_vm2, %v1384_v31 }
 0x1c4   :  { %v1472_v6 = vpop.f32.mrb[26].mxu1 }
 0x1c5   :  { %v1483_v45 = vcombine.high %v1482_v44, %v1482_v44  ;;  %v1490_v54 = vrot.slane %v1482_v44, %v6872_v58  ;;  %v5656_v47 = vpop.f32.mrb[27].mxu1  ;;  %1395 = vst.msk [vmem:[#allocation2 + $0x1c] sm:$0x1] %vm121_vm2, %v1391_v46 }
 0x1c6   :  { %v1575_v49 = vpop.f32.mrb[28].mxu0 }
 0x1c7   :  { %v1497_v61 = vrot.slane %v1483_v45, %v6872_v58  ;;  %1500 = vst.msk [vmem:[#allocation2 + $0xd] sm:$0x1] %vm121_vm2, %v1490_v54  ;;  %v1588_v50 = vrot.slane %v1575_v49, %v6872_v58  ;;  %v5661_v9 = vpop.f32.mrb[29].mxu0 }
 0x1c8   :  { %v1578_v52 = vpop.f32.mrb[30].mxu0 }
 0x1c9   :  { %1501 = vst.msk [vmem:[#allocation2 + $0x1d] sm:$0x1] %vm121_vm2, %v1497_v61  ;;  %v1589_v11 = vcombine.high %v1588_v50, %v1588_v50  ;;  %v1596_v16 = vrot.slane %v1588_v50, %v6872_v58  ;;  %v5662_v55 = vpop.f32.mrb[31].mxu0 }
 0x1ca   :  { %v1681_v51 = vpop.f32.mrb[28].mxu1 }
 0x1cb   :  { %v1694_v23 = vrot.slane %v1681_v51, %v6872_v58  ;;  %v5667_v27 = vpop.f32.mrb[29].mxu1  ;;  %v1603_v63 = vrot.slane %v1589_v11, %v6872_v58  ;;  %1606 = vst.msk [vmem:[#allocation2 + $0xe] sm:$0x1] %vm121_vm2, %v1596_v16 }
 0x1cc   :  { %v1684_v36 = vpop.f32.mrb[30].mxu1 }
 0x1cd   :  { %v1695_v59 = vcombine.high %v1694_v23, %v1694_v23  ;;  %v1702_v62 = vrot.slane %v1694_v23, %v6872_v58  ;;  %v5668_v0 = vpop.f32.mrb[31].mxu1  ;;  %1607 = vst.msk [vmem:[#allocation2 + $0x1e] sm:$0x1] %vm121_vm2, %v1603_v63 }
 0x1cf   :  { %v1709_v1 = vrot.slane %v1695_v59, %v6872_v58  ;;  %1712 = vst.msk [vmem:[#allocation2 + $0xf] sm:$0x1] %vm121_vm2, %v1702_v62 }
 0x1d1   :  { %1713 = vst.msk [vmem:[#allocation2 + $0x1f] sm:$0x1] %vm121_vm2, %v1709_v1 }
 0x1d6   :  { %v1715_v3 = vld [vmem:[#allocation2 + $0x8] sm:$0xff] }
 0x1d7   :  { %v6954_v40 = vpack.c.bf16 %v1715_v3, %v1714_v2  ;;  %v6956_v41 = vpack.i.bf16 %v1715_v3, %v1714_v2 }
 0x1d8   :  { %v1717_v4 = vld [vmem:[#allocation2 + $0x18] sm:$0xff] }
 0x1d9   :  { %5951 = vmatpush3.bf16.msra.mxu0 %v6954_v40  ;;  %v6959_v5 = vpack.c.bf16 %v1717_v4, %v1716_v18  ;;  %v6961_v58 = vpack.i.bf16 %v1717_v4, %v1716_v18 }
 0x1da   :  { %5955 = vmatprep.subr.bf16.mxu0 %v6336_v19 }
 0x1db   :  { %5954 = vmatpush3.bf16.msra.mxu1 %v6959_v5 }
 0x1dc   :  { %5674 = vmatmul.mubr.msk.f32.vlgmr.msra.gmra.mrb[32].mxu0 %vm1719_vm7, %v6338_v38  ;;  %5959 = vmatprep.subr.bf16.mxu1 %v6336_v19 }
 0x1dd   :  { %5687 = vmatprep.mubr.msk.f32.mxu0 %vm6335_vm3, %v6334_v30 }
 0x1de   :  { %5681 = vmatmul.mubr.msk.f32.vlgmr.msra.gmra.mrb[32].mxu1 %vm1719_vm7, %v6338_v38 }
 0x1df   :  { %5694 = vmatprep.mubr.msk.f32.mxu1 %vm6335_vm3, %v6334_v30 }
 0x1e2   :  { %5958 = vmatpush3.bf16.xpose.msk.msra.mxu0 %vm6974_vm12, %v6954_v40 }
 0x1e3   :  { %5963 = vmatprep.subr.bf16.mxu0 %v6336_v19 }
 0x1e4   :  { %5962 = vmatpush3.bf16.xpose.msk.msra.mxu1 %vm6974_vm12, %v6959_v5 }
 0x1e5   :  { %5966 = vmatprep.subr.bf16.mxu1 %v6336_v19 }
 0x2af   :  { %v1789_v22 = vpop.f32.mrb[32].mxu0 }
 0x2b0   :  { %v1863_v7 = vmul.f32 %v1789_v22, %v1789_v22  ;;  %v5675_v8 = vpop.f32.mrb[33].mxu0 }
 0x2b1   :  { %v1859_v10 = vpop.f32.mrb[32].mxu1 }
 0x2b2   :  { %v1864_v32 = vmul.f32 %v1859_v10, %v1859_v10  ;;  %v1866_v21 = vsel %vm1865_vm13, %v1863_v7, 0.0  ;;  %v5682_v56 = vpop.f32.mrb[33].mxu1 }
 0x2b3   :  { %1867 = vadd.xlane.f32.xlu1 %v1866_v21 }
 0x2b4   :  { %v1869_v12 = vsel %vm1865_vm13, %v1864_v32, 0.0 }
 0x2b5   :  { %1870 = vadd.xlane.f32.xlu0 %v1869_v12 }
 0x2c4   :  { %6102 = vrot.lane.b32.xlu1 %v6956_v41, %s6339_s1 }
 0x2cb   :  { %6097 = vrot.lane.b32.xlu0 %v6961_v58, %s6339_s1 }
 0x340   :  { %v1868_v14 = vpop.xlane.xlu1 %1867 }
 0x341   :  { %6190 = vrsqrt.f32 %v1868_v14  ;;  %vm1874_vm14 = vcmp.eq.f32.partialorder %v1868_v14, inf  ;;  %v1877_v26 = vand.u32 2147483648, %v1868_v14  ;;  %vm1876_vm15 = vcmp.eq.f32.partialorder %v1868_v14, 0.0 }
 0x342   :  { %v1871_v24 = vpop.xlane.xlu0 %1870  ;;  %v1886_v53 = vadd.f32 1.0, %v1868_v14 }
 0x343   :  { %6192 = vrsqrt.f32 %v1871_v24  ;;  %vm1881_vm1 = vcmp.eq.f32.partialorder %v1871_v24, inf  ;;  %v1884_v48 = vand.u32 2147483648, %v1871_v24  ;;  %vm1883_vm4 = vcmp.eq.f32.partialorder %v1871_v24, 0.0 }
 0x344   :  { %v1887_v39 = vadd.f32 1.0, %v1871_v24  ;;  %v6103_v15 = vpop.permute.xlu1 %6102 }
 0x345   :  { %v6105_v13 = vunpack.i.h.bf16 %v6103_v15  ;;  %v6104_v6 = vunpack.i.l.bf16 %v6103_v15 }
 0x346   :  { %v6098_v20 = vpop.permute.xlu0 %6097 }
 0x347   :  { %v6100_v47 = vunpack.i.h.bf16 %v6098_v20  ;;  %v6099_v46 = vunpack.i.l.bf16 %v6098_v20  ;;  %v6992_v50 = vpack.c.bf16 %v6105_v13, %v6104_v6 }
 0x349   :  { %v6995_v51 = vpack.c.bf16 %v6100_v47, %v6099_v46 }
 0x34b   :  { %v6191_v35 = vpop.eup %6190 }
 0x34c   :  { %v1873_v25 = vmul.f32 %v6191_v35, %v1868_v14 }
 0x34d   :  { %v6193_v37 = vpop.eup %6192 }
 0x34e   :  { %v1875_v28 = vsel %vm1874_vm14, %v1868_v14, %v1873_v25  ;;  %v1880_v57 = vmul.f32 %v6193_v37, %v1871_v24 }
 0x34f   :  { %v1878_v60 = vsel %vm1876_vm15, %v1877_v26, %v1875_v28 }
 0x350   :  { %v1888_v29 = vadd.f32 1e-08, %v1878_v60  ;;  %v1882_v33 = vsel %vm1881_vm1, %v1871_v24, %v1880_v57 }
 0x351   :  { %v1885_v34 = vsel %vm1883_vm4, %v1884_v48, %v1882_v33 }
 0x352   :  { %v1890_v42 = vmul.f32 %v1888_v29, %v1886_v53  ;;  %v1889_v43 = vadd.f32 1e-08, %v1885_v34 }
 0x354   :  { %6194 = vrcp.f32 %v1890_v42  ;;  %v1891_v44 = vmul.f32 %v1889_v43, %v1887_v39 }
 0x356   :  { %6196 = vrcp.f32 %v1891_v44 }
 0x35e   :  { %v6195_v31 = vpop.eup %6194 }
 0x35f   :  { %v1894_v45 = vmul.f32 %v6195_v31, %v1868_v14 }
 0x360   :  { %v6197_v54 = vpop.eup %6196 }
 0x361   :  { %v1896_v61 = vmul.f32 %v1894_v45, %v1789_v22  ;;  %v1895_v49 = vmul.f32 %v6197_v54, %v1871_v24 }
 0x363   :  { %5688 = vmatmul.mubr.msk.f32.vlgmr.msra.gmra.mrb[34].mxu0 %vm1719_vm7, %v1896_v61  ;;  %v1897_v9 = vmul.f32 %v1895_v49, %v1859_v10 }
 0x364   :  { %5965 = vmatpush3.bf16.msra.mxu0 %v6992_v50  ;;  %5701 = vmatprep.mubr.msk.f32.mxu0 %vm6335_vm3, %v6334_v30 }
 0x365   :  { %5695 = vmatmul.mubr.msk.f32.vlgmr.msra.gmra.mrb[34].mxu1 %vm1719_vm7, %v1897_v9  ;;  %5969 = vmatprep.subr.bf16.mxu0 %v6336_v19 }
 0x366   :  { %5968 = vmatpush3.bf16.msra.mxu1 %v6995_v51  ;;  %5708 = vmatprep.mubr.msk.f32.mxu1 %vm6335_vm3, %v6334_v30 }
 0x367   :  { %5702 = vmatmul.mubr.msk.f32.vlgmr.msra.gmra.mrb[36].mxu0 %vm1719_vm7, %v6338_v38  ;;  %5973 = vmatprep.subr.bf16.mxu1 %v6336_v19 }
 0x368   :  { %5715 = vmatprep.mubr.msk.f32.mxu0 %vm6335_vm3, %v6334_v30 }
 0x369   :  { %5709 = vmatmul.mubr.msk.f32.vlgmr.msra.gmra.mrb[36].mxu1 %vm1719_vm7, %v6338_v38 }
 0x36a   :  { %5722 = vmatprep.mubr.msk.f32.mxu1 %vm6335_vm3, %v6334_v30 }
 0x36d   :  { %5972 = vmatpush3.bf16.xpose.msk.msra.mxu0 %vm6974_vm12, %v6992_v50 }
 0x36e   :  { %5977 = vmatprep.subr.bf16.mxu0 %v6336_v19 }
 0x36f   :  { %5976 = vmatpush3.bf16.xpose.msk.msra.mxu1 %vm6974_vm12, %v6995_v51 }
 0x370   :  { %5980 = vmatprep.subr.bf16.mxu1 %v6336_v19 }
 0x436   :  { %v7022_v52 = vpop.f32.mrb[34].mxu0 }
 0x437   :  { %v5689_v23 = vpop.f32.mrb[35].mxu0 }
 0x438   :  { %v7024_v27 = vpop.f32.mrb[34].mxu1 }
 0x439   :  { %v5696_v11 = vpop.f32.mrb[35].mxu1 }
 0x43a   :  { %v2128_v16 = vpop.f32.mrb[36].mxu0 }
 0x43b   :  { %v2208_v55 = vmul.f32 %v2128_v16, %v2128_v16  ;;  %v5703_v36 = vpop.f32.mrb[37].mxu0 }
 0x43c   :  { %v2204_v59 = vpop.f32.mrb[36].mxu1 }
 0x43d   :  { %v2209_v62 = vmul.f32 %v2204_v59, %v2204_v59  ;;  %v2210_v0 = vsel %vm1865_vm13, %v2208_v55, 0.0  ;;  %v5710_v63 = vpop.f32.mrb[37].mxu1 }
 0x43e   :  { %2211 = vadd.xlane.f32.xlu0 %v2210_v0 }
 0x43f   :  { %v2213_v1 = vsel %vm1865_vm13, %v2209_v62, 0.0 }
 0x440   :  { %2214 = vadd.xlane.f32.xlu1 %v2213_v1 }
 0x451   :  { %6112 = vrot.lane.b32.xlu1 %v6956_v41, %s6340_s25 }
 0x454   :  { %6107 = vrot.lane.b32.xlu0 %v6961_v58, %s6340_s25 }
 0x4cb   :  { %v2212_v2 = vpop.xlane.xlu0 %2211 }
 0x4cc   :  { %6198 = vrsqrt.f32 %v2212_v2  ;;  %vm2218_vm5 = vcmp.eq.f32.partialorder %v2212_v2, inf  ;;  %v2221_v7 = vand.u32 2147483648, %v2212_v2  ;;  %vm2220_vm6 = vcmp.eq.f32.partialorder %v2212_v2, 0.0 }
 0x4cd   :  { %v2215_v3 = vpop.xlane.xlu1 %2214  ;;  %v2230_v56 = vadd.f32 1.0, %v2212_v2 }
 0x4ce   :  { %6200 = vrsqrt.f32 %v2215_v3  ;;  %vm2225_vm8 = vcmp.eq.f32.partialorder %v2215_v3, inf  ;;  %v2228_v21 = vand.u32 2147483648, %v2215_v3  ;;  %vm2227_vm9 = vcmp.eq.f32.partialorder %v2215_v3, 0.0 }
 0x4cf   :  { %v2231_v25 = vadd.f32 1.0, %v2215_v3  ;;  %v6108_v57 = vpop.permute.xlu0 %6107 }
 0x4d0   :  { %v6110_v34 = vunpack.i.h.bf16 %v6108_v57  ;;  %v6109_v42 = vunpack.i.l.bf16 %v6108_v57 }
 0x4d1   :  { %v6113_v28 = vpop.permute.xlu1 %6112 }
 0x4d2   :  { %v6115_v48 = vunpack.i.h.bf16 %v6113_v28  ;;  %v6114_v53 = vunpack.i.l.bf16 %v6113_v28  ;;  %v7033_v20 = vpack.c.bf16 %v6110_v34, %v6109_v42 }
 0x4d4   :  { %v7030_v44 = vpack.c.bf16 %v6115_v48, %v6114_v53 }
 0x4d6   :  { %v6199_v18 = vpop.eup %6198 }
 0x4d7   :  { %v2217_v4 = vmul.f32 %v6199_v18, %v2212_v2 }
 0x4d8   :  { %v6201_v22 = vpop.eup %6200 }
 0x4d9   :  { %v2219_v8 = vsel %vm2218_vm5, %v2212_v2, %v2217_v4  ;;  %v2224_v10 = vmul.f32 %v6201_v22, %v2215_v3 }
 0x4da   :  { %v2222_v32 = vsel %vm2220_vm6, %v2221_v7, %v2219_v8 }
 0x4db   :  { %v2232_v12 = vadd.f32 1e-08, %v2222_v32  ;;  %v2226_v14 = vsel %vm2225_vm8, %v2215_v3, %v2224_v10 }
 0x4dc   :  { %v2229_v24 = vsel %vm2227_vm9, %v2228_v21, %v2226_v14 }
 0x4dd   :  { %v2234_v35 = vmul.f32 %v2232_v12, %v2230_v56  ;;  %v2233_v37 = vadd.f32 1e-08, %v2229_v24 }
 0x4df   :  { %6202 = vrcp.f32 %v2234_v35  ;;  %v2235_v26 = vmul.f32 %v2233_v37, %v2231_v25 }
 0x4e1   :  { %6204 = vrcp.f32 %v2235_v26 }
 0x4e9   :  { %v6203_v60 = vpop.eup %6202 }
 0x4ea   :  { %v2238_v29 = vmul.f32 %v6203_v60, %v2212_v2 }
 0x4eb   :  { %v6205_v33 = vpop.eup %6204 }
 0x4ec   :  { %v2240_v39 = vmul.f32 %v2238_v29, %v2128_v16  ;;  %v2239_v43 = vmul.f32 %v6205_v33, %v2215_v3 }
 0x4ee   :  { %5716 = vmatmul.mubr.msk.f32.vlgmr.msra.gmra.mrb[38].mxu0 %vm1719_vm7, %v2240_v39  ;;  %v2241_v15 = vmul.f32 %v2239_v43, %v2204_v59 }
 0x4ef   :  { %5979 = vmatpush3.bf16.msra.mxu0 %v7030_v44  ;;  %5729 = vmatprep.mubr.msk.f32.mxu0 %vm6335_vm3, %v6334_v30 }
 0x4f0   :  { %5723 = vmatmul.mubr.msk.f32.vlgmr.msra.gmra.mrb[38].mxu1 %vm1719_vm7, %v2241_v15  ;;  %5983 = vmatprep.subr.bf16.mxu0 %v6336_v19 }
 0x4f1   :  { %5982 = vmatpush3.bf16.msra.mxu1 %v7033_v20  ;;  %5736 = vmatprep.mubr.msk.f32.mxu1 %vm6335_vm3, %v6334_v30 }
 0x4f2   :  { %5730 = vmatmul.mubr.msk.f32.vlgmr.msra.gmra.mrb[40].mxu0 %vm1719_vm7, %v6338_v38  ;;  %5987 = vmatprep.subr.bf16.mxu1 %v6336_v19 }
 0x4f3   :  { %5743 = vmatprep.mubr.msk.f32.mxu0 %vm6335_vm3, %v6334_v30 }
 0x4f4   :  { %5737 = vmatmul.mubr.msk.f32.vlgmr.msra.gmra.mrb[40].mxu1 %vm1719_vm7, %v6338_v38 }
 0x4f5   :  { %5750 = vmatprep.mubr.msk.f32.mxu1 %vm6335_vm3, %v6334_v30 }
 0x4f8   :  { %5986 = vmatpush3.bf16.xpose.msk.msra.mxu0 %vm6974_vm12, %v7030_v44 }
 0x4f9   :  { %5991 = vmatprep.subr.bf16.mxu0 %v6336_v19 }
 0x4fa   :  { %5990 = vmatpush3.bf16.xpose.msk.msra.mxu1 %vm6974_vm12, %v7033_v20 }
 0x4fb   :  { %5994 = vmatprep.subr.bf16.mxu1 %v6336_v19 }
 0x5c1   :  { %v7060_v31 = vpop.f32.mrb[38].mxu0 }
 0x5c2   :  { %v3076_v13 = vmax.f32 %v7022_v52, %v7060_v31  ;;  %v5717_v6 = vpop.f32.mrb[39].mxu0 }
 0x5c3   :  { %v7064_v45 = vpop.f32.mrb[38].mxu1 }
 0x5c4   :  { %v3077_v54 = vmax.f32 %v7024_v27, %v7064_v45  ;;  %v5724_v47 = vpop.f32.mrb[39].mxu1 }
 0x5c5   :  { %v2468_v46 = vpop.f32.mrb[40].mxu0 }
 0x5c6   :  { %v2548_v61 = vmul.f32 %v2468_v46, %v2468_v46  ;;  %v5731_v49 = vpop.f32.mrb[41].mxu0 }
 0x5c7   :  { %v2544_v9 = vpop.f32.mrb[40].mxu1 }
 0x5c8   :  { %v2549_v23 = vmul.f32 %v2544_v9, %v2544_v9  ;;  %v2550_v11 = vsel %vm1865_vm13, %v2548_v61, 0.0  ;;  %v5738_v16 = vpop.f32.mrb[41].mxu1 }
 0x5c9   :  { %2551 = vadd.xlane.f32.xlu0 %v2550_v11 }
 0x5ca   :  { %v2553_v55 = vsel %vm1865_vm13, %v2549_v23, 0.0 }
 0x5cb   :  { %2554 = vadd.xlane.f32.xlu1 %v2553_v55 }
 0x5dc   :  { %6122 = vrot.lane.b32.xlu1 %v6956_v41, %s6341_s26 }
 0x5df   :  { %6117 = vrot.lane.b32.xlu0 %v6961_v58, %s6341_s26 }
 0x656   :  { %v2552_v36 = vpop.xlane.xlu0 %2551 }
 0x657   :  { %6206 = vrsqrt.f32 %v2552_v36  ;;  %vm2558_vm10 = vcmp.eq.f32.partialorder %v2552_v36, inf  ;;  %v2561_v1 = vand.u32 2147483648, %v2552_v36  ;;  %vm2560_vm11 = vcmp.eq.f32.partialorder %v2552_v36, 0.0 }
 0x658   :  { %v2555_v59 = vpop.xlane.xlu1 %2554  ;;  %v2570_v22 = vadd.f32 1.0, %v2552_v36 }
 0x659   :  { %6208 = vrsqrt.f32 %v2555_v59  ;;  %vm2565_vm2 = vcmp.eq.f32.partialorder %v2555_v59, inf  ;;  %v2568_v4 = vand.u32 2147483648, %v2555_v59  ;;  %vm2567_vm14 = vcmp.eq.f32.partialorder %v2555_v59, 0.0 }
 0x65a   :  { %v2571_v10 = vadd.f32 1.0, %v2555_v59  ;;  %v6118_v12 = vpop.permute.xlu0 %6117 }
 0x65b   :  { %v6120_v26 = vunpack.i.h.bf16 %v6118_v12  ;;  %v6119_v28 = vunpack.i.l.bf16 %v6118_v12 }
 0x65c   :  { %v6123_v56 = vpop.permute.xlu1 %6122 }
 0x65d   :  { %v6125_v24 = vunpack.i.h.bf16 %v6123_v56  ;;  %v6124_v35 = vunpack.i.l.bf16 %v6123_v56  ;;  %v7075_v29 = vpack.c.bf16 %v6120_v26, %v6119_v28 }
 0x65f   :  { %v7072_v48 = vpack.c.bf16 %v6125_v24, %v6124_v35 }
 0x661   :  { %v6207_v62 = vpop.eup %6206 }
 0x662   :  { %v2557_v0 = vmul.f32 %v6207_v62, %v2552_v36 }
 0x663   :  { %v6209_v63 = vpop.eup %6208 }
 0x664   :  { %v2559_v2 = vsel %vm2558_vm10, %v2552_v36, %v2557_v0  ;;  %v2564_v3 = vmul.f32 %v6209_v63, %v2555_v59 }
 0x665   :  { %v2562_v18 = vsel %vm2560_vm11, %v2561_v1, %v2559_v2 }
 0x666   :  { %v2572_v7 = vadd.f32 1e-08, %v2562_v18  ;;  %v2566_v41 = vsel %vm2565_vm2, %v2555_v59, %v2564_v3 }
 0x667   :  { %v2569_v58 = vsel %vm2567_vm14, %v2568_v4, %v2566_v41 }
 0x668   :  { %v2574_v8 = vmul.f32 %v2572_v7, %v2570_v22  ;;  %v2573_v32 = vadd.f32 1e-08, %v2569_v58 }
 0x66a   :  { %6210 = vrcp.f32 %v2574_v8  ;;  %v2575_v21 = vmul.f32 %v2573_v32, %v2571_v10 }
 0x66c   :  { %6212 = vrcp.f32 %v2575_v21 }
 0x674   :  { %v6211_v14 = vpop.eup %6210 }
 0x675   :  { %v2578_v25 = vmul.f32 %v6211_v14, %v2552_v36 }
 0x676   :  { %v6213_v37 = vpop.eup %6212 }
 0x677   :  { %v2580_v57 = vmul.f32 %v2578_v25, %v2468_v46  ;;  %v2579_v60 = vmul.f32 %v6213_v37, %v2555_v59 }
 0x679   :  { %5744 = vmatmul.mubr.msk.f32.vlgmr.msra.gmra.mrb[42].mxu0 %vm1719_vm7, %v2580_v57  ;;  %v2581_v53 = vmul.f32 %v2579_v60, %v2544_v9 }
 0x67a   :  { %5993 = vmatpush3.bf16.msra.mxu0 %v7072_v48  ;;  %5757 = vmatprep.mubr.msk.f32.mxu0 %vm6335_vm3, %v6334_v30 }
 0x67b   :  { %5751 = vmatmul.mubr.msk.f32.vlgmr.msra.gmra.mrb[42].mxu1 %vm1719_vm7, %v2581_v53  ;;  %5997 = vmatprep.subr.bf16.mxu0 %v6336_v19 }
 0x67c   :  { %5996 = vmatpush3.bf16.msra.mxu1 %v7075_v29  ;;  %5764 = vmatprep.mubr.msk.f32.mxu1 %vm6335_vm3, %v6334_v30 }
 0x67d   :  { %5758 = vmatmul.mubr.msk.f32.vlgmr.msra.gmra.mrb[44].mxu0 %vm1719_vm7, %v6338_v38  ;;  %6001 = vmatprep.subr.bf16.mxu1 %v6336_v19 }
 0x67e   :  { %5771 = vmatprep.mubr.msk.f32.mxu0 %vm6335_vm3, %v6334_v30 }
 0x67f   :  { %5765 = vmatmul.mubr.msk.f32.vlgmr.msra.gmra.mrb[44].mxu1 %vm1719_vm7, %v6338_v38 }
 0x680   :  { %5778 = vmatprep.mubr.msk.f32.mxu1 %vm6335_vm3, %v6334_v30 }
 0x683   :  { %6000 = vmatpush3.bf16.xpose.msk.msra.mxu0 %vm6974_vm12, %v7072_v48 }
 0x684   :  { %6005 = vmatprep.subr.bf16.mxu0 %v6336_v19 }
 0x685   :  { %6004 = vmatpush3.bf16.xpose.msk.msra.mxu1 %vm6974_vm12, %v7075_v29 }
 0x686   :  { %6008 = vmatprep.subr.bf16.mxu1 %v6336_v19 }
 0x74c   :  { %v7102_v33 = vpop.f32.mrb[42].mxu0 }
 0x74d   :  { %v3078_v38 = vmax.f32 %v3076_v13, %v7102_v33  ;;  %v5745_v34 = vpop.f32.mrb[43].mxu0 }
 0x74e   :  { %v7108_v42 = vpop.f32.mrb[42].mxu1 }
 0x74f   :  { %v3079_v39 = vmax.f32 %v3077_v54, %v7108_v42  ;;  %v5752_v43 = vpop.f32.mrb[43].mxu1 }
 0x750   :  { %v2808_v15 = vpop.f32.mrb[44].mxu0 }
 0x751   :  { %v2888_v6 = vmul.f32 %v2808_v15, %v2808_v15  ;;  %v5759_v47 = vpop.f32.mrb[45].mxu0 }
 0x752   :  { %v2884_v46 = vpop.f32.mrb[44].mxu1 }
 0x753   :  { %v2889_v61 = vmul.f32 %v2884_v46, %v2884_v46  ;;  %v2890_v49 = vsel %vm1865_vm13, %v2888_v6, 0.0  ;;  %v5766_v9 = vpop.f32.mrb[45].mxu1 }
 0x754   :  { %2891 = vadd.xlane.f32.xlu0 %v2890_v49 }
 0x755   :  { %v2893_v13 = vsel %vm1865_vm13, %v2889_v61, 0.0 }
 0x756   :  { %2894 = vadd.xlane.f32.xlu1 %v2893_v13 }
 0x7e1   :  { %v2892_v23 = vpop.xlane.xlu0 %2891 }
 0x7e2   :  { %6214 = vrsqrt.f32 %v2892_v23  ;;  %vm2898_vm15 = vcmp.eq.f32.partialorder %v2892_v23, inf  ;;  %v2901_v36 = vand.u32 2147483648, %v2892_v23  ;;  %vm2900_vm1 = vcmp.eq.f32.partialorder %v2892_v23, 0.0 }
 0x7e3   :  { %v2895_v11 = vpop.xlane.xlu1 %2894  ;;  %v2910_v1 = vadd.f32 1.0, %v2892_v23 }
 0x7e4   :  { %6216 = vrsqrt.f32 %v2895_v11  ;;  %vm2905_vm4 = vcmp.eq.f32.partialorder %v2895_v11, inf  ;;  %v2908_v63 = vand.u32 2147483648, %v2895_v11  ;;  %vm2907_vm5 = vcmp.eq.f32.partialorder %v2895_v11, 0.0 }
 0x7e5   :  { %v2911_v22 = vadd.f32 1.0, %v2895_v11 }
 0x7ec   :  { %v6215_v16 = vpop.eup %6214 }
 0x7ed   :  { %v2897_v55 = vmul.f32 %v6215_v16, %v2892_v23 }
 0x7ee   :  { %v6217_v54 = vpop.eup %6216 }
 0x7ef   :  { %v2899_v59 = vsel %vm2898_vm15, %v2892_v23, %v2897_v55  ;;  %v2904_v62 = vmul.f32 %v6217_v54, %v2895_v11 }
 0x7f0   :  { %v2902_v0 = vsel %vm2900_vm1, %v2901_v36, %v2899_v59 }
 0x7f1   :  { %v2912_v2 = vadd.f32 1e-08, %v2902_v0  ;;  %v2906_v3 = vsel %vm2905_vm4, %v2895_v11, %v2904_v62 }
 0x7f2   :  { %v2909_v18 = vsel %vm2907_vm5, %v2908_v63, %v2906_v3 }
 0x7f3   :  { %v2914_v4 = vmul.f32 %v2912_v2, %v2910_v1  ;;  %v2913_v7 = vadd.f32 1e-08, %v2909_v18 }
 0x7f5   :  { %6218 = vrcp.f32 %v2914_v4  ;;  %v2915_v41 = vmul.f32 %v2913_v7, %v2911_v22 }
 0x7f7   :  { %6220 = vrcp.f32 %v2915_v41 }
 0x7ff   :  { %v6219_v58 = vpop.eup %6218 }
 0x800   :  { %v2918_v8 = vmul.f32 %v6219_v58, %v2892_v23 }
 0x801   :  { %v6221_v10 = vpop.eup %6220 }
 0x802   :  { %v2920_v32 = vmul.f32 %v2918_v8, %v2808_v15  ;;  %v2919_v21 = vmul.f32 %v6221_v10, %v2895_v11 }
 0x804   :  { %5772 = vmatmul.mubr.msk.f32.vlgmr.msra.gmra.mrb[46].mxu0 %vm1719_vm7, %v2920_v32  ;;  %v2921_v56 = vmul.f32 %v2919_v21, %v2884_v46 }
 0x805   :  { %6007 = vmatpush3.bf16.msra.mxu0 %v6954_v40  ;;  %5785 = vmatprep.mubr.msk.f32.mxu0 %vm6335_vm3, %v6334_v30 }
 0x806   :  { %5779 = vmatmul.mubr.msk.f32.vlgmr.msra.gmra.mrb[46].mxu1 %vm1719_vm7, %v2921_v56  ;;  %6011 = vmatprep.subr.bf16.mxu0 %v6336_v19 }
 0x807   :  { %6010 = vmatpush3.bf16.msra.mxu1 %v6959_v5  ;;  %5792 = vmatprep.mubr.msk.f32.mxu1 %vm6335_vm3, %v6334_v30 }
 0x808   :  { %6015 = vmatprep.subr.bf16.mxu1 %v6336_v19 }
 0x8d7   :  { %v7126_v12 = vpop.f32.mrb[46].mxu0 }
 0x8d8   :  { %v3080_v14 = vmax.f32 %v3078_v38, %v7126_v12  ;;  %v5773_v24 = vpop.f32.mrb[47].mxu0 }
 0x8d9   :  { %v7129_v35 = vpop.f32.mrb[46].mxu1 }
 0x8da   :  { %v3082_v25 = vsub.f32 %v7022_v52, %v3080_v14  ;;  %v3088_v37 = vsub.f32 %v7060_v31, %v3080_v14  ;;  %v3094_v26 = vsub.f32 %v7102_v33, %v3080_v14  ;;  %v3100_v28 = vsub.f32 %v7126_v12, %v3080_v14  ;;  %v5780_v57 = vpop.f32.mrb[47].mxu1 }
 0x8db   :  { %v3081_v60 = vmax.f32 %v3079_v39, %v7129_v35 }
 0x8dc   :  { %v3084_v53 = vmul.f32 1.442695, %v3082_v25  ;;  %v3090_v34 = vmul.f32 1.442695, %v3088_v37  ;;  %v3096_v43 = vmul.f32 1.442695, %v3094_v26 }
 0x8dd   :  { %v3102_v15 = vmul.f32 1.442695, %v3100_v28  ;;  %v3083_v38 = vsub.f32 %v7024_v27, %v3081_v60  ;;  %v3089_v6 = vsub.f32 %v7064_v45, %v3081_v60  ;;  %v3095_v47 = vsub.f32 %v7108_v42, %v3081_v60 }
 0x8de   :  { %6222 = vpow2.f32 %v3084_v53  ;;  %v3101_v46 = vsub.f32 %v7129_v35, %v3081_v60 }
 0x8df   :  { %6224 = vpow2.f32 %v3090_v34  ;;  %v3086_v61 = vmul.f32 1.442695, %v3083_v38  ;;  %v3092_v49 = vmul.f32 1.442695, %v3089_v6  ;;  %v3098_v9 = vmul.f32 1.442695, %v3095_v47 }
 0x8e0   :  { %6226 = vpow2.f32 %v3096_v43  ;;  %v3104_v39 = vmul.f32 1.442695, %v3101_v46 }
 0x8e1   :  { %6228 = vpow2.f32 %v3102_v15 }
 0x8e2   :  { %6230 = vpow2.f32 %v3086_v61 }
 0x8e3   :  { %6232 = vpow2.f32 %v3092_v49 }
 0x8e4   :  { %6234 = vpow2.f32 %v3098_v9 }
 0x8e5   :  { %6236 = vpow2.f32 %v3104_v39 }
 0x8e8   :  { %v6223_v13 = vpop.eup %6222 }
 0x8e9   :  { %v6225_v23 = vpop.eup %6224 }
 0x8ea   :  { %v6227_v11 = vpop.eup %6226  ;;  %v3106_v16 = vadd.f32 %v6225_v23, %v6223_v13 }
 0x8eb   :  { %v6229_v55 = vpop.eup %6228 }
 0x8ec   :  { %v6231_v54 = vpop.eup %6230  ;;  %v3108_v36 = vadd.f32 %v6227_v11, %v3106_v16 }
 0x8ed   :  { %v6233_v59 = vpop.eup %6232 }
 0x8ee   :  { %v3110_v62 = vadd.f32 %v6229_v55, %v3108_v36  ;;  %v3107_v0 = vadd.f32 %v6233_v59, %v6231_v54  ;;  %v6235_v63 = vpop.eup %6234 }
 0x8ef   :  { %v6237_v2 = vpop.eup %6236 }
 0x8f0   :  { %6238 = vrcp.f32 %v3110_v62  ;;  %v3109_v1 = vadd.f32 %v6235_v63, %v3107_v0 }
 0x8f2   :  { %v3111_v3 = vadd.f32 %v6237_v2, %v3109_v1 }
 0x8f4   :  { %6240 = vrcp.f32 %v3111_v3 }
 0x8fa   :  { %v6239_v18 = vpop.eup %6238 }
 0x8fb   :  { %v3114_v4 = vmul.f32 %v6239_v18, %v6223_v13  ;;  %v7140_v22 = vmul.f32 %v6239_v18, %v6225_v23  ;;  %v7142_v7 = vmul.f32 %v6239_v18, %v6227_v11  ;;  %v7144_v41 = vmul.f32 %v6239_v18, %v6229_v55 }
 0x8fd   :  { %5786 = vmatmul.mubr.msk.f32.vlgmr.msra.gmra.mrb[48].mxu0 %vm1719_vm7, %v3114_v4 }
 0x8fe   :  { %v6241_v58 = vpop.eup %6240  ;;  %6014 = vmatpush3.bf16.xpose.msk.msra.mxu0 %vm6974_vm12, %v6954_v40  ;;  %5799 = vmatprep.mubr.msk.f32.mxu0 %vm6335_vm3, %v6334_v30 }
 0x8ff   :  { %v3115_v8 = vmul.f32 %v6241_v58, %v6231_v54  ;;  %6019 = vmatprep.subr.bf16.mxu0 %v6336_v19  ;;  %v3445_v10 = vmul.f32 %v6241_v58, %v6233_v59  ;;  %v7153_v32 = vmul.f32 %v6241_v58, %v6235_v63  ;;  %v7155_v21 = vmul.f32 %v6241_v58, %v6237_v2 }
 0x901   :  { %5793 = vmatmul.mubr.msk.f32.vlgmr.msra.gmra.mrb[48].mxu1 %vm1719_vm7, %v3115_v8 }
 0x902   :  { %6018 = vmatpush3.bf16.xpose.msk.msra.mxu1 %vm6974_vm12, %v6959_v5  ;;  %5806 = vmatprep.mubr.msk.f32.mxu1 %vm6335_vm3, %v6334_v30 }
 0x903   :  { %6022 = vmatprep.subr.bf16.mxu1 %v6336_v19 }
 0x9d0   :  { %v3185_v56 = vpop.f32.mrb[48].mxu0 }
 0x9d1   :  { %v3262_v14 = vmul.f32 %v3185_v56, %v3185_v56  ;;  %v5787_v24 = vpop.f32.mrb[49].mxu0 }
 0x9d3   :  { %v3264_v25 = vsel %vm1865_vm13, %v3262_v14, 0.0 }
 0x9d4   :  { %v3258_v37 = vpop.f32.mrb[48].mxu1  ;;  %3265 = vadd.xlane.f32.xlu1 %v3264_v25 }
 0x9d5   :  { %v3263_v26 = vmul.f32 %v3258_v37, %v3258_v37  ;;  %v5794_v28 = vpop.f32.mrb[49].mxu1 }
 0x9d7   :  { %v3267_v57 = vsel %vm1865_vm13, %v3263_v26, 0.0 }
 0x9d8   :  { %3268 = vadd.xlane.f32.xlu0 %v3267_v57 }
 0xa61   :  { %v3266_v60 = vpop.xlane.xlu1 %3265 }
 0xa62   :  { %6242 = vrsqrt.f32 %v3266_v60  ;;  %vm3272_vm6 = vcmp.eq.f32.partialorder %v3266_v60, inf  ;;  %v3275_v15 = vand.u32 2147483648, %v3266_v60  ;;  %vm3274_vm8 = vcmp.eq.f32.partialorder %v3266_v60, 0.0 }
 0xa63   :  { %v3284_v46 = vadd.f32 1.0, %v3266_v60 }
 0xa65   :  { %v3269_v53 = vpop.xlane.xlu0 %3268 }
 0xa66   :  { %6244 = vrsqrt.f32 %v3269_v53  ;;  %vm3279_vm9 = vcmp.eq.f32.partialorder %v3269_v53, inf  ;;  %v3282_v9 = vand.u32 2147483648, %v3269_v53  ;;  %vm3281_vm10 = vcmp.eq.f32.partialorder %v3269_v53, 0.0 }
 0xa67   :  { %v3285_v11 = vadd.f32 1.0, %v3269_v53 }
 0xa6c   :  { %v6243_v34 = vpop.eup %6242 }
 0xa6d   :  { %v3271_v43 = vmul.f32 %v6243_v34, %v3266_v60 }
 0xa6f   :  { %v3273_v38 = vsel %vm3272_vm6, %v3266_v60, %v3271_v43 }
 0xa70   :  { %v6245_v6 = vpop.eup %6244  ;;  %v3276_v47 = vsel %vm3274_vm8, %v3275_v15, %v3273_v38 }
 0xa71   :  { %v3286_v61 = vadd.f32 1e-08, %v3276_v47  ;;  %v3278_v49 = vmul.f32 %v6245_v6, %v3269_v53 }
 0xa73   :  { %v3288_v39 = vmul.f32 %v3286_v61, %v3284_v46  ;;  %v3280_v13 = vsel %vm3279_vm9, %v3269_v53, %v3278_v49 }
 0xa74   :  { %v3283_v23 = vsel %vm3281_vm10, %v3282_v9, %v3280_v13 }
 0xa75   :  { %6246 = vrcp.f32 %v3288_v39  ;;  %v3287_v16 = vadd.f32 1e-08, %v3283_v23 }
 0xa77   :  { %v3289_v55 = vmul.f32 %v3287_v16, %v3285_v11 }
 0xa79   :  { %6248 = vrcp.f32 %v3289_v55 }
 0xa7f   :  { %v6247_v54 = vpop.eup %6246 }
 0xa80   :  { %v3292_v36 = vmul.f32 %v6247_v54, %v3266_v60 }
 0xa82   :  { %v3294_v59 = vmul.f32 %v3292_v36, %v3185_v56 }
 0xa83   :  { %v6249_v62 = vpop.eup %6248 }
 0xa84   :  { %5800 = vmatmul.mubr.msk.f32.vlgmr.msra.gmra.mrb[50].mxu0 %vm1719_vm7, %v3294_v59  ;;  %v3293_v0 = vmul.f32 %v6249_v62, %v3269_v53 }
 0xa85   :  { %6021 = vmatpush3.bf16.msra.mxu0 %v6992_v50  ;;  %5813 = vmatprep.mubr.msk.f32.mxu0 %vm6335_vm3, %v6334_v30 }
 0xa86   :  { %v3295_v63 = vmul.f32 %v3293_v0, %v3258_v37  ;;  %6025 = vmatprep.subr.bf16.mxu0 %v6336_v19 }
 0xa88   :  { %5807 = vmatmul.mubr.msk.f32.vlgmr.msra.gmra.mrb[50].mxu1 %vm1719_vm7, %v3295_v63  ;;  %5814 = vmatmul.mubr.msk.f32.vlgmr.msra.gmra.mrb[52].mxu0 %vm1719_vm7, %v7140_v22 }
 0xa89   :  { %6024 = vmatpush3.bf16.msra.mxu1 %v6995_v51  ;;  %5820 = vmatprep.mubr.msk.f32.mxu1 %vm6335_vm3, %v6334_v30 }
 0xa8a   :  { %6029 = vmatprep.subr.bf16.mxu1 %v6336_v19  ;;  %5827 = vmatprep.mubr.msk.f32.mxu0 %vm6335_vm3, %v6334_v30 }
 0xa8c   :  { %5821 = vmatmul.mubr.msk.f32.vlgmr.msra.gmra.mrb[52].mxu1 %vm1719_vm7, %v3445_v10 }
 0xa8d   :  { %5834 = vmatprep.mubr.msk.f32.mxu1 %vm6335_vm3, %v6334_v30 }
 0xa8e   :  { %6028 = vmatpush3.bf16.xpose.msk.msra.mxu0 %vm6974_vm12, %v6992_v50 }
 0xa8f   :  { %6033 = vmatprep.subr.bf16.mxu0 %v6336_v19 }
 0xa92   :  { %6032 = vmatpush3.bf16.xpose.msk.msra.mxu1 %vm6974_vm12, %v6995_v51 }
 0xa93   :  { %6036 = vmatprep.subr.bf16.mxu1 %v6336_v19 }
 0xb57   :  { %v3365_v1 = vpop.f32.mrb[50].mxu0 }
 0xb58   :  { %v7192_v2 = vadd.f32 %v3365_v1, %v7022_v52  ;;  %v5801_v3 = vpop.f32.mrb[51].mxu0 }
 0xb5b   :  { %v3438_v18 = vpop.f32.mrb[50].mxu1  ;;  %v3515_v4 = vpop.f32.mrb[52].mxu0 }
 0xb5c   :  { %v7195_v22 = vadd.f32 %v3438_v18, %v7024_v27  ;;  %v5808_v58 = vpop.f32.mrb[51].mxu1  ;;  %v3592_v8 = vmul.f32 %v3515_v4, %v3515_v4  ;;  %v5815_v10 = vpop.f32.mrb[53].mxu0 }
 0xb5e   :  { %v3594_v56 = vsel %vm1865_vm13, %v3592_v8, 0.0 }
 0xb5f   :  { %v3588_v14 = vpop.f32.mrb[52].mxu1  ;;  %3595 = vadd.xlane.f32.xlu1 %v3594_v56 }
 0xb60   :  { %v3593_v24 = vmul.f32 %v3588_v14, %v3588_v14  ;;  %v5822_v25 = vpop.f32.mrb[53].mxu1 }
 0xb62   :  { %v3597_v37 = vsel %vm1865_vm13, %v3593_v24, 0.0 }
 0xb63   :  { %3598 = vadd.xlane.f32.xlu0 %v3597_v37 }
 0xbec   :  { %v3596_v52 = vpop.xlane.xlu1 %3595 }
 0xbed   :  { %6250 = vrsqrt.f32 %v3596_v52  ;;  %vm3602_vm11 = vcmp.eq.f32.partialorder %v3596_v52, inf  ;;  %v3605_v27 = vand.u32 2147483648, %v3596_v52  ;;  %vm3604_vm2 = vcmp.eq.f32.partialorder %v3596_v52, 0.0 }
 0xbee   :  { %v3614_v43 = vadd.f32 1.0, %v3596_v52 }
 0xbf0   :  { %v3599_v26 = vpop.xlane.xlu0 %3598 }
 0xbf1   :  { %6252 = vrsqrt.f32 %v3599_v26  ;;  %vm3609_vm14 = vcmp.eq.f32.partialorder %v3599_v26, inf  ;;  %v3612_v6 = vand.u32 2147483648, %v3599_v26  ;;  %vm3611_vm15 = vcmp.eq.f32.partialorder %v3599_v26, 0.0 }
 0xbf2   :  { %v3615_v49 = vadd.f32 1.0, %v3599_v26 }
 0xbf7   :  { %v6251_v28 = vpop.eup %6250 }
 0xbf8   :  { %v3601_v57 = vmul.f32 %v6251_v28, %v3596_v52 }
 0xbfa   :  { %v3603_v60 = vsel %vm3602_vm11, %v3596_v52, %v3601_v57 }
 0xbfb   :  { %v6253_v53 = vpop.eup %6252  ;;  %v3606_v34 = vsel %vm3604_vm2, %v3605_v27, %v3603_v60 }
 0xbfc   :  { %v3616_v15 = vadd.f32 1e-08, %v3606_v34  ;;  %v3608_v38 = vmul.f32 %v6253_v53, %v3599_v26 }
 0xbfe   :  { %v3618_v47 = vmul.f32 %v3616_v15, %v3614_v43  ;;  %v3610_v46 = vsel %vm3609_vm14, %v3599_v26, %v3608_v38 }
 0xbff   :  { %v3613_v61 = vsel %vm3611_vm15, %v3612_v6, %v3610_v46 }
 0xc00   :  { %6254 = vrcp.f32 %v3618_v47  ;;  %v3617_v9 = vadd.f32 1e-08, %v3613_v61 }
 0xc02   :  { %v3619_v39 = vmul.f32 %v3617_v9, %v3615_v49 }
 0xc04   :  { %6256 = vrcp.f32 %v3619_v39 }
 0xc0a   :  { %v6255_v13 = vpop.eup %6254 }
 0xc0b   :  { %v3622_v23 = vmul.f32 %v6255_v13, %v3596_v52 }
 0xc0d   :  { %v3624_v11 = vmul.f32 %v3622_v23, %v3515_v4 }
 0xc0e   :  { %v6257_v16 = vpop.eup %6256 }
 0xc0f   :  { %5828 = vmatmul.mubr.msk.f32.vlgmr.msra.gmra.mrb[54].mxu0 %vm1719_vm7, %v3624_v11  ;;  %v3623_v55 = vmul.f32 %v6257_v16, %v3599_v26 }
 0xc10   :  { %6035 = vmatpush3.bf16.msra.mxu0 %v7030_v44  ;;  %5841 = vmatprep.mubr.msk.f32.mxu0 %vm6335_vm3, %v6334_v30 }
 0xc11   :  { %v3625_v54 = vmul.f32 %v3623_v55, %v3588_v14  ;;  %6039 = vmatprep.subr.bf16.mxu0 %v6336_v19 }
 0xc13   :  { %5835 = vmatmul.mubr.msk.f32.vlgmr.msra.gmra.mrb[54].mxu1 %vm1719_vm7, %v3625_v54  ;;  %5842 = vmatmul.mubr.msk.f32.vlgmr.msra.gmra.mrb[56].mxu0 %vm1719_vm7, %v7142_v7 }
 0xc14   :  { %6038 = vmatpush3.bf16.msra.mxu1 %v7033_v20  ;;  %5848 = vmatprep.mubr.msk.f32.mxu1 %vm6335_vm3, %v6334_v30 }
 0xc15   :  { %6043 = vmatprep.subr.bf16.mxu1 %v6336_v19  ;;  %5855 = vmatprep.mubr.msk.f32.mxu0 %vm6335_vm3, %v6334_v30 }
 0xc17   :  { %5849 = vmatmul.mubr.msk.f32.vlgmr.msra.gmra.mrb[56].mxu1 %vm1719_vm7, %v7153_v32 }
 0xc18   :  { %5862 = vmatprep.mubr.msk.f32.mxu1 %vm6335_vm3, %v6334_v30 }
 0xc19   :  { %6042 = vmatpush3.bf16.xpose.msk.msra.mxu0 %vm6974_vm12, %v7030_v44 }
 0xc1a   :  { %6047 = vmatprep.subr.bf16.mxu0 %v6336_v19 }
 0xc1d   :  { %6046 = vmatpush3.bf16.xpose.msk.msra.mxu1 %vm6974_vm12, %v7033_v20 }
 0xc1e   :  { %6050 = vmatprep.subr.bf16.mxu1 %v6336_v19 }
 0xce2   :  { %v3695_v7 = vpop.f32.mrb[54].mxu0 }
 0xce3   :  { %v7226_v36 = vadd.f32 %v3695_v7, %v7060_v31  ;;  %v5829_v32 = vpop.f32.mrb[55].mxu0 }
 0xce5   :  { %v4434_v59 = vmax.f32 %v7192_v2, %v7226_v36 }
 0xce6   :  { %v3768_v62 = vpop.f32.mrb[54].mxu1  ;;  %v3845_v0 = vpop.f32.mrb[56].mxu0 }
 0xce7   :  { %v7231_v63 = vadd.f32 %v3768_v62, %v7064_v45  ;;  %v5836_v1 = vpop.f32.mrb[55].mxu1  ;;  %v3922_v3 = vmul.f32 %v3845_v0, %v3845_v0  ;;  %v5843_v18 = vpop.f32.mrb[57].mxu0 }
 0xce9   :  { %v4435_v4 = vmax.f32 %v7195_v22, %v7231_v63  ;;  %v3924_v58 = vsel %vm1865_vm13, %v3922_v3, 0.0 }
 0xcea   :  { %v3918_v8 = vpop.f32.mrb[56].mxu1  ;;  %3925 = vadd.xlane.f32.xlu1 %v3924_v58 }
 0xceb   :  { %v3923_v31 = vmul.f32 %v3918_v8, %v3918_v8  ;;  %v5850_v10 = vpop.f32.mrb[57].mxu1 }
 0xced   :  { %v3927_v56 = vsel %vm1865_vm13, %v3923_v31, 0.0 }
 0xcee   :  { %3928 = vadd.xlane.f32.xlu0 %v3927_v56 }
 0xd77   :  { %v3926_v14 = vpop.xlane.xlu1 %3925 }
 0xd78   :  { %6258 = vrsqrt.f32 %v3926_v14  ;;  %vm3932_vm1 = vcmp.eq.f32.partialorder %v3926_v14, inf  ;;  %v3935_v37 = vand.u32 2147483648, %v3926_v14  ;;  %vm3934_vm4 = vcmp.eq.f32.partialorder %v3926_v14, 0.0 }
 0xd79   :  { %v3944_v57 = vadd.f32 1.0, %v3926_v14 }
 0xd7b   :  { %v3929_v24 = vpop.xlane.xlu0 %3928 }
 0xd7c   :  { %6260 = vrsqrt.f32 %v3929_v24  ;;  %vm3939_vm5 = vcmp.eq.f32.partialorder %v3929_v24, inf  ;;  %v3942_v53 = vand.u32 2147483648, %v3929_v24  ;;  %vm3941_vm6 = vcmp.eq.f32.partialorder %v3929_v24, 0.0 }
 0xd7d   :  { %v3945_v38 = vadd.f32 1.0, %v3929_v24 }
 0xd82   :  { %v6259_v45 = vpop.eup %6258 }
 0xd83   :  { %v3931_v25 = vmul.f32 %v6259_v45, %v3926_v14 }
 0xd85   :  { %v3933_v52 = vsel %vm3932_vm1, %v3926_v14, %v3931_v25 }
 0xd86   :  { %v6261_v26 = vpop.eup %6260  ;;  %v3936_v28 = vsel %vm3934_vm4, %v3935_v37, %v3933_v52 }
 0xd87   :  { %v3946_v27 = vadd.f32 1e-08, %v3936_v28  ;;  %v3938_v60 = vmul.f32 %v6261_v26, %v3929_v24 }
 0xd89   :  { %v3948_v34 = vmul.f32 %v3946_v27, %v3944_v57  ;;  %v3940_v43 = vsel %vm3939_vm5, %v3929_v24, %v3938_v60 }
 0xd8a   :  { %v3943_v15 = vsel %vm3941_vm6, %v3942_v53, %v3940_v43 }
 0xd8b   :  { %6262 = vrcp.f32 %v3948_v34  ;;  %v3947_v6 = vadd.f32 1e-08, %v3943_v15 }
 0xd8d   :  { %v3949_v47 = vmul.f32 %v3947_v6, %v3945_v38 }
 0xd8f   :  { %6264 = vrcp.f32 %v3949_v47 }
 0xd95   :  { %v6263_v46 = vpop.eup %6262 }
 0xd96   :  { %v3952_v61 = vmul.f32 %v6263_v46, %v3926_v14 }
 0xd98   :  { %v3954_v49 = vmul.f32 %v3952_v61, %v3845_v0 }
 0xd99   :  { %v6265_v9 = vpop.eup %6264 }
 0xd9a   :  { %5856 = vmatmul.mubr.msk.f32.vlgmr.msra.gmra.mrb[58].mxu0 %vm1719_vm7, %v3954_v49  ;;  %v3953_v39 = vmul.f32 %v6265_v9, %v3929_v24 }
 0xd9b   :  { %6049 = vmatpush3.bf16.msra.mxu0 %v7072_v48  ;;  %5869 = vmatprep.mubr.msk.f32.mxu0 %vm6335_vm3, %v6334_v30 }
 0xd9c   :  { %v3955_v13 = vmul.f32 %v3953_v39, %v3918_v8  ;;  %6053 = vmatprep.subr.bf16.mxu0 %v6336_v19 }
 0xd9e   :  { %5863 = vmatmul.mubr.msk.f32.vlgmr.msra.gmra.mrb[58].mxu1 %vm1719_vm7, %v3955_v13  ;;  %5870 = vmatmul.mubr.msk.f32.vlgmr.msra.gmra.mrb[60].mxu0 %vm1719_vm7, %v7144_v41 }
 0xd9f   :  { %6052 = vmatpush3.bf16.msra.mxu1 %v7075_v29  ;;  %5876 = vmatprep.mubr.msk.f32.mxu1 %vm6335_vm3, %v6334_v30 }
 0xda0   :  { %6057 = vmatprep.subr.bf16.mxu1 %v6336_v19  ;;  %5883 = vmatprep.mubr.msk.f32.mxu0 %vm6335_vm3, %v6334_v30 }
 0xda2   :  { %5877 = vmatmul.mubr.msk.f32.vlgmr.msra.gmra.mrb[60].mxu1 %vm1719_vm7, %v7155_v21 }
 0xda3   :  { %5890 = vmatprep.mubr.msk.f32.mxu1 %vm6335_vm3, %v6334_v30 }
 0xda4   :  { %6056 = vmatpush3.bf16.xpose.msk.msra.mxu0 %vm6974_vm12, %v7072_v48 }
 0xda5   :  { %6061 = vmatprep.subr.bf16.mxu0 %v6336_v19 }
 0xda8   :  { %6060 = vmatpush3.bf16.xpose.msk.msra.mxu1 %vm6974_vm12, %v7075_v29 }
 0xda9   :  { %6064 = vmatprep.subr.bf16.mxu1 %v6336_v19 }
 0xe6d   :  { %v4025_v41 = vpop.f32.mrb[58].mxu0 }
 0xe6e   :  { %v7264_v23 = vadd.f32 %v4025_v41, %v7102_v33  ;;  %v5857_v21 = vpop.f32.mrb[59].mxu0 }
 0xe70   :  { %v4436_v11 = vmax.f32 %v4434_v59, %v7264_v23 }
 0xe71   :  { %v4098_v16 = vpop.f32.mrb[58].mxu1  ;;  %v4175_v55 = vpop.f32.mrb[60].mxu0 }
 0xe72   :  { %v7271_v54 = vadd.f32 %v4098_v16, %v7108_v42  ;;  %v5864_v7 = vpop.f32.mrb[59].mxu1  ;;  %v4252_v17 = vmul.f32 %v4175_v55, %v4175_v55  ;;  %v5871_v32 = vpop.f32.mrb[61].mxu0 }
 0xe74   :  { %v4437_v33 = vmax.f32 %v4435_v4, %v7271_v54  ;;  %v4254_v62 = vsel %vm1865_vm13, %v4252_v17, 0.0 }
 0xe75   :  { %v4248_v0 = vpop.f32.mrb[60].mxu1  ;;  %4255 = vadd.xlane.f32.xlu1 %v4254_v62 }
 0xe76   :  { %v4253_v1 = vmul.f32 %v4248_v0, %v4248_v0  ;;  %v5878_v3 = vpop.f32.mrb[61].mxu1 }
 0xe78   :  { %v4257_v59 = vsel %vm1865_vm13, %v4253_v1, 0.0 }
 0xe79   :  { %4258 = vadd.xlane.f32.xlu0 %v4257_v59 }
 0xf02   :  { %v4256_v18 = vpop.xlane.xlu1 %4255 }
 0xf03   :  { %6266 = vrsqrt.f32 %v4256_v18  ;;  %vm4262_vm12 = vcmp.eq.f32.partialorder %v4256_v18, inf  ;;  %v4265_v31 = vand.u32 2147483648, %v4256_v18  ;;  %vm4264_vm8 = vcmp.eq.f32.partialorder %v4256_v18, 0.0 }
 0xf04   :  { %v4274_v14 = vadd.f32 1.0, %v4256_v18 }
 0xf06   :  { %v4259_v42 = vpop.xlane.xlu0 %4258 }
 0xf07   :  { %6268 = vrsqrt.f32 %v4259_v42  ;;  %vm4269_vm9 = vcmp.eq.f32.partialorder %v4259_v42, inf  ;;  %v4272_v25 = vand.u32 2147483648, %v4259_v42  ;;  %vm4271_vm10 = vcmp.eq.f32.partialorder %v4259_v42, 0.0 }
 0xf08   :  { %v4275_v28 = vadd.f32 1.0, %v4259_v42 }
 0xf0d   :  { %v6267_v58 = vpop.eup %6266 }
 0xf0e   :  { %v4261_v8 = vmul.f32 %v6267_v58, %v4256_v18 }
 0xf10   :  { %v4263_v10 = vsel %vm4262_vm12, %v4256_v18, %v4261_v8 }
 0xf11   :  { %v6269_v4 = vpop.eup %6268  ;;  %v4266_v56 = vsel %vm4264_vm8, %v4265_v31, %v4263_v10 }
 0xf12   :  { %v4276_v24 = vadd.f32 1e-08, %v4266_v56  ;;  %v4268_v45 = vmul.f32 %v6269_v4, %v4259_v42 }
 0xf14   :  { %v4278_v37 = vmul.f32 %v4276_v24, %v4274_v14  ;;  %v4270_v52 = vsel %vm4269_vm9, %v4259_v42, %v4268_v45 }
 0xf15   :  { %v4273_v26 = vsel %vm4271_vm10, %v4272_v25, %v4270_v52 }
 0xf16   :  { %6270 = vrcp.f32 %v4278_v37  ;;  %v4277_v57 = vadd.f32 1e-08, %v4273_v26 }
 0xf18   :  { %v4279_v27 = vmul.f32 %v4277_v57, %v4275_v28 }
 0xf1a   :  { %6272 = vrcp.f32 %v4279_v27 }
 0xf20   :  { %v6271_v60 = vpop.eup %6270 }
 0xf21   :  { %v4282_v53 = vmul.f32 %v6271_v60, %v4256_v18 }
 0xf23   :  { %v4284_v34 = vmul.f32 %v4282_v53, %v4175_v55 }
 0xf24   :  { %v6273_v43 = vpop.eup %6272 }
 0xf25   :  { %5884 = vmatmul.mubr.msk.f32.vlgmr.msra.gmra.mrb[62].mxu0 %vm1719_vm7, %v4284_v34  ;;  %v4283_v15 = vmul.f32 %v6273_v43, %v4259_v42 }
 0xf26   :  { %6063 = vmatpush3.bf16.msra.mxu0 %v6954_v40  ;;  %5897 = vmatprep.mubr.msk.f32.mxu0 %vm6335_vm3, %v6334_v30 }
 0xf27   :  { %v4285_v38 = vmul.f32 %v4283_v15, %v4248_v0  ;;  %6067 = vmatprep.subr.bf16.mxu0 %v6336_v19 }
 0xf29   :  { %5891 = vmatmul.mubr.msk.f32.vlgmr.msra.gmra.mrb[62].mxu1 %vm1719_vm7, %v4285_v38 }
 0xf2a   :  { %6066 = vmatpush3.bf16.msra.mxu1 %v6959_v5  ;;  %5904 = vmatprep.mubr.msk.f32.mxu1 %vm6335_vm3, %v6334_v30 }
 0xf2b   :  { %6070 = vmatprep.subr.bf16.mxu1 %v6336_v19 }
 0xff8   :  { %v4355_v6 = vpop.f32.mrb[62].mxu0 }
 0xff9   :  { %v4432_v47 = vadd.f32 %v4355_v6, %v7126_v12  ;;  %v5885_v46 = vpop.f32.mrb[63].mxu0 }
 0xffb   :  { %v4438_v40 = vmax.f32 %v4436_v11, %v4432_v47 }
 0xffc   :  { %v4428_v61 = vpop.f32.mrb[62].mxu1 }
 0xffd   :  { %v4440_v49 = vsub.f32 %v7192_v2, %v4438_v40  ;;  %v4446_v9 = vsub.f32 %v7226_v36, %v4438_v40  ;;  %v4452_v39 = vsub.f32 %v7264_v23, %v4438_v40  ;;  %v4458_v13 = vsub.f32 %v4432_v47, %v4438_v40  ;;  %v5892_v41 = vpop.f32.mrb[63].mxu1 }
 0xffe   :  { %v4433_v5 = vadd.f32 %v4428_v61, %v7129_v35 }
 0xfff   :  { %v4442_v21 = vmul.f32 1.442695, %v4440_v49  ;;  %v4448_v16 = vmul.f32 1.442695, %v4446_v9  ;;  %v4454_v55 = vmul.f32 1.442695, %v4452_v39 }
0x1000   :  { %v4439_v7 = vmax.f32 %v4437_v33, %v4433_v5  ;;  %v4460_v17 = vmul.f32 1.442695, %v4458_v13 }
0x1001   :  { %6274 = vpow2.f32 %v4442_v21 }
0x1002   :  { %6276 = vpow2.f32 %v4448_v16  ;;  %v4441_v12 = vsub.f32 %v7195_v22, %v4439_v7  ;;  %v4447_v11 = vsub.f32 %v7231_v63, %v4439_v7  ;;  %v4453_v2 = vsub.f32 %v7271_v54, %v4439_v7 }
0x1003   :  { %v4459_v36 = vsub.f32 %v4433_v5, %v4439_v7  ;;  %6278 = vpow2.f32 %v4454_v55 }
0x1004   :  { %v4444_v23 = vmul.f32 1.442695, %v4441_v12  ;;  %v4450_v32 = vmul.f32 1.442695, %v4447_v11  ;;  %6280 = vpow2.f32 %v4460_v17  ;;  %v4456_v62 = vmul.f32 1.442695, %v4453_v2 }
0x1005   :  { %v4462_v35 = vmul.f32 1.442695, %v4459_v36 }
0x1006   :  { %6282 = vpow2.f32 %v4444_v23 }
0x1007   :  { %6284 = vpow2.f32 %v4450_v32 }
0x1008   :  { %6286 = vpow2.f32 %v4456_v62 }
0x1009   :  { %6288 = vpow2.f32 %v4462_v35 }
0x100b   :  { %v6275_v33 = vpop.eup %6274 }
0x100c   :  { %v6277_v0 = vpop.eup %6276 }
0x100d   :  { %v4464_v1 = vadd.f32 %v6277_v0, %v6275_v33  ;;  %v6279_v3 = vpop.eup %6278 }
0x100e   :  { %v6281_v22 = vpop.eup %6280 }
0x100f   :  { %v4466_v59 = vadd.f32 %v6279_v3, %v4464_v1 }
0x1010   :  { %v6283_v63 = vpop.eup %6282 }
0x1011   :  { %v6285_v18 = vpop.eup %6284  ;;  %v4468_v54 = vadd.f32 %v6281_v22, %v4466_v59 }
0x1012   :  { %v4465_v42 = vadd.f32 %v6285_v18, %v6283_v63  ;;  %v6287_v58 = vpop.eup %6286 }
0x1013   :  { %6290 = vrcp.f32 %v4468_v54  ;;  %v6289_v31 = vpop.eup %6288 }
0x1014   :  { %v4467_v8 = vadd.f32 %v6287_v58, %v4465_v42 }
0x1016   :  { %v4469_v10 = vadd.f32 %v6289_v31, %v4467_v8 }
0x1018   :  { %6292 = vrcp.f32 %v4469_v10 }
0x101d   :  { %v6291_v4 = vpop.eup %6290 }
0x101e   :  { %v4472_v56 = vmul.f32 %v6291_v4, %v6275_v33  ;;  %v4654_v14 = vmul.f32 %v6291_v4, %v6277_v0  ;;  %v4836_v24 = vmul.f32 %v6291_v4, %v6279_v3  ;;  %v5018_v45 = vmul.f32 %v6291_v4, %v6281_v22 }
0x1020   :  { %5898 = vmatmul.mubr.msk.f32.vlgmr.msra.gmra.mrb[64].mxu0 %vm1719_vm7, %v4472_v56 }
0x1021   :  { %6069 = vmatpush3.bf16.msra.mxu0 %v6992_v50  ;;  %5911 = vmatprep.mubr.msk.f32.mxu0 %vm6335_vm3, %v6334_v30 }
0x1022   :  { %v6293_v25 = vpop.eup %6292  ;;  %6073 = vmatprep.subr.bf16.mxu0 %v6336_v19 }
0x1023   :  { %v4473_v37 = vmul.f32 %v6293_v25, %v6283_v63  ;;  %v4655_v52 = vmul.f32 %v6293_v25, %v6285_v18  ;;  %v4837_v26 = vmul.f32 %v6293_v25, %v6287_v58  ;;  %v5019_v28 = vmul.f32 %v6293_v25, %v6289_v31 }
0x1024   :  { %5912 = vmatmul.mubr.msk.f32.vlgmr.msra.gmra.mrb[66].mxu0 %vm1719_vm7, %v4654_v14 }
0x1025   :  { %5905 = vmatmul.mubr.msk.f32.vlgmr.msra.gmra.mrb[64].mxu1 %vm1719_vm7, %v4473_v37  ;;  %6075 = vmatpush3.bf16.msra.mxu0 %v7030_v44 }
0x1026   :  { %6072 = vmatpush3.bf16.msra.mxu1 %v6995_v51  ;;  %5918 = vmatprep.mubr.msk.f32.mxu1 %vm6335_vm3, %v6334_v30 }
0x1027   :  { %6076 = vmatprep.subr.bf16.mxu1 %v6336_v19  ;;  %5925 = vmatprep.mubr.msk.f32.mxu0 %vm6335_vm3, %v6334_v30 }
0x1028   :  { %6079 = vmatprep.subr.bf16.mxu0 %v6336_v19  ;;  %5926 = vmatmul.mubr.msk.f32.vlgmr.msra.gmra.mrb[68].mxu0 %vm1719_vm7, %v4836_v24 }
0x1029   :  { %5919 = vmatmul.mubr.msk.f32.vlgmr.msra.gmra.mrb[66].mxu1 %vm1719_vm7, %v4655_v52  ;;  %6081 = vmatpush3.bf16.msra.mxu0 %v7072_v48 }
0x102a   :  { %6078 = vmatpush3.bf16.msra.mxu1 %v7033_v20  ;;  %5932 = vmatprep.mubr.msk.f32.mxu1 %vm6335_vm3, %v6334_v30 }
0x102b   :  { %6082 = vmatprep.subr.bf16.mxu1 %v6336_v19  ;;  %5939 = vmatprep.mubr.msk.f32.mxu0 %vm6335_vm3, %v6334_v30 }
0x102c   :  { %5940 = vmatmul.mubr.msk.f32.vlgmr.msra.gmra.mrb[70].mxu0 %vm1719_vm7, %v5018_v45 }
0x102d   :  { %5933 = vmatmul.mubr.msk.f32.vlgmr.msra.gmra.mrb[68].mxu1 %vm1719_vm7, %v4837_v26 }
0x102e   :  { %6084 = vmatpush3.bf16.msra.mxu1 %v7075_v29  ;;  %5946 = vmatprep.mubr.msk.f32.mxu1 %vm6335_vm3, %v6334_v30 }
0x1031   :  { %5947 = vmatmul.mubr.msk.f32.vlgmr.msra.gmra.mrb[70].mxu1 %vm1719_vm7, %v5019_v28 }
0x10f3   :  { %v7327_v50 = vpop.f32.mrb[64].mxu0 }
0x10f4   :  { %v4620_v51 = vmul.f32 %v7327_v50, %v7327_v50  ;;  %v5899_v19 = vpop.f32.mrb[65].mxu0 }
0x10f6   :  { %v4622_v44 = vsel %vm1865_vm13, %v4620_v51, 0.0 }
0x10f7   :  { %4623 = vadd.xlane.f32.xlu0 %v4622_v44  ;;  %v7332_v20 = vpop.f32.mrb[66].mxu0 }
0x10f8   :  { %v7334_v48 = vpop.f32.mrb[64].mxu1  ;;  %v5913_v57 = vpop.f32.mrb[67].mxu0  ;;  %v4802_v27 = vmul.f32 %v7332_v20, %v7332_v20 }
0x10f9   :  { %v4621_v29 = vmul.f32 %v7334_v48, %v7334_v48  ;;  %v5906_v30 = vpop.f32.mrb[65].mxu1 }
0x10fa   :  { %v4804_v46 = vsel %vm1865_vm13, %v4802_v27, 0.0 }
0x10fb   :  { %v4625_v60 = vsel %vm1865_vm13, %v4621_v29, 0.0  ;;  %v7341_v53 = vpop.f32.mrb[68].mxu0 }
0x10fc   :  { %v7343_v34 = vpop.f32.mrb[66].mxu1  ;;  %4626 = vadd.xlane.f32.xlu0 %v4625_v60  ;;  %v5927_v43 = vpop.f32.mrb[69].mxu0  ;;  %v4984_v6 = vmul.f32 %v7341_v53, %v7341_v53 }
0x10fd   :  { %v4803_v15 = vmul.f32 %v7343_v34, %v7343_v34  ;;  %v5920_v38 = vpop.f32.mrb[67].mxu1 }
0x10fe   :  { %v4986_v41 = vsel %vm1865_vm13, %v4984_v6, 0.0 }
0x10ff   :  { %v4807_v47 = vsel %vm1865_vm13, %v4803_v15, 0.0  ;;  %v7351_v40 = vpop.f32.mrb[70].mxu0 }
0x1100   :  { %v7353_v61 = vpop.f32.mrb[68].mxu1  ;;  %4808 = vadd.xlane.f32.xlu1 %v4807_v47  ;;  %4805 = vadd.xlane.f32.xlu0 %v4804_v46  ;;  %v5941_v49 = vpop.f32.mrb[71].mxu0  ;;  %v5166_v55 = vmul.f32 %v7351_v40, %v7351_v40 }
0x1101   :  { %v4985_v9 = vmul.f32 %v7353_v61, %v7353_v61  ;;  %v5934_v39 = vpop.f32.mrb[69].mxu1 }
0x1102   :  { %v5168_v17 = vsel %vm1865_vm13, %v5166_v55, 0.0 }
0x1103   :  { %v4989_v13 = vsel %vm1865_vm13, %v4985_v9, 0.0 }
0x1104   :  { %v7359_v5 = vpop.f32.mrb[70].mxu1  ;;  %4990 = vadd.xlane.f32.xlu1 %v4989_v13  ;;  %4987 = vadd.xlane.f32.xlu0 %v4986_v41 }
0x1105   :  { %v5167_v21 = vmul.f32 %v7359_v5, %v7359_v5  ;;  %v5948_v16 = vpop.f32.mrb[71].mxu1 }
0x1107   :  { %v5171_v7 = vsel %vm1865_vm13, %v5167_v21, 0.0 }
0x1108   :  { %5172 = vadd.xlane.f32.xlu1 %v5171_v7 }
0x110c   :  { %5169 = vadd.xlane.f32.xlu1 %v5168_v17 }
0x1184   :  { %v7367_v12 = vpop.xlane.xlu0 %4623 }
0x1185   :  { %6294 = vrsqrt.f32 %v7367_v12  ;;  %vm4630_vm3 = vcmp.eq.f32.partialorder %v7367_v12, inf  ;;  %v4633_v62 = vand.u32 2147483648, %v7367_v12  ;;  %vm4632_vm7 = vcmp.eq.f32.partialorder %v7367_v12, 0.0 }
0x1186   :  { %v4642_v59 = vadd.f32 1.0, %v7367_v12 }
0x1189   :  { %v7370_v11 = vpop.xlane.xlu0 %4626 }
0x118a   :  { %6296 = vrsqrt.f32 %v7370_v11  ;;  %vm4637_vm13 = vcmp.eq.f32.partialorder %v7370_v11, inf  ;;  %vm4639_vm11 = vcmp.eq.f32.partialorder %v7370_v11, 0.0  ;;  %v4640_v54 = vand.u32 2147483648, %v7370_v11 }
0x118b   :  { %v4643_v58 = vadd.f32 1.0, %v7370_v11 }
0x118d   :  { %v7373_v2 = vpop.xlane.xlu1 %4808  ;;  %v7375_v36 = vpop.xlane.xlu0 %4805 }
0x118e   :  { %6298 = vrsqrt.f32 %v7373_v2  ;;  %vm4819_vm2 = vcmp.eq.f32.partialorder %v7373_v2, inf  ;;  %vm4821_vm14 = vcmp.eq.f32.partialorder %v7373_v2, 0.0  ;;  %v4822_v4 = vand.u32 2147483648, %v7373_v2 }
0x118f   :  { %v6295_v23 = vpop.eup %6294  ;;  %6300 = vrsqrt.f32 %v7375_v36  ;;  %v4825_v56 = vadd.f32 1.0, %v7373_v2  ;;  %vm4812_vm15 = vcmp.eq.f32.partialorder %v7375_v36, inf  ;;  %vm4814_vm1 = vcmp.eq.f32.partialorder %v7375_v36, 0.0 }
0x1190   :  { %v4629_v32 = vmul.f32 %v6295_v23, %v7367_v12  ;;  %v4815_v52 = vand.u32 2147483648, %v7375_v36  ;;  %v4824_v51 = vadd.f32 1.0, %v7375_v36 }
0x1191   :  { %v7382_v35 = vpop.xlane.xlu1 %4990  ;;  %v7384_v33 = vpop.xlane.xlu0 %4987 }
0x1192   :  { %v4631_v0 = vsel %vm4630_vm3, %v7367_v12, %v4629_v32  ;;  %6302 = vrsqrt.f32 %v7382_v35  ;;  %vm5001_vm4 = vcmp.eq.f32.partialorder %v7382_v35, inf  ;;  %vm5003_vm5 = vcmp.eq.f32.partialorder %v7382_v35, 0.0 }
0x1193   :  { %v4634_v1 = vsel %vm4632_vm7, %v4633_v62, %v4631_v0  ;;  %6304 = vrsqrt.f32 %v7384_v33  ;;  %v5004_v29 = vand.u32 2147483648, %v7382_v35  ;;  %v5007_v38 = vadd.f32 1.0, %v7382_v35 }
0x1194   :  { %v6297_v3 = vpop.eup %6296  ;;  %v4644_v22 = vadd.f32 1e-08, %v4634_v1  ;;  %vm4994_vm6 = vcmp.eq.f32.partialorder %v7384_v33, inf  ;;  %vm4996_vm12 = vcmp.eq.f32.partialorder %v7384_v33, 0.0  ;;  %v4997_v49 = vand.u32 2147483648, %v7384_v33 }
0x1195   :  { %v4636_v63 = vmul.f32 %v6297_v3, %v7370_v11  ;;  %v7392_v18 = vpop.xlane.xlu1 %5172  ;;  %v5006_v41 = vadd.f32 1.0, %v7384_v33  ;;  %vm5205_vm7 = vcmask 123904  }
0x1196   :  { %6306 = vrsqrt.f32 %v7392_v18  ;;  %v4646_v8 = vmul.f32 %v4644_v22, %v4642_v59  ;;  %vm5183_vm8 = vcmp.eq.f32.partialorder %v7392_v18, inf  ;;  %v5186_v23 = vand.u32 2147483648, %v7392_v18 }
0x1197   :  { %v4638_v42 = vsel %vm4637_vm13, %v7370_v11, %v4636_v63  ;;  %vm5185_vm9 = vcmp.eq.f32.partialorder %v7392_v18, 0.0  ;;  %v5189_v59 = vadd.f32 1.0, %v7392_v18  ;;  %vm5233_vm13 = vcmask 255104  }
0x1198   :  { %v6299_v31 = vpop.eup %6298  ;;  %v4641_v10 = vsel %vm4639_vm11, %v4640_v54, %v4638_v42  ;;  %6308 = vrcp.f32 %v4646_v8  ;;  %vm5261_vm11 = vcmask 386304  }
0x1199   :  { %v6301_v14 = vpop.eup %6300  ;;  %v4645_v24 = vadd.f32 1e-08, %v4641_v10  ;;  %v4818_v45 = vmul.f32 %v6299_v31, %v7373_v2  ;;  %v7406_v25 = vpop.xlane.xlu1 %5169 }
0x119a   :  { %v4811_v37 = vmul.f32 %v6301_v14, %v7375_v36  ;;  %6310 = vrsqrt.f32 %v7406_v25  ;;  %vm5176_vm10 = vcmp.eq.f32.partialorder %v7406_v25, inf  ;;  %v5179_v42 = vand.u32 2147483648, %v7406_v25 }
0x119b   :  { %v4647_v26 = vmul.f32 %v4645_v24, %v4643_v58  ;;  %v4820_v28 = vsel %vm4819_vm2, %v7373_v2, %v4818_v45  ;;  %vm5178_vm3 = vcmp.eq.f32.partialorder %v7406_v25, 0.0  ;;  %v5188_v14 = vadd.f32 1.0, %v7406_v25 }
0x119c   :  { %v6303_v19 = vpop.eup %6302  ;;  %v4823_v44 = vsel %vm4821_vm14, %v4822_v4, %v4820_v28  ;;  %v4813_v57 = vsel %vm4812_vm15, %v7375_v36, %v4811_v37  ;;  %vm5252_vm15 = vcmask 9224  }
0x119d   :  { %v6305_v30 = vpop.eup %6304  ;;  %v4827_v27 = vadd.f32 1e-08, %v4823_v44  ;;  %v4816_v60 = vsel %vm4814_vm1, %v4815_v52, %v4813_v57  ;;  %v5000_v43 = vmul.f32 %v6303_v19, %v7382_v35  ;;  %6312 = vrcp.f32 %v4647_v26 }
0x119e   :  { %v4826_v15 = vadd.f32 1e-08, %v4816_v60  ;;  %v4993_v6 = vmul.f32 %v6305_v30, %v7384_v33 }
0x119f   :  { %v4829_v47 = vmul.f32 %v4827_v27, %v4825_v56  ;;  %v5002_v46 = vsel %vm5001_vm4, %v7382_v35, %v5000_v43 }
0x11a0   :  { %v6307_v9 = vpop.eup %6306  ;;  %v5005_v39 = vsel %vm5003_vm5, %v5004_v29, %v5002_v46  ;;  %v4995_v13 = vsel %vm4994_vm6, %v7384_v33, %v4993_v6  ;;  %v4828_v21 = vmul.f32 %v4826_v15, %v4824_v51  ;;  %vm5280_vm5 = vcmask 17424  }
0x11a1   :  { %v5009_v16 = vadd.f32 1e-08, %v5005_v39  ;;  %v4998_v55 = vsel %vm4996_vm12, %v4997_v49, %v4995_v13  ;;  %v5182_v7 = vmul.f32 %v6307_v9, %v7392_v18  ;;  %6314 = vrcp.f32 %v4829_v47 }
0x11a2   :  { %v5008_v17 = vadd.f32 1e-08, %v4998_v55  ;;  %6316 = vrcp.f32 %v4828_v21  ;;  %v6309_v32 = vpop.eup %6308 }
0x11a3   :  { %v5011_v62 = vmul.f32 %v5009_v16, %v5007_v38  ;;  %v5184_v0 = vsel %vm5183_vm8, %v7392_v18, %v5182_v7  ;;  %v4650_v58 = vmul.f32 %v6309_v32, %v7367_v12  ;;  %vm5289_vm8 = vcmask 517504  }
0x11a4   :  { %v6311_v1 = vpop.eup %6310  ;;  %v5187_v3 = vsel %vm5185_vm9, %v5186_v23, %v5184_v0  ;;  %v5010_v22 = vmul.f32 %v5008_v17, %v5006_v41  ;;  %vm5308_vm9 = vcmask 25624  }
0x11a5   :  { %v5191_v63 = vadd.f32 1e-08, %v5187_v3  ;;  %v5175_v54 = vmul.f32 %v6311_v1, %v7406_v25  ;;  %6318 = vrcp.f32 %v5011_v62  ;;  %v4652_v45 = vmul.f32 %v4650_v58, %v7327_v50 }
0x11a6   :  { %6320 = vrcp.f32 %v5010_v22 }
0x11a7   :  { %v6313_v8 = vpop.eup %6312  ;;  %v5193_v31 = vmul.f32 %v5191_v63, %v5189_v59  ;;  %v5177_v10 = vsel %vm5176_vm10, %v7406_v25, %v5175_v54 }
0x11a8   :  { %v5180_v4 = vsel %vm5178_vm3, %v5179_v42, %v5177_v10  ;;  %v4651_v56 = vmul.f32 %v6313_v8, %v7370_v11  ;;  %v5207_v11 = vmul.f32 %v4652_v45, %v4652_v45 }
0x11a9   :  { %v5190_v24 = vadd.f32 1e-08, %v5180_v4  ;;  %6322 = vrcp.f32 %v5193_v31 }
0x11aa   :  { %v4653_v37 = vmul.f32 %v4651_v56, %v7334_v48 }
0x11ab   :  { %v6315_v52 = vpop.eup %6314  ;;  %v5192_v12 = vmul.f32 %v5190_v24, %v5188_v14 }
0x11ac   :  { %v6317_v26 = vpop.eup %6316  ;;  %v5202_v28 = vrot.slane %v4653_v37, 7  ;;  %v5208_v51 = vmul.f32 %v4653_v37, %v4653_v37  ;;  %v4833_v19 = vmul.f32 %v6315_v52, %v7373_v2 }
0x11ad   :  { %v4832_v44 = vmul.f32 %v6317_v26, %v7375_v36  ;;  %6324 = vrcp.f32 %v5192_v12 }
0x11ae   :  { %v5211_v57 = vrot.slane %v5208_v51, 7  ;;  %v4835_v29 = vmul.f32 %v4833_v19, %v7343_v34  ;;  %v5203_v30 = vsel %vm21_vm0, %v5202_v28, %v4652_v45 }
0x11af   :  { %v6319_v50 = vpop.eup %6318  ;;  %v4834_v48 = vmul.f32 %v4832_v44, %v7332_v20  ;;  %5206 = vst.msk [vmem:[%s7502_s2] sm:$0x3] %vm5205_vm7, %v5203_v30 }
0x11b0   :  { %v6321_v27 = vpop.eup %6320  ;;  %v5212_v2 = vsel %vm21_vm0, %v5211_v57, %v5207_v11  ;;  %v5236_v60 = vmul.f32 %v4835_v29, %v4835_v29  ;;  %v5015_v36 = vmul.f32 %v6319_v50, %v7382_v35  ;;  %v5228_v43 = vrot.slane %v4835_v29, 7 }
0x11b1   :  { %v5214_v15 = vsel %vm5205_vm7, %v5212_v2, 0.0  ;;  %v5235_v34 = vmul.f32 %v4834_v48, %v4834_v48  ;;  %v5014_v38 = vmul.f32 %v6321_v27, %v7384_v33 }
0x11b2   :  { %5215 = vadd.xlane.f32.xlu0 %v5214_v15  ;;  %v5239_v6 = vrot.slane %v5236_v60, 7  ;;  %v5017_v20 = vmul.f32 %v5015_v36, %v7353_v61  ;;  %v5229_v47 = vsel %vm21_vm0, %v5228_v43, %v4834_v48 }
0x11b3   :  { %v6323_v46 = vpop.eup %6322  ;;  %v5016_v49 = vmul.f32 %v5014_v38, %v7341_v53 }
0x11b4   :  { %v5240_v9 = vsel %vm21_vm0, %v5239_v6, %v5235_v34  ;;  %v5264_v39 = vmul.f32 %v5017_v20, %v5017_v20  ;;  %v5256_v13 = vrot.slane %v5017_v20, 7  ;;  %v5197_v35 = vmul.f32 %v6323_v46, %v7392_v18 }
0x11b5   :  { %v5242_v41 = vsel %vm5205_vm7, %v5240_v9, 0.0  ;;  %v5263_v21 = vmul.f32 %v5016_v49, %v5016_v49 }
0x11b6   :  { %5243 = vadd.xlane.f32.xlu1 %v5242_v41  ;;  %v5267_v33 = vrot.slane %v5264_v39, 7  ;;  %v5257_v16 = vsel %vm21_vm0, %v5256_v13, %v5016_v49  ;;  %v5199_v61 = vmul.f32 %v5197_v35, %v7359_v5 }
0x11b7   :  { %v6325_v55 = vpop.eup %6324 }
0x11b8   :  { %v5268_v7 = vsel %vm21_vm0, %v5267_v33, %v5263_v21  ;;  %v5196_v53 = vmul.f32 %v6325_v55, %v7406_v25  ;;  %v5292_v17 = vmul.f32 %v5199_v61, %v5199_v61  ;;  %v5284_v32 = vrot.slane %v5199_v61, 7 }
0x11b9   :  { %v5270_v23 = vsel %vm5205_vm7, %v5268_v7, 0.0 }
0x11ba   :  { %5271 = vadd.xlane.f32.xlu0 %v5270_v23  ;;  %v5198_v18 = vmul.f32 %v5196_v53, %v7351_v40  ;;  %v5295_v0 = vrot.slane %v5292_v17, 7 }
0x11bc   :  { %v5291_v62 = vmul.f32 %v5198_v18, %v5198_v18  ;;  %v5285_v1 = vsel %vm21_vm0, %v5284_v32, %v5198_v18 }
0x11be   :  { %v5296_v3 = vsel %vm21_vm0, %v5295_v0, %v5291_v62  ;;  %vm5224_vm0 = vcmask 1024  }
0x11bf   :  { %v5298_v5 = vsel %vm5205_vm7, %v5296_v3, 0.0 }
0x11c7   :  { %5258 = vrot.lane.b32.xlu1 %v5257_v16, %s6342_s29 }
0x11d0   :  { %5230 = vrot.lane.b32.xlu0 %v5229_v47, %s6343_s30 }
0x11eb   :  { %5299 = vadd.xlane.f32.xlu1 %v5298_v5 }
0x11fc   :  { %5286 = vrot.lane.b32.xlu1 %v5285_v1, %s6344_s4 }
0x123f   :  { %v5216_v25 = vpop.xlane.xlu0 %5215 }
0x1240   :  { %6326 = vrsqrt.f32 %v5216_v25  ;;  %vm5219_vm2 = vcmp.eq.f32.partialorder %v5216_v25, inf  ;;  %v5222_v42 = vand.u32 2147483648, %v5216_v25  ;;  %vm5221_vm14 = vcmp.eq.f32.partialorder %v5216_v25, 0.0 }
0x1243   :  { %v5244_v22 = vpop.xlane.xlu1 %5243 }
0x1244   :  { %6328 = vrsqrt.f32 %v5244_v22  ;;  %vm5247_vm1 = vcmp.eq.f32.partialorder %v5244_v22, inf  ;;  %v5250_v56 = vand.u32 2147483648, %v5244_v22  ;;  %vm5249_vm4 = vcmp.eq.f32.partialorder %v5244_v22, 0.0 }
0x1247   :  { %v5272_v40 = vpop.xlane.xlu0 %5271  ;;  %v5259_v58 = vpop.permute.xlu1 %5258 }
0x1248   :  { %6330 = vrsqrt.f32 %v5272_v40  ;;  %vm5275_vm6 = vcmp.eq.f32.partialorder %v5272_v40, inf  ;;  %v5278_v52 = vand.u32 2147483648, %v5272_v40  ;;  %vm5277_vm12 = vcmp.eq.f32.partialorder %v5272_v40, 0.0 }
0x124a   :  { %v6327_v59 = vpop.eup %6326 }
0x124b   :  { %v5218_v63 = vmul.f32 %v6327_v59, %v5216_v25  ;;  %v5231_v54 = vpop.permute.xlu0 %5230 }
0x124c   :  { %5234 = vst.msk [vmem:[%s7502_s2] sm:$0x3] %vm5233_vm13, %v5231_v54 }
0x124d   :  { %v5220_v8 = vsel %vm5219_vm2, %v5216_v25, %v5218_v63  ;;  %5262 = vst.msk [vmem:[%s7502_s2] sm:$0x3] %vm5261_vm11, %v5259_v58 }
0x124e   :  { %v6329_v31 = vpop.eup %6328  ;;  %v5223_v10 = vsel %vm5221_vm14, %v5222_v42, %v5220_v8 }
0x124f   :  { %5225 = vst.msk [vmem:[%s7503_s3] sm:$0x3] %vm5224_vm0, %v5223_v10  ;;  %v5246_v4 = vmul.f32 %v6329_v31, %v5244_v22 }
0x1251   :  { %v5248_v14 = vsel %vm5247_vm1, %v5244_v22, %v5246_v4 }
0x1252   :  { %v6331_v24 = vpop.eup %6330  ;;  %v5251_v45 = vsel %vm5249_vm4, %v5250_v56, %v5248_v14 }
0x1253   :  { %5253 = vst.msk [vmem:[%s7503_s3] sm:$0x3] %vm5252_vm15, %v5251_v45  ;;  %v5274_v37 = vmul.f32 %v6331_v24, %v5272_v40 }
0x1255   :  { %v5276_v12 = vsel %vm5275_vm6, %v5272_v40, %v5274_v37 }
0x1256   :  { %v5279_v26 = vsel %vm5277_vm12, %v5278_v52, %v5276_v12 }
0x1257   :  { %5281 = vst.msk [vmem:[%s7503_s3] sm:$0x3] %vm5280_vm5, %v5279_v26 }
0x1278   :  { %v5300_v28 = vpop.xlane.xlu1 %5299 }
0x1279   :  { %6332 = vrsqrt.f32 %v5300_v28  ;;  %vm5303_vm10 = vcmp.eq.f32.partialorder %v5300_v28, inf  ;;  %v5306_v11 = vand.u32 2147483648, %v5300_v28  ;;  %vm5305_vm3 = vcmp.eq.f32.partialorder %v5300_v28, 0.0 }
0x127c   :  { %v5287_v51 = vpop.permute.xlu1 %5286 }
0x127d   :  { %5290 = vst.msk [vmem:[%s7502_s2] sm:$0x3] %vm5289_vm8, %v5287_v51 }
0x1283   :  { %v6333_v19 = vpop.eup %6332 }
0x1284   :  { %v5302_v44 = vmul.f32 %v6333_v19, %v5300_v28 }
0x1286   :  { %v5304_v57 = vsel %vm5303_vm10, %v5300_v28, %v5302_v44 }
0x1287   :  { %v5307_v29 = vsel %vm5305_vm3, %v5306_v11, %v5304_v57 }
0x1288   :  { %5309 = vst.msk [vmem:[%s7503_s3] sm:$0x3] %vm5308_vm9, %v5307_v29 }

// kernel: capsule_net_forward.7
= control target key start
LH: loop header
LB: loop body
LE: loop exit
PB: predicated region body
PF: predicated region fallthrough
CT: control target
= control target key end

     0   :  { %s13326_s0 = inlined_call_operand.vmem [shape: f32[2,64], index: 0, kind: input, shape index: {}]   ;;  %s13327_s1 = inlined_call_operand.vmem [shape: bf16[64,512], index: 1, kind: input, shape index: {}]   ;;  %s13328_s2 = inlined_call_operand.vmem [shape: f32[1,512], index: 2, kind: input, shape index: {}]   ;;  %s13329_s3 = inlined_call_operand.vmem [shape: bf16[512,1024], index: 3, kind: input, shape index: {}]   ;;  %s13330_s4 = inlined_call_operand.vmem [shape: f32[1,1024], index: 4, kind: input, shape index: {}]   ;;  %s13331_s5 = inlined_call_operand.vmem [shape: bf16[1024,1200], index: 5, kind: input, shape index: {}]   ;;  %s13332_s6 = inlined_call_operand.vmem [shape: f32[1,1200], index: 6, kind: input, shape index: {}]   ;;  %s13333_s7 = inlined_call_operand.vmem [shape: bf16[1200,1], index: 7, kind: input, shape index: {}]   ;;  %s13334_s8 = inlined_call_operand.<no memory space> [shape: f32[1,1], index: 8, kind: input, shape index: {}]   ;;  %s13335_s9 = inlined_call_operand.hbm [shape: f32[2,1200], index: 9, kind: output, shape index: {0}]   ;;  %s13336_s10 = inlined_call_operand.vmem [shape: f32[2,1], index: 10, kind: output, shape index: {1}]  }
   0x1   :  { %v16_v0 = vstv %s13334_s8 }
   0x2   :  { %17 = vst [vmem:[#allocation2] sm:$0x1] %v16_v0 }
   0x3   :  { %v8964_v1 = vld [vmem:[%s13327_s1 + $0x4] ss:$16 sps:$4 sm:$0xff]   ;;  %v8966_v2 = vld [vmem:[%s13327_s1] ss:$16 sps:$4 sm:$0xff]   ;;  %v10048_v3 = vmov 0   ;;  %vm158_vm0 = vcmask 523264  }
   0x4   :  { %194 = vmatprep.mubr.bf16.mxu0 %v10048_v3  ;;  %162 = vmatprep.subr.bf16.mxu0 %v8964_v1  ;;  %v8967_v4 = vld [vmem:[%s13327_s1 + $0x24] ss:$16 sps:$4 sm:$0xff]   ;;  %v8969_v5 = vld [vmem:[%s13327_s1 + $0x20] ss:$16 sps:$4 sm:$0xff]   ;;  %v8978_v14 = vld [vmem:[%s13327_s1 + $0xc] ss:$16 sps:$4 sm:$0xff]  }
   0x5   :  { %163 = vmatpush1.bf16.msra.mxu0 %v8966_v2  ;;  %v8970_v6 = vld [vmem:[%s13327_s1 + $0x44] ss:$16 sps:$4 sm:$0xff]   ;;  %v8972_v7 = vld [vmem:[%s13327_s1 + $0x40] ss:$16 sps:$4 sm:$0xff]   ;;  %v8976_v22 = vld [vmem:[%s13327_s1 + $0x8] ss:$16 sps:$4 sm:$0xff]  }
   0x6   :  { %164 = vmatprep.subr.bf16.mxu0 %v8967_v4  ;;  %v8973_v8 = vld [vmem:[%s13327_s1 + $0x64] ss:$16 sps:$4 sm:$0xff]   ;;  %v8975_v9 = vld [vmem:[%s13327_s1 + $0x60] ss:$16 sps:$4 sm:$0xff]   ;;  %v8981_v23 = vld [vmem:[%s13327_s1 + $0x2c] ss:$16 sps:$4 sm:$0xff]  }
   0x7   :  { %v38_v10 = vld [vmem:[%s13326_s0] sm:$0x3]  ;;  %v8979_v28 = vld [vmem:[%s13327_s1 + $0x28] ss:$16 sps:$4 sm:$0xff]   ;;  %v8984_v29 = vld [vmem:[%s13327_s1 + $0x4c] ss:$16 sps:$4 sm:$0xff]  }
   0x8   :  { %v252_v11 = vld [vmem:[%s13329_s3] sm:$0xff]  ;;  %v10152_v19 = vpack.c.bf16 %v38_v10, %v38_v10  ;;  %v8982_v34 = vld [vmem:[%s13327_s1 + $0x48] ss:$16 sps:$4 sm:$0xff]   ;;  %v8987_v35 = vld [vmem:[%s13327_s1 + $0x6c] ss:$16 sps:$4 sm:$0xff]  }
   0x9   :  { %165 = vmatpush1.bf16.msra.mxu0 %v8969_v5  ;;  %v256_v12 = vld [vmem:[%s13329_s3 + $0x20] sm:$0xff]  ;;  %v8985_v40 = vld [vmem:[%s13327_s1 + $0x68] ss:$16 sps:$4 sm:$0xff]  }
   0xa   :  { %166 = vmatprep.subr.bf16.mxu0 %v8970_v6  ;;  %v260_v13 = vld [vmem:[%s13329_s3 + $0x40] sm:$0xff]  ;;  %v7809_v15 = vcombine.high %v252_v11, %v256_v12  ;;  %v7808_v16 = vcombine.low %v252_v11, %v256_v12 }
   0xb   :  { %v264_v17 = vld [vmem:[%s13329_s3 + $0x60] sm:$0xff] }
   0xc   :  { %v7817_v18 = vcombine.high %v260_v13, %v264_v17  ;;  %1830 = vmatprep.subr.bf16.mxu1 %v7809_v15  ;;  %v268_v20 = vld [vmem:[%s13329_s3 + $0x80] sm:$0xff]  ;;  %v7816_v24 = vcombine.low %v260_v13, %v264_v17 }
   0xd   :  { %167 = vmatpush1.bf16.msra.mxu0 %v8972_v7  ;;  %v272_v21 = vld [vmem:[%s13329_s3 + $0xa0] sm:$0xff]  ;;  %1831 = vmatpush1.bf16.msra.mxu1 %v7808_v16 }
   0xe   :  { %168 = vmatprep.subr.bf16.mxu0 %v8973_v8  ;;  %1832 = vmatprep.subr.bf16.mxu1 %v7817_v18  ;;  %v7825_v25 = vcombine.high %v268_v20, %v272_v21  ;;  %v276_v26 = vld [vmem:[%s13329_s3 + $0xc0] sm:$0xff]  ;;  %v7824_v30 = vcombine.low %v268_v20, %v272_v21 }
   0xf   :  { %v280_v27 = vld [vmem:[%s13329_s3 + $0xe0] sm:$0xff] }
  0x10   :  { %v7833_v31 = vcombine.high %v276_v26, %v280_v27  ;;  %v284_v32 = vld [vmem:[%s13329_s3 + $0x100] sm:$0xff]  ;;  %v7832_v36 = vcombine.low %v276_v26, %v280_v27 }
  0x11   :  { %169 = vmatpush1.bf16.msra.mxu0 %v8975_v9  ;;  %1833 = vmatpush1.bf16.msra.mxu1 %v7816_v24  ;;  %v288_v33 = vld [vmem:[%s13329_s3 + $0x120] sm:$0xff] }
  0x12   :  { %203 = vmatprep.subr.bf16.mxu0 %v8978_v14  ;;  %1834 = vmatprep.subr.bf16.mxu1 %v7825_v25  ;;  %v7841_v37 = vcombine.high %v284_v32, %v288_v33  ;;  %v380_v38 = vld [vmem:[%s13329_s3 + $0x400] sm:$0xff]  ;;  %v7840_v46 = vcombine.low %v284_v32, %v288_v33 }
  0x13   :  { %v384_v39 = vld [vmem:[%s13329_s3 + $0x420] sm:$0xff] }
  0x14   :  { %7806 = vmatmul.mubr.msk.bf16.vlgmr.msra.gmra.mrb[0].mxu0 %vm158_vm0, %v10152_v19  ;;  %v292_v41 = vld [vmem:[%s13329_s3 + $0x140] sm:$0xff]  ;;  %v7937_v45 = vcombine.high %v380_v38, %v384_v39  ;;  %v7936_v50 = vcombine.low %v380_v38, %v384_v39 }
  0x15   :  { %204 = vmatpush1.bf16.msra.mxu0 %v8976_v22  ;;  %235 = vmatprep.mubr.bf16.mxu0 %v10048_v3  ;;  %v296_v42 = vld [vmem:[%s13329_s3 + $0x160] sm:$0xff] }
  0x16   :  { %205 = vmatprep.subr.bf16.mxu0 %v8981_v23  ;;  %1835 = vmatpush1.bf16.msra.mxu1 %v7824_v30  ;;  %v388_v43 = vld [vmem:[%s13329_s3 + $0x440] sm:$0xff]  ;;  %v7849_v49 = vcombine.high %v292_v41, %v296_v42  ;;  %v7848_v54 = vcombine.low %v292_v41, %v296_v42 }
  0x17   :  { %1836 = vmatprep.subr.bf16.mxu1 %v7833_v31  ;;  %v392_v44 = vld [vmem:[%s13329_s3 + $0x460] sm:$0xff] }
  0x18   :  { %v300_v47 = vld [vmem:[%s13329_s3 + $0x180] sm:$0xff]  ;;  %v7945_v53 = vcombine.high %v388_v43, %v392_v44  ;;  %v7944_v58 = vcombine.low %v388_v43, %v392_v44 }
  0x19   :  { %206 = vmatpush1.bf16.msra.mxu0 %v8979_v28  ;;  %v304_v48 = vld [vmem:[%s13329_s3 + $0x1a0] sm:$0xff] }
  0x1a   :  { %207 = vmatprep.subr.bf16.mxu0 %v8984_v29  ;;  %1837 = vmatpush1.bf16.msra.mxu1 %v7832_v36  ;;  %v396_v51 = vld [vmem:[%s13329_s3 + $0x480] sm:$0xff]  ;;  %v7857_v57 = vcombine.high %v300_v47, %v304_v48  ;;  %v7856_v62 = vcombine.low %v300_v47, %v304_v48 }
  0x1b   :  { %1838 = vmatprep.subr.bf16.mxu1 %v7841_v37  ;;  %v400_v52 = vld [vmem:[%s13329_s3 + $0x4a0] sm:$0xff] }
  0x1c   :  { %v308_v55 = vld [vmem:[%s13329_s3 + $0x1c0] sm:$0xff]  ;;  %v7953_v61 = vcombine.high %v396_v51, %v400_v52  ;;  %v7952_v2 = vcombine.low %v396_v51, %v400_v52 }
  0x1d   :  { %208 = vmatpush1.bf16.msra.mxu0 %v8982_v34  ;;  %v312_v56 = vld [vmem:[%s13329_s3 + $0x1e0] sm:$0xff] }
  0x1e   :  { %209 = vmatprep.subr.bf16.mxu0 %v8987_v35  ;;  %1839 = vmatpush1.bf16.msra.mxu1 %v7840_v46  ;;  %v404_v59 = vld [vmem:[%s13329_s3 + $0x4c0] sm:$0xff]  ;;  %v7865_v1 = vcombine.high %v308_v55, %v312_v56  ;;  %v7864_v7 = vcombine.low %v308_v55, %v312_v56 }
  0x1f   :  { %1840 = vmatprep.subr.bf16.mxu1 %v7849_v49  ;;  %v408_v60 = vld [vmem:[%s13329_s3 + $0x4e0] sm:$0xff] }
  0x20   :  { %v316_v63 = vld [vmem:[%s13329_s3 + $0x200] sm:$0xff]  ;;  %v7961_v6 = vcombine.high %v404_v59, %v408_v60  ;;  %v7960_v11 = vcombine.low %v404_v59, %v408_v60 }
  0x21   :  { %210 = vmatpush1.bf16.msra.mxu0 %v8985_v40  ;;  %v320_v0 = vld [vmem:[%s13329_s3 + $0x220] sm:$0xff] }
  0x22   :  { %1871 = vmatprep.subr.bf16.mxu0 %v7937_v45  ;;  %1841 = vmatpush1.bf16.msra.mxu1 %v7848_v54  ;;  %v412_v4 = vld [vmem:[%s13329_s3 + $0x500] sm:$0xff]  ;;  %v7873_v10 = vcombine.high %v316_v63, %v320_v0  ;;  %v7872_v15 = vcombine.low %v316_v63, %v320_v0 }
  0x23   :  { %1842 = vmatprep.subr.bf16.mxu1 %v7857_v57  ;;  %v416_v5 = vld [vmem:[%s13329_s3 + $0x520] sm:$0xff] }
  0x24   :  { %7807 = vmatmul.mubr.msk.bf16.vlgmr.msra.gmra.mrb[4].mxu0 %vm158_vm0, %v10152_v19  ;;  %v324_v8 = vld [vmem:[%s13329_s3 + $0x240] sm:$0xff]  ;;  %v7969_v14 = vcombine.high %v412_v4, %v416_v5  ;;  %v7968_v19 = vcombine.low %v412_v4, %v416_v5 }
  0x25   :  { %1872 = vmatpush1.bf16.msra.mxu0 %v7936_v50  ;;  %v328_v9 = vld [vmem:[%s13329_s3 + $0x260] sm:$0xff] }
  0x26   :  { %1873 = vmatprep.subr.bf16.mxu0 %v7945_v53  ;;  %1843 = vmatpush1.bf16.msra.mxu1 %v7856_v62  ;;  %v420_v12 = vld [vmem:[%s13329_s3 + $0x540] sm:$0xff]  ;;  %v7881_v18 = vcombine.high %v324_v8, %v328_v9  ;;  %v7880_v23 = vcombine.low %v324_v8, %v328_v9  ;;  %v253_v8 = vld [vmem:[%s13329_s3 + $0x8] sm:$0xff] }
  0x27   :  { %1844 = vmatprep.subr.bf16.mxu1 %v7865_v1  ;;  %v424_v13 = vld [vmem:[%s13329_s3 + $0x560] sm:$0xff] }
  0x28   :  { %v332_v16 = vld [vmem:[%s13329_s3 + $0x280] sm:$0xff]  ;;  %v7977_v22 = vcombine.high %v420_v12, %v424_v13  ;;  %v7976_v27 = vcombine.low %v420_v12, %v424_v13 }
  0x29   :  { %1874 = vmatpush1.bf16.msra.mxu0 %v7944_v58  ;;  %v336_v17 = vld [vmem:[%s13329_s3 + $0x2a0] sm:$0xff] }
  0x2a   :  { %1875 = vmatprep.subr.bf16.mxu0 %v7953_v61  ;;  %1845 = vmatpush1.bf16.msra.mxu1 %v7864_v7  ;;  %v428_v20 = vld [vmem:[%s13329_s3 + $0x580] sm:$0xff]  ;;  %v7889_v26 = vcombine.high %v332_v16, %v336_v17  ;;  %v7888_v31 = vcombine.low %v332_v16, %v336_v17 }
  0x2b   :  { %1846 = vmatprep.subr.bf16.mxu1 %v7873_v10  ;;  %v432_v21 = vld [vmem:[%s13329_s3 + $0x5a0] sm:$0xff]  ;;  %v257_v10 = vld [vmem:[%s13329_s3 + $0x28] sm:$0xff] }
  0x2c   :  { %v340_v24 = vld [vmem:[%s13329_s3 + $0x2c0] sm:$0xff]  ;;  %v7985_v30 = vcombine.high %v428_v20, %v432_v21  ;;  %v7984_v35 = vcombine.low %v428_v20, %v432_v21  ;;  %v7810_v12 = vcombine.low %v253_v8, %v257_v10  ;;  %v7811_v13 = vcombine.high %v253_v8, %v257_v10  ;;  %v297_v10 = vld [vmem:[%s13329_s3 + $0x168] sm:$0xff] }
  0x2d   :  { %1876 = vmatpush1.bf16.msra.mxu0 %v7952_v2  ;;  %v344_v25 = vld [vmem:[%s13329_s3 + $0x2e0] sm:$0xff] }
  0x2e   :  { %1877 = vmatprep.subr.bf16.mxu0 %v7961_v6  ;;  %1847 = vmatpush1.bf16.msra.mxu1 %v7872_v15  ;;  %v436_v28 = vld [vmem:[%s13329_s3 + $0x5c0] sm:$0xff]  ;;  %v7897_v34 = vcombine.high %v340_v24, %v344_v25  ;;  %v7896_v39 = vcombine.low %v340_v24, %v344_v25 }
  0x2f   :  { %1848 = vmatprep.subr.bf16.mxu1 %v7881_v18  ;;  %v440_v29 = vld [vmem:[%s13329_s3 + $0x5e0] sm:$0xff] }
  0x30   :  { %v348_v32 = vld [vmem:[%s13329_s3 + $0x300] sm:$0xff]  ;;  %v7993_v38 = vcombine.high %v436_v28, %v440_v29  ;;  %v7992_v43 = vcombine.low %v436_v28, %v440_v29 }
  0x31   :  { %1878 = vmatpush1.bf16.msra.mxu0 %v7960_v11  ;;  %v352_v33 = vld [vmem:[%s13329_s3 + $0x320] sm:$0xff] }
  0x32   :  { %1879 = vmatprep.subr.bf16.mxu0 %v7969_v14  ;;  %1849 = vmatpush1.bf16.msra.mxu1 %v7880_v23  ;;  %v444_v36 = vld [vmem:[%s13329_s3 + $0x600] sm:$0xff]  ;;  %v7905_v42 = vcombine.high %v348_v32, %v352_v33  ;;  %v7904_v47 = vcombine.low %v348_v32, %v352_v33 }
  0x33   :  { %1850 = vmatprep.subr.bf16.mxu1 %v7889_v26  ;;  %v448_v37 = vld [vmem:[%s13329_s3 + $0x620] sm:$0xff]  ;;  %v10369_v26 = vld [vmem:[%s13329_s3 + $0x10] sm:$0xff] }
  0x34   :  { %v356_v40 = vld [vmem:[%s13329_s3 + $0x340] sm:$0xff]  ;;  %v8001_v46 = vcombine.high %v444_v36, %v448_v37  ;;  %v8000_v49 = vcombine.low %v444_v36, %v448_v37 }
  0x35   :  { %1880 = vmatpush1.bf16.msra.mxu0 %v7968_v19  ;;  %v360_v41 = vld [vmem:[%s13329_s3 + $0x360] sm:$0xff] }
  0x36   :  { %1881 = vmatprep.subr.bf16.mxu0 %v7977_v22  ;;  %1851 = vmatpush1.bf16.msra.mxu1 %v7888_v31  ;;  %v452_v44 = vld [vmem:[%s13329_s3 + $0x640] sm:$0xff]  ;;  %v7913_v48 = vcombine.high %v356_v40, %v360_v41  ;;  %v7912_v51 = vcombine.low %v356_v40, %v360_v41 }
  0x37   :  { %1852 = vmatprep.subr.bf16.mxu1 %v7897_v34  ;;  %v456_v45 = vld [vmem:[%s13329_s3 + $0x660] sm:$0xff] }
  0x38   :  { %v8009_v50 = vcombine.high %v452_v44, %v456_v45  ;;  %v8008_v52 = vcombine.low %v452_v44, %v456_v45  ;;  %v364_v53 = vld [vmem:[%s13329_s3 + $0x380] sm:$0xff]  ;;  %v261_v44 = vld [vmem:[%s13329_s3 + $0x48] sm:$0xff] }
  0x39   :  { %1882 = vmatpush1.bf16.msra.mxu0 %v7976_v27  ;;  %v368_v54 = vld [vmem:[%s13329_s3 + $0x3a0] sm:$0xff]  ;;  %v10374_v27 = vld [vmem:[%s13329_s3 + $0x30] sm:$0xff] }
  0x3a   :  { %1883 = vmatprep.subr.bf16.mxu0 %v7985_v30  ;;  %1853 = vmatpush1.bf16.msra.mxu1 %v7896_v39  ;;  %v460_v55 = vld [vmem:[%s13329_s3 + $0x680] sm:$0xff]  ;;  %v7921_v56 = vcombine.high %v364_v53, %v368_v54  ;;  %v7920_v60 = vcombine.low %v364_v53, %v368_v54  ;;  %v7812_v28 = vcombine.low %v10369_v26, %v10374_v27  ;;  %v58_v30 = vlaneseq }
  0x3b   :  { %1854 = vmatprep.subr.bf16.mxu1 %v7905_v42  ;;  %v464_v57 = vld [vmem:[%s13329_s3 + $0x6a0] sm:$0xff]  ;;  %v7813_v29 = vcombine.high %v10369_v26, %v10374_v27 }
  0x3c   :  { %v8016_v58 = vcombine.low %v460_v55, %v464_v57  ;;  %v8017_v59 = vcombine.high %v460_v55, %v464_v57  ;;  %v372_v61 = vld [vmem:[%s13329_s3 + $0x3c0] sm:$0xff]  ;;  %v10380_v31 = vshrl.u32 %v58_v30, 7  ;;  %v281_v57 = vld [vmem:[%s13329_s3 + $0xe8] sm:$0xff] }
  0x3d   :  { %1884 = vmatpush1.bf16.msra.mxu0 %v7984_v35  ;;  %v376_v62 = vld [vmem:[%s13329_s3 + $0x3e0] sm:$0xff]  ;;  %v313_v30 = vld [vmem:[%s13329_s3 + $0x1e8] sm:$0xff] }
  0x3e   :  { %1885 = vmatprep.subr.bf16.mxu0 %v7993_v38  ;;  %1855 = vmatpush1.bf16.msra.mxu1 %v7904_v47  ;;  %v468_v63 = vld [vmem:[%s13329_s3 + $0x6c0] sm:$0xff]  ;;  %v7929_v0 = vcombine.high %v372_v61, %v376_v62  ;;  %v7928_v5 = vcombine.low %v372_v61, %v376_v62  ;;  %v10386_v33 = vsub.s32 0, %v10380_v31  ;;  %v10389_v34 = vsub.s32 1, %v10380_v31  ;;  %v285_v62 = vld [vmem:[%s13329_s3 + $0x108] sm:$0xff] }
  0x3f   :  { %1856 = vmatprep.subr.bf16.mxu1 %v7913_v48  ;;  %v472_v1 = vld [vmem:[%s13329_s3 + $0x6e0] sm:$0xff]  ;;  %v10416_v54 = vsub.s32 3, %v10380_v31 }
  0x40   :  { %v8024_v2 = vcombine.low %v468_v63, %v472_v1  ;;  %v8025_v4 = vcombine.high %v468_v63, %v472_v1  ;;  %v476_v6 = vld [vmem:[%s13329_s3 + $0x700] sm:$0xff] }
  0x41   :  { %1886 = vmatpush1.bf16.msra.mxu0 %v7992_v43  ;;  %v480_v7 = vld [vmem:[%s13329_s3 + $0x720] sm:$0xff] }
  0x42   :  { %1887 = vmatprep.subr.bf16.mxu0 %v8001_v46  ;;  %1857 = vmatpush1.bf16.msra.mxu1 %v7912_v51  ;;  %v8033_v9 = vcombine.high %v476_v6, %v480_v7  ;;  %v8032_v11 = vcombine.low %v476_v6, %v480_v7  ;;  %v484_v14 = vld [vmem:[%s13329_s3 + $0x740] sm:$0xff]  ;;  %v265_v46 = vld [vmem:[%s13329_s3 + $0x68] sm:$0xff] }
  0x43   :  { %1858 = vmatprep.subr.bf16.mxu1 %v7921_v56  ;;  %v488_v15 = vld [vmem:[%s13329_s3 + $0x760] sm:$0xff]  ;;  %v273_v51 = vld [vmem:[%s13329_s3 + $0xa8] sm:$0xff]  ;;  %v7818_v53 = vcombine.low %v261_v44, %v265_v46 }
  0x44   :  { %v8040_v16 = vcombine.low %v484_v14, %v488_v15  ;;  %v8041_v17 = vcombine.high %v484_v14, %v488_v15  ;;  %v492_v18 = vld [vmem:[%s13329_s3 + $0x780] sm:$0xff]  ;;  %v277_v56 = vld [vmem:[%s13329_s3 + $0xc8] sm:$0xff]  ;;  %v266_v14 = vld [vmem:[%s13329_s3 + $0x70] sm:$0xff] }
  0x45   :  { %1888 = vmatpush1.bf16.msra.mxu0 %v8000_v49  ;;  %v496_v19 = vld [vmem:[%s13329_s3 + $0x7a0] sm:$0xff]  ;;  %v7819_v49 = vcombine.high %v261_v44, %v265_v46  ;;  %v7835_v61 = vcombine.high %v277_v56, %v281_v57  ;;  %v329_v46 = vld [vmem:[%s13329_s3 + $0x268] sm:$0xff] }
  0x46   :  { %1889 = vmatprep.subr.bf16.mxu0 %v8009_v50  ;;  %1859 = vmatpush1.bf16.msra.mxu1 %v7920_v60  ;;  %v8049_v20 = vcombine.high %v492_v18, %v496_v19  ;;  %v8048_v21 = vcombine.low %v492_v18, %v496_v19  ;;  %v500_v22 = vld [vmem:[%s13329_s3 + $0x7c0] sm:$0xff]  ;;  %v269_v50 = vld [vmem:[%s13329_s3 + $0x88] sm:$0xff] }
  0x47   :  { %1860 = vmatprep.subr.bf16.mxu1 %v7929_v0  ;;  %v504_v23 = vld [vmem:[%s13329_s3 + $0x7e0] sm:$0xff]  ;;  %v7827_v55 = vcombine.high %v269_v50, %v273_v51  ;;  %v289_v0 = vld [vmem:[%s13329_s3 + $0x128] sm:$0xff] }
  0x48   :  { %v8057_v24 = vcombine.high %v500_v22, %v504_v23  ;;  %v8056_v25 = vcombine.low %v500_v22, %v504_v23  ;;  %v56_v32 = vld [vmem:[%s13328_s2] sm:$0xf]  ;;  %v7843_v8 = vcombine.high %v285_v62, %v289_v0  ;;  %v301_v18 = vld [vmem:[%s13329_s3 + $0x188] sm:$0xff]  ;;  %v274_v22 = vld [vmem:[%s13329_s3 + $0xb0] sm:$0xff] }
  0x49   :  { %1890 = vmatpush1.bf16.msra.mxu0 %v8008_v52  ;;  %v61_v35 = vrot.slane %v56_v32, %v10386_v33  ;;  %v65_v36 = vrot.slane %v56_v32, %v10389_v34  ;;  %v10412_v52 = vsub.s32 2, %v10380_v31  ;;  %v73_v60 = vrot.slane %v56_v32, %v10416_v54  ;;  %v305_v19 = vld [vmem:[%s13329_s3 + $0x1a8] sm:$0xff] }
  0x4a   :  { %1891 = vmatprep.subr.bf16.mxu0 %v8017_v59  ;;  %1861 = vmatpush1.bf16.msra.mxu1 %v7928_v5  ;;  %v7826_v59 = vcombine.low %v269_v50, %v273_v51  ;;  %v7834_v5 = vcombine.low %v277_v56, %v281_v57  ;;  %v7859_v26 = vcombine.high %v301_v18, %v305_v19  ;;  %v298_v50 = vld [vmem:[%s13329_s3 + $0x170] sm:$0xff]  ;;  %v333_v57 = vld [vmem:[%s13329_s3 + $0x288] sm:$0xff] }
  0x4b   :  { %1912 = vmatprep.subr.bf16.mxu1 %v7811_v13 }
  0x4d   :  { %1892 = vmatpush1.bf16.msra.mxu0 %v8016_v58  ;;  %v69_v58 = vrot.slane %v56_v32, %v10412_v52  ;;  %v278_v32 = vld [vmem:[%s13329_s3 + $0xd0] sm:$0xff] }
  0x4e   :  { %1893 = vmatprep.subr.bf16.mxu0 %v8025_v4 }
  0x51   :  { %1894 = vmatpush1.bf16.msra.mxu0 %v8024_v2 }
  0x52   :  { %1895 = vmatprep.subr.bf16.mxu0 %v8033_v9  ;;  %v293_v9 = vld [vmem:[%s13329_s3 + $0x148] sm:$0xff] }
  0x55   :  { %1896 = vmatpush1.bf16.msra.mxu0 %v8032_v11  ;;  %v262_v11 = vld [vmem:[%s13329_s3 + $0x50] sm:$0xff] }
  0x56   :  { %1897 = vmatprep.subr.bf16.mxu0 %v8041_v17  ;;  %v7842_v17 = vcombine.low %v285_v62, %v289_v0  ;;  %v7821_v23 = vcombine.high %v262_v11, %v266_v14 }
  0x59   :  { %1898 = vmatpush1.bf16.msra.mxu0 %v8040_v16 }
  0x5a   :  { %1899 = vmatprep.subr.bf16.mxu0 %v8049_v20  ;;  %v7851_v20 = vcombine.high %v293_v9, %v297_v10 }
  0x5d   :  { %1900 = vmatpush1.bf16.msra.mxu0 %v8048_v21  ;;  %v270_v21 = vld [vmem:[%s13329_s3 + $0x90] sm:$0xff] }
  0x5e   :  { %1901 = vmatprep.subr.bf16.mxu0 %v8057_v24  ;;  %v7850_v24 = vcombine.low %v293_v9, %v297_v10  ;;  %v7829_v27 = vcombine.high %v270_v21, %v274_v22  ;;  %v349_v10 = vld [vmem:[%s13329_s3 + $0x308] sm:$0xff] }
  0x61   :  { %1902 = vmatpush1.bf16.msra.mxu0 %v8056_v25  ;;  %v7820_v25 = vcombine.low %v262_v11, %v266_v14  ;;  %v353_v11 = vld [vmem:[%s13329_s3 + $0x328] sm:$0xff] }
  0x62   :  { %1994 = vmatprep.subr.bf16.mxu0 %v7813_v29  ;;  %v309_v29 = vld [vmem:[%s13329_s3 + $0x1c8] sm:$0xff] }
  0xe7   :  { %v196_v37 = vpop.f32.mrb[0].mxu0 }
  0xe8   :  { %v197_v38 = vadd.f32 %v196_v37, %v61_v35  ;;  %v198_v39 = vpop.f32.mrb[1].mxu0  ;;  %v282_v35 = vld [vmem:[%s13329_s3 + $0xf0] sm:$0xff]  ;;  %v317_v37 = vld [vmem:[%s13329_s3 + $0x208] sm:$0xff] }
  0xe9   :  { %v199_v40 = vadd.f32 %v198_v39, %v65_v36  ;;  %v200_v41 = vpop.f32.mrb[2].mxu0  ;;  %v7828_v36 = vcombine.low %v270_v21, %v274_v22  ;;  %v286_v39 = vld [vmem:[%s13329_s3 + $0x110] sm:$0xff]  ;;  %v7836_v44 = vcombine.low %v278_v32, %v282_v35  ;;  %v361_v21 = vld [vmem:[%s13329_s3 + $0x368] sm:$0xff] }
  0xea   :  { %v244_v42 = vmax.f32 %v197_v38, 0.0  ;;  %v201_v43 = vpop.f32.mrb[3].mxu0  ;;  %v321_v38 = vld [vmem:[%s13329_s3 + $0x228] sm:$0xff]  ;;  %v7867_v41 = vcombine.high %v309_v29, %v313_v30  ;;  %v326_v22 = vld [vmem:[%s13329_s3 + $0x250] sm:$0xff] }
  0xeb   :  { %v245_v45 = vmax.f32 %v199_v40, 0.0  ;;  %v290_v40 = vld [vmem:[%s13329_s3 + $0x130] sm:$0xff]  ;;  %v7866_v43 = vcombine.low %v309_v29, %v313_v30  ;;  %v7875_v51 = vcombine.high %v317_v37, %v321_v38  ;;  %v7906_v29 = vcombine.low %v349_v10, %v353_v11 }
  0xec   :  { %v10401_v48 = vpack.c.bf16 %v244_v42, %v244_v42  ;;  %v7837_v42 = vcombine.high %v278_v32, %v282_v35  ;;  %v7844_v56 = vcombine.low %v286_v39, %v290_v40  ;;  %v365_v32 = vld [vmem:[%s13329_s3 + $0x388] sm:$0xff] }
  0xed   :  { %v10399_v47 = vpack.c.bf16 %v245_v45, %v245_v45  ;;  %v325_v45 = vld [vmem:[%s13329_s3 + $0x248] sm:$0xff] }
  0xee   :  { %v369_v35 = vld [vmem:[%s13329_s3 + $0x3a8] sm:$0xff] }
  0xef   :  { %1862 = vmatprep.mubr.bf16.mxu1 %v10399_v47 }
  0xf0   :  { %1863 = vmatmul.mubr.bf16.vlgmr.msra.gmra.mrb[0].mxu1 %v10401_v48 }
  0xf1   :  { %1913 = vmatpush1.bf16.msra.mxu1 %v7810_v12  ;;  %1944 = vmatprep.mubr.bf16.mxu1 %v10399_v47 }
  0xf2   :  { %1914 = vmatprep.subr.bf16.mxu1 %v7819_v49  ;;  %v294_v49 = vld [vmem:[%s13329_s3 + $0x150] sm:$0xff] }
  0xf3   :  { %v7853_v62 = vcombine.high %v294_v49, %v298_v50  ;;  %v7852_v0 = vcombine.low %v294_v49, %v298_v50  ;;  %v381_v49 = vld [vmem:[%s13329_s3 + $0x408] sm:$0xff] }
  0xf4   :  { %v385_v50 = vld [vmem:[%s13329_s3 + $0x428] sm:$0xff] }
  0xf5   :  { %1915 = vmatpush1.bf16.msra.mxu1 %v7818_v53  ;;  %v7845_v53 = vcombine.high %v286_v39, %v290_v40  ;;  %v373_v39 = vld [vmem:[%s13329_s3 + $0x3c8] sm:$0xff] }
  0xf6   :  { %1916 = vmatprep.subr.bf16.mxu1 %v7827_v55  ;;  %v7874_v55 = vcombine.low %v317_v37, %v321_v38  ;;  %v377_v40 = vld [vmem:[%s13329_s3 + $0x3e8] sm:$0xff] }
  0xf7   :  { %v237_v63 = vpop.f32.mrb[4].mxu0 }
  0xf8   :  { %v238_v1 = vadd.f32 %v237_v63, %v69_v58  ;;  %v239_v2 = vpop.f32.mrb[5].mxu0  ;;  %v337_v58 = vld [vmem:[%s13329_s3 + $0x2a8] sm:$0xff]  ;;  %v7882_v63 = vcombine.low %v325_v45, %v329_v46 }
  0xf9   :  { %v240_v4 = vadd.f32 %v239_v2, %v73_v60  ;;  %1917 = vmatpush1.bf16.msra.mxu1 %v7826_v59  ;;  %v241_v6 = vpop.f32.mrb[6].mxu0  ;;  %v302_v59 = vld [vmem:[%s13329_s3 + $0x190] sm:$0xff]  ;;  %v345_v2 = vld [vmem:[%s13329_s3 + $0x2e8] sm:$0xff] }
  0xfa   :  { %v246_v7 = vmax.f32 %v238_v1, 0.0  ;;  %1918 = vmatprep.subr.bf16.mxu1 %v7835_v61  ;;  %v242_v12 = vpop.f32.mrb[7].mxu0  ;;  %v306_v60 = vld [vmem:[%s13329_s3 + $0x1b0] sm:$0xff]  ;;  %v7883_v61 = vcombine.high %v325_v45, %v329_v46  ;;  %v341_v1 = vld [vmem:[%s13329_s3 + $0x2c8] sm:$0xff]  ;;  %v7891_v6 = vcombine.high %v333_v57, %v337_v58  ;;  %v7922_v45 = vcombine.low %v365_v32, %v369_v35 }
  0xfb   :  { %v247_v13 = vmax.f32 %v240_v4, 0.0  ;;  %v310_v4 = vld [vmem:[%s13329_s3 + $0x1d0] sm:$0xff]  ;;  %v7860_v9 = vcombine.low %v302_v59, %v306_v60  ;;  %v7899_v14 = vcombine.high %v341_v1, %v345_v2 }
  0xfc   :  { %v10444_v15 = vpack.c.bf16 %v246_v7, %v246_v7  ;;  %v7861_v7 = vcombine.high %v302_v59, %v306_v60  ;;  %v318_v12 = vld [vmem:[%s13329_s3 + $0x210] sm:$0xff]  ;;  %v389_v59 = vld [vmem:[%s13329_s3 + $0x448] sm:$0xff] }
  0xfd   :  { %v10446_v16 = vpack.c.bf16 %v247_v13, %v247_v13  ;;  %1919 = vmatpush1.bf16.msra.mxu1 %v7834_v5  ;;  %v314_v5 = vld [vmem:[%s13329_s3 + $0x1f0] sm:$0xff]  ;;  %v393_v60 = vld [vmem:[%s13329_s3 + $0x468] sm:$0xff] }
  0xfe   :  { %1920 = vmatprep.subr.bf16.mxu1 %v7843_v8  ;;  %v7890_v8 = vcombine.low %v333_v57, %v337_v58  ;;  %v322_v13 = vld [vmem:[%s13329_s3 + $0x230] sm:$0xff]  ;;  %v7930_v57 = vcombine.low %v373_v39, %v377_v40 }
  0xff   :  { %1903 = vmatprep.mubr.bf16.mxu0 %v10446_v16  ;;  %v7876_v30 = vcombine.low %v318_v12, %v322_v13 }
 0x100   :  { %1904 = vmatmul.mubr.bf16.vlgmr.msra.gmra.mrb[8].mxu0 %v10444_v15 }
 0x101   :  { %1921 = vmatpush1.bf16.msra.mxu1 %v7842_v17  ;;  %1995 = vmatpush1.bf16.msra.mxu0 %v7812_v28  ;;  %v7858_v28 = vcombine.low %v301_v18, %v305_v19  ;;  %v7869_v17 = vcombine.high %v310_v4, %v314_v5  ;;  %v7898_v18 = vcombine.low %v341_v1, %v345_v2  ;;  %v397_v2 = vld [vmem:[%s13329_s3 + $0x488] sm:$0xff] }
 0x102   :  { %2026 = vmatprep.mubr.bf16.mxu0 %v10399_v47  ;;  %1922 = vmatprep.subr.bf16.mxu1 %v7851_v20  ;;  %v7868_v19 = vcombine.low %v310_v4, %v314_v5  ;;  %v357_v20 = vld [vmem:[%s13329_s3 + $0x348] sm:$0xff]  ;;  %v7938_v1 = vcombine.low %v381_v49, %v385_v50  ;;  %v7947_v5 = vcombine.high %v389_v59, %v393_v60 }
 0x103   :  { %1996 = vmatprep.subr.bf16.mxu0 %v7821_v23  ;;  %v330_v23 = vld [vmem:[%s13329_s3 + $0x270] sm:$0xff]  ;;  %v7914_v37 = vcombine.low %v357_v20, %v361_v21 }
 0x104   :  { %v7884_v38 = vcombine.low %v326_v22, %v330_v23 }
 0x105   :  { %1923 = vmatpush1.bf16.msra.mxu1 %v7850_v24  ;;  %1997 = vmatpush1.bf16.msra.mxu0 %v7820_v25  ;;  %v7907_v24 = vcombine.high %v349_v10, %v353_v11  ;;  %v7877_v25 = vcombine.high %v318_v12, %v322_v13  ;;  %v7946_v10 = vcombine.low %v389_v59, %v393_v60  ;;  %v405_v11 = vld [vmem:[%s13329_s3 + $0x4c8] sm:$0xff] }
 0x106   :  { %1924 = vmatprep.subr.bf16.mxu1 %v7859_v26  ;;  %1998 = vmatprep.subr.bf16.mxu0 %v7829_v27  ;;  %v334_v26 = vld [vmem:[%s13329_s3 + $0x290] sm:$0xff]  ;;  %v409_v12 = vld [vmem:[%s13329_s3 + $0x4e8] sm:$0xff] }
 0x107   :  { %v338_v27 = vld [vmem:[%s13329_s3 + $0x2b0] sm:$0xff]  ;;  %v445_v60 = vld [vmem:[%s13329_s3 + $0x608] sm:$0xff] }
 0x108   :  { %v7892_v46 = vcombine.low %v334_v26, %v338_v27 }
 0x109   :  { %1925 = vmatpush1.bf16.msra.mxu1 %v7858_v28  ;;  %1999 = vmatpush1.bf16.msra.mxu0 %v7828_v36  ;;  %v7915_v28 = vcombine.high %v357_v20, %v361_v21  ;;  %v7885_v36 = vcombine.high %v326_v22, %v330_v23  ;;  %v413_v21 = vld [vmem:[%s13329_s3 + $0x508] sm:$0xff] }
 0x10a   :  { %1926 = vmatprep.subr.bf16.mxu1 %v7867_v41  ;;  %2000 = vmatprep.subr.bf16.mxu0 %v7837_v42  ;;  %v342_v41 = vld [vmem:[%s13329_s3 + $0x2d0] sm:$0xff]  ;;  %v417_v22 = vld [vmem:[%s13329_s3 + $0x528] sm:$0xff] }
 0x10b   :  { %v346_v42 = vld [vmem:[%s13329_s3 + $0x2f0] sm:$0xff] }
 0x10c   :  { %v7900_v58 = vcombine.low %v342_v41, %v346_v42 }
 0x10d   :  { %1927 = vmatpush1.bf16.msra.mxu1 %v7866_v43  ;;  %2001 = vmatpush1.bf16.msra.mxu0 %v7836_v44  ;;  %v7923_v43 = vcombine.high %v365_v32, %v369_v35  ;;  %v7893_v44 = vcombine.high %v334_v26, %v338_v27  ;;  %v7962_v32 = vcombine.low %v405_v11, %v409_v12  ;;  %v421_v27 = vld [vmem:[%s13329_s3 + $0x548] sm:$0xff] }
 0x10e   :  { %1928 = vmatprep.subr.bf16.mxu1 %v7875_v51  ;;  %2002 = vmatprep.subr.bf16.mxu0 %v7845_v53  ;;  %v350_v51 = vld [vmem:[%s13329_s3 + $0x310] sm:$0xff]  ;;  %v7971_v26 = vcombine.high %v413_v21, %v417_v22 }
 0x10f   :  { %v354_v53 = vld [vmem:[%s13329_s3 + $0x330] sm:$0xff] }
 0x110   :  { %v7908_v4 = vcombine.low %v350_v51, %v354_v53 }
 0x111   :  { %1929 = vmatpush1.bf16.msra.mxu1 %v7874_v55  ;;  %2003 = vmatpush1.bf16.msra.mxu0 %v7844_v56  ;;  %v7931_v55 = vcombine.high %v373_v39, %v377_v40  ;;  %v7901_v56 = vcombine.high %v342_v41, %v346_v42  ;;  %v7970_v39 = vcombine.low %v413_v21, %v417_v22  ;;  %v429_v40 = vld [vmem:[%s13329_s3 + $0x588] sm:$0xff]  ;;  %v434_v21 = vld [vmem:[%s13329_s3 + $0x5b0] sm:$0xff] }
 0x112   :  { %1930 = vmatprep.subr.bf16.mxu1 %v7883_v61  ;;  %2004 = vmatprep.subr.bf16.mxu0 %v7853_v62  ;;  %v7939_v61 = vcombine.high %v381_v49, %v385_v50  ;;  %v7909_v62 = vcombine.high %v350_v51, %v354_v53  ;;  %v433_v41 = vld [vmem:[%s13329_s3 + $0x5a8] sm:$0xff] }
 0x113   :  { %v437_v50 = vld [vmem:[%s13329_s3 + $0x5c8] sm:$0xff]  ;;  %v7987_v53 = vcombine.high %v429_v40, %v433_v41  ;;  %v7986_v59 = vcombine.low %v429_v40, %v433_v41  ;;  %v450_v40 = vld [vmem:[%s13329_s3 + $0x630] sm:$0xff] }
 0x115   :  { %1931 = vmatpush1.bf16.msra.mxu1 %v7882_v63  ;;  %2005 = vmatpush1.bf16.msra.mxu0 %v7852_v0  ;;  %v358_v63 = vld [vmem:[%s13329_s3 + $0x350] sm:$0xff] }
 0x116   :  { %1932 = vmatprep.subr.bf16.mxu1 %v7891_v6  ;;  %2006 = vmatprep.subr.bf16.mxu0 %v7861_v7  ;;  %v362_v0 = vld [vmem:[%s13329_s3 + $0x370] sm:$0xff]  ;;  %v401_v6 = vld [vmem:[%s13329_s3 + $0x4a8] sm:$0xff] }
 0x117   :  { %v366_v7 = vld [vmem:[%s13329_s3 + $0x390] sm:$0xff]  ;;  %v7916_v13 = vcombine.low %v358_v63, %v362_v0  ;;  %v7954_v20 = vcombine.low %v397_v2, %v401_v6 }
 0x119   :  { %1933 = vmatpush1.bf16.msra.mxu1 %v7890_v8  ;;  %2007 = vmatpush1.bf16.msra.mxu0 %v7860_v9  ;;  %v7917_v8 = vcombine.high %v358_v63, %v362_v0  ;;  %v370_v9 = vld [vmem:[%s13329_s3 + $0x3b0] sm:$0xff]  ;;  %v449_v63 = vld [vmem:[%s13329_s3 + $0x628] sm:$0xff] }
 0x11a   :  { %1934 = vmatprep.subr.bf16.mxu1 %v7899_v14  ;;  %2008 = vmatprep.subr.bf16.mxu0 %v7869_v17  ;;  %v7955_v14 = vcombine.high %v397_v2, %v401_v6  ;;  %v374_v17 = vld [vmem:[%s13329_s3 + $0x3d0] sm:$0xff]  ;;  %v7924_v23 = vcombine.low %v366_v7, %v370_v9  ;;  %v457_v6 = vld [vmem:[%s13329_s3 + $0x668] sm:$0xff] }
 0x11b   :  { %v414_v0 = vld [vmem:[%s13329_s3 + $0x510] sm:$0xff] }
 0x11c   :  { %v418_v2 = vld [vmem:[%s13329_s3 + $0x530] sm:$0xff] }
 0x11d   :  { %1935 = vmatpush1.bf16.msra.mxu1 %v7898_v18  ;;  %2009 = vmatpush1.bf16.msra.mxu0 %v7868_v19  ;;  %v7925_v18 = vcombine.high %v366_v7, %v370_v9  ;;  %v378_v19 = vld [vmem:[%s13329_s3 + $0x3f0] sm:$0xff] }
 0x11e   :  { %1936 = vmatprep.subr.bf16.mxu1 %v7907_v24  ;;  %2010 = vmatprep.subr.bf16.mxu0 %v7877_v25  ;;  %v7963_v24 = vcombine.high %v405_v11, %v409_v12  ;;  %v382_v25 = vld [vmem:[%s13329_s3 + $0x410] sm:$0xff]  ;;  %v7932_v35 = vcombine.low %v374_v17, %v378_v19  ;;  %v8002_v12 = vcombine.low %v445_v60, %v449_v63 }
 0x11f   :  { %v422_v9 = vld [vmem:[%s13329_s3 + $0x550] sm:$0xff] }
 0x120   :  { %v426_v11 = vld [vmem:[%s13329_s3 + $0x570] sm:$0xff] }
 0x121   :  { %1937 = vmatpush1.bf16.msra.mxu1 %v7906_v29  ;;  %2011 = vmatpush1.bf16.msra.mxu0 %v7876_v30  ;;  %v7933_v29 = vcombine.high %v374_v17, %v378_v19  ;;  %v386_v30 = vld [vmem:[%s13329_s3 + $0x430] sm:$0xff]  ;;  %v7972_v17 = vcombine.low %v414_v0, %v418_v2 }
 0x122   :  { %1938 = vmatprep.subr.bf16.mxu1 %v7915_v28  ;;  %2012 = vmatprep.subr.bf16.mxu0 %v7885_v36  ;;  %v425_v28 = vld [vmem:[%s13329_s3 + $0x568] sm:$0xff]  ;;  %v390_v36 = vld [vmem:[%s13329_s3 + $0x450] sm:$0xff]  ;;  %v7940_v42 = vcombine.low %v382_v25, %v386_v30 }
 0x123   :  { %v7978_v49 = vcombine.low %v421_v27, %v425_v28  ;;  %v430_v19 = vld [vmem:[%s13329_s3 + $0x590] sm:$0xff] }
 0x125   :  { %1939 = vmatpush1.bf16.msra.mxu1 %v7914_v37  ;;  %2013 = vmatpush1.bf16.msra.mxu0 %v7884_v38  ;;  %v7941_v37 = vcombine.high %v382_v25, %v386_v30  ;;  %v394_v38 = vld [vmem:[%s13329_s3 + $0x470] sm:$0xff] }
 0x126   :  { %1940 = vmatprep.subr.bf16.mxu1 %v7923_v43  ;;  %2014 = vmatprep.subr.bf16.mxu0 %v7893_v44  ;;  %v398_v43 = vld [vmem:[%s13329_s3 + $0x490] sm:$0xff]  ;;  %v7979_v44 = vcombine.high %v421_v27, %v425_v28  ;;  %v7948_v51 = vcombine.low %v390_v36, %v394_v38  ;;  %v477_v27 = vld [vmem:[%s13329_s3 + $0x708] sm:$0xff]  ;;  %v7988_v28 = vcombine.low %v430_v19, %v434_v21 }
 0x127   :  { %v438_v30 = vld [vmem:[%s13329_s3 + $0x5d0] sm:$0xff] }
 0x129   :  { %1941 = vmatpush1.bf16.msra.mxu1 %v7922_v45  ;;  %2015 = vmatpush1.bf16.msra.mxu0 %v7892_v46  ;;  %v7949_v45 = vcombine.high %v390_v36, %v394_v38  ;;  %v402_v46 = vld [vmem:[%s13329_s3 + $0x4b0] sm:$0xff] }
 0x12a   :  { %1942 = vmatprep.subr.bf16.mxu1 %v7931_v55  ;;  %2016 = vmatprep.subr.bf16.mxu0 %v7901_v56  ;;  %v441_v55 = vld [vmem:[%s13329_s3 + $0x5e8] sm:$0xff]  ;;  %v406_v56 = vld [vmem:[%s13329_s3 + $0x4d0] sm:$0xff] }
 0x12b   :  { %v446_v38 = vld [vmem:[%s13329_s3 + $0x610] sm:$0xff] }
 0x12d   :  { %1943 = vmatpush1.bf16.msra.mxu1 %v7930_v57  ;;  %2017 = vmatpush1.bf16.msra.mxu0 %v7900_v58  ;;  %v7957_v57 = vcombine.high %v398_v43, %v402_v46  ;;  %v410_v58 = vld [vmem:[%s13329_s3 + $0x4f0] sm:$0xff] }
 0x12e   :  { %1953 = vmatprep.subr.bf16.mxu1 %v7939_v61  ;;  %2018 = vmatprep.subr.bf16.mxu0 %v7909_v62  ;;  %v7956_v61 = vcombine.low %v398_v43, %v402_v46  ;;  %v7995_v62 = vcombine.high %v437_v50, %v441_v55  ;;  %v7964_v7 = vcombine.low %v406_v56, %v410_v58  ;;  %v489_v43 = vld [vmem:[%s13329_s3 + $0x768] sm:$0xff]  ;;  %v454_v46 = vld [vmem:[%s13329_s3 + $0x650] sm:$0xff] }
 0x130   :  { %1945 = vmatmul.mubr.bf16.vlgmr.msra.gmra.mrb[4].mxu1 %v10401_v48 }
 0x131   :  { %1954 = vmatpush1.bf16.msra.mxu1 %v7938_v1  ;;  %1985 = vmatprep.mubr.bf16.mxu1 %v10446_v16  ;;  %v7965_v1 = vcombine.high %v406_v56, %v410_v58  ;;  %v8004_v56 = vcombine.low %v446_v38, %v450_v40  ;;  %v462_v58 = vld [vmem:[%s13329_s3 + $0x690] sm:$0xff] }
 0x132   :  { %2019 = vmatpush1.bf16.msra.mxu0 %v7908_v4  ;;  %1955 = vmatprep.subr.bf16.mxu1 %v7947_v5  ;;  %v7994_v4 = vcombine.low %v437_v50, %v441_v55  ;;  %v453_v5 = vld [vmem:[%s13329_s3 + $0x648] sm:$0xff]  ;;  %v8005_v50 = vcombine.high %v446_v38, %v450_v40  ;;  %v502_v40 = vld [vmem:[%s13329_s3 + $0x7d0] sm:$0xff] }
 0x133   :  { %2020 = vmatprep.subr.bf16.mxu0 %v7917_v8  ;;  %v8003_v8 = vcombine.high %v445_v60, %v449_v63  ;;  %v8010_v22 = vcombine.low %v453_v5, %v457_v6  ;;  %v497_v55 = vld [vmem:[%s13329_s3 + $0x7a8] sm:$0xff] }
 0x134   :  { %v505_v63 = vld [vmem:[%s13329_s3 + $0x7e8] sm:$0xff] }
 0x135   :  { %1956 = vmatpush1.bf16.msra.mxu1 %v7946_v10  ;;  %v7973_v10 = vcombine.high %v414_v0, %v418_v2  ;;  %v470_v2 = vld [vmem:[%s13329_s3 + $0x6d0] sm:$0xff] }
 0x136   :  { %2021 = vmatpush1.bf16.msra.mxu0 %v7916_v13  ;;  %1957 = vmatprep.subr.bf16.mxu1 %v7955_v14  ;;  %v461_v13 = vld [vmem:[%s13329_s3 + $0x688] sm:$0xff] }
 0x137   :  { %2022 = vmatprep.subr.bf16.mxu0 %v7925_v18  ;;  %v465_v14 = vld [vmem:[%s13329_s3 + $0x6a8] sm:$0xff]  ;;  %v8011_v18 = vcombine.high %v453_v5, %v457_v6 }
 0x138   :  { %v8019_v25 = vcombine.high %v461_v13, %v465_v14 }
 0x139   :  { %1958 = vmatpush1.bf16.msra.mxu1 %v7954_v20  ;;  %v7981_v20 = vcombine.high %v422_v9, %v426_v11 }
 0x13a   :  { %2023 = vmatpush1.bf16.msra.mxu0 %v7924_v23  ;;  %1959 = vmatprep.subr.bf16.mxu1 %v7963_v24  ;;  %v469_v23 = vld [vmem:[%s13329_s3 + $0x6c8] sm:$0xff]  ;;  %v7980_v24 = vcombine.low %v422_v9, %v426_v11  ;;  %v478_v11 = vld [vmem:[%s13329_s3 + $0x710] sm:$0xff] }
 0x13b   :  { %2024 = vmatprep.subr.bf16.mxu0 %v7933_v29  ;;  %v473_v29 = vld [vmem:[%s13329_s3 + $0x6e8] sm:$0xff] }
 0x13c   :  { %v8027_v36 = vcombine.high %v469_v23, %v473_v29  ;;  %v8026_v41 = vcombine.low %v469_v23, %v473_v29 }
 0x13d   :  { %1960 = vmatpush1.bf16.msra.mxu1 %v7962_v32  ;;  %v7989_v32 = vcombine.high %v430_v19, %v434_v21  ;;  %v486_v21 = vld [vmem:[%s13329_s3 + $0x750] sm:$0xff] }
 0x13e   :  { %2025 = vmatpush1.bf16.msra.mxu0 %v7932_v35  ;;  %1961 = vmatprep.subr.bf16.mxu1 %v7971_v26  ;;  %v442_v35 = vld [vmem:[%s13329_s3 + $0x5f0] sm:$0xff]  ;;  %v8018_v26 = vcombine.low %v461_v13, %v465_v14 }
 0x13f   :  { %2035 = vmatprep.subr.bf16.mxu0 %v7941_v37  ;;  %v481_v37 = vld [vmem:[%s13329_s3 + $0x728] sm:$0xff] }
 0x141   :  { %2027 = vmatmul.mubr.bf16.vlgmr.msra.gmra.mrb[12].mxu0 %v10401_v48  ;;  %1962 = vmatpush1.bf16.msra.mxu1 %v7970_v39  ;;  %v7997_v39 = vcombine.high %v438_v30, %v442_v35 }
 0x142   :  { %2036 = vmatpush1.bf16.msra.mxu0 %v7940_v42  ;;  %2067 = vmatprep.mubr.bf16.mxu0 %v10446_v16  ;;  %v485_v42 = vld [vmem:[%s13329_s3 + $0x748] sm:$0xff] }
 0x143   :  { %1963 = vmatprep.subr.bf16.mxu1 %v7979_v44  ;;  %2037 = vmatprep.subr.bf16.mxu0 %v7949_v45  ;;  %v7996_v44 = vcombine.low %v438_v30, %v442_v35  ;;  %v8035_v45 = vcombine.high %v477_v27, %v481_v37 }
 0x145   :  { %1964 = vmatpush1.bf16.msra.mxu1 %v7978_v49  ;;  %v458_v49 = vld [vmem:[%s13329_s3 + $0x670] sm:$0xff] }
 0x146   :  { %2038 = vmatpush1.bf16.msra.mxu0 %v7948_v51  ;;  %1965 = vmatprep.subr.bf16.mxu1 %v7987_v53  ;;  %v8034_v51 = vcombine.low %v477_v27, %v481_v37  ;;  %v493_v53 = vld [vmem:[%s13329_s3 + $0x788] sm:$0xff]  ;;  %v8013_v60 = vcombine.high %v454_v46, %v458_v49  ;;  %v8012_v0 = vcombine.low %v454_v46, %v458_v49  ;;  %v498_v27 = vld [vmem:[%s13329_s3 + $0x7b0] sm:$0xff]  ;;  %v283_v37 = vld [vmem:[%s13329_s3 + $0xf8] sm:$0xff] }
 0x147   :  { %2039 = vmatprep.subr.bf16.mxu0 %v7957_v57  ;;  %v8043_v57 = vcombine.high %v485_v42, %v489_v43  ;;  %v8050_v6 = vcombine.low %v493_v53, %v497_v55  ;;  %v287_v46 = vld [vmem:[%s13329_s3 + $0x118] sm:$0xff] }
 0x148   :  { %v291_v49 = vld [vmem:[%s13329_s3 + $0x138] sm:$0xff] }
 0x149   :  { %1966 = vmatpush1.bf16.msra.mxu1 %v7986_v59  ;;  %v466_v59 = vld [vmem:[%s13329_s3 + $0x6b0] sm:$0xff] }
 0x14a   :  { %2040 = vmatpush1.bf16.msra.mxu0 %v7956_v61  ;;  %1967 = vmatprep.subr.bf16.mxu1 %v7995_v62  ;;  %v8042_v61 = vcombine.low %v485_v42, %v489_v43  ;;  %v501_v62 = vld [vmem:[%s13329_s3 + $0x7c8] sm:$0xff]  ;;  %v8021_v5 = vcombine.high %v462_v58, %v466_v59  ;;  %v8020_v9 = vcombine.low %v462_v58, %v466_v59 }
 0x14b   :  { %2041 = vmatprep.subr.bf16.mxu0 %v7965_v1  ;;  %v8051_v1 = vcombine.high %v493_v53, %v497_v55  ;;  %v8058_v14 = vcombine.low %v501_v62, %v505_v63 }
 0x14d   :  { %1968 = vmatpush1.bf16.msra.mxu1 %v7994_v4  ;;  %v474_v4 = vld [vmem:[%s13329_s3 + $0x6f0] sm:$0xff] }
 0x14e   :  { %2042 = vmatpush1.bf16.msra.mxu0 %v7964_v7  ;;  %1969 = vmatprep.subr.bf16.mxu1 %v8003_v8  ;;  %v255_v7 = vld [vmem:[%s13329_s3 + $0x18] sm:$0xff]  ;;  %v8029_v13 = vcombine.high %v470_v2, %v474_v4  ;;  %v8028_v19 = vcombine.low %v470_v2, %v474_v4 }
 0x14f   :  { %2043 = vmatprep.subr.bf16.mxu0 %v7973_v10  ;;  %v259_v8 = vld [vmem:[%s13329_s3 + $0x38] sm:$0xff]  ;;  %v8059_v10 = vcombine.high %v501_v62, %v505_v63 }
 0x151   :  { %1970 = vmatpush1.bf16.msra.mxu1 %v8002_v12  ;;  %v482_v12 = vld [vmem:[%s13329_s3 + $0x730] sm:$0xff] }
 0x152   :  { %2044 = vmatpush1.bf16.msra.mxu0 %v7972_v17  ;;  %1971 = vmatprep.subr.bf16.mxu1 %v8011_v18  ;;  %v263_v17 = vld [vmem:[%s13329_s3 + $0x58] sm:$0xff]  ;;  %v8037_v23 = vcombine.high %v478_v11, %v482_v12  ;;  %v8036_v29 = vcombine.low %v478_v11, %v482_v12 }
 0x153   :  { %2045 = vmatprep.subr.bf16.mxu0 %v7981_v20  ;;  %v267_v18 = vld [vmem:[%s13329_s3 + $0x78] sm:$0xff]  ;;  %v7815_v20 = vcombine.high %v255_v7, %v259_v8 }
 0x154   :  { %v7823_v30 = vcombine.high %v263_v17, %v267_v18 }
 0x155   :  { %1972 = vmatpush1.bf16.msra.mxu1 %v8010_v22  ;;  %v490_v22 = vld [vmem:[%s13329_s3 + $0x770] sm:$0xff] }
 0x156   :  { %2046 = vmatpush1.bf16.msra.mxu0 %v7980_v24  ;;  %1973 = vmatprep.subr.bf16.mxu1 %v8019_v25  ;;  %v7814_v24 = vcombine.low %v255_v7, %v259_v8  ;;  %v271_v25 = vld [vmem:[%s13329_s3 + $0x98] sm:$0xff]  ;;  %v8045_v35 = vcombine.high %v486_v21, %v490_v22  ;;  %v8044_v38 = vcombine.low %v486_v21, %v490_v22 }
 0x157   :  { %2047 = vmatprep.subr.bf16.mxu0 %v7989_v32  ;;  %v494_v32 = vld [vmem:[%s13329_s3 + $0x790] sm:$0xff] }
 0x158   :  { %v8052_v43 = vcombine.low %v494_v32, %v498_v27 }
 0x159   :  { %1974 = vmatpush1.bf16.msra.mxu1 %v8018_v26  ;;  %v275_v26 = vld [vmem:[%s13329_s3 + $0xb8] sm:$0xff] }
 0x15a   :  { %2048 = vmatpush1.bf16.msra.mxu0 %v7988_v28  ;;  %1975 = vmatprep.subr.bf16.mxu1 %v8027_v36  ;;  %v7822_v28 = vcombine.low %v263_v17, %v267_v18  ;;  %v279_v36 = vld [vmem:[%s13329_s3 + $0xd8] sm:$0xff]  ;;  %v7830_v42 = vcombine.low %v271_v25, %v275_v26 }
 0x15b   :  { %2049 = vmatprep.subr.bf16.mxu0 %v7997_v39  ;;  %v7831_v39 = vcombine.high %v271_v25, %v275_v26 }
 0x15d   :  { %1976 = vmatpush1.bf16.msra.mxu1 %v8026_v41  ;;  %v8053_v41 = vcombine.high %v494_v32, %v498_v27 }
 0x15e   :  { %2050 = vmatpush1.bf16.msra.mxu0 %v7996_v44  ;;  %1977 = vmatprep.subr.bf16.mxu1 %v8035_v45  ;;  %v7839_v44 = vcombine.high %v279_v36, %v283_v37 }
 0x15f   :  { %2051 = vmatprep.subr.bf16.mxu0 %v8005_v50 }
 0x161   :  { %1978 = vmatpush1.bf16.msra.mxu1 %v8034_v51 }
 0x162   :  { %2052 = vmatpush1.bf16.msra.mxu0 %v8004_v56  ;;  %1979 = vmatprep.subr.bf16.mxu1 %v8043_v57 }
 0x163   :  { %2053 = vmatprep.subr.bf16.mxu0 %v8013_v60 }
 0x165   :  { %1980 = vmatpush1.bf16.msra.mxu1 %v8042_v61 }
 0x166   :  { %2054 = vmatpush1.bf16.msra.mxu0 %v8012_v0  ;;  %1981 = vmatprep.subr.bf16.mxu1 %v8051_v1 }
 0x167   :  { %2055 = vmatprep.subr.bf16.mxu0 %v8021_v5 }
 0x169   :  { %1982 = vmatpush1.bf16.msra.mxu1 %v8050_v6 }
 0x16a   :  { %2056 = vmatpush1.bf16.msra.mxu0 %v8020_v9  ;;  %1983 = vmatprep.subr.bf16.mxu1 %v8059_v10 }
 0x16b   :  { %2057 = vmatprep.subr.bf16.mxu0 %v8029_v13 }
 0x16d   :  { %1984 = vmatpush1.bf16.msra.mxu1 %v8058_v14 }
 0x16e   :  { %2058 = vmatpush1.bf16.msra.mxu0 %v8028_v19  ;;  %2076 = vmatprep.subr.bf16.mxu1 %v7815_v20 }
 0x16f   :  { %2059 = vmatprep.subr.bf16.mxu0 %v8037_v23 }
 0x170   :  { %1986 = vmatmul.mubr.bf16.vlgmr.msra.gmra.mrb[4].mxu1 %v10444_v15 }
 0x171   :  { %2077 = vmatpush1.bf16.msra.mxu1 %v7814_v24  ;;  %2108 = vmatprep.mubr.bf16.mxu1 %v10399_v47  ;;  %v506_v47 = vld [vmem:[%s13329_s3 + $0x7f0] sm:$0xff] }
 0x172   :  { %2060 = vmatpush1.bf16.msra.mxu0 %v8036_v29  ;;  %2078 = vmatprep.subr.bf16.mxu1 %v7823_v30  ;;  %v8061_v45 = vcombine.high %v502_v40, %v506_v47 }
 0x173   :  { %2061 = vmatprep.subr.bf16.mxu0 %v8045_v35 }
 0x175   :  { %2079 = vmatpush1.bf16.msra.mxu1 %v7822_v28 }
 0x176   :  { %2062 = vmatpush1.bf16.msra.mxu0 %v8044_v38  ;;  %2080 = vmatprep.subr.bf16.mxu1 %v7831_v39 }
 0x177   :  { %2063 = vmatprep.subr.bf16.mxu0 %v8053_v41 }
 0x178   :  { %18 = vsyncpa [#allocation4], 0  ;;  %v7838_v50 = vcombine.low %v279_v36, %v283_v37  ;;  %v8060_v51 = vcombine.low %v502_v40, %v506_v47  ;;  %v7847_v53 = vcombine.high %v287_v46, %v291_v49  ;;  %v295_v55 = vld [vmem:[%s13329_s3 + $0x158] sm:$0xff]  ;;  %v8990_v57 = vld [vmem:[%s13331_s5 + $0x4] ss:$40 sps:$4 sm:$0xff]   ;;  %v7846_v58 = vcombine.low %v287_v46, %v291_v49 }
 0x179   :  { %2081 = vmatpush1.bf16.msra.mxu1 %v7830_v42  ;;  %v299_v56 = vld [vmem:[%s13329_s3 + $0x178] sm:$0xff]  ;;  %v8988_v60 = vld [vmem:[%s13331_s5] ss:$40 sps:$4 sm:$0xff]   ;;  %v8996_v6 = vld [vmem:[%s13331_s5 + $0xa4] ss:$40 sps:$4 sm:$0xff]   ;;  %vm6945_vm1 = vcmask 1041408  }
 0x17a   :  { %2064 = vmatpush1.bf16.msra.mxu0 %v8052_v43  ;;  %2082 = vmatprep.subr.bf16.mxu1 %v7839_v44  ;;  %v7855_v59 = vcombine.high %v295_v55, %v299_v56  ;;  %v303_v61 = vld [vmem:[%s13329_s3 + $0x198] sm:$0xff]  ;;  %v7854_v0 = vcombine.low %v295_v55, %v299_v56  ;;  %v8994_v9 = vld [vmem:[%s13331_s5 + $0xa0] ss:$40 sps:$4 sm:$0xff]   ;;  %v9002_v20 = vld [vmem:[%s13331_s5 + $0x144] ss:$40 sps:$4 sm:$0xff]   ;;  %vm6946_vm2 = vcmask 388098  }
 0x17b   :  { %2065 = vmatprep.subr.bf16.mxu0 %v8061_v45  ;;  %v307_v62 = vld [vmem:[%s13329_s3 + $0x1b8] sm:$0xff]  ;;  %v9000_v23 = vld [vmem:[%s13331_s5 + $0x140] ss:$40 sps:$4 sm:$0xff]   ;;  %v9008_v28 = vld [vmem:[%s13331_s5 + $0x1e4] ss:$40 sps:$4 sm:$0xff]   ;;  %vm7566_vm3 = vcmask 392192  }
 0x17c   :  { %v8993_v63 = vld [vmem:[%s13331_s5 + $0x54] ss:$40 sps:$4 sm:$0xff]   ;;  %v7863_v1 = vcombine.high %v303_v61, %v307_v62  ;;  %v8991_v2 = vld [vmem:[%s13331_s5 + $0x50] ss:$40 sps:$4 sm:$0xff]   ;;  %v7862_v7 = vcombine.low %v303_v61, %v307_v62  ;;  %v9006_v38 = vld [vmem:[%s13331_s5 + $0x1e0] ss:$40 sps:$4 sm:$0xff]  }
 0x17d   :  { %2083 = vmatpush1.bf16.msra.mxu1 %v7838_v50  ;;  %v311_v4 = vld [vmem:[%s13329_s3 + $0x1d8] sm:$0xff]  ;;  %v9014_v46 = vld [vmem:[%s13331_s5 + $0x284] ss:$40 sps:$4 sm:$0xff]   ;;  %vm6947_vm4 = vmor %vm6946_vm2, %vm6945_vm1 }
 0x17e   :  { %2066 = vmatpush1.bf16.msra.mxu0 %v8060_v51  ;;  %2084 = vmatprep.subr.bf16.mxu1 %v7847_v53  ;;  %v315_v5 = vld [vmem:[%s13329_s3 + $0x1f8] sm:$0xff]  ;;  %v9012_v51 = vld [vmem:[%s13331_s5 + $0x280] ss:$40 sps:$4 sm:$0xff]   ;;  %v9020_v62 = vld [vmem:[%s13331_s5 + $0x324] ss:$40 sps:$4 sm:$0xff]  }
 0x17f   :  { %6068 = vmatprep.subr.bf16.mxu0 %v8990_v57  ;;  %v7871_v8 = vcombine.high %v311_v4, %v315_v5  ;;  %v319_v10 = vld [vmem:[%s13329_s3 + $0x218] sm:$0xff]  ;;  %v7870_v13 = vcombine.low %v311_v4, %v315_v5 }
 0x180   :  { %v323_v11 = vld [vmem:[%s13329_s3 + $0x238] sm:$0xff] }
 0x181   :  { %2068 = vmatmul.mubr.bf16.vlgmr.msra.gmra.mrb[12].mxu0 %v10444_v15  ;;  %2085 = vmatpush1.bf16.msra.mxu1 %v7846_v58  ;;  %v8999_v12 = vld [vmem:[%s13331_s5 + $0xf4] ss:$40 sps:$4 sm:$0xff]   ;;  %v7879_v14 = vcombine.high %v319_v10, %v323_v11  ;;  %v8997_v17 = vld [vmem:[%s13331_s5 + $0xf0] ss:$40 sps:$4 sm:$0xff]   ;;  %v7878_v21 = vcombine.low %v319_v10, %v323_v11  ;;  %v9026_v11 = vld [vmem:[%s13331_s5 + $0x3c4] ss:$40 sps:$4 sm:$0xff]  }
 0x182   :  { %2086 = vmatprep.subr.bf16.mxu1 %v7855_v59  ;;  %6069 = vmatpush1.bf16.msra.mxu0 %v8988_v60  ;;  %v327_v18 = vld [vmem:[%s13329_s3 + $0x258] sm:$0xff] }
 0x183   :  { %6070 = vmatprep.subr.bf16.mxu0 %v8993_v63  ;;  %v331_v19 = vld [vmem:[%s13329_s3 + $0x278] sm:$0xff] }
 0x184   :  { %v7887_v22 = vcombine.high %v327_v18, %v331_v19  ;;  %v335_v24 = vld [vmem:[%s13329_s3 + $0x298] sm:$0xff]  ;;  %v7886_v30 = vcombine.low %v327_v18, %v331_v19 }
 0x185   :  { %2087 = vmatpush1.bf16.msra.mxu1 %v7854_v0  ;;  %v339_v25 = vld [vmem:[%s13329_s3 + $0x2b8] sm:$0xff] }
 0x186   :  { %2088 = vmatprep.subr.bf16.mxu1 %v7863_v1  ;;  %6071 = vmatpush1.bf16.msra.mxu0 %v8991_v2  ;;  %v9005_v29 = vld [vmem:[%s13331_s5 + $0x194] ss:$40 sps:$4 sm:$0xff]   ;;  %v7895_v32 = vcombine.high %v335_v24, %v339_v25  ;;  %v9003_v35 = vld [vmem:[%s13331_s5 + $0x190] ss:$40 sps:$4 sm:$0xff]   ;;  %v7894_v36 = vcombine.low %v335_v24, %v339_v25  ;;  %v9018_v1 = vld [vmem:[%s13331_s5 + $0x320] ss:$40 sps:$4 sm:$0xff]  }
 0x187   :  { %6072 = vmatprep.subr.bf16.mxu0 %v8996_v6  ;;  %v343_v26 = vld [vmem:[%s13329_s3 + $0x2d8] sm:$0xff] }
 0x188   :  { %v347_v27 = vld [vmem:[%s13329_s3 + $0x2f8] sm:$0xff] }
 0x189   :  { %2089 = vmatpush1.bf16.msra.mxu1 %v7862_v7  ;;  %v7903_v37 = vcombine.high %v343_v26, %v347_v27  ;;  %v351_v39 = vld [vmem:[%s13329_s3 + $0x318] sm:$0xff]  ;;  %v7902_v41 = vcombine.low %v343_v26, %v347_v27 }
 0x18a   :  { %2090 = vmatprep.subr.bf16.mxu1 %v7871_v8  ;;  %6073 = vmatpush1.bf16.msra.mxu0 %v8994_v9  ;;  %v355_v40 = vld [vmem:[%s13329_s3 + $0x338] sm:$0xff] }
 0x18b   :  { %6074 = vmatprep.subr.bf16.mxu0 %v8999_v12  ;;  %v9011_v47 = vld [vmem:[%s13331_s5 + $0x234] ss:$40 sps:$4 sm:$0xff]   ;;  %v7911_v42 = vcombine.high %v351_v39, %v355_v40  ;;  %v9009_v43 = vld [vmem:[%s13331_s5 + $0x230] ss:$40 sps:$4 sm:$0xff]   ;;  %v7910_v49 = vcombine.low %v351_v39, %v355_v40 }
 0x18c   :  { %v359_v44 = vld [vmem:[%s13329_s3 + $0x358] sm:$0xff] }
 0x18d   :  { %2091 = vmatpush1.bf16.msra.mxu1 %v7870_v13  ;;  %v363_v45 = vld [vmem:[%s13329_s3 + $0x378] sm:$0xff] }
 0x18e   :  { %2092 = vmatprep.subr.bf16.mxu1 %v7879_v14  ;;  %6075 = vmatpush1.bf16.msra.mxu0 %v8997_v17  ;;  %v7919_v50 = vcombine.high %v359_v44, %v363_v45  ;;  %v367_v53 = vld [vmem:[%s13329_s3 + $0x398] sm:$0xff]  ;;  %v7918_v57 = vcombine.low %v359_v44, %v363_v45  ;;  %v9024_v14 = vld [vmem:[%s13331_s5 + $0x3c0] ss:$40 sps:$4 sm:$0xff]  }
 0x18f   :  { %6076 = vmatprep.subr.bf16.mxu0 %v9002_v20  ;;  %v371_v55 = vld [vmem:[%s13329_s3 + $0x3b8] sm:$0xff] }
 0x190   :  { %v9017_v56 = vld [vmem:[%s13331_s5 + $0x2d4] ss:$40 sps:$4 sm:$0xff]   ;;  %v7927_v58 = vcombine.high %v367_v53, %v371_v55  ;;  %v9015_v59 = vld [vmem:[%s13331_s5 + $0x2d0] ss:$40 sps:$4 sm:$0xff]   ;;  %v7926_v63 = vcombine.low %v367_v53, %v371_v55 }
 0x191   :  { %2093 = vmatpush1.bf16.msra.mxu1 %v7878_v21  ;;  %v375_v60 = vld [vmem:[%s13329_s3 + $0x3d8] sm:$0xff] }
 0x192   :  { %2094 = vmatprep.subr.bf16.mxu1 %v7887_v22  ;;  %6077 = vmatpush1.bf16.msra.mxu0 %v9000_v23  ;;  %v379_v61 = vld [vmem:[%s13329_s3 + $0x3f8] sm:$0xff] }
 0x193   :  { %6078 = vmatprep.subr.bf16.mxu0 %v9005_v29  ;;  %v7935_v0 = vcombine.high %v375_v60, %v379_v61  ;;  %v383_v2 = vld [vmem:[%s13329_s3 + $0x418] sm:$0xff]  ;;  %v7934_v6 = vcombine.low %v375_v60, %v379_v61  ;;  %v9030_v29 = vld [vmem:[%s13331_s5 + $0x460] ss:$40 sps:$4 sm:$0xff]  }
 0x194   :  { %v387_v4 = vld [vmem:[%s13329_s3 + $0x438] sm:$0xff]  ;;  %v11051_v60 = vld [vmem:[%s13330_s4] sm:$0xff] }
 0x195   :  { %2095 = vmatpush1.bf16.msra.mxu1 %v7886_v30  ;;  %v9023_v5 = vld [vmem:[%s13331_s5 + $0x374] ss:$40 sps:$4 sm:$0xff]   ;;  %v7943_v7 = vcombine.high %v383_v2, %v387_v4  ;;  %v9021_v8 = vld [vmem:[%s13331_s5 + $0x370] ss:$40 sps:$4 sm:$0xff]   ;;  %v7942_v12 = vcombine.low %v383_v2, %v387_v4  ;;  %v517_v2 = vrot.slane %v11051_v60, %v10389_v34 }
 0x196   :  { %2096 = vmatprep.subr.bf16.mxu1 %v7895_v32  ;;  %6079 = vmatpush1.bf16.msra.mxu0 %v9003_v35  ;;  %v391_v9 = vld [vmem:[%s13329_s3 + $0x458] sm:$0xff] }
 0x197   :  { %6080 = vmatprep.subr.bf16.mxu0 %v9008_v28  ;;  %v395_v10 = vld [vmem:[%s13329_s3 + $0x478] sm:$0xff] }
 0x198   :  { %v7951_v13 = vcombine.high %v391_v9, %v395_v10  ;;  %v399_v17 = vld [vmem:[%s13329_s3 + $0x498] sm:$0xff]  ;;  %v7950_v20 = vcombine.low %v391_v9, %v395_v10 }
 0x199   :  { %2097 = vmatpush1.bf16.msra.mxu1 %v7894_v36  ;;  %v403_v18 = vld [vmem:[%s13329_s3 + $0x4b8] sm:$0xff] }
 0x19a   :  { %2098 = vmatprep.subr.bf16.mxu1 %v7903_v37  ;;  %6081 = vmatpush1.bf16.msra.mxu0 %v9006_v38  ;;  %v9029_v19 = vld [vmem:[%s13331_s5 + $0x414] ss:$40 sps:$4 sm:$0xff]   ;;  %v7959_v21 = vcombine.high %v399_v17, %v403_v18  ;;  %v9027_v22 = vld [vmem:[%s13331_s5 + $0x410] ss:$40 sps:$4 sm:$0xff]   ;;  %v9059_v38 = vld [vmem:[%s13331_s5 + $0x504] ss:$40 sps:$4 sm:$0xff]  }
 0x19b   :  { %6082 = vmatprep.subr.bf16.mxu0 %v9011_v47  ;;  %v407_v23 = vld [vmem:[%s13329_s3 + $0x4d8] sm:$0xff] }
 0x19c   :  { %v411_v24 = vld [vmem:[%s13329_s3 + $0x4f8] sm:$0xff] }
 0x19d   :  { %2099 = vmatpush1.bf16.msra.mxu1 %v7902_v41  ;;  %v7967_v25 = vcombine.high %v407_v23, %v411_v24  ;;  %v415_v30 = vld [vmem:[%s13329_s3 + $0x518] sm:$0xff]  ;;  %v7966_v26 = vcombine.low %v407_v23, %v411_v24 }
 0x19e   :  { %2100 = vmatprep.subr.bf16.mxu1 %v7911_v42  ;;  %6083 = vmatpush1.bf16.msra.mxu0 %v9009_v43  ;;  %v419_v32 = vld [vmem:[%s13329_s3 + $0x538] sm:$0xff] }
 0x19f   :  { %6084 = vmatprep.subr.bf16.mxu0 %v9014_v46  ;;  %v9035_v35 = vld [vmem:[%s13331_s5 + $0x4b4] ss:$40 sps:$4 sm:$0xff]   ;;  %v7975_v27 = vcombine.high %v415_v30, %v419_v32  ;;  %v9033_v28 = vld [vmem:[%s13331_s5 + $0x4b0] ss:$40 sps:$4 sm:$0xff]   ;;  %v7974_v39 = vcombine.low %v415_v30, %v419_v32 }
 0x1a0   :  { %v423_v36 = vld [vmem:[%s13329_s3 + $0x558] sm:$0xff] }
 0x1a1   :  { %2101 = vmatpush1.bf16.msra.mxu1 %v7910_v49  ;;  %v427_v37 = vld [vmem:[%s13329_s3 + $0x578] sm:$0xff] }
 0x1a2   :  { %2102 = vmatprep.subr.bf16.mxu1 %v7919_v50  ;;  %6085 = vmatpush1.bf16.msra.mxu0 %v9012_v51  ;;  %v7983_v40 = vcombine.high %v423_v36, %v427_v37  ;;  %v431_v47 = vld [vmem:[%s13329_s3 + $0x598] sm:$0xff]  ;;  %v7982_v42 = vcombine.low %v423_v36, %v427_v37 }
 0x1a3   :  { %6086 = vmatprep.subr.bf16.mxu0 %v9017_v56  ;;  %v435_v41 = vld [vmem:[%s13329_s3 + $0x5b8] sm:$0xff] }
 0x1a4   :  { %v7991_v43 = vcombine.high %v431_v47, %v435_v41  ;;  %v439_v45 = vld [vmem:[%s13329_s3 + $0x5d8] sm:$0xff]  ;;  %v7990_v51 = vcombine.low %v431_v47, %v435_v41  ;;  %v9069_v41 = vld [vmem:[%s13331_s5 + $0x5a0] ss:$40 sps:$4 sm:$0xff]  }
 0x1a5   :  { %2103 = vmatpush1.bf16.msra.mxu1 %v7918_v57  ;;  %v443_v46 = vld [vmem:[%s13329_s3 + $0x5f8] sm:$0xff] }
 0x1a6   :  { %2104 = vmatprep.subr.bf16.mxu1 %v7927_v58  ;;  %6087 = vmatpush1.bf16.msra.mxu0 %v9015_v59  ;;  %v7999_v55 = vcombine.high %v439_v45, %v443_v46  ;;  %v447_v56 = vld [vmem:[%s13329_s3 + $0x618] sm:$0xff]  ;;  %v7998_v58 = vcombine.low %v439_v45, %v443_v46 }
 0x1a7   :  { %6088 = vmatprep.subr.bf16.mxu0 %v9020_v62  ;;  %v451_v57 = vld [vmem:[%s13329_s3 + $0x638] sm:$0xff] }
 0x1a8   :  { %v8007_v59 = vcombine.high %v447_v56, %v451_v57  ;;  %v455_v61 = vld [vmem:[%s13329_s3 + $0x658] sm:$0xff] }
 0x1a9   :  { %2105 = vmatpush1.bf16.msra.mxu1 %v7926_v63  ;;  %v459_v62 = vld [vmem:[%s13329_s3 + $0x678] sm:$0xff]  ;;  %v8006_v63 = vcombine.low %v447_v56, %v451_v57  ;;  %v9038_v56 = vld [vmem:[%s13331_s5 + $0xc] ss:$40 sps:$4 sm:$0xff]  }
 0x1aa   :  { %2106 = vmatprep.subr.bf16.mxu1 %v7935_v0  ;;  %6089 = vmatpush1.bf16.msra.mxu0 %v9018_v1  ;;  %v513_v0 = vrot.slane %v11051_v60, %v10386_v33  ;;  %v8015_v1 = vcombine.high %v455_v61, %v459_v62  ;;  %v463_v4 = vld [vmem:[%s13329_s3 + $0x698] sm:$0xff] }
 0x1ab   :  { %6090 = vmatprep.subr.bf16.mxu0 %v9023_v5  ;;  %v467_v5 = vld [vmem:[%s13329_s3 + $0x6b8] sm:$0xff] }
 0x1ac   :  { %v479_v24 = vld [vmem:[%s13329_s3 + $0x718] sm:$0xff] }
 0x1ad   :  { %2107 = vmatpush1.bf16.msra.mxu1 %v7934_v6  ;;  %v8014_v6 = vcombine.low %v455_v61, %v459_v62  ;;  %v9063_v36 = vld [vmem:[%s13331_s5 + $0x550] ss:$40 sps:$4 sm:$0xff]   ;;  %v9089_v57 = vld [vmem:[%s13331_s5 + $0x694] ss:$40 sps:$4 sm:$0xff]   ;;  %v9095_v62 = vld [vmem:[%s13331_s5 + $0x6e4] ss:$40 sps:$4 sm:$0xff]  }
 0x1ae   :  { %2117 = vmatprep.subr.bf16.mxu1 %v7943_v7  ;;  %6091 = vmatpush1.bf16.msra.mxu0 %v9021_v8  ;;  %v8023_v8 = vcombine.high %v463_v4, %v467_v5  ;;  %v507_v45 = vld [vmem:[%s13329_s3 + $0x7f8] sm:$0xff] }
 0x1af   :  { %6092 = vmatprep.subr.bf16.mxu0 %v9026_v11  ;;  %v471_v11 = vld [vmem:[%s13329_s3 + $0x6d8] sm:$0xff] }
 0x1b0   :  { %2109 = vmatmul.mubr.bf16.vlgmr.msra.gmra.mrb[8].mxu1 %v10401_v48  ;;  %v9032_v48 = vld [vmem:[%s13331_s5 + $0x464] ss:$40 sps:$4 sm:$0xff]   ;;  %v9087_v61 = vld [vmem:[%s13331_s5 + $0x690] ss:$40 sps:$4 sm:$0xff]  }
 0x1b1   :  { %2118 = vmatpush1.bf16.msra.mxu1 %v7942_v12  ;;  %2149 = vmatprep.mubr.bf16.mxu1 %v10446_v16  ;;  %v7958_v16 = vcombine.low %v399_v17, %v403_v18  ;;  %v475_v12 = vld [vmem:[%s13329_s3 + $0x6f8] sm:$0xff]  ;;  %v8022_v18 = vcombine.low %v463_v4, %v467_v5 }
 0x1b2   :  { %2119 = vmatprep.subr.bf16.mxu1 %v7951_v13  ;;  %6093 = vmatpush1.bf16.msra.mxu0 %v9024_v14  ;;  %v9047_v4 = vld [vmem:[%s13331_s5 + $0xfc] ss:$40 sps:$4 sm:$0xff]   ;;  %v9099_v5 = vld [vmem:[%s13331_s5 + $0x730] ss:$40 sps:$4 sm:$0xff]  }
 0x1b3   :  { %6094 = vmatprep.subr.bf16.mxu0 %v9029_v19 }
 0x1b5   :  { %2120 = vmatpush1.bf16.msra.mxu1 %v7950_v20 }
 0x1b6   :  { %2121 = vmatprep.subr.bf16.mxu1 %v7959_v21  ;;  %6095 = vmatpush1.bf16.msra.mxu0 %v9027_v22  ;;  %v8031_v21 = vcombine.high %v471_v11, %v475_v12 }
 0x1b7   :  { %6096 = vmatprep.subr.bf16.mxu0 %v9032_v48  ;;  %v483_v48 = vld [vmem:[%s13329_s3 + $0x738] sm:$0xff] }
 0x1b8   :  { %v8039_v32 = vcombine.high %v479_v24, %v483_v48 }
 0x1b9   :  { %2122 = vmatpush1.bf16.msra.mxu1 %v7958_v16 }
 0x1ba   :  { %2123 = vmatprep.subr.bf16.mxu1 %v7967_v25  ;;  %6097 = vmatpush1.bf16.msra.mxu0 %v9030_v29  ;;  %v8030_v25 = vcombine.low %v471_v11, %v475_v12  ;;  %v9057_v29 = vld [vmem:[%s13331_s5 + $0x500] ss:$40 sps:$4 sm:$0xff]   ;;  %v9053_v12 = vld [vmem:[%s13331_s5 + $0x19c] ss:$40 sps:$4 sm:$0xff]  }
 0x1bb   :  { %6098 = vmatprep.subr.bf16.mxu0 %v9035_v35  ;;  %v9065_v35 = vld [vmem:[%s13331_s5 + $0x554] ss:$40 sps:$4 sm:$0xff]   ;;  %v9048_v11 = vld [vmem:[%s13331_s5 + $0x148] ss:$40 sps:$4 sm:$0xff]  }
 0x1bd   :  { %2124 = vmatpush1.bf16.msra.mxu1 %v7966_v26  ;;  %v487_v26 = vld [vmem:[%s13329_s3 + $0x758] sm:$0xff] }
 0x1be   :  { %2125 = vmatprep.subr.bf16.mxu1 %v7975_v27  ;;  %6099 = vmatpush1.bf16.msra.mxu0 %v9033_v28  ;;  %v491_v27 = vld [vmem:[%s13329_s3 + $0x778] sm:$0xff]  ;;  %v8038_v28 = vcombine.low %v479_v24, %v483_v48  ;;  %v9131_v24 = vld [vmem:[%s13331_s5 + $0x8c4] ss:$40 sps:$4 sm:$0xff]  }
 0x1bf   :  { %6109 = vmatprep.subr.bf16.mxu0 %v9059_v38  ;;  %v8047_v37 = vcombine.high %v487_v26, %v491_v27  ;;  %v9071_v38 = vld [vmem:[%s13331_s5 + $0x5a4] ss:$40 sps:$4 sm:$0xff]   ;;  %v8046_v47 = vcombine.low %v487_v26, %v491_v27  ;;  %v9060_v48 = vld [vmem:[%s13331_s5 + $0x238] ss:$40 sps:$4 sm:$0xff]  }
 0x1c0   :  { %v9074_v26 = vld [vmem:[%s13331_s5 + $0x2dc] ss:$40 sps:$4 sm:$0xff]   ;;  %v9135_v27 = vld [vmem:[%s13331_s5 + $0x910] ss:$40 sps:$4 sm:$0xff]  }
 0x1c1   :  { %2126 = vmatpush1.bf16.msra.mxu1 %v7974_v39  ;;  %v495_v39 = vld [vmem:[%s13329_s3 + $0x798] sm:$0xff] }
 0x1c2   :  { %2127 = vmatprep.subr.bf16.mxu1 %v7983_v40  ;;  %v499_v40 = vld [vmem:[%s13329_s3 + $0x7b8] sm:$0xff] }
 0x1c3   :  { %v1864_v44 = vpop.f32.mrb[0].mxu1  ;;  %v8054_v46 = vcombine.low %v495_v39, %v499_v40 }
 0x1c4   :  { %v1866_v49 = vpop.f32.mrb[1].mxu1  ;;  %v1865_v7 = vadd.f32 %v1864_v44, %v513_v0  ;;  %v503_v44 = vld [vmem:[%s13329_s3 + $0x7d8] sm:$0xff]  ;;  %v9044_v0 = vld [vmem:[%s13331_s5 + $0xac] ss:$40 sps:$4 sm:$0xff]  }
 0x1c5   :  { %2128 = vmatpush1.bf16.msra.mxu1 %v7982_v42  ;;  %v1868_v50 = vpop.f32.mrb[2].mxu1  ;;  %v1867_v9 = vadd.f32 %v1866_v49, %v517_v2  ;;  %v8055_v42 = vcombine.high %v495_v39, %v499_v40  ;;  %v9075_v49 = vld [vmem:[%s13331_s5 + $0x5f0] ss:$40 sps:$4 sm:$0xff]   ;;  %v9149_v39 = vld [vmem:[%s13331_s5 + $0x9b4] ss:$40 sps:$4 sm:$0xff]  }
 0x1c6   :  { %v1869_v53 = vpop.f32.mrb[3].mxu1  ;;  %2129 = vmatprep.subr.bf16.mxu1 %v7991_v43  ;;  %v9077_v43 = vld [vmem:[%s13331_s5 + $0x5f4] ss:$40 sps:$4 sm:$0xff]   ;;  %v8063_v50 = vcombine.high %v503_v44, %v507_v45  ;;  %v9042_v2 = vld [vmem:[%s13331_s5 + $0xa8] ss:$40 sps:$4 sm:$0xff]  }
 0x1c7   :  { %v8062_v53 = vcombine.low %v503_v44, %v507_v45  ;;  %v9078_v40 = vld [vmem:[%s13331_s5 + $0x328] ss:$40 sps:$4 sm:$0xff]   ;;  %v9092_v44 = vld [vmem:[%s13331_s5 + $0x3cc] ss:$40 sps:$4 sm:$0xff]  }
 0x1c8   :  { %v9090_v45 = vld [vmem:[%s13331_s5 + $0x3c8] ss:$40 sps:$4 sm:$0xff]  }
 0x1c9   :  { %2130 = vmatpush1.bf16.msra.mxu1 %v7990_v51  ;;  %v9083_v51 = vld [vmem:[%s13331_s5 + $0x644] ss:$40 sps:$4 sm:$0xff]  }
 0x1ca   :  { %2131 = vmatprep.subr.bf16.mxu1 %v7999_v55  ;;  %v9081_v55 = vld [vmem:[%s13331_s5 + $0x640] ss:$40 sps:$4 sm:$0xff]  }
 0x1cd   :  { %2132 = vmatpush1.bf16.msra.mxu1 %v7998_v58  ;;  %v9036_v58 = vld [vmem:[%s13331_s5 + $0x8] ss:$40 sps:$4 sm:$0xff]  }
 0x1ce   :  { %2133 = vmatprep.subr.bf16.mxu1 %v8007_v59  ;;  %v9041_v59 = vld [vmem:[%s13331_s5 + $0x5c] ss:$40 sps:$4 sm:$0xff]  }
 0x1d1   :  { %2134 = vmatpush1.bf16.msra.mxu1 %v8006_v63  ;;  %v9039_v63 = vld [vmem:[%s13331_s5 + $0x58] ss:$40 sps:$4 sm:$0xff]  }
 0x1d2   :  { %2135 = vmatprep.subr.bf16.mxu1 %v8015_v1  ;;  %v9093_v1 = vld [vmem:[%s13331_s5 + $0x6e0] ss:$40 sps:$4 sm:$0xff]  }
 0x1d3   :  { %v1905_v10 = vpop.f32.mrb[8].mxu0 }
 0x1d4   :  { %v1906_v13 = vadd.f32 %v1905_v10, %v1865_v7  ;;  %v1907_v14 = vpop.f32.mrb[9].mxu0  ;;  %v9045_v7 = vld [vmem:[%s13331_s5 + $0xf8] ss:$40 sps:$4 sm:$0xff]   ;;  %v9113_v10 = vld [vmem:[%s13331_s5 + $0x7d4] ss:$40 sps:$4 sm:$0xff]  }
 0x1d5   :  { %v1908_v17 = vadd.f32 %v1907_v14, %v1867_v9  ;;  %2136 = vmatpush1.bf16.msra.mxu1 %v8014_v6  ;;  %v1909_v19 = vpop.f32.mrb[10].mxu0  ;;  %v9107_v6 = vld [vmem:[%s13331_s5 + $0x784] ss:$40 sps:$4 sm:$0xff]   ;;  %v9105_v9 = vld [vmem:[%s13331_s5 + $0x780] ss:$40 sps:$4 sm:$0xff]  }
 0x1d6   :  { %v2158_v20 = vmax.f32 %v1906_v13, 0.0  ;;  %2137 = vmatprep.subr.bf16.mxu1 %v8023_v8  ;;  %v1910_v22 = vpop.f32.mrb[11].mxu0  ;;  %v9050_v8 = vld [vmem:[%s13331_s5 + $0x14c] ss:$40 sps:$4 sm:$0xff]   ;;  %v9111_v13 = vld [vmem:[%s13331_s5 + $0x7d0] ss:$40 sps:$4 sm:$0xff]  }
 0x1d7   :  { %v2159_v23 = vmax.f32 %v1908_v17, 0.0  ;;  %v9119_v14 = vld [vmem:[%s13331_s5 + $0x824] ss:$40 sps:$4 sm:$0xff]   ;;  %v9051_v17 = vld [vmem:[%s13331_s5 + $0x198] ss:$40 sps:$4 sm:$0xff]  }
 0x1d8   :  { %v11086_v30 = vpack.c.bf16 %v2158_v20, %v2158_v20  ;;  %v9117_v19 = vld [vmem:[%s13331_s5 + $0x820] ss:$40 sps:$4 sm:$0xff]   ;;  %v9125_v20 = vld [vmem:[%s13331_s5 + $0x874] ss:$40 sps:$4 sm:$0xff]  }
 0x1d9   :  { %v11081_v16 = vpack.c.bf16 %v2159_v23, %v2159_v23  ;;  %2138 = vmatpush1.bf16.msra.mxu1 %v8022_v18  ;;  %v9056_v18 = vld [vmem:[%s13331_s5 + $0x1ec] ss:$40 sps:$4 sm:$0xff]   ;;  %v9062_v22 = vld [vmem:[%s13331_s5 + $0x23c] ss:$40 sps:$4 sm:$0xff]   ;;  %v9123_v23 = vld [vmem:[%s13331_s5 + $0x870] ss:$40 sps:$4 sm:$0xff]  }
 0x1da   :  { %2139 = vmatprep.subr.bf16.mxu1 %v8031_v21  ;;  %v9054_v21 = vld [vmem:[%s13331_s5 + $0x1e8] ss:$40 sps:$4 sm:$0xff]  }
 0x1db   :  { %6100 = vmatprep.mubr.bf16.mxu0 %v11081_v16 }
 0x1dc   :  { %6101 = vmatmul.mubr.bf16.vlgmr.msra.gmra.mrb[16].mxu0 %v11086_v30 }
 0x1dd   :  { %2140 = vmatpush1.bf16.msra.mxu1 %v8030_v25  ;;  %6110 = vmatpush1.bf16.msra.mxu0 %v9057_v29  ;;  %v9068_v25 = vld [vmem:[%s13331_s5 + $0x28c] ss:$40 sps:$4 sm:$0xff]   ;;  %v9129_v29 = vld [vmem:[%s13331_s5 + $0x8c0] ss:$40 sps:$4 sm:$0xff]  }
 0x1de   :  { %2141 = vmatprep.subr.bf16.mxu1 %v8039_v32  ;;  %6111 = vmatprep.subr.bf16.mxu0 %v9065_v35  ;;  %v9137_v32 = vld [vmem:[%s13331_s5 + $0x914] ss:$40 sps:$4 sm:$0xff]   ;;  %v9066_v35 = vld [vmem:[%s13331_s5 + $0x288] ss:$40 sps:$4 sm:$0xff]  }
 0x1e1   :  { %2142 = vmatpush1.bf16.msra.mxu1 %v8038_v28  ;;  %6112 = vmatpush1.bf16.msra.mxu0 %v9063_v36  ;;  %v9143_v28 = vld [vmem:[%s13331_s5 + $0x964] ss:$40 sps:$4 sm:$0xff]   ;;  %v9072_v36 = vld [vmem:[%s13331_s5 + $0x2d8] ss:$40 sps:$4 sm:$0xff]  }
 0x1e2   :  { %2143 = vmatprep.subr.bf16.mxu1 %v8047_v37  ;;  %6113 = vmatprep.subr.bf16.mxu0 %v9071_v38  ;;  %v9080_v37 = vld [vmem:[%s13331_s5 + $0x32c] ss:$40 sps:$4 sm:$0xff]   ;;  %v9141_v38 = vld [vmem:[%s13331_s5 + $0x960] ss:$40 sps:$4 sm:$0xff]  }
 0x1e5   :  { %2144 = vmatpush1.bf16.msra.mxu1 %v8046_v47  ;;  %6114 = vmatpush1.bf16.msra.mxu0 %v9069_v41  ;;  %v9086_v47 = vld [vmem:[%s13331_s5 + $0x37c] ss:$40 sps:$4 sm:$0xff]   ;;  %v9147_v41 = vld [vmem:[%s13331_s5 + $0x9b0] ss:$40 sps:$4 sm:$0xff]  }
 0x1e6   :  { %2145 = vmatprep.subr.bf16.mxu1 %v8055_v42  ;;  %6115 = vmatprep.subr.bf16.mxu0 %v9077_v43  ;;  %v9155_v42 = vld [vmem:[%s13331_s5 + $0xa04] ss:$40 sps:$4 sm:$0xff]   ;;  %v9084_v43 = vld [vmem:[%s13331_s5 + $0x378] ss:$40 sps:$4 sm:$0xff]  }
 0x1e9   :  { %2146 = vmatpush1.bf16.msra.mxu1 %v8054_v46  ;;  %6116 = vmatpush1.bf16.msra.mxu0 %v9075_v49  ;;  %v9098_v46 = vld [vmem:[%s13331_s5 + $0x41c] ss:$40 sps:$4 sm:$0xff]   ;;  %v9096_v49 = vld [vmem:[%s13331_s5 + $0x418] ss:$40 sps:$4 sm:$0xff]  }
 0x1ea   :  { %2147 = vmatprep.subr.bf16.mxu1 %v8063_v50  ;;  %6117 = vmatprep.subr.bf16.mxu0 %v9083_v51  ;;  %v9104_v50 = vld [vmem:[%s13331_s5 + $0x46c] ss:$40 sps:$4 sm:$0xff]   ;;  %v9102_v51 = vld [vmem:[%s13331_s5 + $0x468] ss:$40 sps:$4 sm:$0xff]  }
 0x1ed   :  { %2148 = vmatpush1.bf16.msra.mxu1 %v8062_v53  ;;  %6118 = vmatpush1.bf16.msra.mxu0 %v9081_v55  ;;  %v9110_v53 = vld [vmem:[%s13331_s5 + $0x4bc] ss:$40 sps:$4 sm:$0xff]   ;;  %v9108_v55 = vld [vmem:[%s13331_s5 + $0x4b8] ss:$40 sps:$4 sm:$0xff]  }
 0x1ee   :  { %6232 = vmatprep.subr.bf16.mxu1 %v9038_v56  ;;  %6119 = vmatprep.subr.bf16.mxu0 %v9089_v57  ;;  %v9116_v56 = vld [vmem:[%s13331_s5 + $0x50c] ss:$40 sps:$4 sm:$0xff]   ;;  %v9114_v57 = vld [vmem:[%s13331_s5 + $0x508] ss:$40 sps:$4 sm:$0xff]  }
 0x1f0   :  { %2150 = vmatmul.mubr.bf16.vlgmr.msra.gmra.mrb[8].mxu1 %v10444_v15  ;;  %v9101_v15 = vld [vmem:[%s13331_s5 + $0x734] ss:$40 sps:$4 sm:$0xff]  }
 0x1f1   :  { %6233 = vmatpush1.bf16.msra.mxu1 %v9036_v58  ;;  %6264 = vmatprep.mubr.bf16.mxu1 %v11081_v16  ;;  %v9122_v58 = vld [vmem:[%s13331_s5 + $0x55c] ss:$40 sps:$4 sm:$0xff]  }
 0x1f2   :  { %6234 = vmatprep.subr.bf16.mxu1 %v9041_v59  ;;  %6120 = vmatpush1.bf16.msra.mxu0 %v9087_v61  ;;  %v9120_v59 = vld [vmem:[%s13331_s5 + $0x558] ss:$40 sps:$4 sm:$0xff]   ;;  %v9128_v61 = vld [vmem:[%s13331_s5 + $0x5ac] ss:$40 sps:$4 sm:$0xff]  }
 0x1f3   :  { %6121 = vmatprep.subr.bf16.mxu0 %v9095_v62  ;;  %v9126_v62 = vld [vmem:[%s13331_s5 + $0x5a8] ss:$40 sps:$4 sm:$0xff]  }
 0x1f5   :  { %6235 = vmatpush1.bf16.msra.mxu1 %v9039_v63  ;;  %v9134_v63 = vld [vmem:[%s13331_s5 + $0x5fc] ss:$40 sps:$4 sm:$0xff]  }
 0x1f6   :  { %6236 = vmatprep.subr.bf16.mxu1 %v9044_v0  ;;  %6122 = vmatpush1.bf16.msra.mxu0 %v9093_v1  ;;  %v9132_v0 = vld [vmem:[%s13331_s5 + $0x5f8] ss:$40 sps:$4 sm:$0xff]   ;;  %v9140_v1 = vld [vmem:[%s13331_s5 + $0x64c] ss:$40 sps:$4 sm:$0xff]  }
 0x1f7   :  { %6123 = vmatprep.subr.bf16.mxu0 %v9101_v15  ;;  %v9138_v15 = vld [vmem:[%s13331_s5 + $0x648] ss:$40 sps:$4 sm:$0xff]  }
 0x1f9   :  { %6237 = vmatpush1.bf16.msra.mxu1 %v9042_v2  ;;  %v9146_v2 = vld [vmem:[%s13331_s5 + $0x69c] ss:$40 sps:$4 sm:$0xff]  }
 0x1fa   :  { %6238 = vmatprep.subr.bf16.mxu1 %v9047_v4  ;;  %6124 = vmatpush1.bf16.msra.mxu0 %v9099_v5  ;;  %v521_v4 = vrot.slane %v11051_v60, %v10412_v52  ;;  %v525_v5 = vrot.slane %v11051_v60, %v10416_v54 }
 0x1fb   :  { %6125 = vmatprep.subr.bf16.mxu0 %v9107_v6  ;;  %v9144_v6 = vld [vmem:[%s13331_s5 + $0x698] ss:$40 sps:$4 sm:$0xff]  }
 0x1fd   :  { %6239 = vmatpush1.bf16.msra.mxu1 %v9045_v7  ;;  %v9152_v7 = vld [vmem:[%s13331_s5 + $0x6ec] ss:$40 sps:$4 sm:$0xff]  }
 0x1fe   :  { %6240 = vmatprep.subr.bf16.mxu1 %v9050_v8  ;;  %6126 = vmatpush1.bf16.msra.mxu0 %v9105_v9 }
 0x1ff   :  { %6127 = vmatprep.subr.bf16.mxu0 %v9113_v10 }
 0x201   :  { %6241 = vmatpush1.bf16.msra.mxu1 %v9048_v11 }
 0x202   :  { %6242 = vmatprep.subr.bf16.mxu1 %v9053_v12  ;;  %6128 = vmatpush1.bf16.msra.mxu0 %v9111_v13  ;;  %v9150_v13 = vld [vmem:[%s13331_s5 + $0x6e8] ss:$40 sps:$4 sm:$0xff]  }
 0x203   :  { %6129 = vmatprep.subr.bf16.mxu0 %v9119_v14 }
 0x205   :  { %6243 = vmatpush1.bf16.msra.mxu1 %v9051_v17 }
 0x206   :  { %6244 = vmatprep.subr.bf16.mxu1 %v9056_v18  ;;  %6130 = vmatpush1.bf16.msra.mxu0 %v9117_v19  ;;  %v9158_v18 = vld [vmem:[%s13331_s5 + $0x73c] ss:$40 sps:$4 sm:$0xff]  }
 0x207   :  { %6131 = vmatprep.subr.bf16.mxu0 %v9125_v20 }
 0x209   :  { %6245 = vmatpush1.bf16.msra.mxu1 %v9054_v21  ;;  %v9153_v21 = vld [vmem:[%s13331_s5 + $0xa00] ss:$40 sps:$4 sm:$0xff]  }
 0x20a   :  { %6246 = vmatprep.subr.bf16.mxu1 %v9062_v22  ;;  %6132 = vmatpush1.bf16.msra.mxu0 %v9123_v23  ;;  %v9156_v22 = vld [vmem:[%s13331_s5 + $0x738] ss:$40 sps:$4 sm:$0xff]  }
 0x20b   :  { %6133 = vmatprep.subr.bf16.mxu0 %v9131_v24  ;;  %v9161_v24 = vld [vmem:[%s13331_s5 + $0xa54] ss:$40 sps:$4 sm:$0xff]  }
 0x20d   :  { %6247 = vmatpush1.bf16.msra.mxu1 %v9060_v48  ;;  %v9164_v48 = vld [vmem:[%s13331_s5 + $0x78c] ss:$40 sps:$4 sm:$0xff]  }
 0x20e   :  { %6248 = vmatprep.subr.bf16.mxu1 %v9068_v25  ;;  %6134 = vmatpush1.bf16.msra.mxu0 %v9129_v29  ;;  %v9159_v25 = vld [vmem:[%s13331_s5 + $0xa50] ss:$40 sps:$4 sm:$0xff]  }
 0x20f   :  { %6135 = vmatprep.subr.bf16.mxu0 %v9137_v32  ;;  %v9162_v29 = vld [vmem:[%s13331_s5 + $0x788] ss:$40 sps:$4 sm:$0xff]   ;;  %v9167_v32 = vld [vmem:[%s13331_s5 + $0xaa4] ss:$40 sps:$4 sm:$0xff]  }
 0x211   :  { %6249 = vmatpush1.bf16.msra.mxu1 %v9066_v35  ;;  %v532_v35 = vsub.s32 5, %v10380_v31 }
 0x212   :  { %6250 = vmatprep.subr.bf16.mxu1 %v9074_v26  ;;  %6136 = vmatpush1.bf16.msra.mxu0 %v9135_v27  ;;  %v9170_v26 = vld [vmem:[%s13331_s5 + $0x7dc] ss:$40 sps:$4 sm:$0xff]   ;;  %v9165_v27 = vld [vmem:[%s13331_s5 + $0xaa0] ss:$40 sps:$4 sm:$0xff]  }
 0x213   :  { %6137 = vmatprep.subr.bf16.mxu0 %v9143_v28  ;;  %v9168_v28 = vld [vmem:[%s13331_s5 + $0x7d8] ss:$40 sps:$4 sm:$0xff]  }
 0x215   :  { %6251 = vmatpush1.bf16.msra.mxu1 %v9072_v36  ;;  %v533_v36 = vrot.slane %v11051_v60, %v532_v35 }
 0x216   :  { %6252 = vmatprep.subr.bf16.mxu1 %v9080_v37  ;;  %6138 = vmatpush1.bf16.msra.mxu0 %v9141_v38  ;;  %v9173_v37 = vld [vmem:[%s13331_s5 + $0xaf4] ss:$40 sps:$4 sm:$0xff]  }
 0x217   :  { %6139 = vmatprep.subr.bf16.mxu0 %v9149_v39  ;;  %v9176_v38 = vld [vmem:[%s13331_s5 + $0x82c] ss:$40 sps:$4 sm:$0xff]  }
 0x219   :  { %6253 = vmatpush1.bf16.msra.mxu1 %v9078_v40 }
 0x21a   :  { %6254 = vmatprep.subr.bf16.mxu1 %v9086_v47  ;;  %6140 = vmatpush1.bf16.msra.mxu0 %v9147_v41  ;;  %v9171_v47 = vld [vmem:[%s13331_s5 + $0xaf0] ss:$40 sps:$4 sm:$0xff]  }
 0x21b   :  { %6150 = vmatprep.subr.bf16.mxu0 %v9155_v42  ;;  %v9174_v41 = vld [vmem:[%s13331_s5 + $0x828] ss:$40 sps:$4 sm:$0xff]  }
 0x21d   :  { %6255 = vmatpush1.bf16.msra.mxu1 %v9084_v43 }
 0x21e   :  { %6256 = vmatprep.subr.bf16.mxu1 %v9092_v44  ;;  %v9179_v44 = vld [vmem:[%s13331_s5 + $0xb44] ss:$40 sps:$4 sm:$0xff]  }
 0x221   :  { %6257 = vmatpush1.bf16.msra.mxu1 %v9090_v45  ;;  %v9182_v45 = vld [vmem:[%s13331_s5 + $0x87c] ss:$40 sps:$4 sm:$0xff]  }
 0x222   :  { %6258 = vmatprep.subr.bf16.mxu1 %v9098_v46 }
 0x225   :  { %6259 = vmatpush1.bf16.msra.mxu1 %v9096_v49 }
 0x226   :  { %6260 = vmatprep.subr.bf16.mxu1 %v9104_v50  ;;  %v9177_v50 = vld [vmem:[%s13331_s5 + $0xb40] ss:$40 sps:$4 sm:$0xff]  }
 0x229   :  { %6261 = vmatpush1.bf16.msra.mxu1 %v9102_v51  ;;  %v9180_v51 = vld [vmem:[%s13331_s5 + $0x878] ss:$40 sps:$4 sm:$0xff]  }
 0x22a   :  { %6262 = vmatprep.subr.bf16.mxu1 %v9110_v53 }
 0x22d   :  { %6263 = vmatpush1.bf16.msra.mxu1 %v9108_v55  ;;  %v9185_v55 = vld [vmem:[%s13331_s5 + $0xb94] ss:$40 sps:$4 sm:$0xff]  }
 0x22e   :  { %6273 = vmatprep.subr.bf16.mxu1 %v9116_v56  ;;  %v9188_v56 = vld [vmem:[%s13331_s5 + $0x8cc] ss:$40 sps:$4 sm:$0xff]  }
 0x230   :  { %6265 = vmatmul.mubr.bf16.vlgmr.msra.gmra.mrb[12].mxu1 %v11086_v30 }
 0x231   :  { %6274 = vmatpush1.bf16.msra.mxu1 %v9114_v57  ;;  %v9183_v57 = vld [vmem:[%s13331_s5 + $0xb90] ss:$40 sps:$4 sm:$0xff]  }
 0x232   :  { %6275 = vmatprep.subr.bf16.mxu1 %v9122_v58  ;;  %v9186_v58 = vld [vmem:[%s13331_s5 + $0x8c8] ss:$40 sps:$4 sm:$0xff]  }
 0x235   :  { %6276 = vmatpush1.bf16.msra.mxu1 %v9120_v59  ;;  %v9191_v59 = vld [vmem:[%s13331_s5 + $0xbe4] ss:$40 sps:$4 sm:$0xff]  }
 0x236   :  { %6277 = vmatprep.subr.bf16.mxu1 %v9128_v61  ;;  %v9194_v61 = vld [vmem:[%s13331_s5 + $0x91c] ss:$40 sps:$4 sm:$0xff]  }
 0x239   :  { %6278 = vmatpush1.bf16.msra.mxu1 %v9126_v62  ;;  %v9189_v62 = vld [vmem:[%s13331_s5 + $0xbe0] ss:$40 sps:$4 sm:$0xff]  }
 0x23a   :  { %6279 = vmatprep.subr.bf16.mxu1 %v9134_v63  ;;  %v9192_v63 = vld [vmem:[%s13331_s5 + $0x918] ss:$40 sps:$4 sm:$0xff]  }
 0x23d   :  { %6280 = vmatpush1.bf16.msra.mxu1 %v9132_v0  ;;  %v9197_v0 = vld [vmem:[%s13331_s5 + $0xc34] ss:$40 sps:$4 sm:$0xff]  }
 0x23e   :  { %6281 = vmatprep.subr.bf16.mxu1 %v9140_v1  ;;  %v9200_v1 = vld [vmem:[%s13331_s5 + $0x96c] ss:$40 sps:$4 sm:$0xff]  }
 0x241   :  { %6282 = vmatpush1.bf16.msra.mxu1 %v9138_v15  ;;  %v9195_v15 = vld [vmem:[%s13331_s5 + $0xc30] ss:$40 sps:$4 sm:$0xff]  }
 0x242   :  { %6283 = vmatprep.subr.bf16.mxu1 %v9146_v2  ;;  %v9198_v2 = vld [vmem:[%s13331_s5 + $0x968] ss:$40 sps:$4 sm:$0xff]  }
 0x243   :  { %v1987_v8 = vpop.f32.mrb[4].mxu1 }
 0x244   :  { %v8873_v9 = vadd.f32 %v1987_v8, %v521_v4  ;;  %v1989_v10 = vpop.f32.mrb[5].mxu1  ;;  %v9203_v4 = vld [vmem:[%s13331_s5 + $0xc84] ss:$40 sps:$4 sm:$0xff]   ;;  %v9209_v8 = vld [vmem:[%s13331_s5 + $0xcd4] ss:$40 sps:$4 sm:$0xff]  }
 0x245   :  { %v8874_v11 = vadd.f32 %v1989_v10, %v525_v5  ;;  %v1991_v12 = vpop.f32.mrb[6].mxu1  ;;  %6284 = vmatpush1.bf16.msra.mxu1 %v9144_v6  ;;  %v9206_v5 = vld [vmem:[%s13331_s5 + $0x9bc] ss:$40 sps:$4 sm:$0xff]   ;;  %v9201_v6 = vld [vmem:[%s13331_s5 + $0xc80] ss:$40 sps:$4 sm:$0xff]  }
 0x246   :  { %v2160_v14 = vmax.f32 %v8873_v9, 0.0  ;;  %v1992_v17 = vpop.f32.mrb[7].mxu1  ;;  %6285 = vmatprep.subr.bf16.mxu1 %v9152_v7  ;;  %v9204_v7 = vld [vmem:[%s13331_s5 + $0x9b8] ss:$40 sps:$4 sm:$0xff]   ;;  %v9212_v9 = vld [vmem:[%s13331_s5 + $0xa0c] ss:$40 sps:$4 sm:$0xff]  }
 0x247   :  { %v2161_v19 = vmax.f32 %v8874_v11, 0.0  ;;  %v9207_v10 = vld [vmem:[%s13331_s5 + $0xcd0] ss:$40 sps:$4 sm:$0xff]   ;;  %v9215_v12 = vld [vmem:[%s13331_s5 + $0xd24] ss:$40 sps:$4 sm:$0xff]  }
 0x248   :  { %v11357_v23 = vpack.c.bf16 %v2160_v14, %v2160_v14  ;;  %v9210_v11 = vld [vmem:[%s13331_s5 + $0xa08] ss:$40 sps:$4 sm:$0xff]   ;;  %v9216_v17 = vld [vmem:[%s13331_s5 + $0xa58] ss:$40 sps:$4 sm:$0xff]  }
 0x249   :  { %v11349_v20 = vpack.c.bf16 %v2161_v19, %v2161_v19  ;;  %6286 = vmatpush1.bf16.msra.mxu1 %v9150_v13  ;;  %v9218_v13 = vld [vmem:[%s13331_s5 + $0xa5c] ss:$40 sps:$4 sm:$0xff]   ;;  %v9213_v14 = vld [vmem:[%s13331_s5 + $0xd20] ss:$40 sps:$4 sm:$0xff]   ;;  %v9224_v19 = vld [vmem:[%s13331_s5 + $0xaac] ss:$40 sps:$4 sm:$0xff]  }
 0x24a   :  { %6287 = vmatprep.subr.bf16.mxu1 %v9158_v18  ;;  %v9221_v18 = vld [vmem:[%s13331_s5 + $0xd74] ss:$40 sps:$4 sm:$0xff]  }
 0x24b   :  { %6141 = vmatprep.mubr.bf16.mxu0 %v11349_v20  ;;  %6305 = vmatprep.mubr.bf16.mxu1 %v11349_v20 }
 0x24c   :  { %6142 = vmatmul.mubr.bf16.vlgmr.msra.gmra.mrb[16].mxu0 %v11357_v23 }
 0x24d   :  { %6151 = vmatpush1.bf16.msra.mxu0 %v9153_v21  ;;  %6288 = vmatpush1.bf16.msra.mxu1 %v9156_v22  ;;  %v9219_v21 = vld [vmem:[%s13331_s5 + $0xd70] ss:$40 sps:$4 sm:$0xff]  }
 0x24e   :  { %6152 = vmatprep.subr.bf16.mxu0 %v9161_v24  ;;  %6289 = vmatprep.subr.bf16.mxu1 %v9164_v48  ;;  %v9222_v22 = vld [vmem:[%s13331_s5 + $0xaa8] ss:$40 sps:$4 sm:$0xff]   ;;  %v9227_v24 = vld [vmem:[%s13331_s5 + $0xdc4] ss:$40 sps:$4 sm:$0xff]  }
 0x24f   :  { %v9230_v48 = vld [vmem:[%s13331_s5 + $0xafc] ss:$40 sps:$4 sm:$0xff]  }
 0x251   :  { %6153 = vmatpush1.bf16.msra.mxu0 %v9159_v25  ;;  %6290 = vmatpush1.bf16.msra.mxu1 %v9162_v29  ;;  %v9225_v25 = vld [vmem:[%s13331_s5 + $0xdc0] ss:$40 sps:$4 sm:$0xff]  }
 0x252   :  { %6154 = vmatprep.subr.bf16.mxu0 %v9167_v32  ;;  %6291 = vmatprep.subr.bf16.mxu1 %v9170_v26  ;;  %v9228_v29 = vld [vmem:[%s13331_s5 + $0xaf8] ss:$40 sps:$4 sm:$0xff]   ;;  %v528_v32 = vsub.s32 4, %v10380_v31  ;;  %v9233_v26 = vld [vmem:[%s13331_s5 + $0xe14] ss:$40 sps:$4 sm:$0xff]  }
 0x254   :  { %v11396_v39 = vpop.f32.mrb[12].mxu0 }
 0x255   :  { %v2071_v40 = vpop.f32.mrb[13].mxu0  ;;  %6155 = vmatpush1.bf16.msra.mxu0 %v9165_v27  ;;  %6292 = vmatpush1.bf16.msra.mxu1 %v9168_v28  ;;  %v9236_v27 = vld [vmem:[%s13331_s5 + $0xb4c] ss:$40 sps:$4 sm:$0xff]   ;;  %v9231_v28 = vld [vmem:[%s13331_s5 + $0xe10] ss:$40 sps:$4 sm:$0xff]  }
 0x256   :  { %v8876_v42 = vadd.f32 %v2071_v40, %v533_v36  ;;  %v2073_v43 = vpop.f32.mrb[14].mxu0  ;;  %6156 = vmatprep.subr.bf16.mxu0 %v9173_v37  ;;  %6293 = vmatprep.subr.bf16.mxu1 %v9176_v38  ;;  %v9234_v36 = vld [vmem:[%s13331_s5 + $0xb48] ss:$40 sps:$4 sm:$0xff]   ;;  %v529_v37 = vrot.slane %v11051_v60, %v528_v32  ;;  %v9239_v38 = vld [vmem:[%s13331_s5 + $0xe64] ss:$40 sps:$4 sm:$0xff]  }
 0x257   :  { %v2074_v46 = vpop.f32.mrb[15].mxu0  ;;  %v9242_v40 = vld [vmem:[%s13331_s5 + $0xb9c] ss:$40 sps:$4 sm:$0xff]  }
 0x258   :  { %v2163_v49 = vmax.f32 %v8876_v42, 0.0  ;;  %v8875_v42 = vadd.f32 %v11396_v39, %v529_v37  ;;  %v9245_v43 = vld [vmem:[%s13331_s5 + $0xeb4] ss:$40 sps:$4 sm:$0xff]   ;;  %v9246_v39 = vld [vmem:[%s13331_s5 + $0xbe8] ss:$40 sps:$4 sm:$0xff]  }
 0x259   :  { %6157 = vmatpush1.bf16.msra.mxu0 %v9171_v47  ;;  %6294 = vmatpush1.bf16.msra.mxu1 %v9174_v41  ;;  %v9237_v47 = vld [vmem:[%s13331_s5 + $0xe60] ss:$40 sps:$4 sm:$0xff]   ;;  %v9303_v37 = vld [vmem:[%s13331_s5 + $0x11d0] ss:$40 sps:$4 sm:$0xff]  }
 0x25a   :  { %v11416_v53 = vpack.c.bf16 %v2163_v49, %v2163_v49  ;;  %6158 = vmatprep.subr.bf16.mxu0 %v9179_v44  ;;  %6295 = vmatprep.subr.bf16.mxu1 %v9182_v45  ;;  %v9240_v41 = vld [vmem:[%s13331_s5 + $0xb98] ss:$40 sps:$4 sm:$0xff]   ;;  %v9248_v44 = vld [vmem:[%s13331_s5 + $0xbec] ss:$40 sps:$4 sm:$0xff]   ;;  %v2162_v46 = vmax.f32 %v8875_v42, 0.0 }
 0x25b   :  { %v9243_v45 = vld [vmem:[%s13331_s5 + $0xeb0] ss:$40 sps:$4 sm:$0xff]   ;;  %v9251_v49 = vld [vmem:[%s13331_s5 + $0xf04] ss:$40 sps:$4 sm:$0xff]  }
 0x25c   :  { %6182 = vmatprep.mubr.bf16.mxu0 %v11416_v53  ;;  %v9312_v42 = vld [vmem:[%s13331_s5 + $0xf58] ss:$40 sps:$4 sm:$0xff]  }
 0x25d   :  { %6159 = vmatpush1.bf16.msra.mxu0 %v9177_v50  ;;  %6296 = vmatpush1.bf16.msra.mxu1 %v9180_v51  ;;  %v9254_v50 = vld [vmem:[%s13331_s5 + $0xc3c] ss:$40 sps:$4 sm:$0xff]   ;;  %v9249_v51 = vld [vmem:[%s13331_s5 + $0xf00] ss:$40 sps:$4 sm:$0xff]  }
 0x25e   :  { %6160 = vmatprep.subr.bf16.mxu0 %v9185_v55  ;;  %6297 = vmatprep.subr.bf16.mxu1 %v9188_v56  ;;  %v9252_v55 = vld [vmem:[%s13331_s5 + $0xc38] ss:$40 sps:$4 sm:$0xff]   ;;  %v11570_v56 = vpack.c.bf16 %v2162_v46, %v2162_v46  ;;  %v9323_v46 = vld [vmem:[%s13331_s5 + $0x12c4] ss:$40 sps:$4 sm:$0xff]  }
 0x261   :  { %6161 = vmatpush1.bf16.msra.mxu0 %v9183_v57  ;;  %6298 = vmatpush1.bf16.msra.mxu1 %v9186_v58  ;;  %v9257_v57 = vld [vmem:[%s13331_s5 + $0xf54] ss:$40 sps:$4 sm:$0xff]  }
 0x262   :  { %6162 = vmatprep.subr.bf16.mxu0 %v9191_v59  ;;  %6299 = vmatprep.subr.bf16.mxu1 %v9194_v61  ;;  %v9260_v58 = vld [vmem:[%s13331_s5 + $0xc8c] ss:$40 sps:$4 sm:$0xff]   ;;  %v9255_v59 = vld [vmem:[%s13331_s5 + $0xf50] ss:$40 sps:$4 sm:$0xff]  }
 0x263   :  { %v9258_v61 = vld [vmem:[%s13331_s5 + $0xc88] ss:$40 sps:$4 sm:$0xff]  }
 0x265   :  { %6163 = vmatpush1.bf16.msra.mxu0 %v9189_v62  ;;  %6300 = vmatpush1.bf16.msra.mxu1 %v9192_v63  ;;  %v9263_v62 = vld [vmem:[%s13331_s5 + $0xfa4] ss:$40 sps:$4 sm:$0xff]  }
 0x266   :  { %6164 = vmatprep.subr.bf16.mxu0 %v9197_v0  ;;  %6301 = vmatprep.subr.bf16.mxu1 %v9200_v1  ;;  %v9266_v63 = vld [vmem:[%s13331_s5 + $0xcdc] ss:$40 sps:$4 sm:$0xff]   ;;  %v9261_v0 = vld [vmem:[%s13331_s5 + $0xfa0] ss:$40 sps:$4 sm:$0xff]  }
 0x267   :  { %v9264_v1 = vld [vmem:[%s13331_s5 + $0xcd8] ss:$40 sps:$4 sm:$0xff]  }
 0x269   :  { %6165 = vmatpush1.bf16.msra.mxu0 %v9195_v15  ;;  %6302 = vmatpush1.bf16.msra.mxu1 %v9198_v2  ;;  %v9269_v15 = vld [vmem:[%s13331_s5 + $0xff4] ss:$40 sps:$4 sm:$0xff]  }
 0x26a   :  { %6166 = vmatprep.subr.bf16.mxu0 %v9203_v4  ;;  %6303 = vmatprep.subr.bf16.mxu1 %v9206_v5  ;;  %v9272_v2 = vld [vmem:[%s13331_s5 + $0xd2c] ss:$40 sps:$4 sm:$0xff]   ;;  %v9267_v4 = vld [vmem:[%s13331_s5 + $0xff0] ss:$40 sps:$4 sm:$0xff]  }
 0x26b   :  { %v9270_v5 = vld [vmem:[%s13331_s5 + $0xd28] ss:$40 sps:$4 sm:$0xff]  }
 0x26d   :  { %6167 = vmatpush1.bf16.msra.mxu0 %v9201_v6  ;;  %6304 = vmatpush1.bf16.msra.mxu1 %v9204_v7  ;;  %v9275_v6 = vld [vmem:[%s13331_s5 + $0x1044] ss:$40 sps:$4 sm:$0xff]  }
 0x26e   :  { %6168 = vmatprep.subr.bf16.mxu0 %v9209_v8  ;;  %6314 = vmatprep.subr.bf16.mxu1 %v9212_v9  ;;  %v9278_v7 = vld [vmem:[%s13331_s5 + $0xd7c] ss:$40 sps:$4 sm:$0xff]   ;;  %v9273_v8 = vld [vmem:[%s13331_s5 + $0x1040] ss:$40 sps:$4 sm:$0xff]  }
 0x26f   :  { %v9276_v9 = vld [vmem:[%s13331_s5 + $0xd78] ss:$40 sps:$4 sm:$0xff]  }
 0x270   :  { %6306 = vmatmul.mubr.bf16.vlgmr.msra.gmra.mrb[12].mxu1 %v11357_v23 }
 0x271   :  { %6169 = vmatpush1.bf16.msra.mxu0 %v9207_v10  ;;  %6315 = vmatpush1.bf16.msra.mxu1 %v9210_v11  ;;  %v9281_v10 = vld [vmem:[%s13331_s5 + $0x1094] ss:$40 sps:$4 sm:$0xff]  }
 0x272   :  { %6346 = vmatprep.mubr.bf16.mxu1 %v11416_v53  ;;  %6170 = vmatprep.subr.bf16.mxu0 %v9215_v12  ;;  %v9284_v11 = vld [vmem:[%s13331_s5 + $0xdcc] ss:$40 sps:$4 sm:$0xff]   ;;  %v9279_v12 = vld [vmem:[%s13331_s5 + $0x1090] ss:$40 sps:$4 sm:$0xff]  }
 0x273   :  { %6316 = vmatprep.subr.bf16.mxu1 %v9218_v13  ;;  %v9282_v13 = vld [vmem:[%s13331_s5 + $0xdc8] ss:$40 sps:$4 sm:$0xff]  }
 0x275   :  { %6171 = vmatpush1.bf16.msra.mxu0 %v9213_v14  ;;  %6317 = vmatpush1.bf16.msra.mxu1 %v9216_v17  ;;  %v9287_v14 = vld [vmem:[%s13331_s5 + $0x10e4] ss:$40 sps:$4 sm:$0xff]  }
 0x276   :  { %6172 = vmatprep.subr.bf16.mxu0 %v9221_v18  ;;  %6318 = vmatprep.subr.bf16.mxu1 %v9224_v19  ;;  %v9290_v17 = vld [vmem:[%s13331_s5 + $0xe1c] ss:$40 sps:$4 sm:$0xff]   ;;  %v9285_v18 = vld [vmem:[%s13331_s5 + $0x10e0] ss:$40 sps:$4 sm:$0xff]  }
 0x277   :  { %v9288_v19 = vld [vmem:[%s13331_s5 + $0xe18] ss:$40 sps:$4 sm:$0xff]  }
 0x279   :  { %6173 = vmatpush1.bf16.msra.mxu0 %v9219_v21  ;;  %6319 = vmatpush1.bf16.msra.mxu1 %v9222_v22  ;;  %v9293_v21 = vld [vmem:[%s13331_s5 + $0x1134] ss:$40 sps:$4 sm:$0xff]  }
 0x27a   :  { %6174 = vmatprep.subr.bf16.mxu0 %v9227_v24  ;;  %6320 = vmatprep.subr.bf16.mxu1 %v9230_v48  ;;  %v9296_v22 = vld [vmem:[%s13331_s5 + $0xe6c] ss:$40 sps:$4 sm:$0xff]   ;;  %v9291_v24 = vld [vmem:[%s13331_s5 + $0x1130] ss:$40 sps:$4 sm:$0xff]  }
 0x27b   :  { %v9294_v48 = vld [vmem:[%s13331_s5 + $0xe68] ss:$40 sps:$4 sm:$0xff]  }
 0x27d   :  { %6175 = vmatpush1.bf16.msra.mxu0 %v9225_v25  ;;  %6321 = vmatpush1.bf16.msra.mxu1 %v9228_v29  ;;  %v9299_v25 = vld [vmem:[%s13331_s5 + $0x1184] ss:$40 sps:$4 sm:$0xff]  }
 0x27e   :  { %6176 = vmatprep.subr.bf16.mxu0 %v9233_v26  ;;  %6322 = vmatprep.subr.bf16.mxu1 %v9236_v27  ;;  %v9302_v29 = vld [vmem:[%s13331_s5 + $0xebc] ss:$40 sps:$4 sm:$0xff]   ;;  %v9297_v26 = vld [vmem:[%s13331_s5 + $0x1180] ss:$40 sps:$4 sm:$0xff]  }
 0x27f   :  { %v9300_v27 = vld [vmem:[%s13331_s5 + $0xeb8] ss:$40 sps:$4 sm:$0xff]  }
 0x281   :  { %6177 = vmatpush1.bf16.msra.mxu0 %v9231_v28  ;;  %6323 = vmatpush1.bf16.msra.mxu1 %v9234_v36  ;;  %v9305_v28 = vld [vmem:[%s13331_s5 + $0x11d4] ss:$40 sps:$4 sm:$0xff]  }
 0x282   :  { %6178 = vmatprep.subr.bf16.mxu0 %v9239_v38  ;;  %6324 = vmatprep.subr.bf16.mxu1 %v9242_v40  ;;  %v9308_v36 = vld [vmem:[%s13331_s5 + $0xf0c] ss:$40 sps:$4 sm:$0xff]   ;;  %v9306_v38 = vld [vmem:[%s13331_s5 + $0xf08] ss:$40 sps:$4 sm:$0xff]  }
 0x283   :  { %v9311_v40 = vld [vmem:[%s13331_s5 + $0x1224] ss:$40 sps:$4 sm:$0xff]  }
 0x285   :  { %6179 = vmatpush1.bf16.msra.mxu0 %v9237_v47  ;;  %6325 = vmatpush1.bf16.msra.mxu1 %v9240_v41  ;;  %v9314_v47 = vld [vmem:[%s13331_s5 + $0xf5c] ss:$40 sps:$4 sm:$0xff]   ;;  %v9309_v41 = vld [vmem:[%s13331_s5 + $0x1220] ss:$40 sps:$4 sm:$0xff]  }
 0x286   :  { %6180 = vmatprep.subr.bf16.mxu0 %v9245_v43  ;;  %6326 = vmatprep.subr.bf16.mxu1 %v9248_v44  ;;  %v9317_v43 = vld [vmem:[%s13331_s5 + $0x1274] ss:$40 sps:$4 sm:$0xff]  }
 0x287   :  { %v9320_v44 = vld [vmem:[%s13331_s5 + $0xfac] ss:$40 sps:$4 sm:$0xff]  }
 0x289   :  { %6181 = vmatpush1.bf16.msra.mxu0 %v9243_v45  ;;  %6327 = vmatpush1.bf16.msra.mxu1 %v9246_v39  ;;  %v9315_v45 = vld [vmem:[%s13331_s5 + $0x1270] ss:$40 sps:$4 sm:$0xff]  }
 0x28a   :  { %6191 = vmatprep.subr.bf16.mxu0 %v9251_v49  ;;  %6328 = vmatprep.subr.bf16.mxu1 %v9254_v50  ;;  %v9318_v39 = vld [vmem:[%s13331_s5 + $0xfa8] ss:$40 sps:$4 sm:$0xff]   ;;  %v9326_v49 = vld [vmem:[%s13331_s5 + $0xffc] ss:$40 sps:$4 sm:$0xff]  }
 0x28b   :  { %v9321_v50 = vld [vmem:[%s13331_s5 + $0x12c0] ss:$40 sps:$4 sm:$0xff]  }
 0x28c   :  { %6183 = vmatmul.mubr.bf16.vlgmr.msra.gmra.mrb[16].mxu0 %v11570_v56 }
 0x28d   :  { %6192 = vmatpush1.bf16.msra.mxu0 %v9249_v51  ;;  %6329 = vmatpush1.bf16.msra.mxu1 %v9252_v55  ;;  %v9324_v51 = vld [vmem:[%s13331_s5 + $0xff8] ss:$40 sps:$4 sm:$0xff]   ;;  %v9329_v55 = vld [vmem:[%s13331_s5 + $0x1314] ss:$40 sps:$4 sm:$0xff]  }
 0x28e   :  { %6193 = vmatprep.subr.bf16.mxu0 %v9257_v57  ;;  %6330 = vmatprep.subr.bf16.mxu1 %v9260_v58  ;;  %v9332_v57 = vld [vmem:[%s13331_s5 + $0x104c] ss:$40 sps:$4 sm:$0xff]   ;;  %v536_v58 = vsub.s32 6, %v10380_v31 }
 0x291   :  { %6194 = vmatpush1.bf16.msra.mxu0 %v9255_v59  ;;  %6331 = vmatpush1.bf16.msra.mxu1 %v9258_v61  ;;  %v9327_v59 = vld [vmem:[%s13331_s5 + $0x1310] ss:$40 sps:$4 sm:$0xff]  }
 0x292   :  { %6195 = vmatprep.subr.bf16.mxu0 %v9263_v62  ;;  %6332 = vmatprep.subr.bf16.mxu1 %v9266_v63  ;;  %v9330_v61 = vld [vmem:[%s13331_s5 + $0x1048] ss:$40 sps:$4 sm:$0xff]   ;;  %v540_v62 = vsub.s32 7, %v10380_v31  ;;  %v9335_v63 = vld [vmem:[%s13331_s5 + $0x1364] ss:$40 sps:$4 sm:$0xff]  }
 0x295   :  { %6196 = vmatpush1.bf16.msra.mxu0 %v9261_v0  ;;  %6333 = vmatpush1.bf16.msra.mxu1 %v9264_v1  ;;  %v9338_v0 = vld [vmem:[%s13331_s5 + $0x109c] ss:$40 sps:$4 sm:$0xff]   ;;  %v537_v1 = vrot.slane %v11051_v60, %v536_v58 }
 0x296   :  { %6197 = vmatprep.subr.bf16.mxu0 %v9269_v15  ;;  %6334 = vmatprep.subr.bf16.mxu1 %v9272_v2  ;;  %v9333_v15 = vld [vmem:[%s13331_s5 + $0x1360] ss:$40 sps:$4 sm:$0xff]   ;;  %v541_v2 = vrot.slane %v11051_v60, %v540_v62 }
 0x299   :  { %6198 = vmatpush1.bf16.msra.mxu0 %v9267_v4  ;;  %6335 = vmatpush1.bf16.msra.mxu1 %v9270_v5  ;;  %v9336_v4 = vld [vmem:[%s13331_s5 + $0x1098] ss:$40 sps:$4 sm:$0xff]   ;;  %v9341_v5 = vld [vmem:[%s13331_s5 + $0x13b4] ss:$40 sps:$4 sm:$0xff]  }
 0x29a   :  { %6199 = vmatprep.subr.bf16.mxu0 %v9275_v6  ;;  %6336 = vmatprep.subr.bf16.mxu1 %v9278_v7  ;;  %v9344_v6 = vld [vmem:[%s13331_s5 + $0x10ec] ss:$40 sps:$4 sm:$0xff]  }
 0x29d   :  { %6200 = vmatpush1.bf16.msra.mxu0 %v9273_v8  ;;  %6337 = vmatpush1.bf16.msra.mxu1 %v9276_v9 }
 0x29e   :  { %6201 = vmatprep.subr.bf16.mxu0 %v9281_v10  ;;  %6338 = vmatprep.subr.bf16.mxu1 %v9284_v11  ;;  %v9339_v11 = vld [vmem:[%s13331_s5 + $0x13b0] ss:$40 sps:$4 sm:$0xff]  }
 0x2a1   :  { %6202 = vmatpush1.bf16.msra.mxu0 %v9279_v12  ;;  %6339 = vmatpush1.bf16.msra.mxu1 %v9282_v13  ;;  %v9342_v12 = vld [vmem:[%s13331_s5 + $0x10e8] ss:$40 sps:$4 sm:$0xff]  }
 0x2a2   :  { %6203 = vmatprep.subr.bf16.mxu0 %v9287_v14  ;;  %6340 = vmatprep.subr.bf16.mxu1 %v9290_v17  ;;  %v9347_v17 = vld [vmem:[%s13331_s5 + $0x14] ss:$40 sps:$4 sm:$0xff]  }
 0x2a5   :  { %6204 = vmatpush1.bf16.msra.mxu0 %v9285_v18  ;;  %6341 = vmatpush1.bf16.msra.mxu1 %v9288_v19  ;;  %v9350_v18 = vld [vmem:[%s13331_s5 + $0x113c] ss:$40 sps:$4 sm:$0xff]  }
 0x2a6   :  { %6205 = vmatprep.subr.bf16.mxu0 %v9293_v21  ;;  %6342 = vmatprep.subr.bf16.mxu1 %v9296_v22  ;;  %v9345_v22 = vld [vmem:[%s13331_s5 + $0x10] ss:$40 sps:$4 sm:$0xff]  }
 0x2a9   :  { %6206 = vmatpush1.bf16.msra.mxu0 %v9291_v24  ;;  %6343 = vmatpush1.bf16.msra.mxu1 %v9294_v48  ;;  %v9348_v24 = vld [vmem:[%s13331_s5 + $0x1138] ss:$40 sps:$4 sm:$0xff]  }
 0x2aa   :  { %6207 = vmatprep.subr.bf16.mxu0 %v9299_v25  ;;  %6344 = vmatprep.subr.bf16.mxu1 %v9302_v29  ;;  %v9353_v25 = vld [vmem:[%s13331_s5 + $0x64] ss:$40 sps:$4 sm:$0xff]  }
 0x2ab   :  { %v9356_v29 = vld [vmem:[%s13331_s5 + $0x118c] ss:$40 sps:$4 sm:$0xff]  }
 0x2ad   :  { %6208 = vmatpush1.bf16.msra.mxu0 %v9297_v26  ;;  %6345 = vmatpush1.bf16.msra.mxu1 %v9300_v27  ;;  %v9351_v26 = vld [vmem:[%s13331_s5 + $0x60] ss:$40 sps:$4 sm:$0xff]  }
 0x2ae   :  { %6209 = vmatprep.subr.bf16.mxu0 %v9305_v28  ;;  %6355 = vmatprep.subr.bf16.mxu1 %v9308_v36  ;;  %v9354_v27 = vld [vmem:[%s13331_s5 + $0x1188] ss:$40 sps:$4 sm:$0xff]   ;;  %v9359_v28 = vld [vmem:[%s13331_s5 + $0xb4] ss:$40 sps:$4 sm:$0xff]  }
 0x2af   :  { %v9362_v36 = vld [vmem:[%s13331_s5 + $0x11dc] ss:$40 sps:$4 sm:$0xff]  }
 0x2b0   :  { %6347 = vmatmul.mubr.bf16.vlgmr.msra.gmra.mrb[12].mxu1 %v11570_v56 }
 0x2b1   :  { %6210 = vmatpush1.bf16.msra.mxu0 %v9303_v37  ;;  %6356 = vmatpush1.bf16.msra.mxu1 %v9306_v38  ;;  %v9357_v37 = vld [vmem:[%s13331_s5 + $0xb0] ss:$40 sps:$4 sm:$0xff]  }
 0x2b2   :  { %6211 = vmatprep.subr.bf16.mxu0 %v9311_v40  ;;  %6357 = vmatprep.subr.bf16.mxu1 %v9314_v47  ;;  %v9360_v38 = vld [vmem:[%s13331_s5 + $0x11d8] ss:$40 sps:$4 sm:$0xff]   ;;  %v9365_v40 = vld [vmem:[%s13331_s5 + $0x104] ss:$40 sps:$4 sm:$0xff]  }
 0x2b3   :  { %v9368_v47 = vld [vmem:[%s13331_s5 + $0x122c] ss:$40 sps:$4 sm:$0xff]  }
 0x2b5   :  { %6212 = vmatpush1.bf16.msra.mxu0 %v9309_v41  ;;  %6358 = vmatpush1.bf16.msra.mxu1 %v9312_v42  ;;  %v9363_v41 = vld [vmem:[%s13331_s5 + $0x100] ss:$40 sps:$4 sm:$0xff]  }
 0x2b6   :  { %6213 = vmatprep.subr.bf16.mxu0 %v9317_v43  ;;  %6359 = vmatprep.subr.bf16.mxu1 %v9320_v44  ;;  %v9366_v42 = vld [vmem:[%s13331_s5 + $0x1228] ss:$40 sps:$4 sm:$0xff]   ;;  %v9371_v43 = vld [vmem:[%s13331_s5 + $0x154] ss:$40 sps:$4 sm:$0xff]  }
 0x2b7   :  { %v9374_v44 = vld [vmem:[%s13331_s5 + $0x127c] ss:$40 sps:$4 sm:$0xff]  }
 0x2b9   :  { %6214 = vmatpush1.bf16.msra.mxu0 %v9315_v45  ;;  %6360 = vmatpush1.bf16.msra.mxu1 %v9318_v39  ;;  %v9369_v45 = vld [vmem:[%s13331_s5 + $0x150] ss:$40 sps:$4 sm:$0xff]  }
 0x2ba   :  { %6215 = vmatprep.subr.bf16.mxu0 %v9323_v46  ;;  %6361 = vmatprep.subr.bf16.mxu1 %v9326_v49  ;;  %v9372_v39 = vld [vmem:[%s13331_s5 + $0x1278] ss:$40 sps:$4 sm:$0xff]   ;;  %v9377_v46 = vld [vmem:[%s13331_s5 + $0x1a4] ss:$40 sps:$4 sm:$0xff]  }
 0x2bb   :  { %v9380_v49 = vld [vmem:[%s13331_s5 + $0x12cc] ss:$40 sps:$4 sm:$0xff]  }
 0x2bd   :  { %6216 = vmatpush1.bf16.msra.mxu0 %v9321_v50  ;;  %6362 = vmatpush1.bf16.msra.mxu1 %v9324_v51  ;;  %v9375_v50 = vld [vmem:[%s13331_s5 + $0x1a0] ss:$40 sps:$4 sm:$0xff]  }
 0x2be   :  { %6217 = vmatprep.subr.bf16.mxu0 %v9329_v55  ;;  %6363 = vmatprep.subr.bf16.mxu1 %v9332_v57  ;;  %v9378_v51 = vld [vmem:[%s13331_s5 + $0x12c8] ss:$40 sps:$4 sm:$0xff]   ;;  %v9383_v55 = vld [vmem:[%s13331_s5 + $0x1f4] ss:$40 sps:$4 sm:$0xff]  }
 0x2bf   :  { %v9386_v57 = vld [vmem:[%s13331_s5 + $0x131c] ss:$40 sps:$4 sm:$0xff]  }
 0x2c1   :  { %6218 = vmatpush1.bf16.msra.mxu0 %v9327_v59  ;;  %6364 = vmatpush1.bf16.msra.mxu1 %v9330_v61  ;;  %v9381_v59 = vld [vmem:[%s13331_s5 + $0x1f0] ss:$40 sps:$4 sm:$0xff]  }
 0x2c2   :  { %6219 = vmatprep.subr.bf16.mxu0 %v9335_v63  ;;  %6365 = vmatprep.subr.bf16.mxu1 %v9338_v0  ;;  %v9384_v61 = vld [vmem:[%s13331_s5 + $0x1318] ss:$40 sps:$4 sm:$0xff]   ;;  %v9389_v63 = vld [vmem:[%s13331_s5 + $0x244] ss:$40 sps:$4 sm:$0xff]  }
 0x2c3   :  { %v2151_v7 = vpop.f32.mrb[8].mxu1  ;;  %v9392_v0 = vld [vmem:[%s13331_s5 + $0x136c] ss:$40 sps:$4 sm:$0xff]  }
 0x2c4   :  { %v8877_v8 = vadd.f32 %v2151_v7, %v537_v1  ;;  %v2153_v9 = vpop.f32.mrb[9].mxu1  ;;  %v9387_v1 = vld [vmem:[%s13331_s5 + $0x240] ss:$40 sps:$4 sm:$0xff]   ;;  %v9401_v7 = vld [vmem:[%s13331_s5 + $0x2e4] ss:$40 sps:$4 sm:$0xff]  }
 0x2c5   :  { %v8878_v10 = vadd.f32 %v2153_v9, %v541_v2  ;;  %6220 = vmatpush1.bf16.msra.mxu0 %v9333_v15  ;;  %v2155_v60 = vpop.f32.mrb[10].mxu1  ;;  %6366 = vmatpush1.bf16.msra.mxu1 %v9336_v4  ;;  %v9390_v15 = vld [vmem:[%s13331_s5 + $0x1368] ss:$40 sps:$4 sm:$0xff]   ;;  %v9395_v2 = vld [vmem:[%s13331_s5 + $0x294] ss:$40 sps:$4 sm:$0xff]  }
 0x2c6   :  { %v2164_v13 = vmax.f32 %v8877_v8, 0.0  ;;  %v2156_v14 = vpop.f32.mrb[11].mxu1  ;;  %6221 = vmatprep.subr.bf16.mxu0 %v9341_v5  ;;  %6367 = vmatprep.subr.bf16.mxu1 %v9344_v6  ;;  %v9398_v4 = vld [vmem:[%s13331_s5 + $0x13bc] ss:$40 sps:$4 sm:$0xff]   ;;  %v9393_v5 = vld [vmem:[%s13331_s5 + $0x290] ss:$40 sps:$4 sm:$0xff]  }
 0x2c7   :  { %v2165_v19 = vmax.f32 %v8878_v10, 0.0  ;;  %v9396_v6 = vld [vmem:[%s13331_s5 + $0x13b8] ss:$40 sps:$4 sm:$0xff]   ;;  %v9404_v8 = vld [vmem:[%s13331_s5 + $0x1c] ss:$40 sps:$4 sm:$0xff]  }
 0x2c8   :  { %v11776_v48 = vpack.c.bf16 %v2164_v13, %v2164_v13  ;;  %v9399_v9 = vld [vmem:[%s13331_s5 + $0x2e0] ss:$40 sps:$4 sm:$0xff]   ;;  %v9407_v60 = vld [vmem:[%s13331_s5 + $0x334] ss:$40 sps:$4 sm:$0xff]   ;;  %v9413_v14 = vld [vmem:[%s13331_s5 + $0x384] ss:$40 sps:$4 sm:$0xff]  }
 0x2c9   :  { %v11768_v21 = vpack.c.bf16 %v2165_v19, %v2165_v19  ;;  %6222 = vmatpush1.bf16.msra.mxu0 %v9339_v11  ;;  %6368 = vmatpush1.bf16.msra.mxu1 %v9342_v12  ;;  %v9402_v10 = vld [vmem:[%s13331_s5 + $0x18] ss:$40 sps:$4 sm:$0xff]   ;;  %v9410_v11 = vld [vmem:[%s13331_s5 + $0x6c] ss:$40 sps:$4 sm:$0xff]   ;;  %v9408_v13 = vld [vmem:[%s13331_s5 + $0x68] ss:$40 sps:$4 sm:$0xff]  }
 0x2ca   :  { %6396 = vmatprep.subr.bf16.mxu0 %v9347_v17  ;;  %6369 = vmatprep.subr.bf16.mxu1 %v9350_v18  ;;  %v9405_v12 = vld [vmem:[%s13331_s5 + $0x330] ss:$40 sps:$4 sm:$0xff]   ;;  %v9416_v17 = vld [vmem:[%s13331_s5 + $0xbc] ss:$40 sps:$4 sm:$0xff]   ;;  %v9411_v18 = vld [vmem:[%s13331_s5 + $0x380] ss:$40 sps:$4 sm:$0xff]  }
 0x2cb   :  { %6223 = vmatprep.mubr.bf16.mxu0 %v11768_v21  ;;  %6387 = vmatprep.mubr.bf16.mxu1 %v11768_v21  ;;  %v9414_v19 = vld [vmem:[%s13331_s5 + $0xb8] ss:$40 sps:$4 sm:$0xff]  }
 0x2cc   :  { %6224 = vmatmul.mubr.bf16.vlgmr.msra.gmra.mrb[16].mxu0 %v11776_v48 }
 0x2cd   :  { %6397 = vmatpush1.bf16.msra.mxu0 %v9345_v22  ;;  %6370 = vmatpush1.bf16.msra.mxu1 %v9348_v24  ;;  %v9419_v22 = vld [vmem:[%s13331_s5 + $0x3d4] ss:$40 sps:$4 sm:$0xff]  }
 0x2ce   :  { %6428 = vmatprep.mubr.bf16.mxu0 %v11081_v16  ;;  %6398 = vmatprep.subr.bf16.mxu0 %v9353_v25  ;;  %v9422_v24 = vld [vmem:[%s13331_s5 + $0x10c] ss:$40 sps:$4 sm:$0xff]   ;;  %v9417_v25 = vld [vmem:[%s13331_s5 + $0x3d0] ss:$40 sps:$4 sm:$0xff]  }
 0x2cf   :  { %6371 = vmatprep.subr.bf16.mxu1 %v9356_v29  ;;  %v9420_v29 = vld [vmem:[%s13331_s5 + $0x108] ss:$40 sps:$4 sm:$0xff]  }
 0x2d1   :  { %6399 = vmatpush1.bf16.msra.mxu0 %v9351_v26  ;;  %6372 = vmatpush1.bf16.msra.mxu1 %v9354_v27  ;;  %v9425_v26 = vld [vmem:[%s13331_s5 + $0x424] ss:$40 sps:$4 sm:$0xff]  }
 0x2d2   :  { %6400 = vmatprep.subr.bf16.mxu0 %v9359_v28  ;;  %6373 = vmatprep.subr.bf16.mxu1 %v9362_v36  ;;  %v9428_v27 = vld [vmem:[%s13331_s5 + $0x15c] ss:$40 sps:$4 sm:$0xff]   ;;  %v9423_v28 = vld [vmem:[%s13331_s5 + $0x420] ss:$40 sps:$4 sm:$0xff]  }
 0x2d3   :  { %v9426_v36 = vld [vmem:[%s13331_s5 + $0x158] ss:$40 sps:$4 sm:$0xff]  }
 0x2d5   :  { %6401 = vmatpush1.bf16.msra.mxu0 %v9357_v37  ;;  %6374 = vmatpush1.bf16.msra.mxu1 %v9360_v38  ;;  %v9431_v37 = vld [vmem:[%s13331_s5 + $0x474] ss:$40 sps:$4 sm:$0xff]  }
 0x2d6   :  { %6402 = vmatprep.subr.bf16.mxu0 %v9365_v40  ;;  %6375 = vmatprep.subr.bf16.mxu1 %v9368_v47  ;;  %v9434_v38 = vld [vmem:[%s13331_s5 + $0x1ac] ss:$40 sps:$4 sm:$0xff]   ;;  %v9429_v40 = vld [vmem:[%s13331_s5 + $0x470] ss:$40 sps:$4 sm:$0xff]  }
 0x2d7   :  { %v9432_v47 = vld [vmem:[%s13331_s5 + $0x1a8] ss:$40 sps:$4 sm:$0xff]  }
 0x2d9   :  { %6403 = vmatpush1.bf16.msra.mxu0 %v9363_v41  ;;  %6376 = vmatpush1.bf16.msra.mxu1 %v9366_v42  ;;  %v9437_v41 = vld [vmem:[%s13331_s5 + $0x4c4] ss:$40 sps:$4 sm:$0xff]  }
 0x2da   :  { %6404 = vmatprep.subr.bf16.mxu0 %v9371_v43  ;;  %6377 = vmatprep.subr.bf16.mxu1 %v9374_v44  ;;  %v9440_v42 = vld [vmem:[%s13331_s5 + $0x1fc] ss:$40 sps:$4 sm:$0xff]   ;;  %v9435_v43 = vld [vmem:[%s13331_s5 + $0x4c0] ss:$40 sps:$4 sm:$0xff]  }
 0x2db   :  { %v9438_v44 = vld [vmem:[%s13331_s5 + $0x1f8] ss:$40 sps:$4 sm:$0xff]  }
 0x2dd   :  { %6405 = vmatpush1.bf16.msra.mxu0 %v9369_v45  ;;  %6378 = vmatpush1.bf16.msra.mxu1 %v9372_v39  ;;  %v9443_v45 = vld [vmem:[%s13331_s5 + $0x514] ss:$40 sps:$4 sm:$0xff]  }
 0x2de   :  { %6406 = vmatprep.subr.bf16.mxu0 %v9377_v46  ;;  %6379 = vmatprep.subr.bf16.mxu1 %v9380_v49  ;;  %v9446_v39 = vld [vmem:[%s13331_s5 + $0x24c] ss:$40 sps:$4 sm:$0xff]   ;;  %v9441_v46 = vld [vmem:[%s13331_s5 + $0x510] ss:$40 sps:$4 sm:$0xff]  }
 0x2df   :  { %v9444_v49 = vld [vmem:[%s13331_s5 + $0x248] ss:$40 sps:$4 sm:$0xff]  }
 0x2e1   :  { %6407 = vmatpush1.bf16.msra.mxu0 %v9375_v50  ;;  %6380 = vmatpush1.bf16.msra.mxu1 %v9378_v51  ;;  %v9449_v50 = vld [vmem:[%s13331_s5 + $0x564] ss:$40 sps:$4 sm:$0xff]  }
 0x2e2   :  { %6408 = vmatprep.subr.bf16.mxu0 %v9383_v55  ;;  %6381 = vmatprep.subr.bf16.mxu1 %v9386_v57  ;;  %v9452_v51 = vld [vmem:[%s13331_s5 + $0x29c] ss:$40 sps:$4 sm:$0xff]   ;;  %v9447_v55 = vld [vmem:[%s13331_s5 + $0x560] ss:$40 sps:$4 sm:$0xff]  }
 0x2e3   :  { %v9450_v57 = vld [vmem:[%s13331_s5 + $0x298] ss:$40 sps:$4 sm:$0xff]  }
 0x2e5   :  { %6409 = vmatpush1.bf16.msra.mxu0 %v9381_v59  ;;  %6382 = vmatpush1.bf16.msra.mxu1 %v9384_v61  ;;  %v9455_v59 = vld [vmem:[%s13331_s5 + $0x5b4] ss:$40 sps:$4 sm:$0xff]  }
 0x2e6   :  { %6410 = vmatprep.subr.bf16.mxu0 %v9389_v63  ;;  %6383 = vmatprep.subr.bf16.mxu1 %v9392_v0  ;;  %v9458_v61 = vld [vmem:[%s13331_s5 + $0x2ec] ss:$40 sps:$4 sm:$0xff]   ;;  %v9453_v63 = vld [vmem:[%s13331_s5 + $0x5b0] ss:$40 sps:$4 sm:$0xff]  }
 0x2e7   :  { %v9456_v0 = vld [vmem:[%s13331_s5 + $0x2e8] ss:$40 sps:$4 sm:$0xff]  }
 0x2e9   :  { %6411 = vmatpush1.bf16.msra.mxu0 %v9387_v1  ;;  %6384 = vmatpush1.bf16.msra.mxu1 %v9390_v15  ;;  %v9461_v1 = vld [vmem:[%s13331_s5 + $0x604] ss:$40 sps:$4 sm:$0xff]  }
 0x2ea   :  { %6412 = vmatprep.subr.bf16.mxu0 %v9395_v2  ;;  %6385 = vmatprep.subr.bf16.mxu1 %v9398_v4  ;;  %v9464_v15 = vld [vmem:[%s13331_s5 + $0x33c] ss:$40 sps:$4 sm:$0xff]   ;;  %v9459_v2 = vld [vmem:[%s13331_s5 + $0x600] ss:$40 sps:$4 sm:$0xff]  }
 0x2eb   :  { %v9462_v4 = vld [vmem:[%s13331_s5 + $0x338] ss:$40 sps:$4 sm:$0xff]  }
 0x2ed   :  { %6413 = vmatpush1.bf16.msra.mxu0 %v9393_v5  ;;  %6386 = vmatpush1.bf16.msra.mxu1 %v9396_v6  ;;  %v9467_v5 = vld [vmem:[%s13331_s5 + $0x654] ss:$40 sps:$4 sm:$0xff]  }
 0x2ee   :  { %6414 = vmatprep.subr.bf16.mxu0 %v9401_v7  ;;  %6560 = vmatprep.subr.bf16.mxu1 %v9404_v8  ;;  %v9470_v6 = vld [vmem:[%s13331_s5 + $0x38c] ss:$40 sps:$4 sm:$0xff]   ;;  %v9465_v7 = vld [vmem:[%s13331_s5 + $0x650] ss:$40 sps:$4 sm:$0xff]  }
 0x2ef   :  { %v9468_v8 = vld [vmem:[%s13331_s5 + $0x388] ss:$40 sps:$4 sm:$0xff]  }
 0x2f0   :  { %6388 = vmatmul.mubr.bf16.vlgmr.msra.gmra.mrb[12].mxu1 %v11776_v48 }
 0x2f1   :  { %6415 = vmatpush1.bf16.msra.mxu0 %v9399_v9  ;;  %6561 = vmatpush1.bf16.msra.mxu1 %v9402_v10  ;;  %v9473_v9 = vld [vmem:[%s13331_s5 + $0x6a4] ss:$40 sps:$4 sm:$0xff]  }
 0x2f2   :  { %6592 = vmatprep.mubr.bf16.mxu1 %v11081_v16  ;;  %6416 = vmatprep.subr.bf16.mxu0 %v9407_v60  ;;  %v9476_v10 = vld [vmem:[%s13331_s5 + $0x3dc] ss:$40 sps:$4 sm:$0xff]   ;;  %v9471_v60 = vld [vmem:[%s13331_s5 + $0x6a0] ss:$40 sps:$4 sm:$0xff]  }
 0x2f3   :  { %6562 = vmatprep.subr.bf16.mxu1 %v9410_v11  ;;  %v9474_v11 = vld [vmem:[%s13331_s5 + $0x3d8] ss:$40 sps:$4 sm:$0xff]  }
 0x2f5   :  { %6417 = vmatpush1.bf16.msra.mxu0 %v9405_v12  ;;  %6563 = vmatpush1.bf16.msra.mxu1 %v9408_v13  ;;  %v9479_v12 = vld [vmem:[%s13331_s5 + $0x6f4] ss:$40 sps:$4 sm:$0xff]  }
 0x2f6   :  { %6418 = vmatprep.subr.bf16.mxu0 %v9413_v14  ;;  %6564 = vmatprep.subr.bf16.mxu1 %v9416_v17  ;;  %v9482_v13 = vld [vmem:[%s13331_s5 + $0x42c] ss:$40 sps:$4 sm:$0xff]   ;;  %v9477_v14 = vld [vmem:[%s13331_s5 + $0x6f0] ss:$40 sps:$4 sm:$0xff]  }
 0x2f7   :  { %v9480_v17 = vld [vmem:[%s13331_s5 + $0x428] ss:$40 sps:$4 sm:$0xff]  }
 0x2f9   :  { %6419 = vmatpush1.bf16.msra.mxu0 %v9411_v18  ;;  %6565 = vmatpush1.bf16.msra.mxu1 %v9414_v19  ;;  %v9485_v18 = vld [vmem:[%s13331_s5 + $0x744] ss:$40 sps:$4 sm:$0xff]  }
 0x2fa   :  { %6420 = vmatprep.subr.bf16.mxu0 %v9419_v22  ;;  %6566 = vmatprep.subr.bf16.mxu1 %v9422_v24  ;;  %v9488_v19 = vld [vmem:[%s13331_s5 + $0x47c] ss:$40 sps:$4 sm:$0xff]   ;;  %v9483_v22 = vld [vmem:[%s13331_s5 + $0x740] ss:$40 sps:$4 sm:$0xff]  }
 0x2fb   :  { %v9486_v24 = vld [vmem:[%s13331_s5 + $0x478] ss:$40 sps:$4 sm:$0xff]  }
 0x2fd   :  { %6421 = vmatpush1.bf16.msra.mxu0 %v9417_v25  ;;  %6567 = vmatpush1.bf16.msra.mxu1 %v9420_v29  ;;  %v9491_v25 = vld [vmem:[%s13331_s5 + $0x794] ss:$40 sps:$4 sm:$0xff]  }
 0x2fe   :  { %6422 = vmatprep.subr.bf16.mxu0 %v9425_v26  ;;  %6568 = vmatprep.subr.bf16.mxu1 %v9428_v27  ;;  %v9494_v29 = vld [vmem:[%s13331_s5 + $0x4cc] ss:$40 sps:$4 sm:$0xff]   ;;  %v9489_v26 = vld [vmem:[%s13331_s5 + $0x790] ss:$40 sps:$4 sm:$0xff]  }
 0x2ff   :  { %v9492_v27 = vld [vmem:[%s13331_s5 + $0x4c8] ss:$40 sps:$4 sm:$0xff]  }
 0x301   :  { %6423 = vmatpush1.bf16.msra.mxu0 %v9423_v28  ;;  %6569 = vmatpush1.bf16.msra.mxu1 %v9426_v36  ;;  %v9497_v28 = vld [vmem:[%s13331_s5 + $0x7e4] ss:$40 sps:$4 sm:$0xff]  }
 0x302   :  { %6424 = vmatprep.subr.bf16.mxu0 %v9431_v37  ;;  %6570 = vmatprep.subr.bf16.mxu1 %v9434_v38  ;;  %v9500_v36 = vld [vmem:[%s13331_s5 + $0x51c] ss:$40 sps:$4 sm:$0xff]   ;;  %v9495_v37 = vld [vmem:[%s13331_s5 + $0x7e0] ss:$40 sps:$4 sm:$0xff]  }
 0x303   :  { %v9498_v38 = vld [vmem:[%s13331_s5 + $0x518] ss:$40 sps:$4 sm:$0xff]  }
 0x305   :  { %6425 = vmatpush1.bf16.msra.mxu0 %v9429_v40  ;;  %6571 = vmatpush1.bf16.msra.mxu1 %v9432_v47  ;;  %v9503_v40 = vld [vmem:[%s13331_s5 + $0x834] ss:$40 sps:$4 sm:$0xff]  }
 0x306   :  { %6426 = vmatprep.subr.bf16.mxu0 %v9437_v41  ;;  %6572 = vmatprep.subr.bf16.mxu1 %v9440_v42  ;;  %v9506_v47 = vld [vmem:[%s13331_s5 + $0x56c] ss:$40 sps:$4 sm:$0xff]   ;;  %v9501_v41 = vld [vmem:[%s13331_s5 + $0x830] ss:$40 sps:$4 sm:$0xff]  }
 0x307   :  { %v9504_v42 = vld [vmem:[%s13331_s5 + $0x568] ss:$40 sps:$4 sm:$0xff]  }
 0x309   :  { %6427 = vmatpush1.bf16.msra.mxu0 %v9435_v43  ;;  %6573 = vmatpush1.bf16.msra.mxu1 %v9438_v44  ;;  %v9509_v43 = vld [vmem:[%s13331_s5 + $0x884] ss:$40 sps:$4 sm:$0xff]  }
 0x30a   :  { %6437 = vmatprep.subr.bf16.mxu0 %v9443_v45  ;;  %6574 = vmatprep.subr.bf16.mxu1 %v9446_v39  ;;  %v9512_v44 = vld [vmem:[%s13331_s5 + $0x5bc] ss:$40 sps:$4 sm:$0xff]   ;;  %v9507_v45 = vld [vmem:[%s13331_s5 + $0x880] ss:$40 sps:$4 sm:$0xff]  }
 0x30b   :  { %v9510_v39 = vld [vmem:[%s13331_s5 + $0x5b8] ss:$40 sps:$4 sm:$0xff]  }
 0x30c   :  { %6429 = vmatmul.mubr.bf16.vlgmr.msra.gmra.mrb[20].mxu0 %v11086_v30 }
 0x30d   :  { %6438 = vmatpush1.bf16.msra.mxu0 %v9441_v46  ;;  %6469 = vmatprep.mubr.bf16.mxu0 %v11349_v20  ;;  %v9515_v46 = vld [vmem:[%s13331_s5 + $0x8d4] ss:$40 sps:$4 sm:$0xff]  }
 0x30e   :  { %6575 = vmatpush1.bf16.msra.mxu1 %v9444_v49  ;;  %6439 = vmatprep.subr.bf16.mxu0 %v9449_v50  ;;  %v9518_v49 = vld [vmem:[%s13331_s5 + $0x60c] ss:$40 sps:$4 sm:$0xff]   ;;  %v9513_v50 = vld [vmem:[%s13331_s5 + $0x8d0] ss:$40 sps:$4 sm:$0xff]  }
 0x30f   :  { %6576 = vmatprep.subr.bf16.mxu1 %v9452_v51  ;;  %v9516_v51 = vld [vmem:[%s13331_s5 + $0x608] ss:$40 sps:$4 sm:$0xff]  }
 0x311   :  { %6440 = vmatpush1.bf16.msra.mxu0 %v9447_v55  ;;  %v9521_v55 = vld [vmem:[%s13331_s5 + $0x924] ss:$40 sps:$4 sm:$0xff]  }
 0x312   :  { %6577 = vmatpush1.bf16.msra.mxu1 %v9450_v57  ;;  %6441 = vmatprep.subr.bf16.mxu0 %v9455_v59  ;;  %v9524_v57 = vld [vmem:[%s13331_s5 + $0x65c] ss:$40 sps:$4 sm:$0xff]   ;;  %v9519_v59 = vld [vmem:[%s13331_s5 + $0x920] ss:$40 sps:$4 sm:$0xff]  }
 0x313   :  { %6578 = vmatprep.subr.bf16.mxu1 %v9458_v61  ;;  %v9522_v61 = vld [vmem:[%s13331_s5 + $0x658] ss:$40 sps:$4 sm:$0xff]  }
 0x315   :  { %6442 = vmatpush1.bf16.msra.mxu0 %v9453_v63  ;;  %v9527_v63 = vld [vmem:[%s13331_s5 + $0x974] ss:$40 sps:$4 sm:$0xff]  }
 0x316   :  { %6579 = vmatpush1.bf16.msra.mxu1 %v9456_v0  ;;  %6443 = vmatprep.subr.bf16.mxu0 %v9461_v1  ;;  %v9530_v0 = vld [vmem:[%s13331_s5 + $0x6ac] ss:$40 sps:$4 sm:$0xff]   ;;  %v9525_v1 = vld [vmem:[%s13331_s5 + $0x970] ss:$40 sps:$4 sm:$0xff]  }
 0x317   :  { %6580 = vmatprep.subr.bf16.mxu1 %v9464_v15  ;;  %v9528_v15 = vld [vmem:[%s13331_s5 + $0x6a8] ss:$40 sps:$4 sm:$0xff]  }
 0x319   :  { %6444 = vmatpush1.bf16.msra.mxu0 %v9459_v2  ;;  %v9533_v2 = vld [vmem:[%s13331_s5 + $0x9c4] ss:$40 sps:$4 sm:$0xff]  }
 0x31a   :  { %6581 = vmatpush1.bf16.msra.mxu1 %v9462_v4  ;;  %6445 = vmatprep.subr.bf16.mxu0 %v9467_v5  ;;  %v9536_v4 = vld [vmem:[%s13331_s5 + $0x6fc] ss:$40 sps:$4 sm:$0xff]   ;;  %v9531_v5 = vld [vmem:[%s13331_s5 + $0x9c0] ss:$40 sps:$4 sm:$0xff]  }
 0x31b   :  { %6582 = vmatprep.subr.bf16.mxu1 %v9470_v6  ;;  %v9534_v6 = vld [vmem:[%s13331_s5 + $0x6f8] ss:$40 sps:$4 sm:$0xff]  }
 0x31d   :  { %6446 = vmatpush1.bf16.msra.mxu0 %v9465_v7  ;;  %v9539_v7 = vld [vmem:[%s13331_s5 + $0xa14] ss:$40 sps:$4 sm:$0xff]  }
 0x31e   :  { %6583 = vmatpush1.bf16.msra.mxu1 %v9468_v8  ;;  %6447 = vmatprep.subr.bf16.mxu0 %v9473_v9  ;;  %v9542_v8 = vld [vmem:[%s13331_s5 + $0x74c] ss:$40 sps:$4 sm:$0xff]   ;;  %v9537_v9 = vld [vmem:[%s13331_s5 + $0xa10] ss:$40 sps:$4 sm:$0xff]  }
 0x31f   :  { %6584 = vmatprep.subr.bf16.mxu1 %v9476_v10  ;;  %v9540_v10 = vld [vmem:[%s13331_s5 + $0x748] ss:$40 sps:$4 sm:$0xff]  }
 0x321   :  { %6448 = vmatpush1.bf16.msra.mxu0 %v9471_v60  ;;  %v9545_v60 = vld [vmem:[%s13331_s5 + $0xa64] ss:$40 sps:$4 sm:$0xff]  }
 0x322   :  { %6585 = vmatpush1.bf16.msra.mxu1 %v9474_v11  ;;  %6449 = vmatprep.subr.bf16.mxu0 %v9479_v12  ;;  %v9548_v11 = vld [vmem:[%s13331_s5 + $0x79c] ss:$40 sps:$4 sm:$0xff]   ;;  %v9543_v12 = vld [vmem:[%s13331_s5 + $0xa60] ss:$40 sps:$4 sm:$0xff]  }
 0x323   :  { %6586 = vmatprep.subr.bf16.mxu1 %v9482_v13  ;;  %v9546_v13 = vld [vmem:[%s13331_s5 + $0x798] ss:$40 sps:$4 sm:$0xff]  }
 0x325   :  { %6450 = vmatpush1.bf16.msra.mxu0 %v9477_v14  ;;  %v9551_v14 = vld [vmem:[%s13331_s5 + $0xab4] ss:$40 sps:$4 sm:$0xff]  }
 0x326   :  { %6587 = vmatpush1.bf16.msra.mxu1 %v9480_v17  ;;  %6451 = vmatprep.subr.bf16.mxu0 %v9485_v18  ;;  %v9554_v17 = vld [vmem:[%s13331_s5 + $0x7ec] ss:$40 sps:$4 sm:$0xff]   ;;  %v9549_v18 = vld [vmem:[%s13331_s5 + $0xab0] ss:$40 sps:$4 sm:$0xff]  }
 0x327   :  { %6588 = vmatprep.subr.bf16.mxu1 %v9488_v19  ;;  %v9552_v19 = vld [vmem:[%s13331_s5 + $0x7e8] ss:$40 sps:$4 sm:$0xff]  }
 0x329   :  { %6452 = vmatpush1.bf16.msra.mxu0 %v9483_v22  ;;  %v9557_v22 = vld [vmem:[%s13331_s5 + $0xb04] ss:$40 sps:$4 sm:$0xff]  }
 0x32a   :  { %6589 = vmatpush1.bf16.msra.mxu1 %v9486_v24  ;;  %6453 = vmatprep.subr.bf16.mxu0 %v9491_v25  ;;  %v9560_v24 = vld [vmem:[%s13331_s5 + $0x83c] ss:$40 sps:$4 sm:$0xff]   ;;  %v9555_v25 = vld [vmem:[%s13331_s5 + $0xb00] ss:$40 sps:$4 sm:$0xff]  }
 0x32b   :  { %6590 = vmatprep.subr.bf16.mxu1 %v9494_v29  ;;  %v9558_v29 = vld [vmem:[%s13331_s5 + $0x838] ss:$40 sps:$4 sm:$0xff]  }
 0x32d   :  { %6454 = vmatpush1.bf16.msra.mxu0 %v9489_v26  ;;  %v9563_v26 = vld [vmem:[%s13331_s5 + $0xb54] ss:$40 sps:$4 sm:$0xff]  }
 0x32e   :  { %6591 = vmatpush1.bf16.msra.mxu1 %v9492_v27  ;;  %6455 = vmatprep.subr.bf16.mxu0 %v9497_v28  ;;  %v9566_v27 = vld [vmem:[%s13331_s5 + $0x88c] ss:$40 sps:$4 sm:$0xff]   ;;  %v9561_v28 = vld [vmem:[%s13331_s5 + $0xb50] ss:$40 sps:$4 sm:$0xff]  }
 0x32f   :  { %6601 = vmatprep.subr.bf16.mxu1 %v9500_v36  ;;  %v9564_v36 = vld [vmem:[%s13331_s5 + $0x888] ss:$40 sps:$4 sm:$0xff]  }
 0x331   :  { %6456 = vmatpush1.bf16.msra.mxu0 %v9495_v37  ;;  %6593 = vmatmul.mubr.bf16.vlgmr.msra.gmra.mrb[16].mxu1 %v11086_v30  ;;  %v9569_v37 = vld [vmem:[%s13331_s5 + $0xba4] ss:$40 sps:$4 sm:$0xff]  }
 0x332   :  { %6602 = vmatpush1.bf16.msra.mxu1 %v9498_v38  ;;  %6633 = vmatprep.mubr.bf16.mxu1 %v11349_v20  ;;  %v9572_v38 = vld [vmem:[%s13331_s5 + $0x8dc] ss:$40 sps:$4 sm:$0xff]  }
 0x333   :  { %6457 = vmatprep.subr.bf16.mxu0 %v9503_v40  ;;  %6603 = vmatprep.subr.bf16.mxu1 %v9506_v47  ;;  %v9567_v40 = vld [vmem:[%s13331_s5 + $0xba0] ss:$40 sps:$4 sm:$0xff]  }
 0x334   :  { %v9570_v47 = vld [vmem:[%s13331_s5 + $0x8d8] ss:$40 sps:$4 sm:$0xff]  }
 0x335   :  { %6458 = vmatpush1.bf16.msra.mxu0 %v9501_v41  ;;  %v9575_v41 = vld [vmem:[%s13331_s5 + $0xbf4] ss:$40 sps:$4 sm:$0xff]  }
 0x336   :  { %6604 = vmatpush1.bf16.msra.mxu1 %v9504_v42  ;;  %6459 = vmatprep.subr.bf16.mxu0 %v9509_v43  ;;  %v9578_v42 = vld [vmem:[%s13331_s5 + $0x92c] ss:$40 sps:$4 sm:$0xff]   ;;  %v9573_v43 = vld [vmem:[%s13331_s5 + $0xbf0] ss:$40 sps:$4 sm:$0xff]  }
 0x337   :  { %6605 = vmatprep.subr.bf16.mxu1 %v9512_v44  ;;  %v9576_v44 = vld [vmem:[%s13331_s5 + $0x928] ss:$40 sps:$4 sm:$0xff]  }
 0x339   :  { %6460 = vmatpush1.bf16.msra.mxu0 %v9507_v45  ;;  %v9581_v45 = vld [vmem:[%s13331_s5 + $0xc44] ss:$40 sps:$4 sm:$0xff]  }
 0x33a   :  { %6606 = vmatpush1.bf16.msra.mxu1 %v9510_v39  ;;  %6461 = vmatprep.subr.bf16.mxu0 %v9515_v46  ;;  %v9584_v39 = vld [vmem:[%s13331_s5 + $0x97c] ss:$40 sps:$4 sm:$0xff]   ;;  %v9579_v46 = vld [vmem:[%s13331_s5 + $0xc40] ss:$40 sps:$4 sm:$0xff]  }
 0x33b   :  { %6607 = vmatprep.subr.bf16.mxu1 %v9518_v49  ;;  %v9582_v49 = vld [vmem:[%s13331_s5 + $0x978] ss:$40 sps:$4 sm:$0xff]  }
 0x33d   :  { %6462 = vmatpush1.bf16.msra.mxu0 %v9513_v50  ;;  %v9587_v50 = vld [vmem:[%s13331_s5 + $0xc94] ss:$40 sps:$4 sm:$0xff]  }
 0x33e   :  { %6608 = vmatpush1.bf16.msra.mxu1 %v9516_v51  ;;  %6463 = vmatprep.subr.bf16.mxu0 %v9521_v55  ;;  %v9590_v51 = vld [vmem:[%s13331_s5 + $0x9cc] ss:$40 sps:$4 sm:$0xff]   ;;  %v9585_v55 = vld [vmem:[%s13331_s5 + $0xc90] ss:$40 sps:$4 sm:$0xff]  }
 0x33f   :  { %6609 = vmatprep.subr.bf16.mxu1 %v9524_v57  ;;  %v9588_v57 = vld [vmem:[%s13331_s5 + $0x9c8] ss:$40 sps:$4 sm:$0xff]  }
 0x341   :  { %6464 = vmatpush1.bf16.msra.mxu0 %v9519_v59  ;;  %v9593_v59 = vld [vmem:[%s13331_s5 + $0xce4] ss:$40 sps:$4 sm:$0xff]  }
 0x342   :  { %6610 = vmatpush1.bf16.msra.mxu1 %v9522_v61  ;;  %6465 = vmatprep.subr.bf16.mxu0 %v9527_v63  ;;  %v9596_v61 = vld [vmem:[%s13331_s5 + $0xa1c] ss:$40 sps:$4 sm:$0xff]   ;;  %v9591_v63 = vld [vmem:[%s13331_s5 + $0xce0] ss:$40 sps:$4 sm:$0xff]  }
 0x343   :  { %6611 = vmatprep.subr.bf16.mxu1 %v9530_v0  ;;  %v9594_v0 = vld [vmem:[%s13331_s5 + $0xa18] ss:$40 sps:$4 sm:$0xff]  }
 0x345   :  { %6466 = vmatpush1.bf16.msra.mxu0 %v9525_v1  ;;  %v9599_v1 = vld [vmem:[%s13331_s5 + $0xd34] ss:$40 sps:$4 sm:$0xff]  }
 0x346   :  { %6612 = vmatpush1.bf16.msra.mxu1 %v9528_v15  ;;  %6467 = vmatprep.subr.bf16.mxu0 %v9533_v2  ;;  %v9602_v15 = vld [vmem:[%s13331_s5 + $0xa6c] ss:$40 sps:$4 sm:$0xff]   ;;  %v9597_v2 = vld [vmem:[%s13331_s5 + $0xd30] ss:$40 sps:$4 sm:$0xff]  }
 0x347   :  { %6613 = vmatprep.subr.bf16.mxu1 %v9536_v4  ;;  %v9600_v4 = vld [vmem:[%s13331_s5 + $0xa68] ss:$40 sps:$4 sm:$0xff]  }
 0x349   :  { %6468 = vmatpush1.bf16.msra.mxu0 %v9531_v5  ;;  %v9605_v5 = vld [vmem:[%s13331_s5 + $0xd84] ss:$40 sps:$4 sm:$0xff]  }
 0x34a   :  { %6614 = vmatpush1.bf16.msra.mxu1 %v9534_v6  ;;  %6478 = vmatprep.subr.bf16.mxu0 %v9539_v7  ;;  %v9608_v6 = vld [vmem:[%s13331_s5 + $0xabc] ss:$40 sps:$4 sm:$0xff]   ;;  %v9603_v7 = vld [vmem:[%s13331_s5 + $0xd80] ss:$40 sps:$4 sm:$0xff]  }
 0x34b   :  { %6615 = vmatprep.subr.bf16.mxu1 %v9542_v8  ;;  %v9606_v8 = vld [vmem:[%s13331_s5 + $0xab8] ss:$40 sps:$4 sm:$0xff]  }
 0x34c   :  { %6470 = vmatmul.mubr.bf16.vlgmr.msra.gmra.mrb[20].mxu0 %v11357_v23 }
 0x34d   :  { %6479 = vmatpush1.bf16.msra.mxu0 %v9537_v9  ;;  %6510 = vmatprep.mubr.bf16.mxu0 %v11416_v53  ;;  %v9611_v9 = vld [vmem:[%s13331_s5 + $0xdd4] ss:$40 sps:$4 sm:$0xff]  }
 0x34e   :  { %6616 = vmatpush1.bf16.msra.mxu1 %v9540_v10  ;;  %6480 = vmatprep.subr.bf16.mxu0 %v9545_v60  ;;  %v9614_v10 = vld [vmem:[%s13331_s5 + $0xb0c] ss:$40 sps:$4 sm:$0xff]   ;;  %v9609_v60 = vld [vmem:[%s13331_s5 + $0xdd0] ss:$40 sps:$4 sm:$0xff]  }
 0x34f   :  { %6617 = vmatprep.subr.bf16.mxu1 %v9548_v11  ;;  %v9612_v11 = vld [vmem:[%s13331_s5 + $0xb08] ss:$40 sps:$4 sm:$0xff]  }
 0x351   :  { %6481 = vmatpush1.bf16.msra.mxu0 %v9543_v12  ;;  %v9617_v12 = vld [vmem:[%s13331_s5 + $0xe24] ss:$40 sps:$4 sm:$0xff]  }
 0x352   :  { %6618 = vmatpush1.bf16.msra.mxu1 %v9546_v13  ;;  %6482 = vmatprep.subr.bf16.mxu0 %v9551_v14  ;;  %v9620_v13 = vld [vmem:[%s13331_s5 + $0xb5c] ss:$40 sps:$4 sm:$0xff]   ;;  %v9615_v14 = vld [vmem:[%s13331_s5 + $0xe20] ss:$40 sps:$4 sm:$0xff]  }
 0x353   :  { %6619 = vmatprep.subr.bf16.mxu1 %v9554_v17  ;;  %v9618_v17 = vld [vmem:[%s13331_s5 + $0xb58] ss:$40 sps:$4 sm:$0xff]  }
 0x355   :  { %6483 = vmatpush1.bf16.msra.mxu0 %v9549_v18  ;;  %v9623_v18 = vld [vmem:[%s13331_s5 + $0xe74] ss:$40 sps:$4 sm:$0xff]  }
 0x356   :  { %6620 = vmatpush1.bf16.msra.mxu1 %v9552_v19  ;;  %6484 = vmatprep.subr.bf16.mxu0 %v9557_v22  ;;  %v9626_v19 = vld [vmem:[%s13331_s5 + $0xbac] ss:$40 sps:$4 sm:$0xff]   ;;  %v9621_v22 = vld [vmem:[%s13331_s5 + $0xe70] ss:$40 sps:$4 sm:$0xff]  }
 0x357   :  { %6621 = vmatprep.subr.bf16.mxu1 %v9560_v24  ;;  %v9624_v24 = vld [vmem:[%s13331_s5 + $0xba8] ss:$40 sps:$4 sm:$0xff]  }
 0x359   :  { %6485 = vmatpush1.bf16.msra.mxu0 %v9555_v25  ;;  %v9629_v25 = vld [vmem:[%s13331_s5 + $0xec4] ss:$40 sps:$4 sm:$0xff]  }
 0x35a   :  { %6622 = vmatpush1.bf16.msra.mxu1 %v9558_v29  ;;  %6486 = vmatprep.subr.bf16.mxu0 %v9563_v26  ;;  %v9632_v29 = vld [vmem:[%s13331_s5 + $0xbfc] ss:$40 sps:$4 sm:$0xff]   ;;  %v9627_v26 = vld [vmem:[%s13331_s5 + $0xec0] ss:$40 sps:$4 sm:$0xff]  }
 0x35b   :  { %6623 = vmatprep.subr.bf16.mxu1 %v9566_v27  ;;  %v9630_v27 = vld [vmem:[%s13331_s5 + $0xbf8] ss:$40 sps:$4 sm:$0xff]  }
 0x35d   :  { %6487 = vmatpush1.bf16.msra.mxu0 %v9561_v28  ;;  %v9635_v28 = vld [vmem:[%s13331_s5 + $0xf14] ss:$40 sps:$4 sm:$0xff]  }
 0x35e   :  { %6624 = vmatpush1.bf16.msra.mxu1 %v9564_v36  ;;  %6488 = vmatprep.subr.bf16.mxu0 %v9569_v37  ;;  %v9638_v36 = vld [vmem:[%s13331_s5 + $0xc4c] ss:$40 sps:$4 sm:$0xff]   ;;  %v9633_v37 = vld [vmem:[%s13331_s5 + $0xf10] ss:$40 sps:$4 sm:$0xff]  }
 0x35f   :  { %6625 = vmatprep.subr.bf16.mxu1 %v9572_v38  ;;  %v9636_v38 = vld [vmem:[%s13331_s5 + $0xc48] ss:$40 sps:$4 sm:$0xff]  }
 0x361   :  { %6489 = vmatpush1.bf16.msra.mxu0 %v9567_v40  ;;  %v9641_v40 = vld [vmem:[%s13331_s5 + $0xf64] ss:$40 sps:$4 sm:$0xff]  }
 0x362   :  { %6626 = vmatpush1.bf16.msra.mxu1 %v9570_v47  ;;  %6490 = vmatprep.subr.bf16.mxu0 %v9575_v41  ;;  %v9644_v47 = vld [vmem:[%s13331_s5 + $0xc9c] ss:$40 sps:$4 sm:$0xff]   ;;  %v9639_v41 = vld [vmem:[%s13331_s5 + $0xf60] ss:$40 sps:$4 sm:$0xff]  }
 0x363   :  { %6627 = vmatprep.subr.bf16.mxu1 %v9578_v42  ;;  %v9642_v42 = vld [vmem:[%s13331_s5 + $0xc98] ss:$40 sps:$4 sm:$0xff]  }
 0x365   :  { %6491 = vmatpush1.bf16.msra.mxu0 %v9573_v43  ;;  %v9647_v43 = vld [vmem:[%s13331_s5 + $0xfb4] ss:$40 sps:$4 sm:$0xff]  }
 0x366   :  { %6628 = vmatpush1.bf16.msra.mxu1 %v9576_v44  ;;  %6492 = vmatprep.subr.bf16.mxu0 %v9581_v45  ;;  %v9650_v44 = vld [vmem:[%s13331_s5 + $0xcec] ss:$40 sps:$4 sm:$0xff]   ;;  %v9645_v45 = vld [vmem:[%s13331_s5 + $0xfb0] ss:$40 sps:$4 sm:$0xff]  }
 0x367   :  { %6629 = vmatprep.subr.bf16.mxu1 %v9584_v39  ;;  %v9648_v39 = vld [vmem:[%s13331_s5 + $0xce8] ss:$40 sps:$4 sm:$0xff]  }
 0x369   :  { %6493 = vmatpush1.bf16.msra.mxu0 %v9579_v46  ;;  %v9653_v46 = vld [vmem:[%s13331_s5 + $0x1004] ss:$40 sps:$4 sm:$0xff]  }
 0x36a   :  { %6630 = vmatpush1.bf16.msra.mxu1 %v9582_v49  ;;  %6494 = vmatprep.subr.bf16.mxu0 %v9587_v50  ;;  %v9656_v49 = vld [vmem:[%s13331_s5 + $0xd3c] ss:$40 sps:$4 sm:$0xff]   ;;  %v9651_v50 = vld [vmem:[%s13331_s5 + $0x1000] ss:$40 sps:$4 sm:$0xff]  }
 0x36b   :  { %6631 = vmatprep.subr.bf16.mxu1 %v9590_v51  ;;  %v9654_v51 = vld [vmem:[%s13331_s5 + $0xd38] ss:$40 sps:$4 sm:$0xff]  }
 0x36d   :  { %6495 = vmatpush1.bf16.msra.mxu0 %v9585_v55  ;;  %v9659_v55 = vld [vmem:[%s13331_s5 + $0x1054] ss:$40 sps:$4 sm:$0xff]  }
 0x36e   :  { %6632 = vmatpush1.bf16.msra.mxu1 %v9588_v57  ;;  %6496 = vmatprep.subr.bf16.mxu0 %v9593_v59  ;;  %v9662_v57 = vld [vmem:[%s13331_s5 + $0xd8c] ss:$40 sps:$4 sm:$0xff]   ;;  %v9657_v59 = vld [vmem:[%s13331_s5 + $0x1050] ss:$40 sps:$4 sm:$0xff]  }
 0x36f   :  { %6642 = vmatprep.subr.bf16.mxu1 %v9596_v61  ;;  %v12418_v61 = vld [vmem:[%s13332_s6] sm:$0xff] }
 0x371   :  { %6497 = vmatpush1.bf16.msra.mxu0 %v9591_v63  ;;  %6634 = vmatmul.mubr.bf16.vlgmr.msra.gmra.mrb[16].mxu1 %v11357_v23  ;;  %v9660_v63 = vld [vmem:[%s13331_s5 + $0xd88] ss:$40 sps:$4 sm:$0xff]  }
 0x372   :  { %6643 = vmatpush1.bf16.msra.mxu1 %v9594_v0  ;;  %6674 = vmatprep.mubr.bf16.mxu1 %v11416_v53  ;;  %v9665_v0 = vld [vmem:[%s13331_s5 + $0x10a4] ss:$40 sps:$4 sm:$0xff]  }
 0x373   :  { %6498 = vmatprep.subr.bf16.mxu0 %v9599_v1  ;;  %6644 = vmatprep.subr.bf16.mxu1 %v9602_v15  ;;  %v9668_v1 = vld [vmem:[%s13331_s5 + $0xddc] ss:$40 sps:$4 sm:$0xff]   ;;  %v2821_v15 = vrot.slane %v12418_v61, %v10386_v33 }
 0x375   :  { %6499 = vmatpush1.bf16.msra.mxu0 %v9597_v2  ;;  %v9663_v2 = vld [vmem:[%s13331_s5 + $0x10a0] ss:$40 sps:$4 sm:$0xff]  }
 0x376   :  { %6645 = vmatpush1.bf16.msra.mxu1 %v9600_v4  ;;  %6500 = vmatprep.subr.bf16.mxu0 %v9605_v5  ;;  %v2825_v4 = vrot.slane %v12418_v61, %v10389_v34  ;;  %v9666_v5 = vld [vmem:[%s13331_s5 + $0xdd8] ss:$40 sps:$4 sm:$0xff]  }
 0x377   :  { %6646 = vmatprep.subr.bf16.mxu1 %v9608_v6  ;;  %v9671_v6 = vld [vmem:[%s13331_s5 + $0x10f4] ss:$40 sps:$4 sm:$0xff]  }
 0x379   :  { %6501 = vmatpush1.bf16.msra.mxu0 %v9603_v7 }
 0x37a   :  { %6647 = vmatpush1.bf16.msra.mxu1 %v9606_v8  ;;  %6502 = vmatprep.subr.bf16.mxu0 %v9611_v9  ;;  %v9674_v8 = vld [vmem:[%s13331_s5 + $0xe2c] ss:$40 sps:$4 sm:$0xff]  }
 0x37b   :  { %6648 = vmatprep.subr.bf16.mxu1 %v9614_v10 }
 0x37d   :  { %6503 = vmatpush1.bf16.msra.mxu0 %v9609_v60 }
 0x37e   :  { %6649 = vmatpush1.bf16.msra.mxu1 %v9612_v11  ;;  %6504 = vmatprep.subr.bf16.mxu0 %v9617_v12  ;;  %v9669_v12 = vld [vmem:[%s13331_s5 + $0x10f0] ss:$40 sps:$4 sm:$0xff]  }
 0x37f   :  { %6650 = vmatprep.subr.bf16.mxu1 %v9620_v13 }
 0x381   :  { %6505 = vmatpush1.bf16.msra.mxu0 %v9615_v14  ;;  %v9672_v14 = vld [vmem:[%s13331_s5 + $0xe28] ss:$40 sps:$4 sm:$0xff]  }
 0x382   :  { %6651 = vmatpush1.bf16.msra.mxu1 %v9618_v17  ;;  %6506 = vmatprep.subr.bf16.mxu0 %v9623_v18  ;;  %v9677_v17 = vld [vmem:[%s13331_s5 + $0x1144] ss:$40 sps:$4 sm:$0xff]  }
 0x383   :  { %6652 = vmatprep.subr.bf16.mxu1 %v9626_v19  ;;  %v9680_v19 = vld [vmem:[%s13331_s5 + $0xe7c] ss:$40 sps:$4 sm:$0xff]  }
 0x385   :  { %6507 = vmatpush1.bf16.msra.mxu0 %v9621_v22  ;;  %v9675_v22 = vld [vmem:[%s13331_s5 + $0x1140] ss:$40 sps:$4 sm:$0xff]  }
 0x386   :  { %6653 = vmatpush1.bf16.msra.mxu1 %v9624_v24  ;;  %6508 = vmatprep.subr.bf16.mxu0 %v9629_v25  ;;  %v9678_v24 = vld [vmem:[%s13331_s5 + $0xe78] ss:$40 sps:$4 sm:$0xff]   ;;  %v9683_v25 = vld [vmem:[%s13331_s5 + $0x1194] ss:$40 sps:$4 sm:$0xff]  }
 0x387   :  { %6654 = vmatprep.subr.bf16.mxu1 %v9632_v29  ;;  %v9686_v29 = vld [vmem:[%s13331_s5 + $0xecc] ss:$40 sps:$4 sm:$0xff]  }
 0x389   :  { %6509 = vmatpush1.bf16.msra.mxu0 %v9627_v26  ;;  %v9681_v26 = vld [vmem:[%s13331_s5 + $0x1190] ss:$40 sps:$4 sm:$0xff]  }
 0x38a   :  { %6655 = vmatpush1.bf16.msra.mxu1 %v9630_v27  ;;  %6519 = vmatprep.subr.bf16.mxu0 %v9635_v28  ;;  %v9684_v27 = vld [vmem:[%s13331_s5 + $0xec8] ss:$40 sps:$4 sm:$0xff]   ;;  %v9689_v28 = vld [vmem:[%s13331_s5 + $0x11e4] ss:$40 sps:$4 sm:$0xff]  }
 0x38b   :  { %6656 = vmatprep.subr.bf16.mxu1 %v9638_v36  ;;  %v9692_v36 = vld [vmem:[%s13331_s5 + $0xf1c] ss:$40 sps:$4 sm:$0xff]  }
 0x38c   :  { %6511 = vmatmul.mubr.bf16.vlgmr.msra.gmra.mrb[20].mxu0 %v11570_v56 }
 0x38d   :  { %6520 = vmatpush1.bf16.msra.mxu0 %v9633_v37  ;;  %6551 = vmatprep.mubr.bf16.mxu0 %v11768_v21  ;;  %v9687_v37 = vld [vmem:[%s13331_s5 + $0x11e0] ss:$40 sps:$4 sm:$0xff]  }
 0x38e   :  { %6657 = vmatpush1.bf16.msra.mxu1 %v9636_v38  ;;  %6521 = vmatprep.subr.bf16.mxu0 %v9641_v40  ;;  %v9690_v38 = vld [vmem:[%s13331_s5 + $0xf18] ss:$40 sps:$4 sm:$0xff]   ;;  %v9695_v40 = vld [vmem:[%s13331_s5 + $0x1234] ss:$40 sps:$4 sm:$0xff]  }
 0x38f   :  { %6658 = vmatprep.subr.bf16.mxu1 %v9644_v47  ;;  %v9698_v47 = vld [vmem:[%s13331_s5 + $0xf6c] ss:$40 sps:$4 sm:$0xff]  }
 0x391   :  { %6522 = vmatpush1.bf16.msra.mxu0 %v9639_v41  ;;  %v9693_v41 = vld [vmem:[%s13331_s5 + $0x1230] ss:$40 sps:$4 sm:$0xff]  }
 0x392   :  { %6659 = vmatpush1.bf16.msra.mxu1 %v9642_v42  ;;  %6523 = vmatprep.subr.bf16.mxu0 %v9647_v43  ;;  %v9696_v42 = vld [vmem:[%s13331_s5 + $0xf68] ss:$40 sps:$4 sm:$0xff]   ;;  %v9701_v43 = vld [vmem:[%s13331_s5 + $0x1284] ss:$40 sps:$4 sm:$0xff]  }
 0x393   :  { %6660 = vmatprep.subr.bf16.mxu1 %v9650_v44  ;;  %v9704_v44 = vld [vmem:[%s13331_s5 + $0xfbc] ss:$40 sps:$4 sm:$0xff]  }
 0x395   :  { %6524 = vmatpush1.bf16.msra.mxu0 %v9645_v45  ;;  %v9699_v45 = vld [vmem:[%s13331_s5 + $0x1280] ss:$40 sps:$4 sm:$0xff]  }
 0x396   :  { %6661 = vmatpush1.bf16.msra.mxu1 %v9648_v39  ;;  %6525 = vmatprep.subr.bf16.mxu0 %v9653_v46  ;;  %v9702_v39 = vld [vmem:[%s13331_s5 + $0xfb8] ss:$40 sps:$4 sm:$0xff]   ;;  %v9707_v46 = vld [vmem:[%s13331_s5 + $0x12d4] ss:$40 sps:$4 sm:$0xff]  }
 0x397   :  { %6662 = vmatprep.subr.bf16.mxu1 %v9656_v49  ;;  %v9710_v49 = vld [vmem:[%s13331_s5 + $0x100c] ss:$40 sps:$4 sm:$0xff]  }
 0x399   :  { %6526 = vmatpush1.bf16.msra.mxu0 %v9651_v50  ;;  %v9705_v50 = vld [vmem:[%s13331_s5 + $0x12d0] ss:$40 sps:$4 sm:$0xff]  }
 0x39a   :  { %6663 = vmatpush1.bf16.msra.mxu1 %v9654_v51  ;;  %6527 = vmatprep.subr.bf16.mxu0 %v9659_v55  ;;  %v9708_v51 = vld [vmem:[%s13331_s5 + $0x1008] ss:$40 sps:$4 sm:$0xff]   ;;  %v9713_v55 = vld [vmem:[%s13331_s5 + $0x1324] ss:$40 sps:$4 sm:$0xff]  }
 0x39b   :  { %6664 = vmatprep.subr.bf16.mxu1 %v9662_v57  ;;  %v9716_v57 = vld [vmem:[%s13331_s5 + $0x105c] ss:$40 sps:$4 sm:$0xff]  }
 0x39d   :  { %6528 = vmatpush1.bf16.msra.mxu0 %v9657_v59  ;;  %v10049_v59 = vmov 1983009808  }
 0x39e   :  { %6665 = vmatpush1.bf16.msra.mxu1 %v9660_v63  ;;  %6529 = vmatprep.subr.bf16.mxu0 %v9665_v0  ;;  %v6901_v63 = vunpack.c.l.s4 %v10049_v59  ;;  %v9711_v0 = vld [vmem:[%s13331_s5 + $0x1320] ss:$40 sps:$4 sm:$0xff]   ;;  %v9761_v59 = vld [vmem:[%s13331_s5 + $0x1b4] ss:$40 sps:$4 sm:$0xff]  }
 0x39f   :  { %v6225_v7 = vpop.f32.mrb[16].mxu0  ;;  %6666 = vmatprep.subr.bf16.mxu1 %v9668_v1  ;;  %v9714_v1 = vld [vmem:[%s13331_s5 + $0x1058] ss:$40 sps:$4 sm:$0xff]  }
 0x3a0   :  { %v12445_v9 = vadd.f32 %v6225_v7, %v2821_v15  ;;  %v6227_v10 = vpop.f32.mrb[17].mxu0  ;;  %v9719_v15 = vld [vmem:[%s13331_s5 + $0x1374] ss:$40 sps:$4 sm:$0xff]   ;;  %v2833_v7 = vrot.slane %v12418_v61, %v10416_v54 }
 0x3a1   :  { %v12447_v60 = vadd.f32 %v6227_v10, %v2825_v4  ;;  %6530 = vmatpush1.bf16.msra.mxu0 %v9663_v2  ;;  %v6229_v11 = vpop.f32.mrb[18].mxu0  ;;  %v9722_v2 = vld [vmem:[%s13331_s5 + $0x10ac] ss:$40 sps:$4 sm:$0xff]   ;;  %v2829_v4 = vrot.slane %v12418_v61, %v10412_v52 }
 0x3a2   :  { %6667 = vmatpush1.bf16.msra.mxu1 %v9666_v5  ;;  %v6230_v13 = vpop.f32.mrb[19].mxu0  ;;  %6531 = vmatprep.subr.bf16.mxu0 %v9671_v6  ;;  %v6902_v5 = vunpack.c.0.s8 %v6901_v63  ;;  %v9717_v6 = vld [vmem:[%s13331_s5 + $0x1370] ss:$40 sps:$4 sm:$0xff]   ;;  %v9725_v10 = vld [vmem:[%s13331_s5 + $0x13c4] ss:$40 sps:$4 sm:$0xff]  }
 0x3a3   :  { %v6898_v18 = vcombine.low %v12445_v9, %v12447_v60  ;;  %6668 = vmatprep.subr.bf16.mxu1 %v9674_v8  ;;  %v9720_v8 = vld [vmem:[%s13331_s5 + $0x10a8] ss:$40 sps:$4 sm:$0xff]   ;;  %v9728_v11 = vld [vmem:[%s13331_s5 + $0x10fc] ss:$40 sps:$4 sm:$0xff]  }
 0x3a4   :  { %v12568_v54 = vsub.s32 %v6902_v5, %v10380_v31  ;;  %v9764_v63 = vld [vmem:[%s13331_s5 + $0x12dc] ss:$40 sps:$4 sm:$0xff]   ;;  %v9768_v5 = vld [vmem:[%s13331_s5 + $0x1328] ss:$40 sps:$4 sm:$0xff]  }
 0x3a5   :  { %6532 = vmatpush1.bf16.msra.mxu0 %v9669_v12 }
 0x3a6   :  { %6669 = vmatpush1.bf16.msra.mxu1 %v9672_v14  ;;  %6533 = vmatprep.subr.bf16.mxu0 %v9677_v17 }
 0x3a7   :  { %6670 = vmatprep.subr.bf16.mxu1 %v9680_v19  ;;  %v9723_v19 = vld [vmem:[%s13331_s5 + $0x13c0] ss:$40 sps:$4 sm:$0xff]  }
 0x3a9   :  { %6534 = vmatpush1.bf16.msra.mxu0 %v9675_v22 }
 0x3aa   :  { %6671 = vmatpush1.bf16.msra.mxu1 %v9678_v24  ;;  %6535 = vmatprep.subr.bf16.mxu0 %v9683_v25  ;;  %v9726_v24 = vld [vmem:[%s13331_s5 + $0x10f8] ss:$40 sps:$4 sm:$0xff]   ;;  %v9731_v25 = vld [vmem:[%s13331_s5 + $0x24] ss:$40 sps:$4 sm:$0xff]  }
 0x3ab   :  { %6672 = vmatprep.subr.bf16.mxu1 %v9686_v29 }
 0x3ad   :  { %6536 = vmatpush1.bf16.msra.mxu0 %v9681_v26  ;;  %v9734_v26 = vld [vmem:[%s13331_s5 + $0x114c] ss:$40 sps:$4 sm:$0xff]  }
 0x3ae   :  { %6673 = vmatpush1.bf16.msra.mxu1 %v9684_v27  ;;  %6537 = vmatprep.subr.bf16.mxu0 %v9689_v28  ;;  %v6906_v27 = vrot.slane %v6898_v18, %v12568_v54  ;;  %v9740_v18 = vld [vmem:[%s13331_s5 + $0x119c] ss:$40 sps:$4 sm:$0xff]  }
 0x3af   :  { %6683 = vmatprep.subr.bf16.mxu1 %v9692_v36  ;;  %v9729_v36 = vld [vmem:[%s13331_s5 + $0x20] ss:$40 sps:$4 sm:$0xff]  }
 0x3b1   :  { %6538 = vmatpush1.bf16.msra.mxu0 %v9687_v37  ;;  %6675 = vmatmul.mubr.bf16.vlgmr.msra.gmra.mrb[16].mxu1 %v11570_v56  ;;  %v9732_v37 = vld [vmem:[%s13331_s5 + $0x1148] ss:$40 sps:$4 sm:$0xff]  }
 0x3b2   :  { %6684 = vmatpush1.bf16.msra.mxu1 %v9690_v38  ;;  %6715 = vmatprep.mubr.bf16.mxu1 %v11768_v21  ;;  %v9737_v38 = vld [vmem:[%s13331_s5 + $0x74] ss:$40 sps:$4 sm:$0xff]  }
 0x3b3   :  { %6539 = vmatprep.subr.bf16.mxu0 %v9695_v40  ;;  %6685 = vmatprep.subr.bf16.mxu1 %v9698_v47  ;;  %v9735_v47 = vld [vmem:[%s13331_s5 + $0x70] ss:$40 sps:$4 sm:$0xff]  }
 0x3b5   :  { %6540 = vmatpush1.bf16.msra.mxu0 %v9693_v41  ;;  %v9738_v41 = vld [vmem:[%s13331_s5 + $0x1198] ss:$40 sps:$4 sm:$0xff]  }
 0x3b6   :  { %6686 = vmatpush1.bf16.msra.mxu1 %v9696_v42  ;;  %6541 = vmatprep.subr.bf16.mxu0 %v9701_v43  ;;  %v9743_v42 = vld [vmem:[%s13331_s5 + $0xc4] ss:$40 sps:$4 sm:$0xff]   ;;  %v9741_v43 = vld [vmem:[%s13331_s5 + $0xc0] ss:$40 sps:$4 sm:$0xff]  }
 0x3b7   :  { %6687 = vmatprep.subr.bf16.mxu1 %v9704_v44  ;;  %v9744_v44 = vld [vmem:[%s13331_s5 + $0x11e8] ss:$40 sps:$4 sm:$0xff]  }
 0x3b9   :  { %6542 = vmatpush1.bf16.msra.mxu0 %v9699_v45  ;;  %v9749_v45 = vld [vmem:[%s13331_s5 + $0x114] ss:$40 sps:$4 sm:$0xff]  }
 0x3ba   :  { %6688 = vmatpush1.bf16.msra.mxu1 %v9702_v39  ;;  %6543 = vmatprep.subr.bf16.mxu0 %v9707_v46  ;;  %v9752_v39 = vld [vmem:[%s13331_s5 + $0x123c] ss:$40 sps:$4 sm:$0xff]   ;;  %v9747_v46 = vld [vmem:[%s13331_s5 + $0x110] ss:$40 sps:$4 sm:$0xff]  }
 0x3bb   :  { %6689 = vmatprep.subr.bf16.mxu1 %v9710_v49  ;;  %v9750_v49 = vld [vmem:[%s13331_s5 + $0x1238] ss:$40 sps:$4 sm:$0xff]  }
 0x3bd   :  { %6544 = vmatpush1.bf16.msra.mxu0 %v9705_v50  ;;  %v9755_v50 = vld [vmem:[%s13331_s5 + $0x164] ss:$40 sps:$4 sm:$0xff]  }
 0x3be   :  { %6690 = vmatpush1.bf16.msra.mxu1 %v9708_v51  ;;  %6545 = vmatprep.subr.bf16.mxu0 %v9713_v55  ;;  %v9758_v51 = vld [vmem:[%s13331_s5 + $0x128c] ss:$40 sps:$4 sm:$0xff]   ;;  %v9753_v55 = vld [vmem:[%s13331_s5 + $0x160] ss:$40 sps:$4 sm:$0xff]  }
 0x3bf   :  { %6691 = vmatprep.subr.bf16.mxu1 %v9716_v57  ;;  %v9756_v57 = vld [vmem:[%s13331_s5 + $0x1288] ss:$40 sps:$4 sm:$0xff]  }
 0x3c1   :  { %6546 = vmatpush1.bf16.msra.mxu0 %v9711_v0  ;;  %v9759_v0 = vld [vmem:[%s13331_s5 + $0x1b0] ss:$40 sps:$4 sm:$0xff]  }
 0x3c2   :  { %6692 = vmatpush1.bf16.msra.mxu1 %v9714_v1  ;;  %6547 = vmatprep.subr.bf16.mxu0 %v9719_v15  ;;  %v9762_v1 = vld [vmem:[%s13331_s5 + $0x12d8] ss:$40 sps:$4 sm:$0xff]   ;;  %v9767_v15 = vld [vmem:[%s13331_s5 + $0x204] ss:$40 sps:$4 sm:$0xff]  }
 0x3c3   :  { %v6389_v52 = vpop.f32.mrb[12].mxu1  ;;  %6693 = vmatprep.subr.bf16.mxu1 %v9722_v2  ;;  %v9770_v2 = vld [vmem:[%s13331_s5 + $0x132c] ss:$40 sps:$4 sm:$0xff]  }
 0x3c4   :  { %v12565_v12 = vadd.f32 %v6389_v52, %v2829_v4  ;;  %v6391_v13 = vpop.f32.mrb[13].mxu1  ;;  %v9765_v4 = vld [vmem:[%s13331_s5 + $0x200] ss:$40 sps:$4 sm:$0xff]   ;;  %v9779_v52 = vld [vmem:[%s13331_s5 + $0x2a4] ss:$40 sps:$4 sm:$0xff]  }
 0x3c5   :  { %v12570_v14 = vadd.f32 %v6391_v13, %v2833_v7  ;;  %6548 = vmatpush1.bf16.msra.mxu0 %v9717_v6  ;;  %v6393_v17 = vpop.f32.mrb[14].mxu1  ;;  %v9773_v6 = vld [vmem:[%s13331_s5 + $0x254] ss:$40 sps:$4 sm:$0xff]   ;;  %v9777_v13 = vld [vmem:[%s13331_s5 + $0x2a0] ss:$40 sps:$4 sm:$0xff]  }
 0x3c6   :  { %6694 = vmatpush1.bf16.msra.mxu1 %v9720_v8  ;;  %v6394_v22 = vpop.f32.mrb[15].mxu1  ;;  %6549 = vmatprep.subr.bf16.mxu0 %v9725_v10  ;;  %v9776_v7 = vld [vmem:[%s13331_s5 + $0x137c] ss:$40 sps:$4 sm:$0xff]   ;;  %v9771_v8 = vld [vmem:[%s13331_s5 + $0x250] ss:$40 sps:$4 sm:$0xff]  }
 0x3c7   :  { %v6899_v29 = vcombine.low %v12565_v12, %v12570_v14  ;;  %6695 = vmatprep.subr.bf16.mxu1 %v9728_v11  ;;  %v9774_v10 = vld [vmem:[%s13331_s5 + $0x1378] ss:$40 sps:$4 sm:$0xff]   ;;  %v9782_v11 = vld [vmem:[%s13331_s5 + $0x13cc] ss:$40 sps:$4 sm:$0xff]   ;;  %v9780_v17 = vld [vmem:[%s13331_s5 + $0x13c8] ss:$40 sps:$4 sm:$0xff]  }
 0x3c8   :  { %v9786_v22 = vld [vmem:[%s13333_s7 + $0x40] sm:$0xff]  }
 0x3c9   :  { %v6913_v28 = vrot.slane %v6899_v29, %v12568_v54  ;;  %6550 = vmatpush1.bf16.msra.mxu0 %v9723_v19  ;;  %v9785_v19 = vld [vmem:[%s13331_s5 + $0x2f4] ss:$40 sps:$4 sm:$0xff]   ;;  %v9790_v29 = vld [vmem:[%s13331_s5 + $0x344] ss:$40 sps:$4 sm:$0xff]  }
 0x3ca   :  { %6696 = vmatpush1.bf16.msra.mxu1 %v9726_v24  ;;  %6724 = vmatprep.subr.bf16.mxu0 %v9731_v25  ;;  %v9783_v24 = vld [vmem:[%s13331_s5 + $0x2f0] ss:$40 sps:$4 sm:$0xff]   ;;  %v9787_v25 = vld [vmem:[%s13333_s7] sm:$0xff]  }
 0x3cb   :  { %6697 = vmatprep.subr.bf16.mxu1 %v9734_v26  ;;  %v6914_v40 = vcombine.low %v6906_v27, %v6913_v28  ;;  %v9791_v26 = vld [vmem:[%s13333_s7 + $0x48] sm:$0xff]   ;;  %v6950_v27 = vpack.c.bf16 %v12447_v60, %v12447_v60  ;;  %v9796_v60 = vld [vmem:[%s13333_s7 + $0x50] sm:$0xff]  }
 0x3cc   :  { %6552 = vmatmul.mubr.bf16.vlgmr.msra.gmra.mrb[20].mxu0 %v11776_v48  ;;  %v9788_v28 = vld [vmem:[%s13331_s5 + $0x340] ss:$40 sps:$4 sm:$0xff]  }
 0x3cd   :  { %6725 = vmatpush1.bf16.msra.mxu0 %v9729_v36  ;;  %6756 = vmatprep.mubr.bf16.mxu0 %v11081_v16  ;;  %6943 = vst [vmem:[#allocation3] sm:$0xff] %v6914_v40  ;;  %v9746_v16 = vld [vmem:[%s13331_s5 + $0x11ec] ss:$40 sps:$4 sm:$0xff]  }
 0x3ce   :  { %6698 = vmatpush1.bf16.msra.mxu1 %v9732_v37  ;;  %6726 = vmatprep.subr.bf16.mxu0 %v9737_v38  ;;  %v9792_v36 = vld [vmem:[%s13333_s7 + $0x8] sm:$0xff]   ;;  %v9795_v37 = vld [vmem:[%s13331_s5 + $0x394] ss:$40 sps:$4 sm:$0xff]   ;;  %v9793_v38 = vld [vmem:[%s13331_s5 + $0x390] ss:$40 sps:$4 sm:$0xff]  }
 0x3cf   :  { %6699 = vmatprep.subr.bf16.mxu1 %v9740_v18  ;;  %v9797_v18 = vld [vmem:[%s13333_s7 + $0x10] sm:$0xff]   ;;  %v9800_v40 = vld [vmem:[%s13331_s5 + $0x3e4] ss:$40 sps:$4 sm:$0xff]  }
 0x3d1   :  { %6727 = vmatpush1.bf16.msra.mxu0 %v9735_v47  ;;  %v9801_v47 = vld [vmem:[%s13333_s7 + $0x58] sm:$0xff]  }
 0x3d2   :  { %6700 = vmatpush1.bf16.msra.mxu1 %v9738_v41  ;;  %6728 = vmatprep.subr.bf16.mxu0 %v9743_v42  ;;  %v9798_v41 = vld [vmem:[%s13331_s5 + $0x3e0] ss:$40 sps:$4 sm:$0xff]   ;;  %v9802_v42 = vld [vmem:[%s13333_s7 + $0x18] sm:$0xff]  }
 0x3d3   :  { %6701 = vmatprep.subr.bf16.mxu1 %v9746_v16  ;;  %v9805_v16 = vld [vmem:[%s13331_s5 + $0x434] ss:$40 sps:$4 sm:$0xff]  }
 0x3d5   :  { %6729 = vmatpush1.bf16.msra.mxu0 %v9741_v43  ;;  %v9806_v43 = vld [vmem:[%s13333_s7 + $0x60] sm:$0xff]  }
 0x3d6   :  { %6702 = vmatpush1.bf16.msra.mxu1 %v9744_v44  ;;  %6730 = vmatprep.subr.bf16.mxu0 %v9749_v45  ;;  %v9803_v44 = vld [vmem:[%s13331_s5 + $0x430] ss:$40 sps:$4 sm:$0xff]   ;;  %v9807_v45 = vld [vmem:[%s13333_s7 + $0x20] sm:$0xff]  }
 0x3d7   :  { %6703 = vmatprep.subr.bf16.mxu1 %v9752_v39  ;;  %v9810_v39 = vld [vmem:[%s13331_s5 + $0x484] ss:$40 sps:$4 sm:$0xff]  }
 0x3d9   :  { %6731 = vmatpush1.bf16.msra.mxu0 %v9747_v46  ;;  %v9811_v46 = vld [vmem:[%s13333_s7 + $0x68] sm:$0xff]  }
 0x3da   :  { %6704 = vmatpush1.bf16.msra.mxu1 %v9750_v49  ;;  %6732 = vmatprep.subr.bf16.mxu0 %v9755_v50  ;;  %v9808_v49 = vld [vmem:[%s13331_s5 + $0x480] ss:$40 sps:$4 sm:$0xff]  }
 0x3db   :  { %6705 = vmatprep.subr.bf16.mxu1 %v9758_v51  ;;  %v9812_v50 = vld [vmem:[%s13333_s7 + $0x28] sm:$0xff]   ;;  %v9815_v51 = vld [vmem:[%s13331_s5 + $0x4d4] ss:$40 sps:$4 sm:$0xff]  }
 0x3dd   :  { %6733 = vmatpush1.bf16.msra.mxu0 %v9753_v55  ;;  %v9816_v55 = vld [vmem:[%s13333_s7 + $0x70] sm:$0xff]  }
 0x3de   :  { %6706 = vmatpush1.bf16.msra.mxu1 %v9756_v57  ;;  %6734 = vmatprep.subr.bf16.mxu0 %v9761_v59  ;;  %v9813_v57 = vld [vmem:[%s13331_s5 + $0x4d0] ss:$40 sps:$4 sm:$0xff]  }
 0x3df   :  { %6707 = vmatprep.subr.bf16.mxu1 %v9764_v63  ;;  %v9817_v59 = vld [vmem:[%s13333_s7 + $0x30] sm:$0xff]   ;;  %v9820_v63 = vld [vmem:[%s13331_s5 + $0x524] ss:$40 sps:$4 sm:$0xff]  }
 0x3e1   :  { %6735 = vmatpush1.bf16.msra.mxu0 %v9759_v0  ;;  %v9821_v0 = vld [vmem:[%s13333_s7 + $0x78] sm:$0xff]  }
 0x3e2   :  { %6708 = vmatpush1.bf16.msra.mxu1 %v9762_v1  ;;  %6736 = vmatprep.subr.bf16.mxu0 %v9767_v15  ;;  %v9818_v1 = vld [vmem:[%s13331_s5 + $0x520] ss:$40 sps:$4 sm:$0xff]   ;;  %v9822_v15 = vld [vmem:[%s13333_s7 + $0x38] sm:$0xff]  }
 0x3e3   :  { %6709 = vmatprep.subr.bf16.mxu1 %v9770_v2  ;;  %v9825_v2 = vld [vmem:[%s13331_s5 + $0x574] ss:$40 sps:$4 sm:$0xff]  }
 0x3e5   :  { %6737 = vmatpush1.bf16.msra.mxu0 %v9765_v4  ;;  %v9826_v4 = vld [vmem:[%s13333_s7 + $0xc0] sm:$0xff]  }
 0x3e6   :  { %6710 = vmatpush1.bf16.msra.mxu1 %v9768_v5  ;;  %6738 = vmatprep.subr.bf16.mxu0 %v9773_v6  ;;  %v9823_v5 = vld [vmem:[%s13331_s5 + $0x570] ss:$40 sps:$4 sm:$0xff]   ;;  %v9827_v6 = vld [vmem:[%s13333_s7 + $0x80] sm:$0xff]  }
 0x3e7   :  { %6711 = vmatprep.subr.bf16.mxu1 %v9776_v7  ;;  %v6949_v7 = vpack.c.bf16 %v12445_v9, %v12445_v9  ;;  %v9832_v9 = vld [vmem:[%s13333_s7 + $0x88] sm:$0xff]  }
 0x3e9   :  { %6739 = vmatpush1.bf16.msra.mxu0 %v9771_v8  ;;  %v6952_v8 = vpack.c.bf16 %v12570_v14, %v12570_v14  ;;  %v9836_v14 = vld [vmem:[%s13333_s7 + $0xd0] sm:$0xff]  }
 0x3ea   :  { %6712 = vmatpush1.bf16.msra.mxu1 %v9774_v10  ;;  %6740 = vmatprep.subr.bf16.mxu0 %v9779_v52  ;;  %v9828_v10 = vld [vmem:[%s13331_s5 + $0x5c0] ss:$40 sps:$4 sm:$0xff]   ;;  %v9835_v52 = vld [vmem:[%s13331_s5 + $0x614] ss:$40 sps:$4 sm:$0xff]  }
 0x3eb   :  { %6713 = vmatprep.subr.bf16.mxu1 %v9782_v11  ;;  %v9833_v11 = vld [vmem:[%s13331_s5 + $0x610] ss:$40 sps:$4 sm:$0xff]  }
 0x3ed   :  { %6741 = vmatpush1.bf16.msra.mxu0 %v9777_v13  ;;  %v9837_v13 = vld [vmem:[%s13333_s7 + $0x90] sm:$0xff]  }
 0x3ee   :  { %6714 = vmatpush1.bf16.msra.mxu1 %v9780_v17  ;;  %6742 = vmatprep.subr.bf16.mxu0 %v9785_v19  ;;  %v9840_v17 = vld [vmem:[%s13331_s5 + $0x664] ss:$40 sps:$4 sm:$0xff]   ;;  %v9841_v19 = vld [vmem:[%s13333_s7 + $0xd8] sm:$0xff]  }
 0x3ef   :  { %8781 = vmatprep.subr.bf16.mxu1 %v9786_v22  ;;  %v9838_v22 = vld [vmem:[%s13331_s5 + $0x660] ss:$40 sps:$4 sm:$0xff]  }
 0x3f1   :  { %6716 = vmatmul.mubr.bf16.vlgmr.msra.gmra.mrb[16].mxu1 %v11776_v48  ;;  %6743 = vmatpush1.bf16.msra.mxu0 %v9783_v24  ;;  %v9842_v24 = vld [vmem:[%s13333_s7 + $0x98] sm:$0xff]  }
 0x3f2   :  { %8782 = vmatpush3.bf16.msra.mxu1 %v9787_v25  ;;  %7602 = vmatprep.mubr.bf16.mxu1 %v6950_v27  ;;  %v9845_v25 = vld [vmem:[%s13331_s5 + $0x6b4] ss:$40 sps:$4 sm:$0xff]   ;;  %v9847_v27 = vld [vmem:[%s13333_s7 + $0xa0] sm:$0xff]  }
 0x3f3   :  { %6744 = vmatprep.subr.bf16.mxu0 %v9790_v29  ;;  %8783 = vmatprep.subr.bf16.mxu1 %v9791_v26  ;;  %v9846_v29 = vld [vmem:[%s13333_s7 + $0xe0] sm:$0xff]   ;;  %v9843_v26 = vld [vmem:[%s13331_s5 + $0x6b0] ss:$40 sps:$4 sm:$0xff]  }
 0x3f5   :  { %6745 = vmatpush1.bf16.msra.mxu0 %v9788_v28  ;;  %v9850_v28 = vld [vmem:[%s13331_s5 + $0x704] ss:$40 sps:$4 sm:$0xff]  }
 0x3f6   :  { %8784 = vmatpush3.bf16.msra.mxu1 %v9792_v36  ;;  %6746 = vmatprep.subr.bf16.mxu0 %v9795_v37  ;;  %v9851_v36 = vld [vmem:[%s13333_s7 + $0xe8] sm:$0xff]  }
 0x3f7   :  { %8785 = vmatprep.subr.bf16.mxu1 %v9796_v60  ;;  %v9848_v37 = vld [vmem:[%s13331_s5 + $0x700] ss:$40 sps:$4 sm:$0xff]  }
 0x3f8   :  { %v9852_v60 = vld [vmem:[%s13333_s7 + $0xa8] sm:$0xff]  }
 0x3f9   :  { %6747 = vmatpush1.bf16.msra.mxu0 %v9793_v38  ;;  %v9855_v38 = vld [vmem:[%s13331_s5 + $0x754] ss:$40 sps:$4 sm:$0xff]  }
 0x3fa   :  { %8786 = vmatpush3.bf16.msra.mxu1 %v9797_v18  ;;  %6748 = vmatprep.subr.bf16.mxu0 %v9800_v40  ;;  %v9856_v18 = vld [vmem:[%s13333_s7 + $0xf0] sm:$0xff]  }
 0x3fb   :  { %8787 = vmatprep.subr.bf16.mxu1 %v9801_v47  ;;  %v9853_v40 = vld [vmem:[%s13331_s5 + $0x750] ss:$40 sps:$4 sm:$0xff]  }
 0x3fc   :  { %v9857_v47 = vld [vmem:[%s13333_s7 + $0xb0] sm:$0xff]  }
 0x3fd   :  { %6749 = vmatpush1.bf16.msra.mxu0 %v9798_v41  ;;  %v9860_v41 = vld [vmem:[%s13331_s5 + $0x7a4] ss:$40 sps:$4 sm:$0xff]  }
 0x3fe   :  { %8788 = vmatpush3.bf16.msra.mxu1 %v9802_v42  ;;  %6750 = vmatprep.subr.bf16.mxu0 %v9805_v16  ;;  %v9861_v42 = vld [vmem:[%s13333_s7 + $0xf8] sm:$0xff]   ;;  %v9858_v16 = vld [vmem:[%s13331_s5 + $0x7a0] ss:$40 sps:$4 sm:$0xff]  }
 0x3ff   :  { %8789 = vmatprep.subr.bf16.mxu1 %v9806_v43  ;;  %v9862_v43 = vld [vmem:[%s13333_s7 + $0xb8] sm:$0xff]  }
 0x401   :  { %6751 = vmatpush1.bf16.msra.mxu0 %v9803_v44  ;;  %v9865_v44 = vld [vmem:[%s13331_s5 + $0x7f4] ss:$40 sps:$4 sm:$0xff]  }
 0x402   :  { %8790 = vmatpush3.bf16.msra.mxu1 %v9807_v45  ;;  %6752 = vmatprep.subr.bf16.mxu0 %v9810_v39  ;;  %v9929_v45 = vld [vmem:[%s13333_s7 + $0x140] sm:$0xff]   ;;  %v9863_v39 = vld [vmem:[%s13331_s5 + $0x7f0] ss:$40 sps:$4 sm:$0xff]  }
 0x403   :  { %8791 = vmatprep.subr.bf16.mxu1 %v9811_v46  ;;  %v9868_v46 = vld [vmem:[%s13331_s5 + $0x844] ss:$40 sps:$4 sm:$0xff]  }
 0x405   :  { %6753 = vmatpush1.bf16.msra.mxu0 %v9808_v49  ;;  %v9930_v49 = vld [vmem:[%s13333_s7 + $0x100] sm:$0xff]  }
 0x406   :  { %8792 = vmatpush3.bf16.msra.mxu1 %v9812_v50  ;;  %6754 = vmatprep.subr.bf16.mxu0 %v9815_v51  ;;  %v6951_v50 = vpack.c.bf16 %v12565_v12, %v12565_v12  ;;  %v9934_v51 = vld [vmem:[%s13333_s7 + $0x148] sm:$0xff]  }
 0x407   :  { %8793 = vmatprep.subr.bf16.mxu1 %v9816_v55  ;;  %v9866_v55 = vld [vmem:[%s13331_s5 + $0x840] ss:$40 sps:$4 sm:$0xff]  }
 0x408   :  { %v9935_v12 = vld [vmem:[%s13333_s7 + $0x108] sm:$0xff]  }
 0x409   :  { %6755 = vmatpush1.bf16.msra.mxu0 %v9813_v57  ;;  %v9871_v57 = vld [vmem:[%s13331_s5 + $0x894] ss:$40 sps:$4 sm:$0xff]  }
 0x40a   :  { %8794 = vmatpush3.bf16.msra.mxu1 %v9817_v59  ;;  %6765 = vmatprep.subr.bf16.mxu0 %v9820_v63  ;;  %v9939_v59 = vld [vmem:[%s13333_s7 + $0x150] sm:$0xff]  }
 0x40b   :  { %8795 = vmatprep.subr.bf16.mxu1 %v9821_v0  ;;  %v9869_v63 = vld [vmem:[%s13331_s5 + $0x890] ss:$40 sps:$4 sm:$0xff]   ;;  %v9874_v0 = vld [vmem:[%s13331_s5 + $0x8e4] ss:$40 sps:$4 sm:$0xff]  }
 0x40c   :  { %6757 = vmatmul.mubr.bf16.vlgmr.msra.gmra.mrb[24].mxu0 %v11086_v30  ;;  %v9830_v30 = vld [vmem:[%s13331_s5 + $0x5c4] ss:$40 sps:$4 sm:$0xff]  }
 0x40d   :  { %6766 = vmatpush1.bf16.msra.mxu0 %v9818_v1  ;;  %6797 = vmatprep.mubr.bf16.mxu0 %v11349_v20  ;;  %v9831_v20 = vld [vmem:[%s13333_s7 + $0xc8] sm:$0xff]   ;;  %v9940_v1 = vld [vmem:[%s13333_s7 + $0x110] sm:$0xff]  }
 0x40e   :  { %8796 = vmatpush3.bf16.msra.mxu1 %v9822_v15  ;;  %6767 = vmatprep.subr.bf16.mxu0 %v9825_v2  ;;  %v9944_v15 = vld [vmem:[%s13333_s7 + $0x158] sm:$0xff]   ;;  %v9872_v2 = vld [vmem:[%s13331_s5 + $0x8e0] ss:$40 sps:$4 sm:$0xff]  }
 0x40f   :  { %8803 = vmatprep.subr.bf16.mxu1 %v9826_v4  ;;  %v9877_v4 = vld [vmem:[%s13331_s5 + $0x934] ss:$40 sps:$4 sm:$0xff]  }
 0x411   :  { %6768 = vmatpush1.bf16.msra.mxu0 %v9823_v5  ;;  %7603 = vmatmul.mubr.bf16.vlgmr.msra.gmra.mrb[20].mxu1 %v6949_v7  ;;  %v9945_v5 = vld [vmem:[%s13333_s7 + $0x118] sm:$0xff]  }
 0x412   :  { %8804 = vmatpush3.bf16.msra.mxu1 %v9827_v6  ;;  %7642 = vmatprep.mubr.bf16.mxu1 %v6952_v8  ;;  %v9949_v6 = vld [vmem:[%s13333_s7 + $0x160] sm:$0xff]   ;;  %v9875_v7 = vld [vmem:[%s13331_s5 + $0x930] ss:$40 sps:$4 sm:$0xff]   ;;  %v9954_v8 = vld [vmem:[%s13333_s7 + $0x168] sm:$0xff]  }
 0x413   :  { %6769 = vmatprep.subr.bf16.mxu0 %v9830_v30  ;;  %8805 = vmatprep.subr.bf16.mxu1 %v9831_v20  ;;  %v9880_v30 = vld [vmem:[%s13331_s5 + $0x984] ss:$40 sps:$4 sm:$0xff]  }
 0x414   :  { %v9950_v20 = vld [vmem:[%s13333_s7 + $0x120] sm:$0xff]  }
 0x415   :  { %6770 = vmatpush1.bf16.msra.mxu0 %v9828_v10  ;;  %v9878_v10 = vld [vmem:[%s13331_s5 + $0x980] ss:$40 sps:$4 sm:$0xff]  }
 0x416   :  { %8806 = vmatpush3.bf16.msra.mxu1 %v9832_v9  ;;  %6771 = vmatprep.subr.bf16.mxu0 %v9835_v52  ;;  %v9883_v9 = vld [vmem:[%s13331_s5 + $0x9d4] ss:$40 sps:$4 sm:$0xff]   ;;  %v9955_v52 = vld [vmem:[%s13333_s7 + $0x128] sm:$0xff]  }
 0x417   :  { %8807 = vmatprep.subr.bf16.mxu1 %v9836_v14  ;;  %v9959_v14 = vld [vmem:[%s13333_s7 + $0x170] sm:$0xff]  }
 0x419   :  { %6772 = vmatpush1.bf16.msra.mxu0 %v9833_v11  ;;  %v9881_v11 = vld [vmem:[%s13331_s5 + $0x9d0] ss:$40 sps:$4 sm:$0xff]  }
 0x41a   :  { %8808 = vmatpush3.bf16.msra.mxu1 %v9837_v13  ;;  %6773 = vmatprep.subr.bf16.mxu0 %v9840_v17  ;;  %v9886_v13 = vld [vmem:[%s13331_s5 + $0xa24] ss:$40 sps:$4 sm:$0xff]   ;;  %v9960_v17 = vld [vmem:[%s13333_s7 + $0x130] sm:$0xff]  }
 0x41b   :  { %8809 = vmatprep.subr.bf16.mxu1 %v9841_v19  ;;  %v9964_v19 = vld [vmem:[%s13333_s7 + $0x178] sm:$0xff]  }
 0x41d   :  { %6774 = vmatpush1.bf16.msra.mxu0 %v9838_v22  ;;  %v9884_v22 = vld [vmem:[%s13331_s5 + $0xa20] ss:$40 sps:$4 sm:$0xff]  }
 0x41e   :  { %8810 = vmatpush3.bf16.msra.mxu1 %v9842_v24  ;;  %6775 = vmatprep.subr.bf16.mxu0 %v9845_v25  ;;  %v9889_v24 = vld [vmem:[%s13331_s5 + $0xa74] ss:$40 sps:$4 sm:$0xff]  }
 0x41f   :  { %8811 = vmatprep.subr.bf16.mxu1 %v9846_v29  ;;  %v9965_v25 = vld [vmem:[%s13333_s7 + $0x138] sm:$0xff]   ;;  %v9972_v29 = vld [vmem:[%s13333_s7 + $0x1c0] sm:$0xff]  }
 0x421   :  { %6776 = vmatpush1.bf16.msra.mxu0 %v9843_v26  ;;  %v9887_v26 = vld [vmem:[%s13331_s5 + $0xa70] ss:$40 sps:$4 sm:$0xff]  }
 0x422   :  { %8812 = vmatpush3.bf16.msra.mxu1 %v9847_v27  ;;  %6777 = vmatprep.subr.bf16.mxu0 %v9850_v28  ;;  %v9892_v27 = vld [vmem:[%s13331_s5 + $0xac4] ss:$40 sps:$4 sm:$0xff]   ;;  %v9890_v28 = vld [vmem:[%s13331_s5 + $0xac0] ss:$40 sps:$4 sm:$0xff]  }
 0x423   :  { %8813 = vmatprep.subr.bf16.mxu1 %v9851_v36  ;;  %v9898_v36 = vld [vmem:[%s13331_s5 + $0xb64] ss:$40 sps:$4 sm:$0xff]  }
 0x425   :  { %6778 = vmatpush1.bf16.msra.mxu0 %v9848_v37  ;;  %v9896_v37 = vld [vmem:[%s13331_s5 + $0xb60] ss:$40 sps:$4 sm:$0xff]  }
 0x426   :  { %8814 = vmatpush3.bf16.msra.mxu1 %v9852_v60  ;;  %6779 = vmatprep.subr.bf16.mxu0 %v9855_v38  ;;  %v9901_v60 = vld [vmem:[%s13331_s5 + $0xbb4] ss:$40 sps:$4 sm:$0xff]   ;;  %v9899_v38 = vld [vmem:[%s13331_s5 + $0xbb0] ss:$40 sps:$4 sm:$0xff]  }
 0x427   :  { %8815 = vmatprep.subr.bf16.mxu1 %v9856_v18  ;;  %v9904_v18 = vld [vmem:[%s13331_s5 + $0xc04] ss:$40 sps:$4 sm:$0xff]  }
 0x429   :  { %6780 = vmatpush1.bf16.msra.mxu0 %v9853_v40  ;;  %v9902_v40 = vld [vmem:[%s13331_s5 + $0xc00] ss:$40 sps:$4 sm:$0xff]  }
 0x42a   :  { %8816 = vmatpush3.bf16.msra.mxu1 %v9857_v47  ;;  %6781 = vmatprep.subr.bf16.mxu0 %v9860_v41  ;;  %v9907_v47 = vld [vmem:[%s13331_s5 + $0xc54] ss:$40 sps:$4 sm:$0xff]   ;;  %v9905_v41 = vld [vmem:[%s13331_s5 + $0xc50] ss:$40 sps:$4 sm:$0xff]  }
 0x42b   :  { %8817 = vmatprep.subr.bf16.mxu1 %v9861_v42  ;;  %v9910_v42 = vld [vmem:[%s13331_s5 + $0xca4] ss:$40 sps:$4 sm:$0xff]  }
 0x42d   :  { %6782 = vmatpush1.bf16.msra.mxu0 %v9858_v16  ;;  %v9908_v16 = vld [vmem:[%s13331_s5 + $0xca0] ss:$40 sps:$4 sm:$0xff]  }
 0x42e   :  { %8818 = vmatpush3.bf16.msra.mxu1 %v9862_v43  ;;  %6783 = vmatprep.subr.bf16.mxu0 %v9865_v44  ;;  %v9913_v43 = vld [vmem:[%s13331_s5 + $0xcf4] ss:$40 sps:$4 sm:$0xff]   ;;  %v9911_v44 = vld [vmem:[%s13331_s5 + $0xcf0] ss:$40 sps:$4 sm:$0xff]  }
 0x42f   :  { %8825 = vmatprep.subr.bf16.mxu1 %v9929_v45  ;;  %v9916_v45 = vld [vmem:[%s13331_s5 + $0xd44] ss:$40 sps:$4 sm:$0xff]  }
 0x431   :  { %6784 = vmatpush1.bf16.msra.mxu0 %v9863_v39  ;;  %7643 = vmatmul.mubr.bf16.vlgmr.msra.gmra.mrb[24].mxu1 %v6951_v50  ;;  %v9914_v39 = vld [vmem:[%s13331_s5 + $0xd40] ss:$40 sps:$4 sm:$0xff]   ;;  %v9922_v50 = vld [vmem:[%s13331_s5 + $0xde4] ss:$40 sps:$4 sm:$0xff]  }
 0x432   :  { %6785 = vmatprep.subr.bf16.mxu0 %v9868_v46  ;;  %8826 = vmatpush3.bf16.msra.mxu1 %v9930_v49  ;;  %v9919_v46 = vld [vmem:[%s13331_s5 + $0xd94] ss:$40 sps:$4 sm:$0xff]   ;;  %v9917_v49 = vld [vmem:[%s13331_s5 + $0xd90] ss:$40 sps:$4 sm:$0xff]  }
 0x433   :  { %8827 = vmatprep.subr.bf16.mxu1 %v9934_v51  ;;  %v9920_v51 = vld [vmem:[%s13331_s5 + $0xde0] ss:$40 sps:$4 sm:$0xff]  }
 0x435   :  { %6786 = vmatpush1.bf16.msra.mxu0 %v9866_v55  ;;  %v9925_v55 = vld [vmem:[%s13331_s5 + $0xe34] ss:$40 sps:$4 sm:$0xff]  }
 0x436   :  { %6787 = vmatprep.subr.bf16.mxu0 %v9871_v57  ;;  %8828 = vmatpush3.bf16.msra.mxu1 %v9935_v12  ;;  %v9923_v57 = vld [vmem:[%s13331_s5 + $0xe30] ss:$40 sps:$4 sm:$0xff]   ;;  %v9928_v12 = vld [vmem:[%s13331_s5 + $0xe84] ss:$40 sps:$4 sm:$0xff]  }
 0x437   :  { %8829 = vmatprep.subr.bf16.mxu1 %v9939_v59  ;;  %v9926_v59 = vld [vmem:[%s13331_s5 + $0xe80] ss:$40 sps:$4 sm:$0xff]  }
 0x439   :  { %6788 = vmatpush1.bf16.msra.mxu0 %v9869_v63  ;;  %v9933_v63 = vld [vmem:[%s13331_s5 + $0xed4] ss:$40 sps:$4 sm:$0xff]  }
 0x43a   :  { %6789 = vmatprep.subr.bf16.mxu0 %v9874_v0  ;;  %8830 = vmatpush3.bf16.msra.mxu1 %v9940_v1  ;;  %v9931_v0 = vld [vmem:[%s13331_s5 + $0xed0] ss:$40 sps:$4 sm:$0xff]   ;;  %v9938_v1 = vld [vmem:[%s13331_s5 + $0xf24] ss:$40 sps:$4 sm:$0xff]  }
 0x43b   :  { %8831 = vmatprep.subr.bf16.mxu1 %v9944_v15  ;;  %v9936_v15 = vld [vmem:[%s13331_s5 + $0xf20] ss:$40 sps:$4 sm:$0xff]  }
 0x43d   :  { %6790 = vmatpush1.bf16.msra.mxu0 %v9872_v2  ;;  %v9943_v2 = vld [vmem:[%s13331_s5 + $0xf74] ss:$40 sps:$4 sm:$0xff]  }
 0x43e   :  { %6791 = vmatprep.subr.bf16.mxu0 %v9877_v4  ;;  %8832 = vmatpush3.bf16.msra.mxu1 %v9945_v5  ;;  %v9941_v4 = vld [vmem:[%s13331_s5 + $0xf70] ss:$40 sps:$4 sm:$0xff]   ;;  %v9948_v5 = vld [vmem:[%s13331_s5 + $0xfc4] ss:$40 sps:$4 sm:$0xff]  }
 0x43f   :  { %8833 = vmatprep.subr.bf16.mxu1 %v9949_v6  ;;  %v9946_v6 = vld [vmem:[%s13331_s5 + $0xfc0] ss:$40 sps:$4 sm:$0xff]  }
 0x441   :  { %6792 = vmatpush1.bf16.msra.mxu0 %v9875_v7  ;;  %v9958_v7 = vld [vmem:[%s13331_s5 + $0x1064] ss:$40 sps:$4 sm:$0xff]  }
 0x442   :  { %6793 = vmatprep.subr.bf16.mxu0 %v9880_v30  ;;  %8834 = vmatpush3.bf16.msra.mxu1 %v9950_v20  ;;  %v9956_v30 = vld [vmem:[%s13331_s5 + $0x1060] ss:$40 sps:$4 sm:$0xff]   ;;  %v9963_v20 = vld [vmem:[%s13331_s5 + $0x10b4] ss:$40 sps:$4 sm:$0xff]  }
 0x443   :  { %8835 = vmatprep.subr.bf16.mxu1 %v9954_v8  ;;  %v2837_v8 = vrot.slane %v12418_v61, %v528_v32 }
 0x445   :  { %6794 = vmatpush1.bf16.msra.mxu0 %v9878_v10  ;;  %v2841_v10 = vrot.slane %v12418_v61, %v532_v35  ;;  %v9966_v35 = vld [vmem:[%s13331_s5 + $0x1100] ss:$40 sps:$4 sm:$0xff]  }
 0x446   :  { %6795 = vmatprep.subr.bf16.mxu0 %v9883_v9  ;;  %8836 = vmatpush3.bf16.msra.mxu1 %v9955_v52  ;;  %v9961_v9 = vld [vmem:[%s13331_s5 + $0x10b0] ss:$40 sps:$4 sm:$0xff]   ;;  %v9968_v52 = vld [vmem:[%s13331_s5 + $0x1104] ss:$40 sps:$4 sm:$0xff]  }
 0x447   :  { %8837 = vmatprep.subr.bf16.mxu1 %v9959_v14 }
 0x449   :  { %6796 = vmatpush1.bf16.msra.mxu0 %v9881_v11 }
 0x44a   :  { %6806 = vmatprep.subr.bf16.mxu0 %v9886_v13  ;;  %8838 = vmatpush3.bf16.msra.mxu1 %v9960_v17 }
 0x44b   :  { %8839 = vmatprep.subr.bf16.mxu1 %v9964_v19  ;;  %v9971_v19 = vld [vmem:[%s13331_s5 + $0x1154] ss:$40 sps:$4 sm:$0xff]  }
 0x44c   :  { %6798 = vmatmul.mubr.bf16.vlgmr.msra.gmra.mrb[24].mxu0 %v11357_v23  ;;  %v9895_v23 = vld [vmem:[%s13331_s5 + $0xb14] ss:$40 sps:$4 sm:$0xff]  }
 0x44d   :  { %6807 = vmatpush1.bf16.msra.mxu0 %v9884_v22  ;;  %6838 = vmatprep.mubr.bf16.mxu0 %v11416_v53  ;;  %v9893_v53 = vld [vmem:[%s13331_s5 + $0xb10] ss:$40 sps:$4 sm:$0xff]  }
 0x44e   :  { %6808 = vmatprep.subr.bf16.mxu0 %v9889_v24  ;;  %8840 = vmatpush3.bf16.msra.mxu1 %v9965_v25  ;;  %v9976_v25 = vld [vmem:[%s13333_s7 + $0x180] sm:$0xff]  }
 0x44f   :  { %8847 = vmatprep.subr.bf16.mxu1 %v9972_v29 }
 0x451   :  { %6809 = vmatpush1.bf16.msra.mxu0 %v9887_v26  ;;  %v9977_v26 = vld [vmem:[%s13333_s7 + $0x1c8] sm:$0xff]  }
 0x452   :  { %6810 = vmatprep.subr.bf16.mxu0 %v9892_v27  ;;  %v9969_v27 = vld [vmem:[%s13331_s5 + $0x1150] ss:$40 sps:$4 sm:$0xff]  }
 0x455   :  { %6811 = vmatpush1.bf16.msra.mxu0 %v9890_v28  ;;  %v9975_v28 = vld [vmem:[%s13331_s5 + $0x11a4] ss:$40 sps:$4 sm:$0xff]  }
 0x456   :  { %6812 = vmatprep.subr.bf16.mxu0 %v9895_v23  ;;  %v9981_v23 = vld [vmem:[%s13333_s7 + $0x188] sm:$0xff]  }
 0x459   :  { %6813 = vmatpush1.bf16.msra.mxu0 %v9893_v53  ;;  %v9982_v53 = vld [vmem:[%s13333_s7 + $0x1d0] sm:$0xff]  }
 0x45a   :  { %6814 = vmatprep.subr.bf16.mxu0 %v9898_v36  ;;  %v9973_v36 = vld [vmem:[%s13331_s5 + $0x11a0] ss:$40 sps:$4 sm:$0xff]  }
 0x45d   :  { %6815 = vmatpush1.bf16.msra.mxu0 %v9896_v37  ;;  %v9980_v37 = vld [vmem:[%s13331_s5 + $0x11f4] ss:$40 sps:$4 sm:$0xff]  }
 0x45e   :  { %6816 = vmatprep.subr.bf16.mxu0 %v9901_v60  ;;  %v9986_v60 = vld [vmem:[%s13333_s7 + $0x190] sm:$0xff]  }
 0x461   :  { %6817 = vmatpush1.bf16.msra.mxu0 %v9899_v38  ;;  %v9987_v38 = vld [vmem:[%s13333_s7 + $0x1d8] sm:$0xff]  }
 0x462   :  { %6818 = vmatprep.subr.bf16.mxu0 %v9904_v18  ;;  %v9978_v18 = vld [vmem:[%s13331_s5 + $0x11f0] ss:$40 sps:$4 sm:$0xff]  }
 0x465   :  { %6819 = vmatpush1.bf16.msra.mxu0 %v9902_v40  ;;  %v9985_v40 = vld [vmem:[%s13331_s5 + $0x1244] ss:$40 sps:$4 sm:$0xff]  }
 0x466   :  { %6820 = vmatprep.subr.bf16.mxu0 %v9907_v47  ;;  %v9991_v47 = vld [vmem:[%s13333_s7 + $0x198] sm:$0xff]  }
 0x469   :  { %6821 = vmatpush1.bf16.msra.mxu0 %v9905_v41  ;;  %v9992_v41 = vld [vmem:[%s13333_s7 + $0x1e0] sm:$0xff]  }
 0x46a   :  { %6822 = vmatprep.subr.bf16.mxu0 %v9910_v42  ;;  %v9983_v42 = vld [vmem:[%s13331_s5 + $0x1240] ss:$40 sps:$4 sm:$0xff]  }
 0x46d   :  { %6823 = vmatpush1.bf16.msra.mxu0 %v9908_v16  ;;  %v9990_v16 = vld [vmem:[%s13331_s5 + $0x1294] ss:$40 sps:$4 sm:$0xff]  }
 0x46e   :  { %6824 = vmatprep.subr.bf16.mxu0 %v9913_v43  ;;  %v9996_v43 = vld [vmem:[%s13333_s7 + $0x1a0] sm:$0xff]  }
 0x471   :  { %6825 = vmatpush1.bf16.msra.mxu0 %v9911_v44  ;;  %v9997_v44 = vld [vmem:[%s13333_s7 + $0x1e8] sm:$0xff]  }
 0x472   :  { %6826 = vmatprep.subr.bf16.mxu0 %v9916_v45  ;;  %v9988_v45 = vld [vmem:[%s13331_s5 + $0x1290] ss:$40 sps:$4 sm:$0xff]  }
 0x475   :  { %6827 = vmatpush1.bf16.msra.mxu0 %v9914_v39  ;;  %v9995_v39 = vld [vmem:[%s13331_s5 + $0x12e4] ss:$40 sps:$4 sm:$0xff]  }
 0x476   :  { %6828 = vmatprep.subr.bf16.mxu0 %v9919_v46  ;;  %v10001_v46 = vld [vmem:[%s13333_s7 + $0x1a8] sm:$0xff]  }
 0x479   :  { %6829 = vmatpush1.bf16.msra.mxu0 %v9917_v49  ;;  %v10002_v49 = vld [vmem:[%s13333_s7 + $0x1f0] sm:$0xff]  }
 0x47a   :  { %6830 = vmatprep.subr.bf16.mxu0 %v9922_v50  ;;  %v9993_v50 = vld [vmem:[%s13331_s5 + $0x12e0] ss:$40 sps:$4 sm:$0xff]  }
 0x47d   :  { %6831 = vmatpush1.bf16.msra.mxu0 %v9920_v51  ;;  %v10000_v51 = vld [vmem:[%s13331_s5 + $0x1334] ss:$40 sps:$4 sm:$0xff]  }
 0x47e   :  { %6832 = vmatprep.subr.bf16.mxu0 %v9925_v55  ;;  %v10006_v55 = vld [vmem:[%s13333_s7 + $0x1b0] sm:$0xff]  }
 0x481   :  { %6833 = vmatpush1.bf16.msra.mxu0 %v9923_v57  ;;  %v10007_v57 = vld [vmem:[%s13333_s7 + $0x1f8] sm:$0xff]  }
 0x482   :  { %6834 = vmatprep.subr.bf16.mxu0 %v9928_v12  ;;  %v9998_v12 = vld [vmem:[%s13331_s5 + $0x1330] ss:$40 sps:$4 sm:$0xff]  }
 0x485   :  { %6835 = vmatpush1.bf16.msra.mxu0 %v9926_v59  ;;  %v10005_v59 = vld [vmem:[%s13331_s5 + $0x1384] ss:$40 sps:$4 sm:$0xff]  }
 0x486   :  { %6836 = vmatprep.subr.bf16.mxu0 %v9933_v63  ;;  %v10011_v63 = vld [vmem:[%s13333_s7 + $0x1b8] sm:$0xff]  }
 0x489   :  { %6837 = vmatpush1.bf16.msra.mxu0 %v9931_v0  ;;  %v10023_v0 = vld [vmem:[%s13332_s6] sm:$0xff] }
 0x48a   :  { %6847 = vmatprep.subr.bf16.mxu0 %v9938_v1  ;;  %v2845_v1 = vrot.slane %v10023_v0, %v536_v58  ;;  %v10008_v58 = vld [vmem:[%s13331_s5 + $0x13d0] ss:$40 sps:$4 sm:$0xff]  }
 0x48c   :  { %6839 = vmatmul.mubr.bf16.vlgmr.msra.gmra.mrb[24].mxu0 %v11570_v56  ;;  %v9953_v56 = vld [vmem:[%s13331_s5 + $0x1014] ss:$40 sps:$4 sm:$0xff]  }
 0x48d   :  { %6848 = vmatpush1.bf16.msra.mxu0 %v9936_v15  ;;  %6879 = vmatprep.mubr.bf16.mxu0 %v11768_v21  ;;  %v9951_v21 = vld [vmem:[%s13331_s5 + $0x1010] ss:$40 sps:$4 sm:$0xff]   ;;  %v10003_v15 = vld [vmem:[%s13331_s5 + $0x1380] ss:$40 sps:$4 sm:$0xff]  }
 0x48e   :  { %6849 = vmatprep.subr.bf16.mxu0 %v9943_v2  ;;  %v2849_v2 = vrot.slane %v10023_v0, %v540_v62 }
 0x491   :  { %6850 = vmatpush1.bf16.msra.mxu0 %v9941_v4  ;;  %v10010_v4 = vld [vmem:[%s13331_s5 + $0x13d4] ss:$40 sps:$4 sm:$0xff]  }
 0x492   :  { %6851 = vmatprep.subr.bf16.mxu0 %v9948_v5 }
 0x495   :  { %6852 = vmatpush1.bf16.msra.mxu0 %v9946_v6 }
 0x496   :  { %6853 = vmatprep.subr.bf16.mxu0 %v9953_v56 }
 0x499   :  { %6854 = vmatpush1.bf16.msra.mxu0 %v9951_v21 }
 0x49a   :  { %6855 = vmatprep.subr.bf16.mxu0 %v9958_v7 }
 0x49d   :  { %6856 = vmatpush1.bf16.msra.mxu0 %v9956_v30 }
 0x49e   :  { %6857 = vmatprep.subr.bf16.mxu0 %v9963_v20 }
 0x49f   :  { %v6553_v14 = vpop.f32.mrb[20].mxu0 }
 0x4a0   :  { %v13136_v11 = vadd.f32 %v6553_v14, %v2837_v8  ;;  %v6555_v13 = vpop.f32.mrb[21].mxu0 }
 0x4a1   :  { %v13138_v17 = vadd.f32 %v6555_v13, %v2841_v10  ;;  %v6557_v32 = vpop.f32.mrb[22].mxu0  ;;  %6858 = vmatpush1.bf16.msra.mxu0 %v9961_v9 }
 0x4a2   :  { %v6558_v61 = vpop.f32.mrb[23].mxu0  ;;  %6859 = vmatprep.subr.bf16.mxu0 %v9968_v52  ;;  %v6953_v29 = vpack.c.bf16 %v13136_v11, %v13136_v11 }
 0x4a3   :  { %v6915_v22 = vcombine.low %v13136_v11, %v13138_v17  ;;  %v6954_v24 = vpack.c.bf16 %v13138_v17, %v13138_v17  ;;  %v10012_v61 = vld [vmem:[%s13333_s7 + $0x200] sm:$0xff]   ;;  %v10013_v11 = vld [vmem:[%s13333_s7 + $0x208] sm:$0xff]  }
 0x4a4   :  { %v8704_v17 = vld [vmem:[#allocation2] ss:$0 sm:$0xff] }
 0x4a5   :  { %6860 = vmatpush1.bf16.msra.mxu0 %v9966_v35  ;;  %7682 = vmatprep.mubr.bf16.mxu1 %v6954_v24  ;;  %v6923_v8 = vrot.slane %v6915_v22, %v12568_v54 }
 0x4a6   :  { %7683 = vmatmul.mubr.bf16.vlgmr.msra.gmra.mrb[28].mxu1 %v6953_v29  ;;  %6861 = vmatprep.subr.bf16.mxu0 %v9971_v19  ;;  %v10015_v19 = vld [vmem:[%s13333_s7 + $0x218] sm:$0xff]  }
 0x4a7   :  { %8848 = vmatpush3.bf16.msra.mxu1 %v9976_v25 }
 0x4a8   :  { %8849 = vmatprep.subr.bf16.mxu1 %v9977_v26 }
 0x4a9   :  { %6862 = vmatpush1.bf16.msra.mxu0 %v9969_v27 }
 0x4aa   :  { %6863 = vmatprep.subr.bf16.mxu0 %v9975_v28  ;;  %v10016_v28 = vld [vmem:[%s13333_s7 + $0x220] sm:$0xff]  }
 0x4ab   :  { %8850 = vmatpush3.bf16.msra.mxu1 %v9981_v23 }
 0x4ac   :  { %8851 = vmatprep.subr.bf16.mxu1 %v9982_v53  ;;  %v10017_v53 = vld [vmem:[%s13333_s7 + $0x228] sm:$0xff]  }
 0x4ad   :  { %6864 = vmatpush1.bf16.msra.mxu0 %v9973_v36  ;;  %v10018_v36 = vld [vmem:[%s13333_s7 + $0x230] sm:$0xff]  }
 0x4ae   :  { %6865 = vmatprep.subr.bf16.mxu0 %v9980_v37  ;;  %v10019_v37 = vld [vmem:[%s13333_s7 + $0x238] sm:$0xff]  }
 0x4af   :  { %8852 = vmatpush3.bf16.msra.mxu1 %v9986_v60  ;;  %v10020_v60 = vld [vmem:[%s13333_s7 + $0x240] sm:$0xff]  }
 0x4b0   :  { %8853 = vmatprep.subr.bf16.mxu1 %v9987_v38  ;;  %v10021_v38 = vld [vmem:[%s13333_s7 + $0x248] sm:$0xff]  }
 0x4b1   :  { %6866 = vmatpush1.bf16.msra.mxu0 %v9978_v18  ;;  %v10022_v18 = vld [vmem:[%s13333_s7 + $0x250] sm:$0xff]  }
 0x4b2   :  { %6867 = vmatprep.subr.bf16.mxu0 %v9985_v40 }
 0x4b3   :  { %8854 = vmatpush3.bf16.msra.mxu1 %v9991_v47 }
 0x4b4   :  { %8855 = vmatprep.subr.bf16.mxu1 %v9992_v41 }
 0x4b5   :  { %6868 = vmatpush1.bf16.msra.mxu0 %v9983_v42 }
 0x4b6   :  { %6869 = vmatprep.subr.bf16.mxu0 %v9990_v16 }
 0x4b7   :  { %8856 = vmatpush3.bf16.msra.mxu1 %v9996_v43 }
 0x4b8   :  { %8857 = vmatprep.subr.bf16.mxu1 %v9997_v44  ;;  %v2815_v44 = vld [vmem:[%s13332_s6 + $0x8] sm:$0x3]  ;;  %s10050_s6 = smov [#allocation3]  }
 0x4b9   :  { %6870 = vmatpush1.bf16.msra.mxu0 %v9988_v45  ;;  %v2853_v45 = vrot.slane %v2815_v44, %v10386_v33 }
 0x4ba   :  { %6871 = vmatprep.subr.bf16.mxu0 %v9995_v39  ;;  %v2857_v39 = vrot.slane %v2815_v44, %v10389_v34 }
 0x4bb   :  { %8858 = vmatpush3.bf16.msra.mxu1 %v10001_v46 }
 0x4bc   :  { %8859 = vmatprep.subr.bf16.mxu1 %v10002_v49 }
 0x4bd   :  { %6872 = vmatpush1.bf16.msra.mxu0 %v9993_v50 }
 0x4be   :  { %6873 = vmatprep.subr.bf16.mxu0 %v10000_v51 }
 0x4bf   :  { %8860 = vmatpush3.bf16.msra.mxu1 %v10006_v55 }
 0x4c0   :  { %8861 = vmatprep.subr.bf16.mxu1 %v10007_v57 }
 0x4c1   :  { %6874 = vmatpush1.bf16.msra.mxu0 %v9998_v12 }
 0x4c2   :  { %6875 = vmatprep.subr.bf16.mxu0 %v10005_v59 }
 0x4c3   :  { %8862 = vmatpush3.bf16.msra.mxu1 %v10011_v63 }
 0x4c4   :  { %v6717_v5 = vpop.f32.mrb[16].mxu1  ;;  %7730 = vmatprep.subr.bf16.mxu1 %v10048_v3 }
 0x4c5   :  { %v8885_v6 = vadd.f32 %v6717_v5, %v2845_v1  ;;  %v6719_v56 = vpop.f32.mrb[17].mxu1  ;;  %6876 = vmatpush1.bf16.msra.mxu0 %v10003_v15 }
 0x4c6   :  { %v8886_v21 = vadd.f32 %v6719_v56, %v2849_v2  ;;  %v6721_v7 = vpop.f32.mrb[18].mxu1  ;;  %6877 = vmatprep.subr.bf16.mxu0 %v10010_v4 }
 0x4c7   :  { %v6722_v31 = vpop.f32.mrb[19].mxu1  ;;  %v6955_v20 = vpack.c.bf16 %v8885_v6, %v8885_v6 }
 0x4c8   :  { %v6916_v62 = vcombine.low %v8885_v6, %v8886_v21  ;;  %v6956_v30 = vpack.c.bf16 %v8886_v21, %v8886_v21 }
 0x4c9   :  { %6878 = vmatpush1.bf16.msra.mxu0 %v10008_v58 }
 0x4ca   :  { %v6930_v10 = vrot.slane %v6916_v62, %v12568_v54  ;;  %7722 = vmatprep.mubr.bf16.mxu1 %v6956_v30 }
 0x4cb   :  { %7723 = vmatmul.mubr.bf16.vlgmr.msra.gmra.mrb[32].mxu1 %v6955_v20 }
 0x4cc   :  { %6880 = vmatmul.mubr.bf16.vlgmr.msra.gmra.mrb[24].mxu0 %v11776_v48  ;;  %v6931_v9 = vcombine.low %v6923_v8, %v6930_v10  ;;  %7731 = vmatpush1.bf16.msra.mxu1 %v10012_v61  ;;  %v10014_v48 = vld [vmem:[%s13333_s7 + $0x210] sm:$0xff]   ;;  %s7778_s7 = sshll.u32 %s10050_s6, 4  ;;  %s7779_s7 = int_to_ptr.vmem [resolvable:$true] %s7778_s7 }
 0x4cd   :  { %7732 = vmatprep.subr.bf16.mxu1 %v10048_v3  ;;  %s10024_s29 = scalar_lea.vmem %s7779_s7, 320  ;;  %p10029_p1 = scmp.lt.s32.totalorder %s7779_s7, %s7779_s7 }
 0x4ce   :  { %6944 = vst [vmem:[#allocation3 + $0x8] sm:$0xff] %v6931_v9  ;;  %p10025_p0 = scmp.ne.s32.totalorder %s7779_s7, %s10024_s29  ;;  %p10030_p2 = scmp.lt.s32.totalorder %s10024_s29, %s10024_s29 }
 0x4d0   :  { %7733 = vmatpush1.bf16.msra.mxu1 %v10013_v11  ;;  %p10031_p3 = por %p10030_p2, %p10029_p1 }
 0x4d1   :  { %7734 = vmatprep.subr.bf16.mxu1 %v10048_v3 }
 0x4d2   :  { %p10032_p4 = pnand %p10031_p3, %p10025_p0 }
 0x4d4   :  { %7735 = vmatpush1.bf16.msra.mxu1 %v10014_v48 }
 0x4d5   :  { %7736 = vmatprep.subr.bf16.mxu1 %v10048_v3 }
 0x4d8   :  { %7737 = vmatpush1.bf16.msra.mxu1 %v10015_v19 }
 0x4d9   :  { %7738 = vmatprep.subr.bf16.mxu1 %v10048_v3 }
 0x4dc   :  { %7739 = vmatpush1.bf16.msra.mxu1 %v10016_v28 }
 0x4dd   :  { %7740 = vmatprep.subr.bf16.mxu1 %v10048_v3 }
 0x4e0   :  { %7741 = vmatpush1.bf16.msra.mxu1 %v10017_v53 }
 0x4e1   :  { %7742 = vmatprep.subr.bf16.mxu1 %v10048_v3 }
 0x4e4   :  { %v8797_v52 = vpop.f32.mrb[20].mxu1  ;;  %7743 = vmatpush1.bf16.msra.mxu1 %v10018_v36 }
 0x4e5   :  { %v8798_v14 = vpop.f32.mrb[21].mxu1  ;;  %7744 = vmatprep.subr.bf16.mxu1 %v10048_v3 }
 0x4e6   :  { %v8799_v13 = vadd.f32 %v8798_v14, %v8797_v52  ;;  %v8800_v32 = vpop.f32.mrb[22].mxu1 }
 0x4e7   :  { %v8801_v35 = vpop.f32.mrb[23].mxu1 }
 0x4e8   :  { %v7605_v25 = vadd.f32 %v8799_v13, %v8704_v17  ;;  %7745 = vmatpush1.bf16.msra.mxu1 %v10019_v37 }
 0x4e9   :  { %7746 = vmatprep.subr.bf16.mxu1 %v10048_v3 }
 0x4ec   :  { %7747 = vmatpush1.bf16.msra.mxu1 %v10020_v60 }
 0x4ed   :  { %7748 = vmatprep.subr.bf16.mxu1 %v10048_v3 }
 0x4f0   :  { %7749 = vmatpush1.bf16.msra.mxu1 %v10021_v38 }
 0x4f1   :  { %7750 = vmatprep.subr.bf16.mxu1 %v10048_v3 }
 0x4f4   :  { %7751 = vmatpush1.bf16.msra.mxu1 %v10022_v18 }
 0x504   :  { %v8819_v22 = vpop.f32.mrb[24].mxu1 }
 0x505   :  { %v8820_v24 = vpop.f32.mrb[25].mxu1 }
 0x506   :  { %v8821_v29 = vadd.f32 %v8820_v24, %v8819_v22  ;;  %v8822_v26 = vpop.f32.mrb[26].mxu1 }
 0x507   :  { %v8823_v27 = vpop.f32.mrb[27].mxu1 }
 0x508   :  { %v7645_v23 = vadd.f32 %v8821_v29, %v7605_v25 }
 0x579   :  { %v8841_v40 = vpop.f32.mrb[28].mxu1 }
 0x57a   :  { %v8842_v47 = vpop.f32.mrb[29].mxu1 }
 0x57b   :  { %v8843_v41 = vadd.f32 %v8842_v47, %v8841_v40  ;;  %v8844_v42 = vpop.f32.mrb[30].mxu1 }
 0x57c   :  { %v8845_v16 = vpop.f32.mrb[31].mxu1 }
 0x57d   :  { %v7685_v43 = vadd.f32 %v8843_v41, %v7645_v23 }
 0x59e   :  { %v8863_v3 = vpop.f32.mrb[32].mxu1 }
 0x59f   :  { %v6881_v46 = vpop.f32.mrb[24].mxu0  ;;  %v8864_v49 = vpop.f32.mrb[33].mxu1 }
 0x5a0   :  { %v8887_v50 = vadd.f32 %v6881_v46, %v2853_v45  ;;  %v8865_v51 = vadd.f32 %v8864_v49, %v8863_v3  ;;  %v6883_v55 = vpop.f32.mrb[25].mxu0  ;;  %v8866_v57 = vpop.f32.mrb[34].mxu1 }
 0x5a1   :  { %v8888_v12 = vadd.f32 %v6883_v55, %v2857_v39  ;;  %v6885_v59 = vpop.f32.mrb[26].mxu0  ;;  %v8867_v63 = vpop.f32.mrb[35].mxu1 }
 0x5a2   :  { %v6886_v0 = vpop.f32.mrb[27].mxu0  ;;  %v7725_v1 = vadd.f32 %v8865_v51, %v7685_v43  ;;  %v6957_v33 = vpack.c.bf16 %v8887_v50, %v8887_v50 }
 0x5a3   :  { %v6932_v15 = vcombine.low %v8887_v50, %v8888_v12  ;;  %v6958_v2 = vpack.c.bf16 %v8888_v12, %v8888_v12 }
 0x5a5   :  { %v6939_v34 = vrot.slane %v6932_v15, %v12568_v54  ;;  %8780 = vmatprep.mubr.msk.bf16.mxu1 %vm7566_vm3, %v6958_v2 }
 0x5a6   :  { %7763 = vmatmul.mubr.bf16.vlgmr.msra.gmra.mrb[36].mxu1 %v6957_v33 }
 0x5a7   :  { %6948 = vst.msk [vmem:[#allocation3 + $0x10] sm:$0xf] %vm6947_vm4, %v6939_v34 }
 0x5a8   :  { %10035 = shalt.err (!%p10032_p4)
}
 0x5a9   :  { %s10036_s5 = scalar_lea.hbm %s13335_s9, 320 }
 0x5aa   :  { %p10037_p5 = scmp.ne.s32.totalorder %s13335_s9, %s10036_s5  ;;  %p10040_p6 = scmp.lt.u32.totalorder %s10036_s5, %s13335_s9 }
 0x5ac   :  { %p10042_p7 = pnand %p10040_p6, %p10037_p5 }
 0x5ae   :  { %10045 = shalt.err (!%p10042_p7)
}
 0x5af   :  { %7781 = dma.vmem_to_hbm [thread:$0]  %s7779_s7, 320, %s13335_s9, [#allocation4]   ;;  %vm7770_vm5 = vcmask 1024  }
 0x679   :  { %v7764_v54 = vpop.f32.mrb[36].mxu1 }
 0x67a   :  { %v7765_v4 = vadd.f32 %v7764_v54, %v7725_v1  ;;  %v7766_v5 = vpop.f32.mrb[37].mxu1 }
 0x67b   :  { %v7767_v6 = vpop.f32.mrb[38].mxu1 }
 0x67c   :  { %7771 = vst.msk [vmem:[%s13336_s10] sm:$0x3] %vm7770_vm5, %v7765_v4  ;;  %v7768_v56 = vpop.f32.mrb[39].mxu1 }
 0x67d   :  { %10046 = dma.done.wait [#allocation4], 320  }
 0x67e   :  { %10047 = vsyncadd [#allocation4], 4294966976 }
 0x67f   :  { %7789 = vsyncpa [#allocation4], 1 }

</bundles_post_ra>
